<compile_context>
chip_gen: v7x
topology: tpu7x:2x2x1
jax: 0.10.0
libtpu: 0.0.40
codegen_flags: <defaults>
</compile_context>

<pallas_src>
import math
from functools import partial

import jax
import jax.numpy as jnp
from jax import lax
from jax.experimental import pallas as pl
from jax.experimental.pallas import tpu as pltpu

VMEM_SPEC = pl.BlockSpec(memory_space=pltpu.MemorySpace.VMEM)

# Fused gate order is [i | f | o | g] (sigmoid gates contiguous first, tanh gate last).
# PyTorch's natural order is [i | f | g | o]; this maps fused slot -> natural gate idx.
_FUSED_GATE_ORDER = (0, 1, 3, 2)


# ----------------------------------------------------------------------------
# Fused whole-model kernel.
#
# Fused-recurrence state layout (width S): [trend_fwd (H) | trend_bwd (H) | vol (H2)]
# (vol part absent for the last, trend-only, recurrence).  Gate layout (width 4S):
# [i | f | o | g], each S wide with the same internal part layout.  whh is (S, 4S)
# block-diagonal so one (B,S) @ (S,4S) matmul per step produces every gate of every
# fused sub-recurrence.
# ----------------------------------------------------------------------------
def _tvl_fused_kernel(*refs, T, B, H, H2):
    f32 = jnp.float32
    S1 = 2 * H + H2          # fused {trend bidir + vol} state width
    S2 = 2 * H               # trend-only (layer 2) state width

    idx = 0

    def take(n):
        nonlocal idx
        out = refs[idx:idx + n]
        idx += n
        return out

    (x_ref,) = take(1)                       # (B, T) lane-dense input
    fused0 = take(5)                         # W_tf, W_tb, W_v, Whh, b   (layer 0)
    fused1 = take(5)                         # W_tf, W_tb, W_v, Whh, b   (layer 1)
    trend2 = take(4)                         # W_f, W_b, Whh, b          (trend layer 2)
    t_attn = take(4)                         # w1, b1, w2_row, b2
    v_attn = take(4)
    t_pred = take(4)
    v_pred = take(4)
    f_pred = take(4)                         # fw1 (2,H4), fb1, fw2_row, fb2
    (out_ref,) = take(1)                     # (B, 3)
    (gxA_ref, gxB_ref) = take(2)             # VMEM scratch (T,B,4*S1), (T,B,4*S2)

    # ---- off-critical-path helpers -------------------------------------------------
    def in_proj(x_stack, w_ref):
        # Batched input->gate projection for all T timesteps at once.
        w = w_ref[...]
        if w.shape[0] == 1:                  # Din == 1: pure broadcast, no MXU
            return x_stack * w
        return jnp.dot(x_stack, w, preferred_element_type=f32)

    def fill_gx(gx_ref, contribs, b_ref):
        # Assemble per-step gate inputs (bias folded in) and stage them in VMEM scratch
        # so the unrolled recurrence reloads one (B, 4S) row per step.
        b = b_ref[...]
        for t in range(T):
            acc = b
            for g_all, rev in contribs:
                tt = (T - 1 - t) if rev else t       # bwd direction consumes reversed time
                acc = acc + g_all[tt * B:(tt + 1) * B]
            gx_ref[t] = acc

    # ---- serial recurrence (the critical path) -------------------------------------
    def run_lstm(gx_ref, whh_ref, S):
        whh = whh_ref[...]                   # (S, 4S) block-diagonal
        h = jnp.zeros((B, S), f32)
        c = jnp.zeros((B, S), f32)
        hs = []
        for t in range(T):                   # fully unrolled (T static)
            gates = gx_ref[t] + jnp.dot(h, whh, preferred_element_type=f32)
            sig = jax.nn.sigmoid(gates[:, :3 * S])       # i | f | o  (contiguous)
            g_g = jnp.tanh(gates[:, 3 * S:4 * S])        # g          (tanh only here)
            c = sig[:, S:2 * S] * c + sig[:, 0:S] * g_g
            h = sig[:, 2 * S:3 * S] * jnp.tanh(c)
            hs.append(h)
        return hs

    lane2h = lax.broadcasted_iota(jnp.int32, (B, 2 * H), 1)

    def bidir_reassemble(hs):
        # Original timestep t: fwd half from recurrence step t, bwd half from step
        # T-1-t.  Halves already sit on the right lanes -> pure lane select.
        return [jnp.where(lane2h < H, hs[t][:, :2 * H], hs[T - 1 - t][:, :2 * H])
                for t in range(T)]

    def attention(y_list, w1_ref, b1_ref, w2_ref, b2_ref):
        Y = jnp.concatenate(y_list, axis=0)                          # (T*B, D) slab
        Hh = jnp.tanh(jnp.dot(Y, w1_ref[...], preferred_element_type=f32) + b1_ref[...])
        s = jnp.sum(Hh * w2_ref[...], axis=-1, keepdims=True) + b2_ref[...]   # (T*B, 1)
        m = s[0:B]
        for t in range(1, T):
            m = jnp.maximum(m, s[t * B:(t + 1) * B])                 # per-batch max over T
        e = jnp.exp(s - jnp.concatenate([m] * T, axis=0))            # ONE exp for all T
        den = e[0:B]
        for t in range(1, T):
            den = den + e[t * B:(t + 1) * B]
        w_col = e * jnp.concatenate([1.0 / den] * T, axis=0)         # softmax weights
        Z = Y * w_col
        out = Z[0:B]
        for t in range(1, T):
            out = out + Z[t * B:(t + 1) * B]
        return out                                                   # (B, D)

    def mlp_head(a, w1_ref, b1_ref, w2_ref, b2_ref):
        hh = jnp.maximum(
            jnp.dot(a, w1_ref[...], preferred_element_type=f32) + b1_ref[...], 0.0)
        return jnp.sum(hh * w2_ref[...], axis=-1, keepdims=True) + b2_ref[...]   # (B,1)

    # ---------------- forward pass ----------------
    # Stack the scalar input over time along sublanes: (T*B, 1).
    x_stack = jnp.concatenate([x_ref[:, t:t + 1] for t in range(T)], axis=0)

    # Fused recurrence 0: trend layer 0 (bidir) + vol layer 0.
    W_tf, W_tb, W_v, Whh0, b0 = fused0
    fill_gx(gxA_ref, [(in_proj(x_stack, W_tf), False),
                      (in_proj(x_stack, W_tb), True),
                      (in_proj(x_stack, W_v), False)], b0)
    hs = run_lstm(gxA_ref, Whh0, S1)
    ys = bidir_reassemble(hs)                                        # T x (B, 2H)
    vs = [hs[t][:, 2 * H:S1] for t in range(T)]                      # T x (B, H2)

    # Fused recurrence 1: trend layer 1 (bidir) + vol layer 1.
    W_tf, W_tb, W_v, Whh1, b1c = fused1
    ys_stack = jnp.concatenate(ys, axis=0)                           # (T*B, 2H)
    vs_stack = jnp.concatenate(vs, axis=0)                           # (T*B, H2)
    fill_gx(gxA_ref, [(in_proj(ys_stack, W_tf), False),
                      (in_proj(ys_stack, W_tb), True),
                      (in_proj(vs_stack, W_v), False)], b1c)
    hs = run_lstm(gxA_ref, Whh1, S1)
    ys = bidir_reassemble(hs)
    vol_out = [hs[t][:, 2 * H:S1] for t in range(T)]                 # final vol outputs

    # Recurrence 2: trend layer 2 (bidirectional only).
    W_f, W_b, Whh2, b2c = trend2
    ys_stack = jnp.concatenate(ys, axis=0)
    fill_gx(gxB_ref, [(in_proj(ys_stack, W_f), False),
                      (in_proj(ys_stack, W_b), True)], b2c)
    hs = run_lstm(gxB_ref, Whh2, S2)
    trend_out = bidir_reassemble(hs)                                 # T x (B, 2H)

    trend_att = attention(trend_out, *t_attn)                        # (B, 2H)
    vol_att = attention(vol_out, *v_attn)                            # (B, H2)

    trend_pred = mlp_head(trend_att, *t_pred)                        # (B, 1)
    vol_pred = mlp_head(vol_att, *v_pred)                            # (B, 1)

    # final layer: cat([trend, vol]) @ fw1 expanded as trend*fw1[0] + vol*fw1[1]
    fw1 = f_pred[0][...]                                             # (2, H4)
    fh = jnp.maximum(trend_pred * fw1[0:1, :] + vol_pred * fw1[1:2, :] + f_pred[1][...],
                     0.0)
    final_pred = jnp.sum(fh * f_pred[2][...], axis=-1, keepdims=True) + f_pred[3][...]

    # Pack the three (B,1) outputs into one lane-packed (B,3) store.
    lane3 = lax.broadcasted_iota(jnp.int32, (B, 3), 1)
    out_ref[...] = jnp.where(lane3 == 0, final_pred,
                             jnp.where(lane3 == 1, trend_pred, vol_pred))


# ----------------------------------------------------------------------------
# Wrapper: single pallas_call for the whole model.
# ----------------------------------------------------------------------------
def tvl_predictor_forward(packed, x, *, hidden_size=32):
    B, T, _ = x.shape
    H = hidden_size
    H2 = H // 2
    S1 = 2 * H + H2
    S2 = 2 * H
    x2 = x[:, :, 0]                                     # (B, T) lane-dense input
    kernel = partial(_tvl_fused_kernel, T=T, B=B, H=H, H2=H2)
    out = pl.pallas_call(
        kernel,
        out_shape=jax.ShapeDtypeStruct((B, 3), jnp.float32),
        in_specs=[VMEM_SPEC] * (1 + len(packed)),
        out_specs=VMEM_SPEC,
        scratch_shapes=[pltpu.VMEM((T, B, 4 * S1), jnp.float32),   # fused-layer gate inputs
                        pltpu.VMEM((T, B, 4 * S2), jnp.float32)],  # trend-layer-2 gate inputs
    )(x2, *packed)
    return out[:, 0:1], out[:, 1:2], out[:, 2:3]        # final, trend, vol


# ----------------------------------------------------------------------------
# Parameter init (PyTorch-style uniform).
# ----------------------------------------------------------------------------
def init_params(key, hidden_size=32):
    H = hidden_size
    H2 = H // 2
    H4 = H // 4
    keys = iter(jax.random.split(key, 64))

    def u(shape, scale):
        return jax.random.uniform(next(keys), shape, jnp.float32, -scale, scale)

    def lstm_dir(din, h):
        k = 1.0 / math.sqrt(h)
        w_ih = u((din, 4 * h), k)                       # transposed PyTorch (4H, Din)
        w_hh = u((h, 4 * h), k)                         # transposed PyTorch (4H, H)
        bias = u((1, 4 * h), k) + u((1, 4 * h), k)      # b_ih + b_hh
        return (w_ih, w_hh, bias)

    def linear(din, dout):
        k = 1.0 / math.sqrt(din)
        return u((din, dout), k), u((1, dout), k)

    trend_lstm = [{"fwd": lstm_dir(1 if l == 0 else 2 * H, H),
                   "bwd": lstm_dir(1 if l == 0 else 2 * H, H)} for l in range(3)]
    vol_lstm = [{"fwd": lstm_dir(1 if l == 0 else H2, H2)} for l in range(2)]

    def attn(d):
        w1, b1 = linear(d, d)
        w2, b2 = linear(d, 1)
        return (w1, b1, w2, b2)

    trend_attn = attn(2 * H)
    vol_attn = attn(H2)
    tw1, tb1 = linear(2 * H, H)
    tw2, tb2 = linear(H, 1)
    vw1, vb1 = linear(H2, H2)
    vw2, vb2 = linear(H2, 1)
    fw1, fb1 = linear(2, H4)
    fw2, fb2 = linear(H4, 1)

    return {"trend_lstm": trend_lstm, "vol_lstm": vol_lstm,
            "trend_attn": trend_attn, "vol_attn": vol_attn,
            "trend_pred": (tw1, tb1, tw2, tb2),
            "vol_pred": (vw1, vb1, vw2, vb2),
            "final": (fw1, fb1, fw2, fb2)}


# ----------------------------------------------------------------------------
# Packing into the kernel's fused, block-diagonal layouts.
# ----------------------------------------------------------------------------
def _pack_fused_layer(tf, tb, v, H, H2):
    """{trend bidir layer + vol layer}: state [tf | tb | v], gates [i | f | o | g]."""
    wif, whf, bf = tf
    wib, whb, bb = tb
    wiv, whv, bv = v
    S = 2 * H + H2
    G = 4 * S
    dT, dV = wif.shape[0], wiv.shape[0]
    W_tf = jnp.zeros((dT, G), jnp.float32)
    W_tb = jnp.zeros((dT, G), jnp.float32)
    W_v = jnp.zeros((dV, G), jnp.float32)
    Whh = jnp.zeros((S, G), jnp.float32)
    Bb = jnp.zeros((1, G), jnp.float32)
    for k, g in enumerate(_FUSED_GATE_ORDER):
        c0 = k * S
        gT = slice(g * H, (g + 1) * H)
        gV = slice(g * H2, (g + 1) * H2)
        W_tf = W_tf.at[:, c0:c0 + H].set(wif[:, gT])
        W_tb = W_tb.at[:, c0 + H:c0 + 2 * H].set(wib[:, gT])
        W_v = W_v.at[:, c0 + 2 * H:c0 + S].set(wiv[:, gV])
        Whh = Whh.at[0:H, c0:c0 + H].set(whf[:, gT])
        Whh = Whh.at[H:2 * H, c0 + H:c0 + 2 * H].set(whb[:, gT])
        Whh = Whh.at[2 * H:S, c0 + 2 * H:c0 + S].set(whv[:, gV])
        Bb = Bb.at[:, c0:c0 + H].set(bf[:, gT])
        Bb = Bb.at[:, c0 + H:c0 + 2 * H].set(bb[:, gT])
        Bb = Bb.at[:, c0 + 2 * H:c0 + S].set(bv[:, gV])
    return W_tf, W_tb, W_v, Whh, Bb


def _pack_bidir_layer(tf, tb, H):
    """Trend-only bidirectional layer: state [tf | tb], gates [i | f | o | g]."""
    wif, whf, bf = tf
    wib, whb, bb = tb
    S = 2 * H
    G = 4 * S
    dT = wif.shape[0]
    W_f = jnp.zeros((dT, G), jnp.float32)
    W_b = jnp.zeros((dT, G), jnp.float32)
    Whh = jnp.zeros((S, G), jnp.float32)
    Bb = jnp.zeros((1, G), jnp.float32)
    for k, g in enumerate(_FUSED_GATE_ORDER):
        c0 = k * S
        gT = slice(g * H, (g + 1) * H)
        W_f = W_f.at[:, c0:c0 + H].set(wif[:, gT])
        W_b = W_b.at[:, c0 + H:c0 + 2 * H].set(wib[:, gT])
        Whh = Whh.at[0:H, c0:c0 + H].set(whf[:, gT])
        Whh = Whh.at[H:2 * H, c0 + H:c0 + 2 * H].set(whb[:, gT])
        Bb = Bb.at[:, c0:c0 + H].set(bf[:, gT])
        Bb = Bb.at[:, c0 + H:c0 + 2 * H].set(bb[:, gT])
    return W_f, W_b, Whh, Bb


def pack_params(natural, hidden_size=32):
    H = hidden_size
    H2 = H // 2
    flat = []
    for l in range(2):                                  # fused {trend l + vol l}
        tl = natural["trend_lstm"][l]
        vl = natural["vol_lstm"][l]
        flat += list(_pack_fused_layer(tl["fwd"], tl["bwd"], vl["fwd"], H, H2))
    t2 = natural["trend_lstm"][2]                       # trend layer 2 alone
    flat += list(_pack_bidir_layer(t2["fwd"], t2["bwd"], H))
    for name in ("trend_attn", "vol_attn", "trend_pred", "vol_pred", "final"):
        w1, b1, w2, b2 = natural[name]
        flat += [w1, b1, w2.T, b2]                      # w2 passed as a (1, D) row
    return tuple(flat)


# ----------------------------------------------------------------------------
# Pure-JAX reference of the PyTorch module (for correctness cross-check).
# ----------------------------------------------------------------------------
def ref_tvl_forward(params, x):
    P = lax.Precision.HIGHEST

    def lstm_dir(xs, w_ih, w_hh, b):
        Tn, Bn, _ = xs.shape
        Hd = w_hh.shape[0]
        h = jnp.zeros((Bn, Hd), jnp.float32)
        c = jnp.zeros((Bn, Hd), jnp.float32)
        ys = []
        for t in range(Tn):
            g = jnp.dot(xs[t], w_ih, precision=P) + jnp.dot(h, w_hh, precision=P) + b
            i = jax.nn.sigmoid(g[:, :Hd])
            f = jax.nn.sigmoid(g[:, Hd:2 * Hd])
            gg = jnp.tanh(g[:, 2 * Hd:3 * Hd])
            o = jax.nn.sigmoid(g[:, 3 * Hd:])
            c = f * c + i * gg
            h = o * jnp.tanh(c)
            ys.append(h)
        return jnp.stack(ys, 0)

    x_t = jnp.transpose(x, (1, 0, 2))
    h = x_t
    for layer in params["trend_lstm"]:
        fwd = lstm_dir(h, *layer["fwd"])
        bwd = jnp.flip(lstm_dir(jnp.flip(h, 0), *layer["bwd"]), 0)
        h = jnp.concatenate([fwd, bwd], axis=-1)
    trend_out = jnp.transpose(h, (1, 0, 2))
    v = x_t
    for layer in params["vol_lstm"]:
        v = lstm_dir(v, *layer["fwd"])
    vol_out = jnp.transpose(v, (1, 0, 2))

    def attn(y, w1, b1, w2, b2):
        s = jnp.tanh(jnp.einsum('btd,de->bte', y, w1, precision=P) + b1)
        s = jnp.einsum('btd,de->bte', s, w2, precision=P) + b2
        w = jax.nn.softmax(s, axis=1)
        return jnp.sum(w * y, axis=1)

    ta = attn(trend_out, *params["trend_attn"])
    va = attn(vol_out, *params["vol_attn"])

    def head(a, w1, b1, w2, b2):
        hh = jnp.maximum(jnp.dot(a, w1, precision=P) + b1, 0.0)
        return jnp.dot(hh, w2, precision=P) + b2

    trend_pred = head(ta, *params["trend_pred"])
    vol_pred = head(va, *params["vol_pred"])
    fw1, fb1, fw2, fb2 = params["final"]
    comb = jnp.concatenate([trend_pred, vol_pred], axis=1)
    final = jnp.dot(jnp.maximum(jnp.dot(comb, fw1, precision=P) + fb1, 0.0),
                    fw2, precision=P) + fb2
    return final, trend_pred, vol_pred


if __name__ == "__main__":
    B, T, HIDDEN = 2, 8, 32
    x = jax.random.normal(jax.random.PRNGKey(0), (B, T, 1), jnp.float32)
    natural = init_params(jax.random.PRNGKey(42), hidden_size=HIDDEN)
    packed = pack_params(natural, hidden_size=HIDDEN)

    fwd = jax.jit(partial(tvl_predictor_forward, hidden_size=HIDDEN))
    final_pred, trend_pred, vol_pred = fwd(packed, x)
    jax.block_until_ready((final_pred, trend_pred, vol_pred))

    assert final_pred.shape == (B, 1)
    assert trend_pred.shape == (B, 1)
    assert vol_pred.shape == (B, 1)
    assert bool(jnp.all(jnp.isfinite(final_pred)))

    # Cross-check the fused kernel against the pure-JAX reference of the module.
    # (Kernel matmuls use default MXU precision; reference uses Precision.HIGHEST.)
    ref_final, ref_trend, ref_vol = jax.jit(ref_tvl_forward)(natural, x)
    err = max(float(jnp.max(jnp.abs(final_pred - ref_final))),
              float(jnp.max(jnp.abs(trend_pred - ref_trend))),
              float(jnp.max(jnp.abs(vol_pred - ref_vol))))
    assert err < 5e-2, f"kernel/reference mismatch: max abs err = {err}"

    print("KERNEL_OK")
</pallas_src>

<mosaic_0001>
module attributes {stable_mosaic.version = 11 : i64} {
  func.func @_tvl_fused_kernel(%arg0: memref<2x8xf32, #tpu.memory_space<vmem>>, %arg1: memref<1x320xf32, #tpu.memory_space<vmem>>, %arg2: memref<1x320xf32, #tpu.memory_space<vmem>>, %arg3: memref<1x320xf32, #tpu.memory_space<vmem>>, %arg4: memref<80x320xf32, #tpu.memory_space<vmem>>, %arg5: memref<1x320xf32, #tpu.memory_space<vmem>>, %arg6: memref<64x320xf32, #tpu.memory_space<vmem>>, %arg7: memref<64x320xf32, #tpu.memory_space<vmem>>, %arg8: memref<16x320xf32, #tpu.memory_space<vmem>>, %arg9: memref<80x320xf32, #tpu.memory_space<vmem>>, %arg10: memref<1x320xf32, #tpu.memory_space<vmem>>, %arg11: memref<64x256xf32, #tpu.memory_space<vmem>>, %arg12: memref<64x256xf32, #tpu.memory_space<vmem>>, %arg13: memref<64x256xf32, #tpu.memory_space<vmem>>, %arg14: memref<1x256xf32, #tpu.memory_space<vmem>>, %arg15: memref<64x64xf32, #tpu.memory_space<vmem>>, %arg16: memref<1x64xf32, #tpu.memory_space<vmem>>, %arg17: memref<1x64xf32, #tpu.memory_space<vmem>>, %arg18: memref<1x1xf32, #tpu.memory_space<vmem>>, %arg19: memref<16x16xf32, #tpu.memory_space<vmem>>, %arg20: memref<1x16xf32, #tpu.memory_space<vmem>>, %arg21: memref<1x16xf32, #tpu.memory_space<vmem>>, %arg22: memref<1x1xf32, #tpu.memory_space<vmem>>, %arg23: memref<64x32xf32, #tpu.memory_space<vmem>>, %arg24: memref<1x32xf32, #tpu.memory_space<vmem>>, %arg25: memref<1x32xf32, #tpu.memory_space<vmem>>, %arg26: memref<1x1xf32, #tpu.memory_space<vmem>>, %arg27: memref<16x16xf32, #tpu.memory_space<vmem>>, %arg28: memref<1x16xf32, #tpu.memory_space<vmem>>, %arg29: memref<1x16xf32, #tpu.memory_space<vmem>>, %arg30: memref<1x1xf32, #tpu.memory_space<vmem>>, %arg31: memref<2x8xf32, #tpu.memory_space<vmem>>, %arg32: memref<1x8xf32, #tpu.memory_space<vmem>>, %arg33: memref<1x8xf32, #tpu.memory_space<vmem>>, %arg34: memref<1x1xf32, #tpu.memory_space<vmem>>, %arg35: memref<2x3xf32, #tpu.memory_space<vmem>>, %arg36: memref<8x2x320xf32, #tpu.memory_space<vmem>>, %arg37: memref<8x2x256xf32, #tpu.memory_space<vmem>>) attributes {dimension_semantics = [], scalar_prefetch = 0 : i64, scratch_operands = 2 : i64, tpu.core_type = #tpu.core_type<tc>} {
    %0 = tpu.iota {dimensions = array<i32: 1>} : vector<2x64xi32>
    %c0 = arith.constant 0 : index
    %c0_0 = arith.constant 0 : index
    %1 = vector.load %arg0[%c0, %c0_0] : memref<2x8xf32, #tpu.memory_space<vmem>>, vector<2x1xf32>
    %c0_1 = arith.constant 0 : index
    %c1 = arith.constant 1 : index
    %2 = vector.load %arg0[%c0_1, %c1] : memref<2x8xf32, #tpu.memory_space<vmem>>, vector<2x1xf32>
    %c0_2 = arith.constant 0 : index
    %c2 = arith.constant 2 : index
    %3 = vector.load %arg0[%c0_2, %c2] : memref<2x8xf32, #tpu.memory_space<vmem>>, vector<2x1xf32>
    %c0_3 = arith.constant 0 : index
    %c3 = arith.constant 3 : index
    %4 = vector.load %arg0[%c0_3, %c3] : memref<2x8xf32, #tpu.memory_space<vmem>>, vector<2x1xf32>
    %c0_4 = arith.constant 0 : index
    %c4 = arith.constant 4 : index
    %5 = vector.load %arg0[%c0_4, %c4] : memref<2x8xf32, #tpu.memory_space<vmem>>, vector<2x1xf32>
    %c0_5 = arith.constant 0 : index
    %c5 = arith.constant 5 : index
    %6 = vector.load %arg0[%c0_5, %c5] : memref<2x8xf32, #tpu.memory_space<vmem>>, vector<2x1xf32>
    %c0_6 = arith.constant 0 : index
    %c6 = arith.constant 6 : index
    %7 = vector.load %arg0[%c0_6, %c6] : memref<2x8xf32, #tpu.memory_space<vmem>>, vector<2x1xf32>
    %c0_7 = arith.constant 0 : index
    %c7 = arith.constant 7 : index
    %8 = vector.load %arg0[%c0_7, %c7] : memref<2x8xf32, #tpu.memory_space<vmem>>, vector<2x1xf32>
    %9 = tpu.concatenate %1, %2, %3, %4, %5, %6, %7, %8 in 0 : vector<2x1xf32>, vector<2x1xf32>, vector<2x1xf32>, vector<2x1xf32>, vector<2x1xf32>, vector<2x1xf32>, vector<2x1xf32>, vector<2x1xf32> -> vector<16x1xf32>
    %c0_8 = arith.constant 0 : index
    %c0_9 = arith.constant 0 : index
    %10 = vector.load %arg1[%c0_8, %c0_9] : memref<1x320xf32, #tpu.memory_space<vmem>>, vector<1x320xf32>
    %11 = vector.broadcast %9 : vector<16x1xf32> to vector<16x320xf32>
    %12 = vector.broadcast %10 : vector<1x320xf32> to vector<16x320xf32>
    %13 = arith.mulf %11, %12 : vector<16x320xf32>
    %c0_10 = arith.constant 0 : index
    %c0_11 = arith.constant 0 : index
    %14 = vector.load %arg2[%c0_10, %c0_11] : memref<1x320xf32, #tpu.memory_space<vmem>>, vector<1x320xf32>
    %15 = vector.broadcast %9 : vector<16x1xf32> to vector<16x320xf32>
    %16 = vector.broadcast %14 : vector<1x320xf32> to vector<16x320xf32>
    %17 = arith.mulf %15, %16 : vector<16x320xf32>
    %c0_12 = arith.constant 0 : index
    %c0_13 = arith.constant 0 : index
    %18 = vector.load %arg3[%c0_12, %c0_13] : memref<1x320xf32, #tpu.memory_space<vmem>>, vector<1x320xf32>
    %19 = vector.broadcast %9 : vector<16x1xf32> to vector<16x320xf32>
    %20 = vector.broadcast %18 : vector<1x320xf32> to vector<16x320xf32>
    %21 = arith.mulf %19, %20 : vector<16x320xf32>
    %c0_14 = arith.constant 0 : index
    %c0_15 = arith.constant 0 : index
    %22 = vector.load %arg5[%c0_14, %c0_15] : memref<1x320xf32, #tpu.memory_space<vmem>>, vector<1x320xf32>
    %23 = vector.extract_strided_slice %13 {offsets = [0, 0], sizes = [2, 320], strides = [1, 1]} : vector<16x320xf32> to vector<2x320xf32>
    %24 = vector.broadcast %22 : vector<1x320xf32> to vector<2x320xf32>
    %25 = arith.addf %24, %23 : vector<2x320xf32>
    %26 = vector.extract_strided_slice %17 {offsets = [14, 0], sizes = [2, 320], strides = [1, 1]} : vector<16x320xf32> to vector<2x320xf32>
    %27 = arith.addf %25, %26 : vector<2x320xf32>
    %28 = vector.extract_strided_slice %21 {offsets = [0, 0], sizes = [2, 320], strides = [1, 1]} : vector<16x320xf32> to vector<2x320xf32>
    %29 = arith.addf %27, %28 : vector<2x320xf32>
    %c0_16 = arith.constant 0 : index
    %c0_17 = arith.constant 0 : index
    %c0_18 = arith.constant 0 : index
    %30 = vector.load %arg36[%c0_16, %c0_17, %c0_18] : memref<8x2x320xf32, #tpu.memory_space<vmem>>, vector<1x2x320xf32>
    %31 = vector.shape_cast %30 : vector<1x2x320xf32> to vector<2x320xf32>
    %32 = vector.shape_cast %29 : vector<2x320xf32> to vector<1x2x320xf32>
    tpu.vector_store %arg36[%c0_16, %c0_17, %c0_18], %32 {strides = array<i32>} : memref<8x2x320xf32, #tpu.memory_space<vmem>>, vector<1x2x320xf32>,
    %33 = vector.extract_strided_slice %13 {offsets = [2, 0], sizes = [2, 320], strides = [1, 1]} : vector<16x320xf32> to vector<2x320xf32>
    %34 = vector.broadcast %22 : vector<1x320xf32> to vector<2x320xf32>
    %35 = arith.addf %34, %33 : vector<2x320xf32>
    %36 = vector.extract_strided_slice %17 {offsets = [12, 0], sizes = [2, 320], strides = [1, 1]} : vector<16x320xf32> to vector<2x320xf32>
    %37 = arith.addf %35, %36 : vector<2x320xf32>
    %38 = vector.extract_strided_slice %21 {offsets = [2, 0], sizes = [2, 320], strides = [1, 1]} : vector<16x320xf32> to vector<2x320xf32>
    %39 = arith.addf %37, %38 : vector<2x320xf32>
    %c1_19 = arith.constant 1 : index
    %c0_20 = arith.constant 0 : index
    %c0_21 = arith.constant 0 : index
    %40 = vector.load %arg36[%c1_19, %c0_20, %c0_21] : memref<8x2x320xf32, #tpu.memory_space<vmem>>, vector<1x2x320xf32>
    %41 = vector.shape_cast %40 : vector<1x2x320xf32> to vector<2x320xf32>
    %42 = vector.shape_cast %39 : vector<2x320xf32> to vector<1x2x320xf32>
    tpu.vector_store %arg36[%c1_19, %c0_20, %c0_21], %42 {strides = array<i32>} : memref<8x2x320xf32, #tpu.memory_space<vmem>>, vector<1x2x320xf32>,
    %43 = vector.extract_strided_slice %13 {offsets = [4, 0], sizes = [2, 320], strides = [1, 1]} : vector<16x320xf32> to vector<2x320xf32>
    %44 = vector.broadcast %22 : vector<1x320xf32> to vector<2x320xf32>
    %45 = arith.addf %44, %43 : vector<2x320xf32>
    %46 = vector.extract_strided_slice %17 {offsets = [10, 0], sizes = [2, 320], strides = [1, 1]} : vector<16x320xf32> to vector<2x320xf32>
    %47 = arith.addf %45, %46 : vector<2x320xf32>
    %48 = vector.extract_strided_slice %21 {offsets = [4, 0], sizes = [2, 320], strides = [1, 1]} : vector<16x320xf32> to vector<2x320xf32>
    %49 = arith.addf %47, %48 : vector<2x320xf32>
    %c2_22 = arith.constant 2 : index
    %c0_23 = arith.constant 0 : index
    %c0_24 = arith.constant 0 : index
    %50 = vector.load %arg36[%c2_22, %c0_23, %c0_24] : memref<8x2x320xf32, #tpu.memory_space<vmem>>, vector<1x2x320xf32>
    %51 = vector.shape_cast %50 : vector<1x2x320xf32> to vector<2x320xf32>
    %52 = vector.shape_cast %49 : vector<2x320xf32> to vector<1x2x320xf32>
    tpu.vector_store %arg36[%c2_22, %c0_23, %c0_24], %52 {strides = array<i32>} : memref<8x2x320xf32, #tpu.memory_space<vmem>>, vector<1x2x320xf32>,
    %53 = vector.extract_strided_slice %13 {offsets = [6, 0], sizes = [2, 320], strides = [1, 1]} : vector<16x320xf32> to vector<2x320xf32>
    %54 = vector.broadcast %22 : vector<1x320xf32> to vector<2x320xf32>
    %55 = arith.addf %54, %53 : vector<2x320xf32>
    %56 = vector.extract_strided_slice %17 {offsets = [8, 0], sizes = [2, 320], strides = [1, 1]} : vector<16x320xf32> to vector<2x320xf32>
    %57 = arith.addf %55, %56 : vector<2x320xf32>
    %58 = vector.extract_strided_slice %21 {offsets = [6, 0], sizes = [2, 320], strides = [1, 1]} : vector<16x320xf32> to vector<2x320xf32>
    %59 = arith.addf %57, %58 : vector<2x320xf32>
    %c3_25 = arith.constant 3 : index
    %c0_26 = arith.constant 0 : index
    %c0_27 = arith.constant 0 : index
    %60 = vector.load %arg36[%c3_25, %c0_26, %c0_27] : memref<8x2x320xf32, #tpu.memory_space<vmem>>, vector<1x2x320xf32>
    %61 = vector.shape_cast %60 : vector<1x2x320xf32> to vector<2x320xf32>
    %62 = vector.shape_cast %59 : vector<2x320xf32> to vector<1x2x320xf32>
    tpu.vector_store %arg36[%c3_25, %c0_26, %c0_27], %62 {strides = array<i32>} : memref<8x2x320xf32, #tpu.memory_space<vmem>>, vector<1x2x320xf32>,
    %63 = vector.extract_strided_slice %13 {offsets = [8, 0], sizes = [2, 320], strides = [1, 1]} : vector<16x320xf32> to vector<2x320xf32>
    %64 = vector.broadcast %22 : vector<1x320xf32> to vector<2x320xf32>
    %65 = arith.addf %64, %63 : vector<2x320xf32>
    %66 = vector.extract_strided_slice %17 {offsets = [6, 0], sizes = [2, 320], strides = [1, 1]} : vector<16x320xf32> to vector<2x320xf32>
    %67 = arith.addf %65, %66 : vector<2x320xf32>
    %68 = vector.extract_strided_slice %21 {offsets = [8, 0], sizes = [2, 320], strides = [1, 1]} : vector<16x320xf32> to vector<2x320xf32>
    %69 = arith.addf %67, %68 : vector<2x320xf32>
    %c4_28 = arith.constant 4 : index
    %c0_29 = arith.constant 0 : index
    %c0_30 = arith.constant 0 : index
    %70 = vector.load %arg36[%c4_28, %c0_29, %c0_30] : memref<8x2x320xf32, #tpu.memory_space<vmem>>, vector<1x2x320xf32>
    %71 = vector.shape_cast %70 : vector<1x2x320xf32> to vector<2x320xf32>
    %72 = vector.shape_cast %69 : vector<2x320xf32> to vector<1x2x320xf32>
    tpu.vector_store %arg36[%c4_28, %c0_29, %c0_30], %72 {strides = array<i32>} : memref<8x2x320xf32, #tpu.memory_space<vmem>>, vector<1x2x320xf32>,
    %73 = vector.extract_strided_slice %13 {offsets = [10, 0], sizes = [2, 320], strides = [1, 1]} : vector<16x320xf32> to vector<2x320xf32>
    %74 = vector.broadcast %22 : vector<1x320xf32> to vector<2x320xf32>
    %75 = arith.addf %74, %73 : vector<2x320xf32>
    %76 = vector.extract_strided_slice %17 {offsets = [4, 0], sizes = [2, 320], strides = [1, 1]} : vector<16x320xf32> to vector<2x320xf32>
    %77 = arith.addf %75, %76 : vector<2x320xf32>
    %78 = vector.extract_strided_slice %21 {offsets = [10, 0], sizes = [2, 320], strides = [1, 1]} : vector<16x320xf32> to vector<2x320xf32>
    %79 = arith.addf %77, %78 : vector<2x320xf32>
    %c5_31 = arith.constant 5 : index
    %c0_32 = arith.constant 0 : index
    %c0_33 = arith.constant 0 : index
    %80 = vector.load %arg36[%c5_31, %c0_32, %c0_33] : memref<8x2x320xf32, #tpu.memory_space<vmem>>, vector<1x2x320xf32>
    %81 = vector.shape_cast %80 : vector<1x2x320xf32> to vector<2x320xf32>
    %82 = vector.shape_cast %79 : vector<2x320xf32> to vector<1x2x320xf32>
    tpu.vector_store %arg36[%c5_31, %c0_32, %c0_33], %82 {strides = array<i32>} : memref<8x2x320xf32, #tpu.memory_space<vmem>>, vector<1x2x320xf32>,
    %83 = vector.extract_strided_slice %13 {offsets = [12, 0], sizes = [2, 320], strides = [1, 1]} : vector<16x320xf32> to vector<2x320xf32>
    %84 = vector.broadcast %22 : vector<1x320xf32> to vector<2x320xf32>
    %85 = arith.addf %84, %83 : vector<2x320xf32>
    %86 = vector.extract_strided_slice %17 {offsets = [2, 0], sizes = [2, 320], strides = [1, 1]} : vector<16x320xf32> to vector<2x320xf32>
    %87 = arith.addf %85, %86 : vector<2x320xf32>
    %88 = vector.extract_strided_slice %21 {offsets = [12, 0], sizes = [2, 320], strides = [1, 1]} : vector<16x320xf32> to vector<2x320xf32>
    %89 = arith.addf %87, %88 : vector<2x320xf32>
    %c6_34 = arith.constant 6 : index
    %c0_35 = arith.constant 0 : index
    %c0_36 = arith.constant 0 : index
    %90 = vector.load %arg36[%c6_34, %c0_35, %c0_36] : memref<8x2x320xf32, #tpu.memory_space<vmem>>, vector<1x2x320xf32>
    %91 = vector.shape_cast %90 : vector<1x2x320xf32> to vector<2x320xf32>
    %92 = vector.shape_cast %89 : vector<2x320xf32> to vector<1x2x320xf32>
    tpu.vector_store %arg36[%c6_34, %c0_35, %c0_36], %92 {strides = array<i32>} : memref<8x2x320xf32, #tpu.memory_space<vmem>>, vector<1x2x320xf32>,
    %93 = vector.extract_strided_slice %13 {offsets = [14, 0], sizes = [2, 320], strides = [1, 1]} : vector<16x320xf32> to vector<2x320xf32>
    %94 = vector.broadcast %22 : vector<1x320xf32> to vector<2x320xf32>
    %95 = arith.addf %94, %93 : vector<2x320xf32>
    %96 = vector.extract_strided_slice %17 {offsets = [0, 0], sizes = [2, 320], strides = [1, 1]} : vector<16x320xf32> to vector<2x320xf32>
    %97 = arith.addf %95, %96 : vector<2x320xf32>
    %98 = vector.extract_strided_slice %21 {offsets = [14, 0], sizes = [2, 320], strides = [1, 1]} : vector<16x320xf32> to vector<2x320xf32>
    %99 = arith.addf %97, %98 : vector<2x320xf32>
    %c7_37 = arith.constant 7 : index
    %c0_38 = arith.constant 0 : index
    %c0_39 = arith.constant 0 : index
    %100 = vector.load %arg36[%c7_37, %c0_38, %c0_39] : memref<8x2x320xf32, #tpu.memory_space<vmem>>, vector<1x2x320xf32>
    %101 = vector.shape_cast %100 : vector<1x2x320xf32> to vector<2x320xf32>
    %102 = vector.shape_cast %99 : vector<2x320xf32> to vector<1x2x320xf32>
    tpu.vector_store %arg36[%c7_37, %c0_38, %c0_39], %102 {strides = array<i32>} : memref<8x2x320xf32, #tpu.memory_space<vmem>>, vector<1x2x320xf32>,
    %c0_40 = arith.constant 0 : index
    %c0_41 = arith.constant 0 : index
    %103 = vector.load %arg4[%c0_40, %c0_41] : memref<80x320xf32, #tpu.memory_space<vmem>>, vector<80x320xf32>
    %cst = arith.constant 0.000000e+00 : f32
    %104 = vector.broadcast %cst : f32 to vector<2x80xf32>
    %cst_42 = arith.constant 0.000000e+00 : f32
    %105 = vector.broadcast %cst_42 : f32 to vector<2x80xf32>
    %c0_43 = arith.constant 0 : index
    %c0_44 = arith.constant 0 : index
    %c0_45 = arith.constant 0 : index
    %106 = vector.load %arg36[%c0_43, %c0_44, %c0_45] : memref<8x2x320xf32, #tpu.memory_space<vmem>>, vector<1x2x320xf32>
    %107 = vector.shape_cast %106 : vector<1x2x320xf32> to vector<2x320xf32>
    %cst_46 = arith.constant dense<0.000000e+00> : vector<2x320xf32>
    %108 = tpu.matmul %104, %103, %cst_46 {dimension_numbers = #tpu.dot_dimension_numbers<[1], [0], [0], [1], [0, 0, 1, 1], [], []>} : vector<2x80xf32>, vector<80x320xf32>, vector<2x320xf32> -> vector<2x320xf32>
    %109 = arith.addf %107, %108 : vector<2x320xf32>
    %110 = vector.extract_strided_slice %109 {offsets = [0, 0], sizes = [2, 240], strides = [1, 1]} : vector<2x320xf32> to vector<2x240xf32>
    %111 = arith.negf %110 : vector<2x240xf32>
    %112 = math.exp %111 : vector<2x240xf32>
    %cst_47 = arith.constant 1.000000e+00 : f32
    %113 = vector.broadcast %cst_47 : f32 to vector<2x240xf32>
    %114 = arith.addf %113, %112 : vector<2x240xf32>
    %115 = arith.divf %113, %114 : vector<2x240xf32>
    %116 = vector.extract_strided_slice %109 {offsets = [0, 240], sizes = [2, 80], strides = [1, 1]} : vector<2x320xf32> to vector<2x80xf32>
    %117 = math.tanh %116 : vector<2x80xf32>
    %118 = vector.extract_strided_slice %115 {offsets = [0, 80], sizes = [2, 80], strides = [1, 1]} : vector<2x240xf32> to vector<2x80xf32>
    %119 = arith.mulf %118, %105 : vector<2x80xf32>
    %120 = vector.extract_strided_slice %115 {offsets = [0, 0], sizes = [2, 80], strides = [1, 1]} : vector<2x240xf32> to vector<2x80xf32>
    %121 = arith.mulf %120, %117 : vector<2x80xf32>
    %122 = arith.addf %119, %121 : vector<2x80xf32>
    %123 = vector.extract_strided_slice %115 {offsets = [0, 160], sizes = [2, 80], strides = [1, 1]} : vector<2x240xf32> to vector<2x80xf32>
    %124 = math.tanh %122 : vector<2x80xf32>
    %125 = arith.mulf %123, %124 : vector<2x80xf32>
    %c1_48 = arith.constant 1 : index
    %c0_49 = arith.constant 0 : index
    %c0_50 = arith.constant 0 : index
    %126 = vector.load %arg36[%c1_48, %c0_49, %c0_50] : memref<8x2x320xf32, #tpu.memory_space<vmem>>, vector<1x2x320xf32>
    %127 = vector.shape_cast %126 : vector<1x2x320xf32> to vector<2x320xf32>
    %cst_51 = arith.constant dense<0.000000e+00> : vector<2x320xf32>
    %128 = tpu.matmul %125, %103, %cst_51 {dimension_numbers = #tpu.dot_dimension_numbers<[1], [0], [0], [1], [0, 0, 1, 1], [], []>} : vector<2x80xf32>, vector<80x320xf32>, vector<2x320xf32> -> vector<2x320xf32>
    %129 = arith.addf %127, %128 : vector<2x320xf32>
    %130 = vector.extract_strided_slice %129 {offsets = [0, 0], sizes = [2, 240], strides = [1, 1]} : vector<2x320xf32> to vector<2x240xf32>
    %131 = arith.negf %130 : vector<2x240xf32>
    %132 = math.exp %131 : vector<2x240xf32>
    %cst_52 = arith.constant 1.000000e+00 : f32
    %133 = vector.broadcast %cst_52 : f32 to vector<2x240xf32>
    %134 = arith.addf %133, %132 : vector<2x240xf32>
    %135 = arith.divf %133, %134 : vector<2x240xf32>
    %136 = vector.extract_strided_slice %129 {offsets = [0, 240], sizes = [2, 80], strides = [1, 1]} : vector<2x320xf32> to vector<2x80xf32>
    %137 = math.tanh %136 : vector<2x80xf32>
    %138 = vector.extract_strided_slice %135 {offsets = [0, 80], sizes = [2, 80], strides = [1, 1]} : vector<2x240xf32> to vector<2x80xf32>
    %139 = arith.mulf %138, %122 : vector<2x80xf32>
    %140 = vector.extract_strided_slice %135 {offsets = [0, 0], sizes = [2, 80], strides = [1, 1]} : vector<2x240xf32> to vector<2x80xf32>
    %141 = arith.mulf %140, %137 : vector<2x80xf32>
    %142 = arith.addf %139, %141 : vector<2x80xf32>
    %143 = vector.extract_strided_slice %135 {offsets = [0, 160], sizes = [2, 80], strides = [1, 1]} : vector<2x240xf32> to vector<2x80xf32>
    %144 = math.tanh %142 : vector<2x80xf32>
    %145 = arith.mulf %143, %144 : vector<2x80xf32>
    %c2_53 = arith.constant 2 : index
    %c0_54 = arith.constant 0 : index
    %c0_55 = arith.constant 0 : index
    %146 = vector.load %arg36[%c2_53, %c0_54, %c0_55] : memref<8x2x320xf32, #tpu.memory_space<vmem>>, vector<1x2x320xf32>
    %147 = vector.shape_cast %146 : vector<1x2x320xf32> to vector<2x320xf32>
    %cst_56 = arith.constant dense<0.000000e+00> : vector<2x320xf32>
    %148 = tpu.matmul %145, %103, %cst_56 {dimension_numbers = #tpu.dot_dimension_numbers<[1], [0], [0], [1], [0, 0, 1, 1], [], []>} : vector<2x80xf32>, vector<80x320xf32>, vector<2x320xf32> -> vector<2x320xf32>
    %149 = arith.addf %147, %148 : vector<2x320xf32>
    %150 = vector.extract_strided_slice %149 {offsets = [0, 0], sizes = [2, 240], strides = [1, 1]} : vector<2x320xf32> to vector<2x240xf32>
    %151 = arith.negf %150 : vector<2x240xf32>
    %152 = math.exp %151 : vector<2x240xf32>
    %cst_57 = arith.constant 1.000000e+00 : f32
    %153 = vector.broadcast %cst_57 : f32 to vector<2x240xf32>
    %154 = arith.addf %153, %152 : vector<2x240xf32>
    %155 = arith.divf %153, %154 : vector<2x240xf32>
    %156 = vector.extract_strided_slice %149 {offsets = [0, 240], sizes = [2, 80], strides = [1, 1]} : vector<2x320xf32> to vector<2x80xf32>
    %157 = math.tanh %156 : vector<2x80xf32>
    %158 = vector.extract_strided_slice %155 {offsets = [0, 80], sizes = [2, 80], strides = [1, 1]} : vector<2x240xf32> to vector<2x80xf32>
    %159 = arith.mulf %158, %142 : vector<2x80xf32>
    %160 = vector.extract_strided_slice %155 {offsets = [0, 0], sizes = [2, 80], strides = [1, 1]} : vector<2x240xf32> to vector<2x80xf32>
    %161 = arith.mulf %160, %157 : vector<2x80xf32>
    %162 = arith.addf %159, %161 : vector<2x80xf32>
    %163 = vector.extract_strided_slice %155 {offsets = [0, 160], sizes = [2, 80], strides = [1, 1]} : vector<2x240xf32> to vector<2x80xf32>
    %164 = math.tanh %162 : vector<2x80xf32>
    %165 = arith.mulf %163, %164 : vector<2x80xf32>
    %c3_58 = arith.constant 3 : index
    %c0_59 = arith.constant 0 : index
    %c0_60 = arith.constant 0 : index
    %166 = vector.load %arg36[%c3_58, %c0_59, %c0_60] : memref<8x2x320xf32, #tpu.memory_space<vmem>>, vector<1x2x320xf32>
    %167 = vector.shape_cast %166 : vector<1x2x320xf32> to vector<2x320xf32>
    %cst_61 = arith.constant dense<0.000000e+00> : vector<2x320xf32>
    %168 = tpu.matmul %165, %103, %cst_61 {dimension_numbers = #tpu.dot_dimension_numbers<[1], [0], [0], [1], [0, 0, 1, 1], [], []>} : vector<2x80xf32>, vector<80x320xf32>, vector<2x320xf32> -> vector<2x320xf32>
    %169 = arith.addf %167, %168 : vector<2x320xf32>
    %170 = vector.extract_strided_slice %169 {offsets = [0, 0], sizes = [2, 240], strides = [1, 1]} : vector<2x320xf32> to vector<2x240xf32>
    %171 = arith.negf %170 : vector<2x240xf32>
    %172 = math.exp %171 : vector<2x240xf32>
    %cst_62 = arith.constant 1.000000e+00 : f32
    %173 = vector.broadcast %cst_62 : f32 to vector<2x240xf32>
    %174 = arith.addf %173, %172 : vector<2x240xf32>
    %175 = arith.divf %173, %174 : vector<2x240xf32>
    %176 = vector.extract_strided_slice %169 {offsets = [0, 240], sizes = [2, 80], strides = [1, 1]} : vector<2x320xf32> to vector<2x80xf32>
    %177 = math.tanh %176 : vector<2x80xf32>
    %178 = vector.extract_strided_slice %175 {offsets = [0, 80], sizes = [2, 80], strides = [1, 1]} : vector<2x240xf32> to vector<2x80xf32>
    %179 = arith.mulf %178, %162 : vector<2x80xf32>
    %180 = vector.extract_strided_slice %175 {offsets = [0, 0], sizes = [2, 80], strides = [1, 1]} : vector<2x240xf32> to vector<2x80xf32>
    %181 = arith.mulf %180, %177 : vector<2x80xf32>
    %182 = arith.addf %179, %181 : vector<2x80xf32>
    %183 = vector.extract_strided_slice %175 {offsets = [0, 160], sizes = [2, 80], strides = [1, 1]} : vector<2x240xf32> to vector<2x80xf32>
    %184 = math.tanh %182 : vector<2x80xf32>
    %185 = arith.mulf %183, %184 : vector<2x80xf32>
    %c4_63 = arith.constant 4 : index
    %c0_64 = arith.constant 0 : index
    %c0_65 = arith.constant 0 : index
    %186 = vector.load %arg36[%c4_63, %c0_64, %c0_65] : memref<8x2x320xf32, #tpu.memory_space<vmem>>, vector<1x2x320xf32>
    %187 = vector.shape_cast %186 : vector<1x2x320xf32> to vector<2x320xf32>
    %cst_66 = arith.constant dense<0.000000e+00> : vector<2x320xf32>
    %188 = tpu.matmul %185, %103, %cst_66 {dimension_numbers = #tpu.dot_dimension_numbers<[1], [0], [0], [1], [0, 0, 1, 1], [], []>} : vector<2x80xf32>, vector<80x320xf32>, vector<2x320xf32> -> vector<2x320xf32>
    %189 = arith.addf %187, %188 : vector<2x320xf32>
    %190 = vector.extract_strided_slice %189 {offsets = [0, 0], sizes = [2, 240], strides = [1, 1]} : vector<2x320xf32> to vector<2x240xf32>
    %191 = arith.negf %190 : vector<2x240xf32>
    %192 = math.exp %191 : vector<2x240xf32>
    %cst_67 = arith.constant 1.000000e+00 : f32
    %193 = vector.broadcast %cst_67 : f32 to vector<2x240xf32>
    %194 = arith.addf %193, %192 : vector<2x240xf32>
    %195 = arith.divf %193, %194 : vector<2x240xf32>
    %196 = vector.extract_strided_slice %189 {offsets = [0, 240], sizes = [2, 80], strides = [1, 1]} : vector<2x320xf32> to vector<2x80xf32>
    %197 = math.tanh %196 : vector<2x80xf32>
    %198 = vector.extract_strided_slice %195 {offsets = [0, 80], sizes = [2, 80], strides = [1, 1]} : vector<2x240xf32> to vector<2x80xf32>
    %199 = arith.mulf %198, %182 : vector<2x80xf32>
    %200 = vector.extract_strided_slice %195 {offsets = [0, 0], sizes = [2, 80], strides = [1, 1]} : vector<2x240xf32> to vector<2x80xf32>
    %201 = arith.mulf %200, %197 : vector<2x80xf32>
    %202 = arith.addf %199, %201 : vector<2x80xf32>
    %203 = vector.extract_strided_slice %195 {offsets = [0, 160], sizes = [2, 80], strides = [1, 1]} : vector<2x240xf32> to vector<2x80xf32>
    %204 = math.tanh %202 : vector<2x80xf32>
    %205 = arith.mulf %203, %204 : vector<2x80xf32>
    %c5_68 = arith.constant 5 : index
    %c0_69 = arith.constant 0 : index
    %c0_70 = arith.constant 0 : index
    %206 = vector.load %arg36[%c5_68, %c0_69, %c0_70] : memref<8x2x320xf32, #tpu.memory_space<vmem>>, vector<1x2x320xf32>
    %207 = vector.shape_cast %206 : vector<1x2x320xf32> to vector<2x320xf32>
    %cst_71 = arith.constant dense<0.000000e+00> : vector<2x320xf32>
    %208 = tpu.matmul %205, %103, %cst_71 {dimension_numbers = #tpu.dot_dimension_numbers<[1], [0], [0], [1], [0, 0, 1, 1], [], []>} : vector<2x80xf32>, vector<80x320xf32>, vector<2x320xf32> -> vector<2x320xf32>
    %209 = arith.addf %207, %208 : vector<2x320xf32>
    %210 = vector.extract_strided_slice %209 {offsets = [0, 0], sizes = [2, 240], strides = [1, 1]} : vector<2x320xf32> to vector<2x240xf32>
    %211 = arith.negf %210 : vector<2x240xf32>
    %212 = math.exp %211 : vector<2x240xf32>
    %cst_72 = arith.constant 1.000000e+00 : f32
    %213 = vector.broadcast %cst_72 : f32 to vector<2x240xf32>
    %214 = arith.addf %213, %212 : vector<2x240xf32>
    %215 = arith.divf %213, %214 : vector<2x240xf32>
    %216 = vector.extract_strided_slice %209 {offsets = [0, 240], sizes = [2, 80], strides = [1, 1]} : vector<2x320xf32> to vector<2x80xf32>
    %217 = math.tanh %216 : vector<2x80xf32>
    %218 = vector.extract_strided_slice %215 {offsets = [0, 80], sizes = [2, 80], strides = [1, 1]} : vector<2x240xf32> to vector<2x80xf32>
    %219 = arith.mulf %218, %202 : vector<2x80xf32>
    %220 = vector.extract_strided_slice %215 {offsets = [0, 0], sizes = [2, 80], strides = [1, 1]} : vector<2x240xf32> to vector<2x80xf32>
    %221 = arith.mulf %220, %217 : vector<2x80xf32>
    %222 = arith.addf %219, %221 : vector<2x80xf32>
    %223 = vector.extract_strided_slice %215 {offsets = [0, 160], sizes = [2, 80], strides = [1, 1]} : vector<2x240xf32> to vector<2x80xf32>
    %224 = math.tanh %222 : vector<2x80xf32>
    %225 = arith.mulf %223, %224 : vector<2x80xf32>
    %c6_73 = arith.constant 6 : index
    %c0_74 = arith.constant 0 : index
    %c0_75 = arith.constant 0 : index
    %226 = vector.load %arg36[%c6_73, %c0_74, %c0_75] : memref<8x2x320xf32, #tpu.memory_space<vmem>>, vector<1x2x320xf32>
    %227 = vector.shape_cast %226 : vector<1x2x320xf32> to vector<2x320xf32>
    %cst_76 = arith.constant dense<0.000000e+00> : vector<2x320xf32>
    %228 = tpu.matmul %225, %103, %cst_76 {dimension_numbers = #tpu.dot_dimension_numbers<[1], [0], [0], [1], [0, 0, 1, 1], [], []>} : vector<2x80xf32>, vector<80x320xf32>, vector<2x320xf32> -> vector<2x320xf32>
    %229 = arith.addf %227, %228 : vector<2x320xf32>
    %230 = vector.extract_strided_slice %229 {offsets = [0, 0], sizes = [2, 240], strides = [1, 1]} : vector<2x320xf32> to vector<2x240xf32>
    %231 = arith.negf %230 : vector<2x240xf32>
    %232 = math.exp %231 : vector<2x240xf32>
    %cst_77 = arith.constant 1.000000e+00 : f32
    %233 = vector.broadcast %cst_77 : f32 to vector<2x240xf32>
    %234 = arith.addf %233, %232 : vector<2x240xf32>
    %235 = arith.divf %233, %234 : vector<2x240xf32>
    %236 = vector.extract_strided_slice %229 {offsets = [0, 240], sizes = [2, 80], strides = [1, 1]} : vector<2x320xf32> to vector<2x80xf32>
    %237 = math.tanh %236 : vector<2x80xf32>
    %238 = vector.extract_strided_slice %235 {offsets = [0, 80], sizes = [2, 80], strides = [1, 1]} : vector<2x240xf32> to vector<2x80xf32>
    %239 = arith.mulf %238, %222 : vector<2x80xf32>
    %240 = vector.extract_strided_slice %235 {offsets = [0, 0], sizes = [2, 80], strides = [1, 1]} : vector<2x240xf32> to vector<2x80xf32>
    %241 = arith.mulf %240, %237 : vector<2x80xf32>
    %242 = arith.addf %239, %241 : vector<2x80xf32>
    %243 = vector.extract_strided_slice %235 {offsets = [0, 160], sizes = [2, 80], strides = [1, 1]} : vector<2x240xf32> to vector<2x80xf32>
    %244 = math.tanh %242 : vector<2x80xf32>
    %245 = arith.mulf %243, %244 : vector<2x80xf32>
    %c7_78 = arith.constant 7 : index
    %c0_79 = arith.constant 0 : index
    %c0_80 = arith.constant 0 : index
    %246 = vector.load %arg36[%c7_78, %c0_79, %c0_80] : memref<8x2x320xf32, #tpu.memory_space<vmem>>, vector<1x2x320xf32>
    %247 = vector.shape_cast %246 : vector<1x2x320xf32> to vector<2x320xf32>
    %cst_81 = arith.constant dense<0.000000e+00> : vector<2x320xf32>
    %248 = tpu.matmul %245, %103, %cst_81 {dimension_numbers = #tpu.dot_dimension_numbers<[1], [0], [0], [1], [0, 0, 1, 1], [], []>} : vector<2x80xf32>, vector<80x320xf32>, vector<2x320xf32> -> vector<2x320xf32>
    %249 = arith.addf %247, %248 : vector<2x320xf32>
    %250 = vector.extract_strided_slice %249 {offsets = [0, 0], sizes = [2, 240], strides = [1, 1]} : vector<2x320xf32> to vector<2x240xf32>
    %251 = arith.negf %250 : vector<2x240xf32>
    %252 = math.exp %251 : vector<2x240xf32>
    %cst_82 = arith.constant 1.000000e+00 : f32
    %253 = vector.broadcast %cst_82 : f32 to vector<2x240xf32>
    %254 = arith.addf %253, %252 : vector<2x240xf32>
    %255 = arith.divf %253, %254 : vector<2x240xf32>
    %256 = vector.extract_strided_slice %249 {offsets = [0, 240], sizes = [2, 80], strides = [1, 1]} : vector<2x320xf32> to vector<2x80xf32>
    %257 = math.tanh %256 : vector<2x80xf32>
    %258 = vector.extract_strided_slice %255 {offsets = [0, 80], sizes = [2, 80], strides = [1, 1]} : vector<2x240xf32> to vector<2x80xf32>
    %259 = arith.mulf %258, %242 : vector<2x80xf32>
    %260 = vector.extract_strided_slice %255 {offsets = [0, 0], sizes = [2, 80], strides = [1, 1]} : vector<2x240xf32> to vector<2x80xf32>
    %261 = arith.mulf %260, %257 : vector<2x80xf32>
    %262 = arith.addf %259, %261 : vector<2x80xf32>
    %263 = vector.extract_strided_slice %255 {offsets = [0, 160], sizes = [2, 80], strides = [1, 1]} : vector<2x240xf32> to vector<2x80xf32>
    %264 = math.tanh %262 : vector<2x80xf32>
    %265 = arith.mulf %263, %264 : vector<2x80xf32>
    %c32_i32 = arith.constant 32 : i32
    %266 = vector.broadcast %c32_i32 : i32 to vector<2x64xi32>
    %267 = arith.cmpi slt, %0, %266 : vector<2x64xi32>
    %268 = vector.extract_strided_slice %125 {offsets = [0, 0], sizes = [2, 64], strides = [1, 1]} : vector<2x80xf32> to vector<2x64xf32>
    %269 = vector.extract_strided_slice %265 {offsets = [0, 0], sizes = [2, 64], strides = [1, 1]} : vector<2x80xf32> to vector<2x64xf32>
    %270 = arith.select %267, %268, %269 : vector<2x64xi1>, vector<2x64xf32>
    %c32_i32_83 = arith.constant 32 : i32
    %271 = vector.broadcast %c32_i32_83 : i32 to vector<2x64xi32>
    %272 = arith.cmpi slt, %0, %271 : vector<2x64xi32>
    %273 = vector.extract_strided_slice %145 {offsets = [0, 0], sizes = [2, 64], strides = [1, 1]} : vector<2x80xf32> to vector<2x64xf32>
    %274 = vector.extract_strided_slice %245 {offsets = [0, 0], sizes = [2, 64], strides = [1, 1]} : vector<2x80xf32> to vector<2x64xf32>
    %275 = arith.select %272, %273, %274 : vector<2x64xi1>, vector<2x64xf32>
    %c32_i32_84 = arith.constant 32 : i32
    %276 = vector.broadcast %c32_i32_84 : i32 to vector<2x64xi32>
    %277 = arith.cmpi slt, %0, %276 : vector<2x64xi32>
    %278 = vector.extract_strided_slice %165 {offsets = [0, 0], sizes = [2, 64], strides = [1, 1]} : vector<2x80xf32> to vector<2x64xf32>
    %279 = vector.extract_strided_slice %225 {offsets = [0, 0], sizes = [2, 64], strides = [1, 1]} : vector<2x80xf32> to vector<2x64xf32>
    %280 = arith.select %277, %278, %279 : vector<2x64xi1>, vector<2x64xf32>
    %c32_i32_85 = arith.constant 32 : i32
    %281 = vector.broadcast %c32_i32_85 : i32 to vector<2x64xi32>
    %282 = arith.cmpi slt, %0, %281 : vector<2x64xi32>
    %283 = vector.extract_strided_slice %185 {offsets = [0, 0], sizes = [2, 64], strides = [1, 1]} : vector<2x80xf32> to vector<2x64xf32>
    %284 = vector.extract_strided_slice %205 {offsets = [0, 0], sizes = [2, 64], strides = [1, 1]} : vector<2x80xf32> to vector<2x64xf32>
    %285 = arith.select %282, %283, %284 : vector<2x64xi1>, vector<2x64xf32>
    %c32_i32_86 = arith.constant 32 : i32
    %286 = vector.broadcast %c32_i32_86 : i32 to vector<2x64xi32>
    %287 = arith.cmpi slt, %0, %286 : vector<2x64xi32>
    %288 = vector.extract_strided_slice %205 {offsets = [0, 0], sizes = [2, 64], strides = [1, 1]} : vector<2x80xf32> to vector<2x64xf32>
    %289 = vector.extract_strided_slice %185 {offsets = [0, 0], sizes = [2, 64], strides = [1, 1]} : vector<2x80xf32> to vector<2x64xf32>
    %290 = arith.select %287, %288, %289 : vector<2x64xi1>, vector<2x64xf32>
    %c32_i32_87 = arith.constant 32 : i32
    %291 = vector.broadcast %c32_i32_87 : i32 to vector<2x64xi32>
    %292 = arith.cmpi slt, %0, %291 : vector<2x64xi32>
    %293 = vector.extract_strided_slice %225 {offsets = [0, 0], sizes = [2, 64], strides = [1, 1]} : vector<2x80xf32> to vector<2x64xf32>
    %294 = vector.extract_strided_slice %165 {offsets = [0, 0], sizes = [2, 64], strides = [1, 1]} : vector<2x80xf32> to vector<2x64xf32>
    %295 = arith.select %292, %293, %294 : vector<2x64xi1>, vector<2x64xf32>
    %c32_i32_88 = arith.constant 32 : i32
    %296 = vector.broadcast %c32_i32_88 : i32 to vector<2x64xi32>
    %297 = arith.cmpi slt, %0, %296 : vector<2x64xi32>
    %298 = vector.extract_strided_slice %245 {offsets = [0, 0], sizes = [2, 64], strides = [1, 1]} : vector<2x80xf32> to vector<2x64xf32>
    %299 = vector.extract_strided_slice %145 {offsets = [0, 0], sizes = [2, 64], strides = [1, 1]} : vector<2x80xf32> to vector<2x64xf32>
    %300 = arith.select %297, %298, %299 : vector<2x64xi1>, vector<2x64xf32>
    %c32_i32_89 = arith.constant 32 : i32
    %301 = vector.broadcast %c32_i32_89 : i32 to vector<2x64xi32>
    %302 = arith.cmpi slt, %0, %301 : vector<2x64xi32>
    %303 = vector.extract_strided_slice %265 {offsets = [0, 0], sizes = [2, 64], strides = [1, 1]} : vector<2x80xf32> to vector<2x64xf32>
    %304 = vector.extract_strided_slice %125 {offsets = [0, 0], sizes = [2, 64], strides = [1, 1]} : vector<2x80xf32> to vector<2x64xf32>
    %305 = arith.select %302, %303, %304 : vector<2x64xi1>, vector<2x64xf32>
    %306 = vector.extract_strided_slice %125 {offsets = [0, 64], sizes = [2, 16], strides = [1, 1]} : vector<2x80xf32> to vector<2x16xf32>
    %307 = vector.extract_strided_slice %145 {offsets = [0, 64], sizes = [2, 16], strides = [1, 1]} : vector<2x80xf32> to vector<2x16xf32>
    %308 = vector.extract_strided_slice %165 {offsets = [0, 64], sizes = [2, 16], strides = [1, 1]} : vector<2x80xf32> to vector<2x16xf32>
    %309 = vector.extract_strided_slice %185 {offsets = [0, 64], sizes = [2, 16], strides = [1, 1]} : vector<2x80xf32> to vector<2x16xf32>
    %310 = vector.extract_strided_slice %205 {offsets = [0, 64], sizes = [2, 16], strides = [1, 1]} : vector<2x80xf32> to vector<2x16xf32>
    %311 = vector.extract_strided_slice %225 {offsets = [0, 64], sizes = [2, 16], strides = [1, 1]} : vector<2x80xf32> to vector<2x16xf32>
    %312 = vector.extract_strided_slice %245 {offsets = [0, 64], sizes = [2, 16], strides = [1, 1]} : vector<2x80xf32> to vector<2x16xf32>
    %313 = vector.extract_strided_slice %265 {offsets = [0, 64], sizes = [2, 16], strides = [1, 1]} : vector<2x80xf32> to vector<2x16xf32>
    %314 = tpu.concatenate %270, %275, %280, %285, %290, %295, %300, %305 in 0 : vector<2x64xf32>, vector<2x64xf32>, vector<2x64xf32>, vector<2x64xf32>, vector<2x64xf32>, vector<2x64xf32>, vector<2x64xf32>, vector<2x64xf32> -> vector<16x64xf32>
    %315 = tpu.concatenate %306, %307, %308, %309, %310, %311, %312, %313 in 0 : vector<2x16xf32>, vector<2x16xf32>, vector<2x16xf32>, vector<2x16xf32>, vector<2x16xf32>, vector<2x16xf32>, vector<2x16xf32>, vector<2x16xf32> -> vector<16x16xf32>
    %c0_90 = arith.constant 0 : index
    %c0_91 = arith.constant 0 : index
    %316 = vector.load %arg6[%c0_90, %c0_91] : memref<64x320xf32, #tpu.memory_space<vmem>>, vector<64x320xf32>
    %cst_92 = arith.constant dense<0.000000e+00> : vector<16x320xf32>
    %317 = tpu.matmul %314, %316, %cst_92 {dimension_numbers = #tpu.dot_dimension_numbers<[1], [0], [0], [1], [0, 0, 1, 1], [], []>} : vector<16x64xf32>, vector<64x320xf32>, vector<16x320xf32> -> vector<16x320xf32>
    %c0_93 = arith.constant 0 : index
    %c0_94 = arith.constant 0 : index
    %318 = vector.load %arg7[%c0_93, %c0_94] : memref<64x320xf32, #tpu.memory_space<vmem>>, vector<64x320xf32>
    %cst_95 = arith.constant dense<0.000000e+00> : vector<16x320xf32>
    %319 = tpu.matmul %314, %318, %cst_95 {dimension_numbers = #tpu.dot_dimension_numbers<[1], [0], [0], [1], [0, 0, 1, 1], [], []>} : vector<16x64xf32>, vector<64x320xf32>, vector<16x320xf32> -> vector<16x320xf32>
    %c0_96 = arith.constant 0 : index
    %c0_97 = arith.constant 0 : index
    %320 = vector.load %arg8[%c0_96, %c0_97] : memref<16x320xf32, #tpu.memory_space<vmem>>, vector<16x320xf32>
    %cst_98 = arith.constant dense<0.000000e+00> : vector<16x320xf32>
    %321 = tpu.matmul %315, %320, %cst_98 {dimension_numbers = #tpu.dot_dimension_numbers<[1], [0], [0], [1], [0, 0, 1, 1], [], []>} : vector<16x16xf32>, vector<16x320xf32>, vector<16x320xf32> -> vector<16x320xf32>
    %c0_99 = arith.constant 0 : index
    %c0_100 = arith.constant 0 : index
    %322 = vector.load %arg10[%c0_99, %c0_100] : memref<1x320xf32, #tpu.memory_space<vmem>>, vector<1x320xf32>
    %323 = vector.extract_strided_slice %317 {offsets = [0, 0], sizes = [2, 320], strides = [1, 1]} : vector<16x320xf32> to vector<2x320xf32>
    %324 = vector.broadcast %322 : vector<1x320xf32> to vector<2x320xf32>
    %325 = arith.addf %324, %323 : vector<2x320xf32>
    %326 = vector.extract_strided_slice %319 {offsets = [14, 0], sizes = [2, 320], strides = [1, 1]} : vector<16x320xf32> to vector<2x320xf32>
    %327 = arith.addf %325, %326 : vector<2x320xf32>
    %328 = vector.extract_strided_slice %321 {offsets = [0, 0], sizes = [2, 320], strides = [1, 1]} : vector<16x320xf32> to vector<2x320xf32>
    %329 = arith.addf %327, %328 : vector<2x320xf32>
    %c0_101 = arith.constant 0 : index
    %c0_102 = arith.constant 0 : index
    %c0_103 = arith.constant 0 : index
    %330 = vector.load %arg36[%c0_101, %c0_102, %c0_103] : memref<8x2x320xf32, #tpu.memory_space<vmem>>, vector<1x2x320xf32>
    %331 = vector.shape_cast %330 : vector<1x2x320xf32> to vector<2x320xf32>
    %332 = vector.shape_cast %329 : vector<2x320xf32> to vector<1x2x320xf32>
    tpu.vector_store %arg36[%c0_101, %c0_102, %c0_103], %332 {strides = array<i32>} : memref<8x2x320xf32, #tpu.memory_space<vmem>>, vector<1x2x320xf32>,
    %333 = vector.extract_strided_slice %317 {offsets = [2, 0], sizes = [2, 320], strides = [1, 1]} : vector<16x320xf32> to vector<2x320xf32>
    %334 = vector.broadcast %322 : vector<1x320xf32> to vector<2x320xf32>
    %335 = arith.addf %334, %333 : vector<2x320xf32>
    %336 = vector.extract_strided_slice %319 {offsets = [12, 0], sizes = [2, 320], strides = [1, 1]} : vector<16x320xf32> to vector<2x320xf32>
    %337 = arith.addf %335, %336 : vector<2x320xf32>
    %338 = vector.extract_strided_slice %321 {offsets = [2, 0], sizes = [2, 320], strides = [1, 1]} : vector<16x320xf32> to vector<2x320xf32>
    %339 = arith.addf %337, %338 : vector<2x320xf32>
    %c1_104 = arith.constant 1 : index
    %c0_105 = arith.constant 0 : index
    %c0_106 = arith.constant 0 : index
    %340 = vector.load %arg36[%c1_104, %c0_105, %c0_106] : memref<8x2x320xf32, #tpu.memory_space<vmem>>, vector<1x2x320xf32>
    %341 = vector.shape_cast %340 : vector<1x2x320xf32> to vector<2x320xf32>
    %342 = vector.shape_cast %339 : vector<2x320xf32> to vector<1x2x320xf32>
    tpu.vector_store %arg36[%c1_104, %c0_105, %c0_106], %342 {strides = array<i32>} : memref<8x2x320xf32, #tpu.memory_space<vmem>>, vector<1x2x320xf32>,
    %343 = vector.extract_strided_slice %317 {offsets = [4, 0], sizes = [2, 320], strides = [1, 1]} : vector<16x320xf32> to vector<2x320xf32>
    %344 = vector.broadcast %322 : vector<1x320xf32> to vector<2x320xf32>
    %345 = arith.addf %344, %343 : vector<2x320xf32>
    %346 = vector.extract_strided_slice %319 {offsets = [10, 0], sizes = [2, 320], strides = [1, 1]} : vector<16x320xf32> to vector<2x320xf32>
    %347 = arith.addf %345, %346 : vector<2x320xf32>
    %348 = vector.extract_strided_slice %321 {offsets = [4, 0], sizes = [2, 320], strides = [1, 1]} : vector<16x320xf32> to vector<2x320xf32>
    %349 = arith.addf %347, %348 : vector<2x320xf32>
    %c2_107 = arith.constant 2 : index
    %c0_108 = arith.constant 0 : index
    %c0_109 = arith.constant 0 : index
    %350 = vector.load %arg36[%c2_107, %c0_108, %c0_109] : memref<8x2x320xf32, #tpu.memory_space<vmem>>, vector<1x2x320xf32>
    %351 = vector.shape_cast %350 : vector<1x2x320xf32> to vector<2x320xf32>
    %352 = vector.shape_cast %349 : vector<2x320xf32> to vector<1x2x320xf32>
    tpu.vector_store %arg36[%c2_107, %c0_108, %c0_109], %352 {strides = array<i32>} : memref<8x2x320xf32, #tpu.memory_space<vmem>>, vector<1x2x320xf32>,
    %353 = vector.extract_strided_slice %317 {offsets = [6, 0], sizes = [2, 320], strides = [1, 1]} : vector<16x320xf32> to vector<2x320xf32>
    %354 = vector.broadcast %322 : vector<1x320xf32> to vector<2x320xf32>
    %355 = arith.addf %354, %353 : vector<2x320xf32>
    %356 = vector.extract_strided_slice %319 {offsets = [8, 0], sizes = [2, 320], strides = [1, 1]} : vector<16x320xf32> to vector<2x320xf32>
    %357 = arith.addf %355, %356 : vector<2x320xf32>
    %358 = vector.extract_strided_slice %321 {offsets = [6, 0], sizes = [2, 320], strides = [1, 1]} : vector<16x320xf32> to vector<2x320xf32>
    %359 = arith.addf %357, %358 : vector<2x320xf32>
    %c3_110 = arith.constant 3 : index
    %c0_111 = arith.constant 0 : index
    %c0_112 = arith.constant 0 : index
    %360 = vector.load %arg36[%c3_110, %c0_111, %c0_112] : memref<8x2x320xf32, #tpu.memory_space<vmem>>, vector<1x2x320xf32>
    %361 = vector.shape_cast %360 : vector<1x2x320xf32> to vector<2x320xf32>
    %362 = vector.shape_cast %359 : vector<2x320xf32> to vector<1x2x320xf32>
    tpu.vector_store %arg36[%c3_110, %c0_111, %c0_112], %362 {strides = array<i32>} : memref<8x2x320xf32, #tpu.memory_space<vmem>>, vector<1x2x320xf32>,
    %363 = vector.extract_strided_slice %317 {offsets = [8, 0], sizes = [2, 320], strides = [1, 1]} : vector<16x320xf32> to vector<2x320xf32>
    %364 = vector.broadcast %322 : vector<1x320xf32> to vector<2x320xf32>
    %365 = arith.addf %364, %363 : vector<2x320xf32>
    %366 = vector.extract_strided_slice %319 {offsets = [6, 0], sizes = [2, 320], strides = [1, 1]} : vector<16x320xf32> to vector<2x320xf32>
    %367 = arith.addf %365, %366 : vector<2x320xf32>
    %368 = vector.extract_strided_slice %321 {offsets = [8, 0], sizes = [2, 320], strides = [1, 1]} : vector<16x320xf32> to vector<2x320xf32>
    %369 = arith.addf %367, %368 : vector<2x320xf32>
    %c4_113 = arith.constant 4 : index
    %c0_114 = arith.constant 0 : index
    %c0_115 = arith.constant 0 : index
    %370 = vector.load %arg36[%c4_113, %c0_114, %c0_115] : memref<8x2x320xf32, #tpu.memory_space<vmem>>, vector<1x2x320xf32>
    %371 = vector.shape_cast %370 : vector<1x2x320xf32> to vector<2x320xf32>
    %372 = vector.shape_cast %369 : vector<2x320xf32> to vector<1x2x320xf32>
    tpu.vector_store %arg36[%c4_113, %c0_114, %c0_115], %372 {strides = array<i32>} : memref<8x2x320xf32, #tpu.memory_space<vmem>>, vector<1x2x320xf32>,
    %373 = vector.extract_strided_slice %317 {offsets = [10, 0], sizes = [2, 320], strides = [1, 1]} : vector<16x320xf32> to vector<2x320xf32>
    %374 = vector.broadcast %322 : vector<1x320xf32> to vector<2x320xf32>
    %375 = arith.addf %374, %373 : vector<2x320xf32>
    %376 = vector.extract_strided_slice %319 {offsets = [4, 0], sizes = [2, 320], strides = [1, 1]} : vector<16x320xf32> to vector<2x320xf32>
    %377 = arith.addf %375, %376 : vector<2x320xf32>
    %378 = vector.extract_strided_slice %321 {offsets = [10, 0], sizes = [2, 320], strides = [1, 1]} : vector<16x320xf32> to vector<2x320xf32>
    %379 = arith.addf %377, %378 : vector<2x320xf32>
    %c5_116 = arith.constant 5 : index
    %c0_117 = arith.constant 0 : index
    %c0_118 = arith.constant 0 : index
    %380 = vector.load %arg36[%c5_116, %c0_117, %c0_118] : memref<8x2x320xf32, #tpu.memory_space<vmem>>, vector<1x2x320xf32>
    %381 = vector.shape_cast %380 : vector<1x2x320xf32> to vector<2x320xf32>
    %382 = vector.shape_cast %379 : vector<2x320xf32> to vector<1x2x320xf32>
    tpu.vector_store %arg36[%c5_116, %c0_117, %c0_118], %382 {strides = array<i32>} : memref<8x2x320xf32, #tpu.memory_space<vmem>>, vector<1x2x320xf32>,
    %383 = vector.extract_strided_slice %317 {offsets = [12, 0], sizes = [2, 320], strides = [1, 1]} : vector<16x320xf32> to vector<2x320xf32>
    %384 = vector.broadcast %322 : vector<1x320xf32> to vector<2x320xf32>
    %385 = arith.addf %384, %383 : vector<2x320xf32>
    %386 = vector.extract_strided_slice %319 {offsets = [2, 0], sizes = [2, 320], strides = [1, 1]} : vector<16x320xf32> to vector<2x320xf32>
    %387 = arith.addf %385, %386 : vector<2x320xf32>
    %388 = vector.extract_strided_slice %321 {offsets = [12, 0], sizes = [2, 320], strides = [1, 1]} : vector<16x320xf32> to vector<2x320xf32>
    %389 = arith.addf %387, %388 : vector<2x320xf32>
    %c6_119 = arith.constant 6 : index
    %c0_120 = arith.constant 0 : index
    %c0_121 = arith.constant 0 : index
    %390 = vector.load %arg36[%c6_119, %c0_120, %c0_121] : memref<8x2x320xf32, #tpu.memory_space<vmem>>, vector<1x2x320xf32>
    %391 = vector.shape_cast %390 : vector<1x2x320xf32> to vector<2x320xf32>
    %392 = vector.shape_cast %389 : vector<2x320xf32> to vector<1x2x320xf32>
    tpu.vector_store %arg36[%c6_119, %c0_120, %c0_121], %392 {strides = array<i32>} : memref<8x2x320xf32, #tpu.memory_space<vmem>>, vector<1x2x320xf32>,
    %393 = vector.extract_strided_slice %317 {offsets = [14, 0], sizes = [2, 320], strides = [1, 1]} : vector<16x320xf32> to vector<2x320xf32>
    %394 = vector.broadcast %322 : vector<1x320xf32> to vector<2x320xf32>
    %395 = arith.addf %394, %393 : vector<2x320xf32>
    %396 = vector.extract_strided_slice %319 {offsets = [0, 0], sizes = [2, 320], strides = [1, 1]} : vector<16x320xf32> to vector<2x320xf32>
    %397 = arith.addf %395, %396 : vector<2x320xf32>
    %398 = vector.extract_strided_slice %321 {offsets = [14, 0], sizes = [2, 320], strides = [1, 1]} : vector<16x320xf32> to vector<2x320xf32>
    %399 = arith.addf %397, %398 : vector<2x320xf32>
    %c7_122 = arith.constant 7 : index
    %c0_123 = arith.constant 0 : index
    %c0_124 = arith.constant 0 : index
    %400 = vector.load %arg36[%c7_122, %c0_123, %c0_124] : memref<8x2x320xf32, #tpu.memory_space<vmem>>, vector<1x2x320xf32>
    %401 = vector.shape_cast %400 : vector<1x2x320xf32> to vector<2x320xf32>
    %402 = vector.shape_cast %399 : vector<2x320xf32> to vector<1x2x320xf32>
    tpu.vector_store %arg36[%c7_122, %c0_123, %c0_124], %402 {strides = array<i32>} : memref<8x2x320xf32, #tpu.memory_space<vmem>>, vector<1x2x320xf32>,
    %c0_125 = arith.constant 0 : index
    %c0_126 = arith.constant 0 : index
    %403 = vector.load %arg9[%c0_125, %c0_126] : memref<80x320xf32, #tpu.memory_space<vmem>>, vector<80x320xf32>
    %cst_127 = arith.constant 0.000000e+00 : f32
    %404 = vector.broadcast %cst_127 : f32 to vector<2x80xf32>
    %cst_128 = arith.constant 0.000000e+00 : f32
    %405 = vector.broadcast %cst_128 : f32 to vector<2x80xf32>
    %c0_129 = arith.constant 0 : index
    %c0_130 = arith.constant 0 : index
    %c0_131 = arith.constant 0 : index
    %406 = vector.load %arg36[%c0_129, %c0_130, %c0_131] : memref<8x2x320xf32, #tpu.memory_space<vmem>>, vector<1x2x320xf32>
    %407 = vector.shape_cast %406 : vector<1x2x320xf32> to vector<2x320xf32>
    %cst_132 = arith.constant dense<0.000000e+00> : vector<2x320xf32>
    %408 = tpu.matmul %404, %403, %cst_132 {dimension_numbers = #tpu.dot_dimension_numbers<[1], [0], [0], [1], [0, 0, 1, 1], [], []>} : vector<2x80xf32>, vector<80x320xf32>, vector<2x320xf32> -> vector<2x320xf32>
    %409 = arith.addf %407, %408 : vector<2x320xf32>
    %410 = vector.extract_strided_slice %409 {offsets = [0, 0], sizes = [2, 240], strides = [1, 1]} : vector<2x320xf32> to vector<2x240xf32>
    %411 = arith.negf %410 : vector<2x240xf32>
    %412 = math.exp %411 : vector<2x240xf32>
    %cst_133 = arith.constant 1.000000e+00 : f32
    %413 = vector.broadcast %cst_133 : f32 to vector<2x240xf32>
    %414 = arith.addf %413, %412 : vector<2x240xf32>
    %415 = arith.divf %413, %414 : vector<2x240xf32>
    %416 = vector.extract_strided_slice %409 {offsets = [0, 240], sizes = [2, 80], strides = [1, 1]} : vector<2x320xf32> to vector<2x80xf32>
    %417 = math.tanh %416 : vector<2x80xf32>
    %418 = vector.extract_strided_slice %415 {offsets = [0, 80], sizes = [2, 80], strides = [1, 1]} : vector<2x240xf32> to vector<2x80xf32>
    %419 = arith.mulf %418, %405 : vector<2x80xf32>
    %420 = vector.extract_strided_slice %415 {offsets = [0, 0], sizes = [2, 80], strides = [1, 1]} : vector<2x240xf32> to vector<2x80xf32>
    %421 = arith.mulf %420, %417 : vector<2x80xf32>
    %422 = arith.addf %419, %421 : vector<2x80xf32>
    %423 = vector.extract_strided_slice %415 {offsets = [0, 160], sizes = [2, 80], strides = [1, 1]} : vector<2x240xf32> to vector<2x80xf32>
    %424 = math.tanh %422 : vector<2x80xf32>
    %425 = arith.mulf %423, %424 : vector<2x80xf32>
    %c1_134 = arith.constant 1 : index
    %c0_135 = arith.constant 0 : index
    %c0_136 = arith.constant 0 : index
    %426 = vector.load %arg36[%c1_134, %c0_135, %c0_136] : memref<8x2x320xf32, #tpu.memory_space<vmem>>, vector<1x2x320xf32>
    %427 = vector.shape_cast %426 : vector<1x2x320xf32> to vector<2x320xf32>
    %cst_137 = arith.constant dense<0.000000e+00> : vector<2x320xf32>
    %428 = tpu.matmul %425, %403, %cst_137 {dimension_numbers = #tpu.dot_dimension_numbers<[1], [0], [0], [1], [0, 0, 1, 1], [], []>} : vector<2x80xf32>, vector<80x320xf32>, vector<2x320xf32> -> vector<2x320xf32>
    %429 = arith.addf %427, %428 : vector<2x320xf32>
    %430 = vector.extract_strided_slice %429 {offsets = [0, 0], sizes = [2, 240], strides = [1, 1]} : vector<2x320xf32> to vector<2x240xf32>
    %431 = arith.negf %430 : vector<2x240xf32>
    %432 = math.exp %431 : vector<2x240xf32>
    %cst_138 = arith.constant 1.000000e+00 : f32
    %433 = vector.broadcast %cst_138 : f32 to vector<2x240xf32>
    %434 = arith.addf %433, %432 : vector<2x240xf32>
    %435 = arith.divf %433, %434 : vector<2x240xf32>
    %436 = vector.extract_strided_slice %429 {offsets = [0, 240], sizes = [2, 80], strides = [1, 1]} : vector<2x320xf32> to vector<2x80xf32>
    %437 = math.tanh %436 : vector<2x80xf32>
    %438 = vector.extract_strided_slice %435 {offsets = [0, 80], sizes = [2, 80], strides = [1, 1]} : vector<2x240xf32> to vector<2x80xf32>
    %439 = arith.mulf %438, %422 : vector<2x80xf32>
    %440 = vector.extract_strided_slice %435 {offsets = [0, 0], sizes = [2, 80], strides = [1, 1]} : vector<2x240xf32> to vector<2x80xf32>
    %441 = arith.mulf %440, %437 : vector<2x80xf32>
    %442 = arith.addf %439, %441 : vector<2x80xf32>
    %443 = vector.extract_strided_slice %435 {offsets = [0, 160], sizes = [2, 80], strides = [1, 1]} : vector<2x240xf32> to vector<2x80xf32>
    %444 = math.tanh %442 : vector<2x80xf32>
    %445 = arith.mulf %443, %444 : vector<2x80xf32>
    %c2_139 = arith.constant 2 : index
    %c0_140 = arith.constant 0 : index
    %c0_141 = arith.constant 0 : index
    %446 = vector.load %arg36[%c2_139, %c0_140, %c0_141] : memref<8x2x320xf32, #tpu.memory_space<vmem>>, vector<1x2x320xf32>
    %447 = vector.shape_cast %446 : vector<1x2x320xf32> to vector<2x320xf32>
    %cst_142 = arith.constant dense<0.000000e+00> : vector<2x320xf32>
    %448 = tpu.matmul %445, %403, %cst_142 {dimension_numbers = #tpu.dot_dimension_numbers<[1], [0], [0], [1], [0, 0, 1, 1], [], []>} : vector<2x80xf32>, vector<80x320xf32>, vector<2x320xf32> -> vector<2x320xf32>
    %449 = arith.addf %447, %448 : vector<2x320xf32>
    %450 = vector.extract_strided_slice %449 {offsets = [0, 0], sizes = [2, 240], strides = [1, 1]} : vector<2x320xf32> to vector<2x240xf32>
    %451 = arith.negf %450 : vector<2x240xf32>
    %452 = math.exp %451 : vector<2x240xf32>
    %cst_143 = arith.constant 1.000000e+00 : f32
    %453 = vector.broadcast %cst_143 : f32 to vector<2x240xf32>
    %454 = arith.addf %453, %452 : vector<2x240xf32>
    %455 = arith.divf %453, %454 : vector<2x240xf32>
    %456 = vector.extract_strided_slice %449 {offsets = [0, 240], sizes = [2, 80], strides = [1, 1]} : vector<2x320xf32> to vector<2x80xf32>
    %457 = math.tanh %456 : vector<2x80xf32>
    %458 = vector.extract_strided_slice %455 {offsets = [0, 80], sizes = [2, 80], strides = [1, 1]} : vector<2x240xf32> to vector<2x80xf32>
    %459 = arith.mulf %458, %442 : vector<2x80xf32>
    %460 = vector.extract_strided_slice %455 {offsets = [0, 0], sizes = [2, 80], strides = [1, 1]} : vector<2x240xf32> to vector<2x80xf32>
    %461 = arith.mulf %460, %457 : vector<2x80xf32>
    %462 = arith.addf %459, %461 : vector<2x80xf32>
    %463 = vector.extract_strided_slice %455 {offsets = [0, 160], sizes = [2, 80], strides = [1, 1]} : vector<2x240xf32> to vector<2x80xf32>
    %464 = math.tanh %462 : vector<2x80xf32>
    %465 = arith.mulf %463, %464 : vector<2x80xf32>
    %c3_144 = arith.constant 3 : index
    %c0_145 = arith.constant 0 : index
    %c0_146 = arith.constant 0 : index
    %466 = vector.load %arg36[%c3_144, %c0_145, %c0_146] : memref<8x2x320xf32, #tpu.memory_space<vmem>>, vector<1x2x320xf32>
    %467 = vector.shape_cast %466 : vector<1x2x320xf32> to vector<2x320xf32>
    %cst_147 = arith.constant dense<0.000000e+00> : vector<2x320xf32>
    %468 = tpu.matmul %465, %403, %cst_147 {dimension_numbers = #tpu.dot_dimension_numbers<[1], [0], [0], [1], [0, 0, 1, 1], [], []>} : vector<2x80xf32>, vector<80x320xf32>, vector<2x320xf32> -> vector<2x320xf32>
    %469 = arith.addf %467, %468 : vector<2x320xf32>
    %470 = vector.extract_strided_slice %469 {offsets = [0, 0], sizes = [2, 240], strides = [1, 1]} : vector<2x320xf32> to vector<2x240xf32>
    %471 = arith.negf %470 : vector<2x240xf32>
    %472 = math.exp %471 : vector<2x240xf32>
    %cst_148 = arith.constant 1.000000e+00 : f32
    %473 = vector.broadcast %cst_148 : f32 to vector<2x240xf32>
    %474 = arith.addf %473, %472 : vector<2x240xf32>
    %475 = arith.divf %473, %474 : vector<2x240xf32>
    %476 = vector.extract_strided_slice %469 {offsets = [0, 240], sizes = [2, 80], strides = [1, 1]} : vector<2x320xf32> to vector<2x80xf32>
    %477 = math.tanh %476 : vector<2x80xf32>
    %478 = vector.extract_strided_slice %475 {offsets = [0, 80], sizes = [2, 80], strides = [1, 1]} : vector<2x240xf32> to vector<2x80xf32>
    %479 = arith.mulf %478, %462 : vector<2x80xf32>
    %480 = vector.extract_strided_slice %475 {offsets = [0, 0], sizes = [2, 80], strides = [1, 1]} : vector<2x240xf32> to vector<2x80xf32>
    %481 = arith.mulf %480, %477 : vector<2x80xf32>
    %482 = arith.addf %479, %481 : vector<2x80xf32>
    %483 = vector.extract_strided_slice %475 {offsets = [0, 160], sizes = [2, 80], strides = [1, 1]} : vector<2x240xf32> to vector<2x80xf32>
    %484 = math.tanh %482 : vector<2x80xf32>
    %485 = arith.mulf %483, %484 : vector<2x80xf32>
    %c4_149 = arith.constant 4 : index
    %c0_150 = arith.constant 0 : index
    %c0_151 = arith.constant 0 : index
    %486 = vector.load %arg36[%c4_149, %c0_150, %c0_151] : memref<8x2x320xf32, #tpu.memory_space<vmem>>, vector<1x2x320xf32>
    %487 = vector.shape_cast %486 : vector<1x2x320xf32> to vector<2x320xf32>
    %cst_152 = arith.constant dense<0.000000e+00> : vector<2x320xf32>
    %488 = tpu.matmul %485, %403, %cst_152 {dimension_numbers = #tpu.dot_dimension_numbers<[1], [0], [0], [1], [0, 0, 1, 1], [], []>} : vector<2x80xf32>, vector<80x320xf32>, vector<2x320xf32> -> vector<2x320xf32>
    %489 = arith.addf %487, %488 : vector<2x320xf32>
    %490 = vector.extract_strided_slice %489 {offsets = [0, 0], sizes = [2, 240], strides = [1, 1]} : vector<2x320xf32> to vector<2x240xf32>
    %491 = arith.negf %490 : vector<2x240xf32>
    %492 = math.exp %491 : vector<2x240xf32>
    %cst_153 = arith.constant 1.000000e+00 : f32
    %493 = vector.broadcast %cst_153 : f32 to vector<2x240xf32>
    %494 = arith.addf %493, %492 : vector<2x240xf32>
    %495 = arith.divf %493, %494 : vector<2x240xf32>
    %496 = vector.extract_strided_slice %489 {offsets = [0, 240], sizes = [2, 80], strides = [1, 1]} : vector<2x320xf32> to vector<2x80xf32>
    %497 = math.tanh %496 : vector<2x80xf32>
    %498 = vector.extract_strided_slice %495 {offsets = [0, 80], sizes = [2, 80], strides = [1, 1]} : vector<2x240xf32> to vector<2x80xf32>
    %499 = arith.mulf %498, %482 : vector<2x80xf32>
    %500 = vector.extract_strided_slice %495 {offsets = [0, 0], sizes = [2, 80], strides = [1, 1]} : vector<2x240xf32> to vector<2x80xf32>
    %501 = arith.mulf %500, %497 : vector<2x80xf32>
    %502 = arith.addf %499, %501 : vector<2x80xf32>
    %503 = vector.extract_strided_slice %495 {offsets = [0, 160], sizes = [2, 80], strides = [1, 1]} : vector<2x240xf32> to vector<2x80xf32>
    %504 = math.tanh %502 : vector<2x80xf32>
    %505 = arith.mulf %503, %504 : vector<2x80xf32>
    %c5_154 = arith.constant 5 : index
    %c0_155 = arith.constant 0 : index
    %c0_156 = arith.constant 0 : index
    %506 = vector.load %arg36[%c5_154, %c0_155, %c0_156] : memref<8x2x320xf32, #tpu.memory_space<vmem>>, vector<1x2x320xf32>
    %507 = vector.shape_cast %506 : vector<1x2x320xf32> to vector<2x320xf32>
    %cst_157 = arith.constant dense<0.000000e+00> : vector<2x320xf32>
    %508 = tpu.matmul %505, %403, %cst_157 {dimension_numbers = #tpu.dot_dimension_numbers<[1], [0], [0], [1], [0, 0, 1, 1], [], []>} : vector<2x80xf32>, vector<80x320xf32>, vector<2x320xf32> -> vector<2x320xf32>
    %509 = arith.addf %507, %508 : vector<2x320xf32>
    %510 = vector.extract_strided_slice %509 {offsets = [0, 0], sizes = [2, 240], strides = [1, 1]} : vector<2x320xf32> to vector<2x240xf32>
    %511 = arith.negf %510 : vector<2x240xf32>
    %512 = math.exp %511 : vector<2x240xf32>
    %cst_158 = arith.constant 1.000000e+00 : f32
    %513 = vector.broadcast %cst_158 : f32 to vector<2x240xf32>
    %514 = arith.addf %513, %512 : vector<2x240xf32>
    %515 = arith.divf %513, %514 : vector<2x240xf32>
    %516 = vector.extract_strided_slice %509 {offsets = [0, 240], sizes = [2, 80], strides = [1, 1]} : vector<2x320xf32> to vector<2x80xf32>
    %517 = math.tanh %516 : vector<2x80xf32>
    %518 = vector.extract_strided_slice %515 {offsets = [0, 80], sizes = [2, 80], strides = [1, 1]} : vector<2x240xf32> to vector<2x80xf32>
    %519 = arith.mulf %518, %502 : vector<2x80xf32>
    %520 = vector.extract_strided_slice %515 {offsets = [0, 0], sizes = [2, 80], strides = [1, 1]} : vector<2x240xf32> to vector<2x80xf32>
    %521 = arith.mulf %520, %517 : vector<2x80xf32>
    %522 = arith.addf %519, %521 : vector<2x80xf32>
    %523 = vector.extract_strided_slice %515 {offsets = [0, 160], sizes = [2, 80], strides = [1, 1]} : vector<2x240xf32> to vector<2x80xf32>
    %524 = math.tanh %522 : vector<2x80xf32>
    %525 = arith.mulf %523, %524 : vector<2x80xf32>
    %c6_159 = arith.constant 6 : index
    %c0_160 = arith.constant 0 : index
    %c0_161 = arith.constant 0 : index
    %526 = vector.load %arg36[%c6_159, %c0_160, %c0_161] : memref<8x2x320xf32, #tpu.memory_space<vmem>>, vector<1x2x320xf32>
    %527 = vector.shape_cast %526 : vector<1x2x320xf32> to vector<2x320xf32>
    %cst_162 = arith.constant dense<0.000000e+00> : vector<2x320xf32>
    %528 = tpu.matmul %525, %403, %cst_162 {dimension_numbers = #tpu.dot_dimension_numbers<[1], [0], [0], [1], [0, 0, 1, 1], [], []>} : vector<2x80xf32>, vector<80x320xf32>, vector<2x320xf32> -> vector<2x320xf32>
    %529 = arith.addf %527, %528 : vector<2x320xf32>
    %530 = vector.extract_strided_slice %529 {offsets = [0, 0], sizes = [2, 240], strides = [1, 1]} : vector<2x320xf32> to vector<2x240xf32>
    %531 = arith.negf %530 : vector<2x240xf32>
    %532 = math.exp %531 : vector<2x240xf32>
    %cst_163 = arith.constant 1.000000e+00 : f32
    %533 = vector.broadcast %cst_163 : f32 to vector<2x240xf32>
    %534 = arith.addf %533, %532 : vector<2x240xf32>
    %535 = arith.divf %533, %534 : vector<2x240xf32>
    %536 = vector.extract_strided_slice %529 {offsets = [0, 240], sizes = [2, 80], strides = [1, 1]} : vector<2x320xf32> to vector<2x80xf32>
    %537 = math.tanh %536 : vector<2x80xf32>
    %538 = vector.extract_strided_slice %535 {offsets = [0, 80], sizes = [2, 80], strides = [1, 1]} : vector<2x240xf32> to vector<2x80xf32>
    %539 = arith.mulf %538, %522 : vector<2x80xf32>
    %540 = vector.extract_strided_slice %535 {offsets = [0, 0], sizes = [2, 80], strides = [1, 1]} : vector<2x240xf32> to vector<2x80xf32>
    %541 = arith.mulf %540, %537 : vector<2x80xf32>
    %542 = arith.addf %539, %541 : vector<2x80xf32>
    %543 = vector.extract_strided_slice %535 {offsets = [0, 160], sizes = [2, 80], strides = [1, 1]} : vector<2x240xf32> to vector<2x80xf32>
    %544 = math.tanh %542 : vector<2x80xf32>
    %545 = arith.mulf %543, %544 : vector<2x80xf32>
    %c7_164 = arith.constant 7 : index
    %c0_165 = arith.constant 0 : index
    %c0_166 = arith.constant 0 : index
    %546 = vector.load %arg36[%c7_164, %c0_165, %c0_166] : memref<8x2x320xf32, #tpu.memory_space<vmem>>, vector<1x2x320xf32>
    %547 = vector.shape_cast %546 : vector<1x2x320xf32> to vector<2x320xf32>
    %cst_167 = arith.constant dense<0.000000e+00> : vector<2x320xf32>
    %548 = tpu.matmul %545, %403, %cst_167 {dimension_numbers = #tpu.dot_dimension_numbers<[1], [0], [0], [1], [0, 0, 1, 1], [], []>} : vector<2x80xf32>, vector<80x320xf32>, vector<2x320xf32> -> vector<2x320xf32>
    %549 = arith.addf %547, %548 : vector<2x320xf32>
    %550 = vector.extract_strided_slice %549 {offsets = [0, 0], sizes = [2, 240], strides = [1, 1]} : vector<2x320xf32> to vector<2x240xf32>
    %551 = arith.negf %550 : vector<2x240xf32>
    %552 = math.exp %551 : vector<2x240xf32>
    %cst_168 = arith.constant 1.000000e+00 : f32
    %553 = vector.broadcast %cst_168 : f32 to vector<2x240xf32>
    %554 = arith.addf %553, %552 : vector<2x240xf32>
    %555 = arith.divf %553, %554 : vector<2x240xf32>
    %556 = vector.extract_strided_slice %549 {offsets = [0, 240], sizes = [2, 80], strides = [1, 1]} : vector<2x320xf32> to vector<2x80xf32>
    %557 = math.tanh %556 : vector<2x80xf32>
    %558 = vector.extract_strided_slice %555 {offsets = [0, 80], sizes = [2, 80], strides = [1, 1]} : vector<2x240xf32> to vector<2x80xf32>
    %559 = arith.mulf %558, %542 : vector<2x80xf32>
    %560 = vector.extract_strided_slice %555 {offsets = [0, 0], sizes = [2, 80], strides = [1, 1]} : vector<2x240xf32> to vector<2x80xf32>
    %561 = arith.mulf %560, %557 : vector<2x80xf32>
    %562 = arith.addf %559, %561 : vector<2x80xf32>
    %563 = vector.extract_strided_slice %555 {offsets = [0, 160], sizes = [2, 80], strides = [1, 1]} : vector<2x240xf32> to vector<2x80xf32>
    %564 = math.tanh %562 : vector<2x80xf32>
    %565 = arith.mulf %563, %564 : vector<2x80xf32>
    %c32_i32_169 = arith.constant 32 : i32
    %566 = vector.broadcast %c32_i32_169 : i32 to vector<2x64xi32>
    %567 = arith.cmpi slt, %0, %566 : vector<2x64xi32>
    %568 = vector.extract_strided_slice %425 {offsets = [0, 0], sizes = [2, 64], strides = [1, 1]} : vector<2x80xf32> to vector<2x64xf32>
    %569 = vector.extract_strided_slice %565 {offsets = [0, 0], sizes = [2, 64], strides = [1, 1]} : vector<2x80xf32> to vector<2x64xf32>
    %570 = arith.select %567, %568, %569 : vector<2x64xi1>, vector<2x64xf32>
    %c32_i32_170 = arith.constant 32 : i32
    %571 = vector.broadcast %c32_i32_170 : i32 to vector<2x64xi32>
    %572 = arith.cmpi slt, %0, %571 : vector<2x64xi32>
    %573 = vector.extract_strided_slice %445 {offsets = [0, 0], sizes = [2, 64], strides = [1, 1]} : vector<2x80xf32> to vector<2x64xf32>
    %574 = vector.extract_strided_slice %545 {offsets = [0, 0], sizes = [2, 64], strides = [1, 1]} : vector<2x80xf32> to vector<2x64xf32>
    %575 = arith.select %572, %573, %574 : vector<2x64xi1>, vector<2x64xf32>
    %c32_i32_171 = arith.constant 32 : i32
    %576 = vector.broadcast %c32_i32_171 : i32 to vector<2x64xi32>
    %577 = arith.cmpi slt, %0, %576 : vector<2x64xi32>
    %578 = vector.extract_strided_slice %465 {offsets = [0, 0], sizes = [2, 64], strides = [1, 1]} : vector<2x80xf32> to vector<2x64xf32>
    %579 = vector.extract_strided_slice %525 {offsets = [0, 0], sizes = [2, 64], strides = [1, 1]} : vector<2x80xf32> to vector<2x64xf32>
    %580 = arith.select %577, %578, %579 : vector<2x64xi1>, vector<2x64xf32>
    %c32_i32_172 = arith.constant 32 : i32
    %581 = vector.broadcast %c32_i32_172 : i32 to vector<2x64xi32>
    %582 = arith.cmpi slt, %0, %581 : vector<2x64xi32>
    %583 = vector.extract_strided_slice %485 {offsets = [0, 0], sizes = [2, 64], strides = [1, 1]} : vector<2x80xf32> to vector<2x64xf32>
    %584 = vector.extract_strided_slice %505 {offsets = [0, 0], sizes = [2, 64], strides = [1, 1]} : vector<2x80xf32> to vector<2x64xf32>
    %585 = arith.select %582, %583, %584 : vector<2x64xi1>, vector<2x64xf32>
    %c32_i32_173 = arith.constant 32 : i32
    %586 = vector.broadcast %c32_i32_173 : i32 to vector<2x64xi32>
    %587 = arith.cmpi slt, %0, %586 : vector<2x64xi32>
    %588 = vector.extract_strided_slice %505 {offsets = [0, 0], sizes = [2, 64], strides = [1, 1]} : vector<2x80xf32> to vector<2x64xf32>
    %589 = vector.extract_strided_slice %485 {offsets = [0, 0], sizes = [2, 64], strides = [1, 1]} : vector<2x80xf32> to vector<2x64xf32>
    %590 = arith.select %587, %588, %589 : vector<2x64xi1>, vector<2x64xf32>
    %c32_i32_174 = arith.constant 32 : i32
    %591 = vector.broadcast %c32_i32_174 : i32 to vector<2x64xi32>
    %592 = arith.cmpi slt, %0, %591 : vector<2x64xi32>
    %593 = vector.extract_strided_slice %525 {offsets = [0, 0], sizes = [2, 64], strides = [1, 1]} : vector<2x80xf32> to vector<2x64xf32>
    %594 = vector.extract_strided_slice %465 {offsets = [0, 0], sizes = [2, 64], strides = [1, 1]} : vector<2x80xf32> to vector<2x64xf32>
    %595 = arith.select %592, %593, %594 : vector<2x64xi1>, vector<2x64xf32>
    %c32_i32_175 = arith.constant 32 : i32
    %596 = vector.broadcast %c32_i32_175 : i32 to vector<2x64xi32>
    %597 = arith.cmpi slt, %0, %596 : vector<2x64xi32>
    %598 = vector.extract_strided_slice %545 {offsets = [0, 0], sizes = [2, 64], strides = [1, 1]} : vector<2x80xf32> to vector<2x64xf32>
    %599 = vector.extract_strided_slice %445 {offsets = [0, 0], sizes = [2, 64], strides = [1, 1]} : vector<2x80xf32> to vector<2x64xf32>
    %600 = arith.select %597, %598, %599 : vector<2x64xi1>, vector<2x64xf32>
    %c32_i32_176 = arith.constant 32 : i32
    %601 = vector.broadcast %c32_i32_176 : i32 to vector<2x64xi32>
    %602 = arith.cmpi slt, %0, %601 : vector<2x64xi32>
    %603 = vector.extract_strided_slice %565 {offsets = [0, 0], sizes = [2, 64], strides = [1, 1]} : vector<2x80xf32> to vector<2x64xf32>
    %604 = vector.extract_strided_slice %425 {offsets = [0, 0], sizes = [2, 64], strides = [1, 1]} : vector<2x80xf32> to vector<2x64xf32>
    %605 = arith.select %602, %603, %604 : vector<2x64xi1>, vector<2x64xf32>
    %606 = vector.extract_strided_slice %425 {offsets = [0, 64], sizes = [2, 16], strides = [1, 1]} : vector<2x80xf32> to vector<2x16xf32>
    %607 = vector.extract_strided_slice %445 {offsets = [0, 64], sizes = [2, 16], strides = [1, 1]} : vector<2x80xf32> to vector<2x16xf32>
    %608 = vector.extract_strided_slice %465 {offsets = [0, 64], sizes = [2, 16], strides = [1, 1]} : vector<2x80xf32> to vector<2x16xf32>
    %609 = vector.extract_strided_slice %485 {offsets = [0, 64], sizes = [2, 16], strides = [1, 1]} : vector<2x80xf32> to vector<2x16xf32>
    %610 = vector.extract_strided_slice %505 {offsets = [0, 64], sizes = [2, 16], strides = [1, 1]} : vector<2x80xf32> to vector<2x16xf32>
    %611 = vector.extract_strided_slice %525 {offsets = [0, 64], sizes = [2, 16], strides = [1, 1]} : vector<2x80xf32> to vector<2x16xf32>
    %612 = vector.extract_strided_slice %545 {offsets = [0, 64], sizes = [2, 16], strides = [1, 1]} : vector<2x80xf32> to vector<2x16xf32>
    %613 = vector.extract_strided_slice %565 {offsets = [0, 64], sizes = [2, 16], strides = [1, 1]} : vector<2x80xf32> to vector<2x16xf32>
    %614 = tpu.concatenate %570, %575, %580, %585, %590, %595, %600, %605 in 0 : vector<2x64xf32>, vector<2x64xf32>, vector<2x64xf32>, vector<2x64xf32>, vector<2x64xf32>, vector<2x64xf32>, vector<2x64xf32>, vector<2x64xf32> -> vector<16x64xf32>
    %c0_177 = arith.constant 0 : index
    %c0_178 = arith.constant 0 : index
    %615 = vector.load %arg11[%c0_177, %c0_178] : memref<64x256xf32, #tpu.memory_space<vmem>>, vector<64x256xf32>
    %cst_179 = arith.constant dense<0.000000e+00> : vector<16x256xf32>
    %616 = tpu.matmul %614, %615, %cst_179 {dimension_numbers = #tpu.dot_dimension_numbers<[1], [0], [0], [1], [0, 0, 1, 1], [], []>} : vector<16x64xf32>, vector<64x256xf32>, vector<16x256xf32> -> vector<16x256xf32>
    %c0_180 = arith.constant 0 : index
    %c0_181 = arith.constant 0 : index
    %617 = vector.load %arg12[%c0_180, %c0_181] : memref<64x256xf32, #tpu.memory_space<vmem>>, vector<64x256xf32>
    %cst_182 = arith.constant dense<0.000000e+00> : vector<16x256xf32>
    %618 = tpu.matmul %614, %617, %cst_182 {dimension_numbers = #tpu.dot_dimension_numbers<[1], [0], [0], [1], [0, 0, 1, 1], [], []>} : vector<16x64xf32>, vector<64x256xf32>, vector<16x256xf32> -> vector<16x256xf32>
    %c0_183 = arith.constant 0 : index
    %c0_184 = arith.constant 0 : index
    %619 = vector.load %arg14[%c0_183, %c0_184] : memref<1x256xf32, #tpu.memory_space<vmem>>, vector<1x256xf32>
    %620 = vector.extract_strided_slice %616 {offsets = [0, 0], sizes = [2, 256], strides = [1, 1]} : vector<16x256xf32> to vector<2x256xf32>
    %621 = vector.broadcast %619 : vector<1x256xf32> to vector<2x256xf32>
    %622 = arith.addf %621, %620 : vector<2x256xf32>
    %623 = vector.extract_strided_slice %618 {offsets = [14, 0], sizes = [2, 256], strides = [1, 1]} : vector<16x256xf32> to vector<2x256xf32>
    %624 = arith.addf %622, %623 : vector<2x256xf32>
    %c0_185 = arith.constant 0 : index
    %c0_186 = arith.constant 0 : index
    %c0_187 = arith.constant 0 : index
    %625 = vector.load %arg37[%c0_185, %c0_186, %c0_187] : memref<8x2x256xf32, #tpu.memory_space<vmem>>, vector<1x2x256xf32>
    %626 = vector.shape_cast %625 : vector<1x2x256xf32> to vector<2x256xf32>
    %627 = vector.shape_cast %624 : vector<2x256xf32> to vector<1x2x256xf32>
    tpu.vector_store %arg37[%c0_185, %c0_186, %c0_187], %627 {strides = array<i32>} : memref<8x2x256xf32, #tpu.memory_space<vmem>>, vector<1x2x256xf32>,
    %628 = vector.extract_strided_slice %616 {offsets = [2, 0], sizes = [2, 256], strides = [1, 1]} : vector<16x256xf32> to vector<2x256xf32>
    %629 = vector.broadcast %619 : vector<1x256xf32> to vector<2x256xf32>
    %630 = arith.addf %629, %628 : vector<2x256xf32>
    %631 = vector.extract_strided_slice %618 {offsets = [12, 0], sizes = [2, 256], strides = [1, 1]} : vector<16x256xf32> to vector<2x256xf32>
    %632 = arith.addf %630, %631 : vector<2x256xf32>
    %c1_188 = arith.constant 1 : index
    %c0_189 = arith.constant 0 : index
    %c0_190 = arith.constant 0 : index
    %633 = vector.load %arg37[%c1_188, %c0_189, %c0_190] : memref<8x2x256xf32, #tpu.memory_space<vmem>>, vector<1x2x256xf32>
    %634 = vector.shape_cast %633 : vector<1x2x256xf32> to vector<2x256xf32>
    %635 = vector.shape_cast %632 : vector<2x256xf32> to vector<1x2x256xf32>
    tpu.vector_store %arg37[%c1_188, %c0_189, %c0_190], %635 {strides = array<i32>} : memref<8x2x256xf32, #tpu.memory_space<vmem>>, vector<1x2x256xf32>,
    %636 = vector.extract_strided_slice %616 {offsets = [4, 0], sizes = [2, 256], strides = [1, 1]} : vector<16x256xf32> to vector<2x256xf32>
    %637 = vector.broadcast %619 : vector<1x256xf32> to vector<2x256xf32>
    %638 = arith.addf %637, %636 : vector<2x256xf32>
    %639 = vector.extract_strided_slice %618 {offsets = [10, 0], sizes = [2, 256], strides = [1, 1]} : vector<16x256xf32> to vector<2x256xf32>
    %640 = arith.addf %638, %639 : vector<2x256xf32>
    %c2_191 = arith.constant 2 : index
    %c0_192 = arith.constant 0 : index
    %c0_193 = arith.constant 0 : index
    %641 = vector.load %arg37[%c2_191, %c0_192, %c0_193] : memref<8x2x256xf32, #tpu.memory_space<vmem>>, vector<1x2x256xf32>
    %642 = vector.shape_cast %641 : vector<1x2x256xf32> to vector<2x256xf32>
    %643 = vector.shape_cast %640 : vector<2x256xf32> to vector<1x2x256xf32>
    tpu.vector_store %arg37[%c2_191, %c0_192, %c0_193], %643 {strides = array<i32>} : memref<8x2x256xf32, #tpu.memory_space<vmem>>, vector<1x2x256xf32>,
    %644 = vector.extract_strided_slice %616 {offsets = [6, 0], sizes = [2, 256], strides = [1, 1]} : vector<16x256xf32> to vector<2x256xf32>
    %645 = vector.broadcast %619 : vector<1x256xf32> to vector<2x256xf32>
    %646 = arith.addf %645, %644 : vector<2x256xf32>
    %647 = vector.extract_strided_slice %618 {offsets = [8, 0], sizes = [2, 256], strides = [1, 1]} : vector<16x256xf32> to vector<2x256xf32>
    %648 = arith.addf %646, %647 : vector<2x256xf32>
    %c3_194 = arith.constant 3 : index
    %c0_195 = arith.constant 0 : index
    %c0_196 = arith.constant 0 : index
    %649 = vector.load %arg37[%c3_194, %c0_195, %c0_196] : memref<8x2x256xf32, #tpu.memory_space<vmem>>, vector<1x2x256xf32>
    %650 = vector.shape_cast %649 : vector<1x2x256xf32> to vector<2x256xf32>
    %651 = vector.shape_cast %648 : vector<2x256xf32> to vector<1x2x256xf32>
    tpu.vector_store %arg37[%c3_194, %c0_195, %c0_196], %651 {strides = array<i32>} : memref<8x2x256xf32, #tpu.memory_space<vmem>>, vector<1x2x256xf32>,
    %652 = vector.extract_strided_slice %616 {offsets = [8, 0], sizes = [2, 256], strides = [1, 1]} : vector<16x256xf32> to vector<2x256xf32>
    %653 = vector.broadcast %619 : vector<1x256xf32> to vector<2x256xf32>
    %654 = arith.addf %653, %652 : vector<2x256xf32>
    %655 = vector.extract_strided_slice %618 {offsets = [6, 0], sizes = [2, 256], strides = [1, 1]} : vector<16x256xf32> to vector<2x256xf32>
    %656 = arith.addf %654, %655 : vector<2x256xf32>
    %c4_197 = arith.constant 4 : index
    %c0_198 = arith.constant 0 : index
    %c0_199 = arith.constant 0 : index
    %657 = vector.load %arg37[%c4_197, %c0_198, %c0_199] : memref<8x2x256xf32, #tpu.memory_space<vmem>>, vector<1x2x256xf32>
    %658 = vector.shape_cast %657 : vector<1x2x256xf32> to vector<2x256xf32>
    %659 = vector.shape_cast %656 : vector<2x256xf32> to vector<1x2x256xf32>
    tpu.vector_store %arg37[%c4_197, %c0_198, %c0_199], %659 {strides = array<i32>} : memref<8x2x256xf32, #tpu.memory_space<vmem>>, vector<1x2x256xf32>,
    %660 = vector.extract_strided_slice %616 {offsets = [10, 0], sizes = [2, 256], strides = [1, 1]} : vector<16x256xf32> to vector<2x256xf32>
    %661 = vector.broadcast %619 : vector<1x256xf32> to vector<2x256xf32>
    %662 = arith.addf %661, %660 : vector<2x256xf32>
    %663 = vector.extract_strided_slice %618 {offsets = [4, 0], sizes = [2, 256], strides = [1, 1]} : vector<16x256xf32> to vector<2x256xf32>
    %664 = arith.addf %662, %663 : vector<2x256xf32>
    %c5_200 = arith.constant 5 : index
    %c0_201 = arith.constant 0 : index
    %c0_202 = arith.constant 0 : index
    %665 = vector.load %arg37[%c5_200, %c0_201, %c0_202] : memref<8x2x256xf32, #tpu.memory_space<vmem>>, vector<1x2x256xf32>
    %666 = vector.shape_cast %665 : vector<1x2x256xf32> to vector<2x256xf32>
    %667 = vector.shape_cast %664 : vector<2x256xf32> to vector<1x2x256xf32>
    tpu.vector_store %arg37[%c5_200, %c0_201, %c0_202], %667 {strides = array<i32>} : memref<8x2x256xf32, #tpu.memory_space<vmem>>, vector<1x2x256xf32>,
    %668 = vector.extract_strided_slice %616 {offsets = [12, 0], sizes = [2, 256], strides = [1, 1]} : vector<16x256xf32> to vector<2x256xf32>
    %669 = vector.broadcast %619 : vector<1x256xf32> to vector<2x256xf32>
    %670 = arith.addf %669, %668 : vector<2x256xf32>
    %671 = vector.extract_strided_slice %618 {offsets = [2, 0], sizes = [2, 256], strides = [1, 1]} : vector<16x256xf32> to vector<2x256xf32>
    %672 = arith.addf %670, %671 : vector<2x256xf32>
    %c6_203 = arith.constant 6 : index
    %c0_204 = arith.constant 0 : index
    %c0_205 = arith.constant 0 : index
    %673 = vector.load %arg37[%c6_203, %c0_204, %c0_205] : memref<8x2x256xf32, #tpu.memory_space<vmem>>, vector<1x2x256xf32>
    %674 = vector.shape_cast %673 : vector<1x2x256xf32> to vector<2x256xf32>
    %675 = vector.shape_cast %672 : vector<2x256xf32> to vector<1x2x256xf32>
    tpu.vector_store %arg37[%c6_203, %c0_204, %c0_205], %675 {strides = array<i32>} : memref<8x2x256xf32, #tpu.memory_space<vmem>>, vector<1x2x256xf32>,
    %676 = vector.extract_strided_slice %616 {offsets = [14, 0], sizes = [2, 256], strides = [1, 1]} : vector<16x256xf32> to vector<2x256xf32>
    %677 = vector.broadcast %619 : vector<1x256xf32> to vector<2x256xf32>
    %678 = arith.addf %677, %676 : vector<2x256xf32>
    %679 = vector.extract_strided_slice %618 {offsets = [0, 0], sizes = [2, 256], strides = [1, 1]} : vector<16x256xf32> to vector<2x256xf32>
    %680 = arith.addf %678, %679 : vector<2x256xf32>
    %c7_206 = arith.constant 7 : index
    %c0_207 = arith.constant 0 : index
    %c0_208 = arith.constant 0 : index
    %681 = vector.load %arg37[%c7_206, %c0_207, %c0_208] : memref<8x2x256xf32, #tpu.memory_space<vmem>>, vector<1x2x256xf32>
    %682 = vector.shape_cast %681 : vector<1x2x256xf32> to vector<2x256xf32>
    %683 = vector.shape_cast %680 : vector<2x256xf32> to vector<1x2x256xf32>
    tpu.vector_store %arg37[%c7_206, %c0_207, %c0_208], %683 {strides = array<i32>} : memref<8x2x256xf32, #tpu.memory_space<vmem>>, vector<1x2x256xf32>,
    %c0_209 = arith.constant 0 : index
    %c0_210 = arith.constant 0 : index
    %684 = vector.load %arg13[%c0_209, %c0_210] : memref<64x256xf32, #tpu.memory_space<vmem>>, vector<64x256xf32>
    %cst_211 = arith.constant 0.000000e+00 : f32
    %685 = vector.broadcast %cst_211 : f32 to vector<2x64xf32>
    %cst_212 = arith.constant 0.000000e+00 : f32
    %686 = vector.broadcast %cst_212 : f32 to vector<2x64xf32>
    %c0_213 = arith.constant 0 : index
    %c0_214 = arith.constant 0 : index
    %c0_215 = arith.constant 0 : index
    %687 = vector.load %arg37[%c0_213, %c0_214, %c0_215] : memref<8x2x256xf32, #tpu.memory_space<vmem>>, vector<1x2x256xf32>
    %688 = vector.shape_cast %687 : vector<1x2x256xf32> to vector<2x256xf32>
    %cst_216 = arith.constant dense<0.000000e+00> : vector<2x256xf32>
    %689 = tpu.matmul %685, %684, %cst_216 {dimension_numbers = #tpu.dot_dimension_numbers<[1], [0], [0], [1], [0, 0, 1, 1], [], []>} : vector<2x64xf32>, vector<64x256xf32>, vector<2x256xf32> -> vector<2x256xf32>
    %690 = arith.addf %688, %689 : vector<2x256xf32>
    %691 = vector.extract_strided_slice %690 {offsets = [0, 0], sizes = [2, 192], strides = [1, 1]} : vector<2x256xf32> to vector<2x192xf32>
    %692 = arith.negf %691 : vector<2x192xf32>
    %693 = math.exp %692 : vector<2x192xf32>
    %cst_217 = arith.constant 1.000000e+00 : f32
    %694 = vector.broadcast %cst_217 : f32 to vector<2x192xf32>
    %695 = arith.addf %694, %693 : vector<2x192xf32>
    %696 = arith.divf %694, %695 : vector<2x192xf32>
    %697 = vector.extract_strided_slice %690 {offsets = [0, 192], sizes = [2, 64], strides = [1, 1]} : vector<2x256xf32> to vector<2x64xf32>
    %698 = math.tanh %697 : vector<2x64xf32>
    %699 = vector.extract_strided_slice %696 {offsets = [0, 64], sizes = [2, 64], strides = [1, 1]} : vector<2x192xf32> to vector<2x64xf32>
    %700 = arith.mulf %699, %686 : vector<2x64xf32>
    %701 = vector.extract_strided_slice %696 {offsets = [0, 0], sizes = [2, 64], strides = [1, 1]} : vector<2x192xf32> to vector<2x64xf32>
    %702 = arith.mulf %701, %698 : vector<2x64xf32>
    %703 = arith.addf %700, %702 : vector<2x64xf32>
    %704 = vector.extract_strided_slice %696 {offsets = [0, 128], sizes = [2, 64], strides = [1, 1]} : vector<2x192xf32> to vector<2x64xf32>
    %705 = math.tanh %703 : vector<2x64xf32>
    %706 = arith.mulf %704, %705 : vector<2x64xf32>
    %c1_218 = arith.constant 1 : index
    %c0_219 = arith.constant 0 : index
    %c0_220 = arith.constant 0 : index
    %707 = vector.load %arg37[%c1_218, %c0_219, %c0_220] : memref<8x2x256xf32, #tpu.memory_space<vmem>>, vector<1x2x256xf32>
    %708 = vector.shape_cast %707 : vector<1x2x256xf32> to vector<2x256xf32>
    %cst_221 = arith.constant dense<0.000000e+00> : vector<2x256xf32>
    %709 = tpu.matmul %706, %684, %cst_221 {dimension_numbers = #tpu.dot_dimension_numbers<[1], [0], [0], [1], [0, 0, 1, 1], [], []>} : vector<2x64xf32>, vector<64x256xf32>, vector<2x256xf32> -> vector<2x256xf32>
    %710 = arith.addf %708, %709 : vector<2x256xf32>
    %711 = vector.extract_strided_slice %710 {offsets = [0, 0], sizes = [2, 192], strides = [1, 1]} : vector<2x256xf32> to vector<2x192xf32>
    %712 = arith.negf %711 : vector<2x192xf32>
    %713 = math.exp %712 : vector<2x192xf32>
    %cst_222 = arith.constant 1.000000e+00 : f32
    %714 = vector.broadcast %cst_222 : f32 to vector<2x192xf32>
    %715 = arith.addf %714, %713 : vector<2x192xf32>
    %716 = arith.divf %714, %715 : vector<2x192xf32>
    %717 = vector.extract_strided_slice %710 {offsets = [0, 192], sizes = [2, 64], strides = [1, 1]} : vector<2x256xf32> to vector<2x64xf32>
    %718 = math.tanh %717 : vector<2x64xf32>
    %719 = vector.extract_strided_slice %716 {offsets = [0, 64], sizes = [2, 64], strides = [1, 1]} : vector<2x192xf32> to vector<2x64xf32>
    %720 = arith.mulf %719, %703 : vector<2x64xf32>
    %721 = vector.extract_strided_slice %716 {offsets = [0, 0], sizes = [2, 64], strides = [1, 1]} : vector<2x192xf32> to vector<2x64xf32>
    %722 = arith.mulf %721, %718 : vector<2x64xf32>
    %723 = arith.addf %720, %722 : vector<2x64xf32>
    %724 = vector.extract_strided_slice %716 {offsets = [0, 128], sizes = [2, 64], strides = [1, 1]} : vector<2x192xf32> to vector<2x64xf32>
    %725 = math.tanh %723 : vector<2x64xf32>
    %726 = arith.mulf %724, %725 : vector<2x64xf32>
    %c2_223 = arith.constant 2 : index
    %c0_224 = arith.constant 0 : index
    %c0_225 = arith.constant 0 : index
    %727 = vector.load %arg37[%c2_223, %c0_224, %c0_225] : memref<8x2x256xf32, #tpu.memory_space<vmem>>, vector<1x2x256xf32>
    %728 = vector.shape_cast %727 : vector<1x2x256xf32> to vector<2x256xf32>
    %cst_226 = arith.constant dense<0.000000e+00> : vector<2x256xf32>
    %729 = tpu.matmul %726, %684, %cst_226 {dimension_numbers = #tpu.dot_dimension_numbers<[1], [0], [0], [1], [0, 0, 1, 1], [], []>} : vector<2x64xf32>, vector<64x256xf32>, vector<2x256xf32> -> vector<2x256xf32>
    %730 = arith.addf %728, %729 : vector<2x256xf32>
    %731 = vector.extract_strided_slice %730 {offsets = [0, 0], sizes = [2, 192], strides = [1, 1]} : vector<2x256xf32> to vector<2x192xf32>
    %732 = arith.negf %731 : vector<2x192xf32>
    %733 = math.exp %732 : vector<2x192xf32>
    %cst_227 = arith.constant 1.000000e+00 : f32
    %734 = vector.broadcast %cst_227 : f32 to vector<2x192xf32>
    %735 = arith.addf %734, %733 : vector<2x192xf32>
    %736 = arith.divf %734, %735 : vector<2x192xf32>
    %737 = vector.extract_strided_slice %730 {offsets = [0, 192], sizes = [2, 64], strides = [1, 1]} : vector<2x256xf32> to vector<2x64xf32>
    %738 = math.tanh %737 : vector<2x64xf32>
    %739 = vector.extract_strided_slice %736 {offsets = [0, 64], sizes = [2, 64], strides = [1, 1]} : vector<2x192xf32> to vector<2x64xf32>
    %740 = arith.mulf %739, %723 : vector<2x64xf32>
    %741 = vector.extract_strided_slice %736 {offsets = [0, 0], sizes = [2, 64], strides = [1, 1]} : vector<2x192xf32> to vector<2x64xf32>
    %742 = arith.mulf %741, %738 : vector<2x64xf32>
    %743 = arith.addf %740, %742 : vector<2x64xf32>
    %744 = vector.extract_strided_slice %736 {offsets = [0, 128], sizes = [2, 64], strides = [1, 1]} : vector<2x192xf32> to vector<2x64xf32>
    %745 = math.tanh %743 : vector<2x64xf32>
    %746 = arith.mulf %744, %745 : vector<2x64xf32>
    %c3_228 = arith.constant 3 : index
    %c0_229 = arith.constant 0 : index
    %c0_230 = arith.constant 0 : index
    %747 = vector.load %arg37[%c3_228, %c0_229, %c0_230] : memref<8x2x256xf32, #tpu.memory_space<vmem>>, vector<1x2x256xf32>
    %748 = vector.shape_cast %747 : vector<1x2x256xf32> to vector<2x256xf32>
    %cst_231 = arith.constant dense<0.000000e+00> : vector<2x256xf32>
    %749 = tpu.matmul %746, %684, %cst_231 {dimension_numbers = #tpu.dot_dimension_numbers<[1], [0], [0], [1], [0, 0, 1, 1], [], []>} : vector<2x64xf32>, vector<64x256xf32>, vector<2x256xf32> -> vector<2x256xf32>
    %750 = arith.addf %748, %749 : vector<2x256xf32>
    %751 = vector.extract_strided_slice %750 {offsets = [0, 0], sizes = [2, 192], strides = [1, 1]} : vector<2x256xf32> to vector<2x192xf32>
    %752 = arith.negf %751 : vector<2x192xf32>
    %753 = math.exp %752 : vector<2x192xf32>
    %cst_232 = arith.constant 1.000000e+00 : f32
    %754 = vector.broadcast %cst_232 : f32 to vector<2x192xf32>
    %755 = arith.addf %754, %753 : vector<2x192xf32>
    %756 = arith.divf %754, %755 : vector<2x192xf32>
    %757 = vector.extract_strided_slice %750 {offsets = [0, 192], sizes = [2, 64], strides = [1, 1]} : vector<2x256xf32> to vector<2x64xf32>
    %758 = math.tanh %757 : vector<2x64xf32>
    %759 = vector.extract_strided_slice %756 {offsets = [0, 64], sizes = [2, 64], strides = [1, 1]} : vector<2x192xf32> to vector<2x64xf32>
    %760 = arith.mulf %759, %743 : vector<2x64xf32>
    %761 = vector.extract_strided_slice %756 {offsets = [0, 0], sizes = [2, 64], strides = [1, 1]} : vector<2x192xf32> to vector<2x64xf32>
    %762 = arith.mulf %761, %758 : vector<2x64xf32>
    %763 = arith.addf %760, %762 : vector<2x64xf32>
    %764 = vector.extract_strided_slice %756 {offsets = [0, 128], sizes = [2, 64], strides = [1, 1]} : vector<2x192xf32> to vector<2x64xf32>
    %765 = math.tanh %763 : vector<2x64xf32>
    %766 = arith.mulf %764, %765 : vector<2x64xf32>
    %c4_233 = arith.constant 4 : index
    %c0_234 = arith.constant 0 : index
    %c0_235 = arith.constant 0 : index
    %767 = vector.load %arg37[%c4_233, %c0_234, %c0_235] : memref<8x2x256xf32, #tpu.memory_space<vmem>>, vector<1x2x256xf32>
    %768 = vector.shape_cast %767 : vector<1x2x256xf32> to vector<2x256xf32>
    %cst_236 = arith.constant dense<0.000000e+00> : vector<2x256xf32>
    %769 = tpu.matmul %766, %684, %cst_236 {dimension_numbers = #tpu.dot_dimension_numbers<[1], [0], [0], [1], [0, 0, 1, 1], [], []>} : vector<2x64xf32>, vector<64x256xf32>, vector<2x256xf32> -> vector<2x256xf32>
    %770 = arith.addf %768, %769 : vector<2x256xf32>
    %771 = vector.extract_strided_slice %770 {offsets = [0, 0], sizes = [2, 192], strides = [1, 1]} : vector<2x256xf32> to vector<2x192xf32>
    %772 = arith.negf %771 : vector<2x192xf32>
    %773 = math.exp %772 : vector<2x192xf32>
    %cst_237 = arith.constant 1.000000e+00 : f32
    %774 = vector.broadcast %cst_237 : f32 to vector<2x192xf32>
    %775 = arith.addf %774, %773 : vector<2x192xf32>
    %776 = arith.divf %774, %775 : vector<2x192xf32>
    %777 = vector.extract_strided_slice %770 {offsets = [0, 192], sizes = [2, 64], strides = [1, 1]} : vector<2x256xf32> to vector<2x64xf32>
    %778 = math.tanh %777 : vector<2x64xf32>
    %779 = vector.extract_strided_slice %776 {offsets = [0, 64], sizes = [2, 64], strides = [1, 1]} : vector<2x192xf32> to vector<2x64xf32>
    %780 = arith.mulf %779, %763 : vector<2x64xf32>
    %781 = vector.extract_strided_slice %776 {offsets = [0, 0], sizes = [2, 64], strides = [1, 1]} : vector<2x192xf32> to vector<2x64xf32>
    %782 = arith.mulf %781, %778 : vector<2x64xf32>
    %783 = arith.addf %780, %782 : vector<2x64xf32>
    %784 = vector.extract_strided_slice %776 {offsets = [0, 128], sizes = [2, 64], strides = [1, 1]} : vector<2x192xf32> to vector<2x64xf32>
    %785 = math.tanh %783 : vector<2x64xf32>
    %786 = arith.mulf %784, %785 : vector<2x64xf32>
    %c5_238 = arith.constant 5 : index
    %c0_239 = arith.constant 0 : index
    %c0_240 = arith.constant 0 : index
    %787 = vector.load %arg37[%c5_238, %c0_239, %c0_240] : memref<8x2x256xf32, #tpu.memory_space<vmem>>, vector<1x2x256xf32>
    %788 = vector.shape_cast %787 : vector<1x2x256xf32> to vector<2x256xf32>
    %cst_241 = arith.constant dense<0.000000e+00> : vector<2x256xf32>
    %789 = tpu.matmul %786, %684, %cst_241 {dimension_numbers = #tpu.dot_dimension_numbers<[1], [0], [0], [1], [0, 0, 1, 1], [], []>} : vector<2x64xf32>, vector<64x256xf32>, vector<2x256xf32> -> vector<2x256xf32>
    %790 = arith.addf %788, %789 : vector<2x256xf32>
    %791 = vector.extract_strided_slice %790 {offsets = [0, 0], sizes = [2, 192], strides = [1, 1]} : vector<2x256xf32> to vector<2x192xf32>
    %792 = arith.negf %791 : vector<2x192xf32>
    %793 = math.exp %792 : vector<2x192xf32>
    %cst_242 = arith.constant 1.000000e+00 : f32
    %794 = vector.broadcast %cst_242 : f32 to vector<2x192xf32>
    %795 = arith.addf %794, %793 : vector<2x192xf32>
    %796 = arith.divf %794, %795 : vector<2x192xf32>
    %797 = vector.extract_strided_slice %790 {offsets = [0, 192], sizes = [2, 64], strides = [1, 1]} : vector<2x256xf32> to vector<2x64xf32>
    %798 = math.tanh %797 : vector<2x64xf32>
    %799 = vector.extract_strided_slice %796 {offsets = [0, 64], sizes = [2, 64], strides = [1, 1]} : vector<2x192xf32> to vector<2x64xf32>
    %800 = arith.mulf %799, %783 : vector<2x64xf32>
    %801 = vector.extract_strided_slice %796 {offsets = [0, 0], sizes = [2, 64], strides = [1, 1]} : vector<2x192xf32> to vector<2x64xf32>
    %802 = arith.mulf %801, %798 : vector<2x64xf32>
    %803 = arith.addf %800, %802 : vector<2x64xf32>
    %804 = vector.extract_strided_slice %796 {offsets = [0, 128], sizes = [2, 64], strides = [1, 1]} : vector<2x192xf32> to vector<2x64xf32>
    %805 = math.tanh %803 : vector<2x64xf32>
    %806 = arith.mulf %804, %805 : vector<2x64xf32>
    %c6_243 = arith.constant 6 : index
    %c0_244 = arith.constant 0 : index
    %c0_245 = arith.constant 0 : index
    %807 = vector.load %arg37[%c6_243, %c0_244, %c0_245] : memref<8x2x256xf32, #tpu.memory_space<vmem>>, vector<1x2x256xf32>
    %808 = vector.shape_cast %807 : vector<1x2x256xf32> to vector<2x256xf32>
    %cst_246 = arith.constant dense<0.000000e+00> : vector<2x256xf32>
    %809 = tpu.matmul %806, %684, %cst_246 {dimension_numbers = #tpu.dot_dimension_numbers<[1], [0], [0], [1], [0, 0, 1, 1], [], []>} : vector<2x64xf32>, vector<64x256xf32>, vector<2x256xf32> -> vector<2x256xf32>
    %810 = arith.addf %808, %809 : vector<2x256xf32>
    %811 = vector.extract_strided_slice %810 {offsets = [0, 0], sizes = [2, 192], strides = [1, 1]} : vector<2x256xf32> to vector<2x192xf32>
    %812 = arith.negf %811 : vector<2x192xf32>
    %813 = math.exp %812 : vector<2x192xf32>
    %cst_247 = arith.constant 1.000000e+00 : f32
    %814 = vector.broadcast %cst_247 : f32 to vector<2x192xf32>
    %815 = arith.addf %814, %813 : vector<2x192xf32>
    %816 = arith.divf %814, %815 : vector<2x192xf32>
    %817 = vector.extract_strided_slice %810 {offsets = [0, 192], sizes = [2, 64], strides = [1, 1]} : vector<2x256xf32> to vector<2x64xf32>
    %818 = math.tanh %817 : vector<2x64xf32>
    %819 = vector.extract_strided_slice %816 {offsets = [0, 64], sizes = [2, 64], strides = [1, 1]} : vector<2x192xf32> to vector<2x64xf32>
    %820 = arith.mulf %819, %803 : vector<2x64xf32>
    %821 = vector.extract_strided_slice %816 {offsets = [0, 0], sizes = [2, 64], strides = [1, 1]} : vector<2x192xf32> to vector<2x64xf32>
    %822 = arith.mulf %821, %818 : vector<2x64xf32>
    %823 = arith.addf %820, %822 : vector<2x64xf32>
    %824 = vector.extract_strided_slice %816 {offsets = [0, 128], sizes = [2, 64], strides = [1, 1]} : vector<2x192xf32> to vector<2x64xf32>
    %825 = math.tanh %823 : vector<2x64xf32>
    %826 = arith.mulf %824, %825 : vector<2x64xf32>
    %c7_248 = arith.constant 7 : index
    %c0_249 = arith.constant 0 : index
    %c0_250 = arith.constant 0 : index
    %827 = vector.load %arg37[%c7_248, %c0_249, %c0_250] : memref<8x2x256xf32, #tpu.memory_space<vmem>>, vector<1x2x256xf32>
    %828 = vector.shape_cast %827 : vector<1x2x256xf32> to vector<2x256xf32>
    %cst_251 = arith.constant dense<0.000000e+00> : vector<2x256xf32>
    %829 = tpu.matmul %826, %684, %cst_251 {dimension_numbers = #tpu.dot_dimension_numbers<[1], [0], [0], [1], [0, 0, 1, 1], [], []>} : vector<2x64xf32>, vector<64x256xf32>, vector<2x256xf32> -> vector<2x256xf32>
    %830 = arith.addf %828, %829 : vector<2x256xf32>
    %831 = vector.extract_strided_slice %830 {offsets = [0, 0], sizes = [2, 192], strides = [1, 1]} : vector<2x256xf32> to vector<2x192xf32>
    %832 = arith.negf %831 : vector<2x192xf32>
    %833 = math.exp %832 : vector<2x192xf32>
    %cst_252 = arith.constant 1.000000e+00 : f32
    %834 = vector.broadcast %cst_252 : f32 to vector<2x192xf32>
    %835 = arith.addf %834, %833 : vector<2x192xf32>
    %836 = arith.divf %834, %835 : vector<2x192xf32>
    %837 = vector.extract_strided_slice %830 {offsets = [0, 192], sizes = [2, 64], strides = [1, 1]} : vector<2x256xf32> to vector<2x64xf32>
    %838 = math.tanh %837 : vector<2x64xf32>
    %839 = vector.extract_strided_slice %836 {offsets = [0, 64], sizes = [2, 64], strides = [1, 1]} : vector<2x192xf32> to vector<2x64xf32>
    %840 = arith.mulf %839, %823 : vector<2x64xf32>
    %841 = vector.extract_strided_slice %836 {offsets = [0, 0], sizes = [2, 64], strides = [1, 1]} : vector<2x192xf32> to vector<2x64xf32>
    %842 = arith.mulf %841, %838 : vector<2x64xf32>
    %843 = arith.addf %840, %842 : vector<2x64xf32>
    %844 = vector.extract_strided_slice %836 {offsets = [0, 128], sizes = [2, 64], strides = [1, 1]} : vector<2x192xf32> to vector<2x64xf32>
    %845 = math.tanh %843 : vector<2x64xf32>
    %846 = arith.mulf %844, %845 : vector<2x64xf32>
    %c32_i32_253 = arith.constant 32 : i32
    %847 = vector.broadcast %c32_i32_253 : i32 to vector<2x64xi32>
    %848 = arith.cmpi slt, %0, %847 : vector<2x64xi32>
    %849 = arith.select %848, %706, %846 : vector<2x64xi1>, vector<2x64xf32>
    %c32_i32_254 = arith.constant 32 : i32
    %850 = vector.broadcast %c32_i32_254 : i32 to vector<2x64xi32>
    %851 = arith.cmpi slt, %0, %850 : vector<2x64xi32>
    %852 = arith.select %851, %726, %826 : vector<2x64xi1>, vector<2x64xf32>
    %c32_i32_255 = arith.constant 32 : i32
    %853 = vector.broadcast %c32_i32_255 : i32 to vector<2x64xi32>
    %854 = arith.cmpi slt, %0, %853 : vector<2x64xi32>
    %855 = arith.select %854, %746, %806 : vector<2x64xi1>, vector<2x64xf32>
    %c32_i32_256 = arith.constant 32 : i32
    %856 = vector.broadcast %c32_i32_256 : i32 to vector<2x64xi32>
    %857 = arith.cmpi slt, %0, %856 : vector<2x64xi32>
    %858 = arith.select %857, %766, %786 : vector<2x64xi1>, vector<2x64xf32>
    %c32_i32_257 = arith.constant 32 : i32
    %859 = vector.broadcast %c32_i32_257 : i32 to vector<2x64xi32>
    %860 = arith.cmpi slt, %0, %859 : vector<2x64xi32>
    %861 = arith.select %860, %786, %766 : vector<2x64xi1>, vector<2x64xf32>
    %c32_i32_258 = arith.constant 32 : i32
    %862 = vector.broadcast %c32_i32_258 : i32 to vector<2x64xi32>
    %863 = arith.cmpi slt, %0, %862 : vector<2x64xi32>
    %864 = arith.select %863, %806, %746 : vector<2x64xi1>, vector<2x64xf32>
    %c32_i32_259 = arith.constant 32 : i32
    %865 = vector.broadcast %c32_i32_259 : i32 to vector<2x64xi32>
    %866 = arith.cmpi slt, %0, %865 : vector<2x64xi32>
    %867 = arith.select %866, %826, %726 : vector<2x64xi1>, vector<2x64xf32>
    %c32_i32_260 = arith.constant 32 : i32
    %868 = vector.broadcast %c32_i32_260 : i32 to vector<2x64xi32>
    %869 = arith.cmpi slt, %0, %868 : vector<2x64xi32>
    %870 = arith.select %869, %846, %706 : vector<2x64xi1>, vector<2x64xf32>
    %871 = tpu.concatenate %849, %852, %855, %858, %861, %864, %867, %870 in 0 : vector<2x64xf32>, vector<2x64xf32>, vector<2x64xf32>, vector<2x64xf32>, vector<2x64xf32>, vector<2x64xf32>, vector<2x64xf32>, vector<2x64xf32> -> vector<16x64xf32>
    %c0_261 = arith.constant 0 : index
    %c0_262 = arith.constant 0 : index
    %872 = vector.load %arg15[%c0_261, %c0_262] : memref<64x64xf32, #tpu.memory_space<vmem>>, vector<64x64xf32>
    %cst_263 = arith.constant dense<0.000000e+00> : vector<16x64xf32>
    %873 = tpu.matmul %871, %872, %cst_263 {dimension_numbers = #tpu.dot_dimension_numbers<[1], [0], [0], [1], [0, 0, 1, 1], [], []>} : vector<16x64xf32>, vector<64x64xf32>, vector<16x64xf32> -> vector<16x64xf32>
    %c0_264 = arith.constant 0 : index
    %c0_265 = arith.constant 0 : index
    %874 = vector.load %arg16[%c0_264, %c0_265] : memref<1x64xf32, #tpu.memory_space<vmem>>, vector<1x64xf32>
    %875 = vector.broadcast %874 : vector<1x64xf32> to vector<16x64xf32>
    %876 = arith.addf %873, %875 : vector<16x64xf32>
    %877 = math.tanh %876 : vector<16x64xf32>
    %c0_266 = arith.constant 0 : index
    %c0_267 = arith.constant 0 : index
    %878 = vector.load %arg17[%c0_266, %c0_267] : memref<1x64xf32, #tpu.memory_space<vmem>>, vector<1x64xf32>
    %879 = vector.broadcast %878 : vector<1x64xf32> to vector<16x64xf32>
    %880 = arith.mulf %877, %879 : vector<16x64xf32>
    %cst_268 = arith.constant dense<0.000000e+00> : vector<16xf32>
    %881 = vector.multi_reduction <add>, %880, %cst_268 [1] : vector<16x64xf32> to vector<16xf32>
    %882 = vector.shape_cast %881 : vector<16xf32> to vector<16x1xf32>
    %c0_269 = arith.constant 0 : index
    %c0_270 = arith.constant 0 : index
    %883 = vector.load %arg18[%c0_269, %c0_270] : memref<1x1xf32, #tpu.memory_space<vmem>>, vector<1x1xf32>
    %884 = vector.broadcast %883 : vector<1x1xf32> to vector<16x1xf32>
    %885 = arith.addf %882, %884 : vector<16x1xf32>
    %886 = vector.extract_strided_slice %885 {offsets = [0, 0], sizes = [2, 1], strides = [1, 1]} : vector<16x1xf32> to vector<2x1xf32>
    %887 = vector.extract_strided_slice %885 {offsets = [2, 0], sizes = [2, 1], strides = [1, 1]} : vector<16x1xf32> to vector<2x1xf32>
    %888 = arith.maximumf %886, %887 : vector<2x1xf32>
    %889 = vector.extract_strided_slice %885 {offsets = [4, 0], sizes = [2, 1], strides = [1, 1]} : vector<16x1xf32> to vector<2x1xf32>
    %890 = arith.maximumf %888, %889 : vector<2x1xf32>
    %891 = vector.extract_strided_slice %885 {offsets = [6, 0], sizes = [2, 1], strides = [1, 1]} : vector<16x1xf32> to vector<2x1xf32>
    %892 = arith.maximumf %890, %891 : vector<2x1xf32>
    %893 = vector.extract_strided_slice %885 {offsets = [8, 0], sizes = [2, 1], strides = [1, 1]} : vector<16x1xf32> to vector<2x1xf32>
    %894 = arith.maximumf %892, %893 : vector<2x1xf32>
    %895 = vector.extract_strided_slice %885 {offsets = [10, 0], sizes = [2, 1], strides = [1, 1]} : vector<16x1xf32> to vector<2x1xf32>
    %896 = arith.maximumf %894, %895 : vector<2x1xf32>
    %897 = vector.extract_strided_slice %885 {offsets = [12, 0], sizes = [2, 1], strides = [1, 1]} : vector<16x1xf32> to vector<2x1xf32>
    %898 = arith.maximumf %896, %897 : vector<2x1xf32>
    %899 = vector.extract_strided_slice %885 {offsets = [14, 0], sizes = [2, 1], strides = [1, 1]} : vector<16x1xf32> to vector<2x1xf32>
    %900 = arith.maximumf %898, %899 : vector<2x1xf32>
    %901 = tpu.concatenate %900, %900, %900, %900, %900, %900, %900, %900 in 0 : vector<2x1xf32>, vector<2x1xf32>, vector<2x1xf32>, vector<2x1xf32>, vector<2x1xf32>, vector<2x1xf32>, vector<2x1xf32>, vector<2x1xf32> -> vector<16x1xf32>
    %902 = arith.subf %885, %901 : vector<16x1xf32>
    %903 = math.exp %902 : vector<16x1xf32>
    %904 = vector.extract_strided_slice %903 {offsets = [0, 0], sizes = [2, 1], strides = [1, 1]} : vector<16x1xf32> to vector<2x1xf32>
    %905 = vector.extract_strided_slice %903 {offsets = [2, 0], sizes = [2, 1], strides = [1, 1]} : vector<16x1xf32> to vector<2x1xf32>
    %906 = arith.addf %904, %905 : vector<2x1xf32>
    %907 = vector.extract_strided_slice %903 {offsets = [4, 0], sizes = [2, 1], strides = [1, 1]} : vector<16x1xf32> to vector<2x1xf32>
    %908 = arith.addf %906, %907 : vector<2x1xf32>
    %909 = vector.extract_strided_slice %903 {offsets = [6, 0], sizes = [2, 1], strides = [1, 1]} : vector<16x1xf32> to vector<2x1xf32>
    %910 = arith.addf %908, %909 : vector<2x1xf32>
    %911 = vector.extract_strided_slice %903 {offsets = [8, 0], sizes = [2, 1], strides = [1, 1]} : vector<16x1xf32> to vector<2x1xf32>
    %912 = arith.addf %910, %911 : vector<2x1xf32>
    %913 = vector.extract_strided_slice %903 {offsets = [10, 0], sizes = [2, 1], strides = [1, 1]} : vector<16x1xf32> to vector<2x1xf32>
    %914 = arith.addf %912, %913 : vector<2x1xf32>
    %915 = vector.extract_strided_slice %903 {offsets = [12, 0], sizes = [2, 1], strides = [1, 1]} : vector<16x1xf32> to vector<2x1xf32>
    %916 = arith.addf %914, %915 : vector<2x1xf32>
    %917 = vector.extract_strided_slice %903 {offsets = [14, 0], sizes = [2, 1], strides = [1, 1]} : vector<16x1xf32> to vector<2x1xf32>
    %918 = arith.addf %916, %917 : vector<2x1xf32>
    %cst_271 = arith.constant 1.000000e+00 : f32
    %919 = vector.broadcast %cst_271 : f32 to vector<2x1xf32>
    %920 = arith.divf %919, %918 : vector<2x1xf32>
    %921 = tpu.concatenate %920, %920, %920, %920, %920, %920, %920, %920 in 0 : vector<2x1xf32>, vector<2x1xf32>, vector<2x1xf32>, vector<2x1xf32>, vector<2x1xf32>, vector<2x1xf32>, vector<2x1xf32>, vector<2x1xf32> -> vector<16x1xf32>
    %922 = arith.mulf %903, %921 : vector<16x1xf32>
    %923 = vector.broadcast %922 : vector<16x1xf32> to vector<16x64xf32>
    %924 = arith.mulf %871, %923 : vector<16x64xf32>
    %925 = vector.extract_strided_slice %924 {offsets = [0, 0], sizes = [2, 64], strides = [1, 1]} : vector<16x64xf32> to vector<2x64xf32>
    %926 = vector.extract_strided_slice %924 {offsets = [2, 0], sizes = [2, 64], strides = [1, 1]} : vector<16x64xf32> to vector<2x64xf32>
    %927 = arith.addf %925, %926 : vector<2x64xf32>
    %928 = vector.extract_strided_slice %924 {offsets = [4, 0], sizes = [2, 64], strides = [1, 1]} : vector<16x64xf32> to vector<2x64xf32>
    %929 = arith.addf %927, %928 : vector<2x64xf32>
    %930 = vector.extract_strided_slice %924 {offsets = [6, 0], sizes = [2, 64], strides = [1, 1]} : vector<16x64xf32> to vector<2x64xf32>
    %931 = arith.addf %929, %930 : vector<2x64xf32>
    %932 = vector.extract_strided_slice %924 {offsets = [8, 0], sizes = [2, 64], strides = [1, 1]} : vector<16x64xf32> to vector<2x64xf32>
    %933 = arith.addf %931, %932 : vector<2x64xf32>
    %934 = vector.extract_strided_slice %924 {offsets = [10, 0], sizes = [2, 64], strides = [1, 1]} : vector<16x64xf32> to vector<2x64xf32>
    %935 = arith.addf %933, %934 : vector<2x64xf32>
    %936 = vector.extract_strided_slice %924 {offsets = [12, 0], sizes = [2, 64], strides = [1, 1]} : vector<16x64xf32> to vector<2x64xf32>
    %937 = arith.addf %935, %936 : vector<2x64xf32>
    %938 = vector.extract_strided_slice %924 {offsets = [14, 0], sizes = [2, 64], strides = [1, 1]} : vector<16x64xf32> to vector<2x64xf32>
    %939 = arith.addf %937, %938 : vector<2x64xf32>
    %940 = tpu.concatenate %606, %607, %608, %609, %610, %611, %612, %613 in 0 : vector<2x16xf32>, vector<2x16xf32>, vector<2x16xf32>, vector<2x16xf32>, vector<2x16xf32>, vector<2x16xf32>, vector<2x16xf32>, vector<2x16xf32> -> vector<16x16xf32>
    %c0_272 = arith.constant 0 : index
    %c0_273 = arith.constant 0 : index
    %941 = vector.load %arg19[%c0_272, %c0_273] : memref<16x16xf32, #tpu.memory_space<vmem>>, vector<16x16xf32>
    %cst_274 = arith.constant dense<0.000000e+00> : vector<16x16xf32>
    %942 = tpu.matmul %940, %941, %cst_274 {dimension_numbers = #tpu.dot_dimension_numbers<[1], [0], [0], [1], [0, 0, 1, 1], [], []>} : vector<16x16xf32>, vector<16x16xf32>, vector<16x16xf32> -> vector<16x16xf32>
    %c0_275 = arith.constant 0 : index
    %c0_276 = arith.constant 0 : index
    %943 = vector.load %arg20[%c0_275, %c0_276] : memref<1x16xf32, #tpu.memory_space<vmem>>, vector<1x16xf32>
    %944 = vector.broadcast %943 : vector<1x16xf32> to vector<16x16xf32>
    %945 = arith.addf %942, %944 : vector<16x16xf32>
    %946 = math.tanh %945 : vector<16x16xf32>
    %c0_277 = arith.constant 0 : index
    %c0_278 = arith.constant 0 : index
    %947 = vector.load %arg21[%c0_277, %c0_278] : memref<1x16xf32, #tpu.memory_space<vmem>>, vector<1x16xf32>
    %948 = vector.broadcast %947 : vector<1x16xf32> to vector<16x16xf32>
    %949 = arith.mulf %946, %948 : vector<16x16xf32>
    %cst_279 = arith.constant dense<0.000000e+00> : vector<16xf32>
    %950 = vector.multi_reduction <add>, %949, %cst_279 [1] : vector<16x16xf32> to vector<16xf32>
    %951 = vector.shape_cast %950 : vector<16xf32> to vector<16x1xf32>
    %c0_280 = arith.constant 0 : index
    %c0_281 = arith.constant 0 : index
    %952 = vector.load %arg22[%c0_280, %c0_281] : memref<1x1xf32, #tpu.memory_space<vmem>>, vector<1x1xf32>
    %953 = vector.broadcast %952 : vector<1x1xf32> to vector<16x1xf32>
    %954 = arith.addf %951, %953 : vector<16x1xf32>
    %955 = vector.extract_strided_slice %954 {offsets = [0, 0], sizes = [2, 1], strides = [1, 1]} : vector<16x1xf32> to vector<2x1xf32>
    %956 = vector.extract_strided_slice %954 {offsets = [2, 0], sizes = [2, 1], strides = [1, 1]} : vector<16x1xf32> to vector<2x1xf32>
    %957 = arith.maximumf %955, %956 : vector<2x1xf32>
    %958 = vector.extract_strided_slice %954 {offsets = [4, 0], sizes = [2, 1], strides = [1, 1]} : vector<16x1xf32> to vector<2x1xf32>
    %959 = arith.maximumf %957, %958 : vector<2x1xf32>
    %960 = vector.extract_strided_slice %954 {offsets = [6, 0], sizes = [2, 1], strides = [1, 1]} : vector<16x1xf32> to vector<2x1xf32>
    %961 = arith.maximumf %959, %960 : vector<2x1xf32>
    %962 = vector.extract_strided_slice %954 {offsets = [8, 0], sizes = [2, 1], strides = [1, 1]} : vector<16x1xf32> to vector<2x1xf32>
    %963 = arith.maximumf %961, %962 : vector<2x1xf32>
    %964 = vector.extract_strided_slice %954 {offsets = [10, 0], sizes = [2, 1], strides = [1, 1]} : vector<16x1xf32> to vector<2x1xf32>
    %965 = arith.maximumf %963, %964 : vector<2x1xf32>
    %966 = vector.extract_strided_slice %954 {offsets = [12, 0], sizes = [2, 1], strides = [1, 1]} : vector<16x1xf32> to vector<2x1xf32>
    %967 = arith.maximumf %965, %966 : vector<2x1xf32>
    %968 = vector.extract_strided_slice %954 {offsets = [14, 0], sizes = [2, 1], strides = [1, 1]} : vector<16x1xf32> to vector<2x1xf32>
    %969 = arith.maximumf %967, %968 : vector<2x1xf32>
    %970 = tpu.concatenate %969, %969, %969, %969, %969, %969, %969, %969 in 0 : vector<2x1xf32>, vector<2x1xf32>, vector<2x1xf32>, vector<2x1xf32>, vector<2x1xf32>, vector<2x1xf32>, vector<2x1xf32>, vector<2x1xf32> -> vector<16x1xf32>
    %971 = arith.subf %954, %970 : vector<16x1xf32>
    %972 = math.exp %971 : vector<16x1xf32>
    %973 = vector.extract_strided_slice %972 {offsets = [0, 0], sizes = [2, 1], strides = [1, 1]} : vector<16x1xf32> to vector<2x1xf32>
    %974 = vector.extract_strided_slice %972 {offsets = [2, 0], sizes = [2, 1], strides = [1, 1]} : vector<16x1xf32> to vector<2x1xf32>
    %975 = arith.addf %973, %974 : vector<2x1xf32>
    %976 = vector.extract_strided_slice %972 {offsets = [4, 0], sizes = [2, 1], strides = [1, 1]} : vector<16x1xf32> to vector<2x1xf32>
    %977 = arith.addf %975, %976 : vector<2x1xf32>
    %978 = vector.extract_strided_slice %972 {offsets = [6, 0], sizes = [2, 1], strides = [1, 1]} : vector<16x1xf32> to vector<2x1xf32>
    %979 = arith.addf %977, %978 : vector<2x1xf32>
    %980 = vector.extract_strided_slice %972 {offsets = [8, 0], sizes = [2, 1], strides = [1, 1]} : vector<16x1xf32> to vector<2x1xf32>
    %981 = arith.addf %979, %980 : vector<2x1xf32>
    %982 = vector.extract_strided_slice %972 {offsets = [10, 0], sizes = [2, 1], strides = [1, 1]} : vector<16x1xf32> to vector<2x1xf32>
    %983 = arith.addf %981, %982 : vector<2x1xf32>
    %984 = vector.extract_strided_slice %972 {offsets = [12, 0], sizes = [2, 1], strides = [1, 1]} : vector<16x1xf32> to vector<2x1xf32>
    %985 = arith.addf %983, %984 : vector<2x1xf32>
    %986 = vector.extract_strided_slice %972 {offsets = [14, 0], sizes = [2, 1], strides = [1, 1]} : vector<16x1xf32> to vector<2x1xf32>
    %987 = arith.addf %985, %986 : vector<2x1xf32>
    %cst_282 = arith.constant 1.000000e+00 : f32
    %988 = vector.broadcast %cst_282 : f32 to vector<2x1xf32>
    %989 = arith.divf %988, %987 : vector<2x1xf32>
    %990 = tpu.concatenate %989, %989, %989, %989, %989, %989, %989, %989 in 0 : vector<2x1xf32>, vector<2x1xf32>, vector<2x1xf32>, vector<2x1xf32>, vector<2x1xf32>, vector<2x1xf32>, vector<2x1xf32>, vector<2x1xf32> -> vector<16x1xf32>
    %991 = arith.mulf %972, %990 : vector<16x1xf32>
    %992 = vector.broadcast %991 : vector<16x1xf32> to vector<16x16xf32>
    %993 = arith.mulf %940, %992 : vector<16x16xf32>
    %994 = vector.extract_strided_slice %993 {offsets = [0, 0], sizes = [2, 16], strides = [1, 1]} : vector<16x16xf32> to vector<2x16xf32>
    %995 = vector.extract_strided_slice %993 {offsets = [2, 0], sizes = [2, 16], strides = [1, 1]} : vector<16x16xf32> to vector<2x16xf32>
    %996 = arith.addf %994, %995 : vector<2x16xf32>
    %997 = vector.extract_strided_slice %993 {offsets = [4, 0], sizes = [2, 16], strides = [1, 1]} : vector<16x16xf32> to vector<2x16xf32>
    %998 = arith.addf %996, %997 : vector<2x16xf32>
    %999 = vector.extract_strided_slice %993 {offsets = [6, 0], sizes = [2, 16], strides = [1, 1]} : vector<16x16xf32> to vector<2x16xf32>
    %1000 = arith.addf %998, %999 : vector<2x16xf32>
    %1001 = vector.extract_strided_slice %993 {offsets = [8, 0], sizes = [2, 16], strides = [1, 1]} : vector<16x16xf32> to vector<2x16xf32>
    %1002 = arith.addf %1000, %1001 : vector<2x16xf32>
    %1003 = vector.extract_strided_slice %993 {offsets = [10, 0], sizes = [2, 16], strides = [1, 1]} : vector<16x16xf32> to vector<2x16xf32>
    %1004 = arith.addf %1002, %1003 : vector<2x16xf32>
    %1005 = vector.extract_strided_slice %993 {offsets = [12, 0], sizes = [2, 16], strides = [1, 1]} : vector<16x16xf32> to vector<2x16xf32>
    %1006 = arith.addf %1004, %1005 : vector<2x16xf32>
    %1007 = vector.extract_strided_slice %993 {offsets = [14, 0], sizes = [2, 16], strides = [1, 1]} : vector<16x16xf32> to vector<2x16xf32>
    %1008 = arith.addf %1006, %1007 : vector<2x16xf32>
    %c0_283 = arith.constant 0 : index
    %c0_284 = arith.constant 0 : index
    %1009 = vector.load %arg23[%c0_283, %c0_284] : memref<64x32xf32, #tpu.memory_space<vmem>>, vector<64x32xf32>
    %cst_285 = arith.constant dense<0.000000e+00> : vector<2x32xf32>
    %1010 = tpu.matmul %939, %1009, %cst_285 {dimension_numbers = #tpu.dot_dimension_numbers<[1], [0], [0], [1], [0, 0, 1, 1], [], []>} : vector<2x64xf32>, vector<64x32xf32>, vector<2x32xf32> -> vector<2x32xf32>
    %c0_286 = arith.constant 0 : index
    %c0_287 = arith.constant 0 : index
    %1011 = vector.load %arg24[%c0_286, %c0_287] : memref<1x32xf32, #tpu.memory_space<vmem>>, vector<1x32xf32>
    %1012 = vector.broadcast %1011 : vector<1x32xf32> to vector<2x32xf32>
    %1013 = arith.addf %1010, %1012 : vector<2x32xf32>
    %cst_288 = arith.constant 0.000000e+00 : f32
    %1014 = vector.broadcast %cst_288 : f32 to vector<2x32xf32>
    %1015 = arith.maximumf %1013, %1014 : vector<2x32xf32>
    %c0_289 = arith.constant 0 : index
    %c0_290 = arith.constant 0 : index
    %1016 = vector.load %arg25[%c0_289, %c0_290] : memref<1x32xf32, #tpu.memory_space<vmem>>, vector<1x32xf32>
    %1017 = vector.broadcast %1016 : vector<1x32xf32> to vector<2x32xf32>
    %1018 = arith.mulf %1015, %1017 : vector<2x32xf32>
    %cst_291 = arith.constant dense<0.000000e+00> : vector<2xf32>
    %1019 = vector.multi_reduction <add>, %1018, %cst_291 [1] : vector<2x32xf32> to vector<2xf32>
    %1020 = vector.shape_cast %1019 : vector<2xf32> to vector<2x1xf32>
    %c0_292 = arith.constant 0 : index
    %c0_293 = arith.constant 0 : index
    %1021 = vector.load %arg26[%c0_292, %c0_293] : memref<1x1xf32, #tpu.memory_space<vmem>>, vector<1x1xf32>
    %1022 = vector.broadcast %1021 : vector<1x1xf32> to vector<2x1xf32>
    %1023 = arith.addf %1020, %1022 : vector<2x1xf32>
    %c0_294 = arith.constant 0 : index
    %c0_295 = arith.constant 0 : index
    %1024 = vector.load %arg27[%c0_294, %c0_295] : memref<16x16xf32, #tpu.memory_space<vmem>>, vector<16x16xf32>
    %cst_296 = arith.constant dense<0.000000e+00> : vector<2x16xf32>
    %1025 = tpu.matmul %1008, %1024, %cst_296 {dimension_numbers = #tpu.dot_dimension_numbers<[1], [0], [0], [1], [0, 0, 1, 1], [], []>} : vector<2x16xf32>, vector<16x16xf32>, vector<2x16xf32> -> vector<2x16xf32>
    %c0_297 = arith.constant 0 : index
    %c0_298 = arith.constant 0 : index
    %1026 = vector.load %arg28[%c0_297, %c0_298] : memref<1x16xf32, #tpu.memory_space<vmem>>, vector<1x16xf32>
    %1027 = vector.broadcast %1026 : vector<1x16xf32> to vector<2x16xf32>
    %1028 = arith.addf %1025, %1027 : vector<2x16xf32>
    %cst_299 = arith.constant 0.000000e+00 : f32
    %1029 = vector.broadcast %cst_299 : f32 to vector<2x16xf32>
    %1030 = arith.maximumf %1028, %1029 : vector<2x16xf32>
    %c0_300 = arith.constant 0 : index
    %c0_301 = arith.constant 0 : index
    %1031 = vector.load %arg29[%c0_300, %c0_301] : memref<1x16xf32, #tpu.memory_space<vmem>>, vector<1x16xf32>
    %1032 = vector.broadcast %1031 : vector<1x16xf32> to vector<2x16xf32>
    %1033 = arith.mulf %1030, %1032 : vector<2x16xf32>
    %cst_302 = arith.constant dense<0.000000e+00> : vector<2xf32>
    %1034 = vector.multi_reduction <add>, %1033, %cst_302 [1] : vector<2x16xf32> to vector<2xf32>
    %1035 = vector.shape_cast %1034 : vector<2xf32> to vector<2x1xf32>
    %c0_303 = arith.constant 0 : index
    %c0_304 = arith.constant 0 : index
    %1036 = vector.load %arg30[%c0_303, %c0_304] : memref<1x1xf32, #tpu.memory_space<vmem>>, vector<1x1xf32>
    %1037 = vector.broadcast %1036 : vector<1x1xf32> to vector<2x1xf32>
    %1038 = arith.addf %1035, %1037 : vector<2x1xf32>
    %c0_305 = arith.constant 0 : index
    %c0_306 = arith.constant 0 : index
    %1039 = vector.load %arg31[%c0_305, %c0_306] : memref<2x8xf32, #tpu.memory_space<vmem>>, vector<2x8xf32>
    %1040 = vector.extract_strided_slice %1039 {offsets = [0, 0], sizes = [1, 8], strides = [1, 1]} : vector<2x8xf32> to vector<1x8xf32>
    %1041 = vector.broadcast %1023 : vector<2x1xf32> to vector<2x8xf32>
    %1042 = vector.broadcast %1040 : vector<1x8xf32> to vector<2x8xf32>
    %1043 = arith.mulf %1041, %1042 : vector<2x8xf32>
    %1044 = vector.extract_strided_slice %1039 {offsets = [1, 0], sizes = [1, 8], strides = [1, 1]} : vector<2x8xf32> to vector<1x8xf32>
    %1045 = vector.broadcast %1038 : vector<2x1xf32> to vector<2x8xf32>
    %1046 = vector.broadcast %1044 : vector<1x8xf32> to vector<2x8xf32>
    %1047 = arith.mulf %1045, %1046 : vector<2x8xf32>
    %1048 = arith.addf %1043, %1047 : vector<2x8xf32>
    %c0_307 = arith.constant 0 : index
    %c0_308 = arith.constant 0 : index
    %1049 = vector.load %arg32[%c0_307, %c0_308] : memref<1x8xf32, #tpu.memory_space<vmem>>, vector<1x8xf32>
    %1050 = vector.broadcast %1049 : vector<1x8xf32> to vector<2x8xf32>
    %1051 = arith.addf %1048, %1050 : vector<2x8xf32>
    %cst_309 = arith.constant 0.000000e+00 : f32
    %1052 = vector.broadcast %cst_309 : f32 to vector<2x8xf32>
    %1053 = arith.maximumf %1051, %1052 : vector<2x8xf32>
    %c0_310 = arith.constant 0 : index
    %c0_311 = arith.constant 0 : index
    %1054 = vector.load %arg33[%c0_310, %c0_311] : memref<1x8xf32, #tpu.memory_space<vmem>>, vector<1x8xf32>
    %1055 = vector.broadcast %1054 : vector<1x8xf32> to vector<2x8xf32>
    %1056 = arith.mulf %1053, %1055 : vector<2x8xf32>
    %cst_312 = arith.constant dense<0.000000e+00> : vector<2xf32>
    %1057 = vector.multi_reduction <add>, %1056, %cst_312 [1] : vector<2x8xf32> to vector<2xf32>
    %1058 = vector.shape_cast %1057 : vector<2xf32> to vector<2x1xf32>
    %c0_313 = arith.constant 0 : index
    %c0_314 = arith.constant 0 : index
    %1059 = vector.load %arg34[%c0_313, %c0_314] : memref<1x1xf32, #tpu.memory_space<vmem>>, vector<1x1xf32>
    %1060 = vector.broadcast %1059 : vector<1x1xf32> to vector<2x1xf32>
    %1061 = arith.addf %1058, %1060 : vector<2x1xf32>
    %1062 = tpu.iota {dimensions = array<i32: 1>} : vector<2x3xi32>
    %c0_i32 = arith.constant 0 : i32
    %1063 = vector.broadcast %c0_i32 : i32 to vector<2x3xi32>
    %1064 = arith.cmpi eq, %1062, %1063 : vector<2x3xi32>
    %c1_i32 = arith.constant 1 : i32
    %1065 = vector.broadcast %c1_i32 : i32 to vector<2x3xi32>
    %1066 = arith.cmpi eq, %1062, %1065 : vector<2x3xi32>
    %1067 = vector.shape_cast %1023 : vector<2x1xf32> to vector<2x1xf32>
    %1068 = vector.broadcast %1067 : vector<2x1xf32> to vector<2x3xf32>
    %1069 = vector.shape_cast %1038 : vector<2x1xf32> to vector<2x1xf32>
    %1070 = vector.broadcast %1069 : vector<2x1xf32> to vector<2x3xf32>
    %1071 = arith.select %1066, %1068, %1070 : vector<2x3xi1>, vector<2x3xf32>
    %1072 = vector.shape_cast %1061 : vector<2x1xf32> to vector<2x1xf32>
    %1073 = vector.broadcast %1072 : vector<2x1xf32> to vector<2x3xf32>
    %1074 = arith.select %1064, %1073, %1071 : vector<2x3xi1>, vector<2x3xf32>
    %c0_315 = arith.constant 0 : index
    %c0_316 = arith.constant 0 : index
    %1075 = vector.load %arg35[%c0_315, %c0_316] : memref<2x3xf32, #tpu.memory_space<vmem>>, vector<2x3xf32>
    tpu.vector_store %arg35[%c0_315, %c0_316], %1074 {strides = array<i32>} : memref<2x3xf32, #tpu.memory_space<vmem>>, vector<2x3xf32>,
    return
  }
}

</mosaic_0001>

<bundles_post_ra>
// kernel: tvl_predictor_forward.1
= control target key start
LH: loop header
LB: loop body
LE: loop exit
PB: predicated region body
PF: predicated region fallthrough
CT: control target
= control target key end

     0   :  { %s9393_s6 = smov 1   ;;  %s9394_s10 = smov 2   ;;  %s11006_s0 = inlined_call_operand.smem [shape: u32[36], index: -1, kind: input, shape index: {}] }
   0x1   :  { %s9476_s5 = sld [smem:[%s11006_s0]]   ;;  %s9395_s14 = smov 3  }
   0x2   :  { %s9481_s9 = sld [smem:[%s11006_s0 + %s9393_s6]]   ;;  %s9396_s18 = smov 4  }
   0x3   :  { %s9486_s13 = sld [smem:[%s11006_s0 + %s9394_s10]]   ;;  %s9397_s22 = smov 5  }
   0x4   :  { %s9491_s17 = sld [smem:[%s11006_s0 + %s9395_s14]]   ;;  %s9398_s26 = smov 6  }
   0x5   :  { %s9496_s21 = sld [smem:[%s11006_s0 + %s9396_s18]]   ;;  %s9399_s30 = smov 7  }
   0x6   :  { %s9501_s25 = sld [smem:[%s11006_s0 + %s9397_s22]]   ;;  %s9400_s4 = smov 8  }
   0x7   :  { %11025 = sst [smem:[#allocation47_spill]] %s9476_s5  ;;  %s9401_s10 = smov 9  }
   0x8   :  { %s9506_s29 = sld [smem:[%s11006_s0 + %s9398_s26]]   ;;  %s9402_s15 = smov 10  }
   0x9   :  { %s9511_s3 = sld [smem:[%s11006_s0 + %s9399_s30]]   ;;  %s9403_s20 = smov 11  }
   0xa   :  { %s9516_s8 = sld [smem:[%s11006_s0 + %s9400_s4]]   ;;  %s9404_s26 = smov 12  }
   0xb   :  { %s9521_s14 = sld [smem:[%s11006_s0 + %s9401_s10]]   ;;  %s9405_s1 = smov 13  }
   0xc   :  { %s9526_s19 = sld [smem:[%s11006_s0 + %s9402_s15]]   ;;  %s9406_s7 = smov 14  }
   0xd   :  { %s9531_s24 = sld [smem:[%s11006_s0 + %s9403_s20]]   ;;  %s9407_s15 = smov 15  }
   0xe   :  { %s9536_s30 = sld [smem:[%s11006_s0 + %s9404_s26]]   ;;  %s9408_s22 = smov 16  }
   0xf   :  { %s9541_s6 = sld [smem:[%s11006_s0 + %s9405_s1]]   ;;  %s9409_s28 = smov 17  }
  0x10   :  { %s9546_s12 = sld [smem:[%s11006_s0 + %s9406_s7]]   ;;  %s9410_s7 = smov 18  }
  0x11   :  { %11026 = sst [smem:[#allocation48_spill]] %s9521_s14  ;;  %s9411_s16 = smov 19  }
  0x12   :  { %s9551_s20 = sld [smem:[%s11006_s0 + %s9407_s15]]   ;;  %s9412_s23 = smov 20  }
  0x13   :  { %11027 = sst [smem:[#allocation49_spill]] %s9531_s24  ;;  %s9413_s1 = smov 21  }
  0x14   :  { %11028 = sst [smem:[#allocation50_spill]] %s9536_s30  ;;  %s9414_s10 = smov 23  }
  0x15   :  { %s9556_s27 = sld [smem:[%s11006_s0 + %s9408_s22]]   ;;  %s9419_s15 = smov 29  }
  0x16   :  { %11029 = sst [smem:[#allocation51_spill]] %s9546_s12 }
  0x17   :  { %s9561_s4 = sld [smem:[%s11006_s0 + %s9409_s28]]  }
  0x18   :  { %s7052_s24 = sld [smem:[%s11006_s0 + %s9410_s7]]  }
  0x19   :  { %s9569_s5 = sld [smem:[%s11006_s0 + %s9411_s16]]   ;;  %s9415_s16 = smov 24  }
  0x1a   :  { %s9579_s12 = sld [smem:[%s11006_s0 + %s9413_s1]]   ;;  %s9417_s1 = smov 27  }
  0x1b   :  { %11030 = sst [smem:[#allocation52_spill]] %s9556_s27 }
  0x1c   :  { %s9574_s27 = sld [smem:[%s11006_s0 + %s9412_s23]]   ;;  %s9416_s23 = smov 25  }
  0x1d   :  { %s9584_s30 = sld [smem:[%s11006_s0 + %s9414_s10]]   ;;  %s9418_s10 = smov 28  }
  0x1e   :  { %v76_v0 = vstv %s7052_s24  ;;  %s9599_s7 = sld [smem:[%s11006_s0 + %s9417_s1]]   ;;  %s9420_s24 = smov 31  }
  0x1f   :  { %11031 = sst [smem:[#allocation53_spill]] %s9569_s5  ;;  %77 = vst [vmem:[#allocation4] sm:$0x1] %v76_v0  ;;  %s9421_s1 = smov 32  }
  0x20   :  { %11033 = sst [smem:[#allocation55_spill]] %s9579_s12  ;;  %s9426_s12 = smov 30  }
  0x21   :  { %s9589_s5 = sld [smem:[%s11006_s0 + %s9415_s16]]  }
  0x22   :  { %11032 = sst [smem:[#allocation54_spill]] %s9574_s27 }
  0x23   :  { %11034 = sst [smem:[#allocation56_spill]] %s9584_s30  ;;  %s9422_s30 = smov 33  }
  0x24   :  { %s9594_s27 = sld [smem:[%s11006_s0 + %s9416_s23]]  }
  0x25   :  { %11037 = sst [smem:[#allocation59_spill]] %s9599_s7 }
  0x26   :  { %s9604_s16 = sld [smem:[%s11006_s0 + %s9418_s10]]  }
  0x27   :  { %11035 = sst [smem:[#allocation57_spill]] %s9589_s5  ;;  %s9423_s5 = smov 35  }
  0x28   :  { %s9609_s23 = sld [smem:[%s11006_s0 + %s9419_s15]]  }
  0x29   :  { %s9614_s28 = sld [smem:[%s11006_s0 + %s9420_s24]]   ;;  %s9424_s24 = smov 22  }
  0x2a   :  { %11036 = sst [smem:[#allocation58_spill]] %s9594_s27  ;;  %s9425_s27 = smov 26  }
  0x2b   :  { %s9619_s7 = sld [smem:[%s11006_s0 + %s9421_s1]]  }
  0x2c   :  { %11038 = sst [smem:[#allocation60_spill]] %s9604_s16 }
  0x2d   :  { %s9624_s16 = sld [smem:[%s11006_s0 + %s9422_s30]]  }
  0x2e   :  { %11039 = sst [smem:[#allocation61_spill]] %s9609_s23 }
  0x2f   :  { %11040 = sst [smem:[#allocation62_spill]] %s9614_s28 }
  0x30   :  { %s9629_s23 = sld [smem:[%s11006_s0 + %s9423_s5]]  }
  0x31   :  { %11041 = sst [smem:[#allocation63_spill]] %s9619_s7 }
  0x32   :  { %s7056_s28 = sld [smem:[%s11006_s0 + %s9424_s24]]  }
  0x33   :  { %11042 = sst [smem:[#allocation64_spill]] %s9624_s16  ;;  %s9427_s16 = smov 34  }
  0x34   :  { %s7060_s7 = sld [smem:[%s11006_s0 + %s9425_s27]]  }
  0x35   :  { %s7064_s11 = sld [smem:[%s11006_s0 + %s9426_s12]]  }
  0x36   :  { %s7068_s5 = sld [smem:[%s11006_s0 + %s9427_s16]]  }
  0x38   :  { %v78_v1 = vstv %s7056_s28 }
  0x39   :  { %79 = vst [vmem:[#allocation5] sm:$0x1] %v78_v1 }
  0x3a   :  { %v80_v2 = vstv %s7060_s7 }
  0x3b   :  { %81 = vst [vmem:[#allocation6] sm:$0x1] %v80_v2  ;;  %v82_v3 = vstv %s7064_s11 }
  0x3c   :  { %83 = vst [vmem:[#allocation7] sm:$0x1] %v82_v3  ;;  %v84_v4 = vstv %s7068_s5 }
  0x3d   :  { %85 = vst [vmem:[#allocation8] sm:$0x1] %v84_v4 }
  0x3e   :  { %86 = vsyncpa [#allocation10], 0 }
  0x3f   :  { %87 = vsyncpa [#allocation12], 0 }
  0x40   :  { %88 = vsyncpa [#allocation15], 0 }
  0x41   :  { %89 = vsyncpa [#allocation18], 0 }
  0x42   :  { %90 = vsyncpa [#allocation21], 0 }
  0x43   :  { %91 = vsyncpa [#allocation24], 0 }
  0x44   :  { %92 = vsyncpa [#allocation27], 0 }
  0x45   :  { %93 = vsyncpa [#allocation30], 0 }
  0x46   :  { %94 = vsyncpa [#allocation33], 0 }
  0x47   :  { %95 = vsyncpa [#allocation36], 0  ;;  %s9428_s0 = smov [#allocation11]   ;;  %s9429_s12 = smov [#allocation14]  }
  0x48   :  { %s114_s14 = sshll.u32 %s9428_s0, 4  ;;  %s133_s7 = sshll.u32 %s9429_s12, 4  ;;  %s115_s14 = int_to_ptr.vmem [resolvable:$true] %s114_s14  ;;  %s9643_s7 = int_to_ptr.vmem [resolvable:$true] %s133_s7 }
  0x49   :  { %s8977_s16 = scalar_lea.hbm %s9486_s13, 48 }
  0x4a   :  { %p8978_p0 = scmp.ne.s32.totalorder %s9486_s13, %s8977_s16  ;;  %p8981_p1 = scmp.lt.u32.totalorder %s8977_s16, %s9486_s13 }
  0x4c   :  { %p8983_p2 = pnand %p8981_p1, %p8978_p0 }
  0x4e   :  { %8986 = shalt.err (!%p8983_p2)
}
  0x4f   :  { %s8987_s28 = scalar_lea.vmem %s115_s14, 48  ;;  %s8991_s18 = scalar_lea.vmem %s115_s14, 64 }
  0x50   :  { %p8988_p3 = scmp.ne.s32.totalorder %s115_s14, %s8987_s28  ;;  %p8992_p4 = scmp.lt.s32.totalorder %s115_s14, %s115_s14 }
  0x51   :  { %p8993_p5 = scmp.lt.s32.totalorder %s8991_s18, %s8987_s28 }
  0x53   :  { %p8994_p6 = por %p8993_p5, %p8992_p4 }
  0x55   :  { %p8995_p7 = pnand %p8994_p6, %p8988_p3 }
  0x57   :  { %8998 = shalt.err (!%p8995_p7)
}
  0x58   :  { %117 = dma.hbm_to_vmem [thread:$0]  %s9486_s13, 48, %s115_s14, [#allocation12]  }
  0x59   :  { %s8999_s24 = scalar_lea.hbm %s9496_s21, 3840 }
  0x5a   :  { %p9000_p8 = scmp.ne.s32.totalorder %s9496_s21, %s8999_s24  ;;  %p9003_p9 = scmp.lt.u32.totalorder %s8999_s24, %s9496_s21 }
  0x5c   :  { %p9005_p10 = pnand %p9003_p9, %p9000_p8 }
  0x5e   :  { %9008 = shalt.err (!%p9005_p10)
}
  0x5f   :  { %s9009_s22 = scalar_lea.vmem %s9643_s7, 3840  ;;  %p9014_p12 = scmp.lt.s32.totalorder %s9643_s7, %s9643_s7 }
  0x60   :  { %p9010_p11 = scmp.ne.s32.totalorder %s9643_s7, %s9009_s22  ;;  %p9015_p13 = scmp.lt.s32.totalorder %s9009_s22, %s9009_s22 }
  0x62   :  { %p9016_p0 = por %p9015_p13, %p9014_p12 }
  0x64   :  { %p9017_p1 = pnand %p9016_p0, %p9010_p11 }
  0x66   :  { %9020 = shalt.err (!%p9017_p1)
}
  0x67   :  { %s9430_s26 = smov 384   ;;  %s9431_s13 = smov 24  }
  0x68   :  { %139 = dma.hbm_to_vmem [thread:$0]  %s9496_s21, 3840, %s9643_s7, [#allocation15], %s9430_s26, %s9430_s26, %s9431_s13  }
  0x69   :  { %s9432_s27 = smov [#allocation17]   ;;  %s9433_s2 = smov [#allocation20]  }
  0x6a   :  { %s155_s1 = sshll.u32 %s9432_s27, 4  ;;  %s179_s10 = sshll.u32 %s9433_s2, 4  ;;  %s156_s1 = int_to_ptr.vmem [resolvable:$true] %s155_s1  ;;  %s9661_s10 = int_to_ptr.vmem [resolvable:$true] %s179_s10 }
  0x6b   :  { %s9021_s30 = scalar_lea.hbm %s9506_s29, 3072 }
  0x6c   :  { %p9022_p2 = scmp.ne.s32.totalorder %s9506_s29, %s9021_s30  ;;  %p9025_p3 = scmp.lt.u32.totalorder %s9021_s30, %s9506_s29 }
  0x6e   :  { %p9027_p4 = pnand %p9025_p3, %p9022_p2 }
  0x70   :  { %9030 = shalt.err (!%p9027_p4)
}
  0x71   :  { %s9031_s11 = scalar_lea.vmem %s156_s1, 3072  ;;  %p9036_p6 = scmp.lt.s32.totalorder %s156_s1, %s156_s1 }
  0x72   :  { %p9032_p5 = scmp.ne.s32.totalorder %s156_s1, %s9031_s11  ;;  %p9037_p7 = scmp.lt.s32.totalorder %s9031_s11, %s9031_s11 }
  0x74   :  { %p9038_p8 = por %p9037_p7, %p9036_p6 }
  0x76   :  { %p9039_p9 = pnand %p9038_p8, %p9032_p5 }
  0x78   :  { %9042 = shalt.err (!%p9039_p9)
}
  0x79   :  { %161 = dma.hbm_to_vmem [thread:$0]  %s9506_s29, 3072, %s156_s1, [#allocation18], %s9430_s26, %s9430_s26, %s9431_s13  }
  0x7a   :  { %s9043_s21 = scalar_lea.hbm %s9516_s8, 768 }
  0x7b   :  { %p9044_p10 = scmp.ne.s32.totalorder %s9516_s8, %s9043_s21  ;;  %p9047_p11 = scmp.lt.u32.totalorder %s9043_s21, %s9516_s8 }
  0x7d   :  { %p9049_p12 = pnand %p9047_p11, %p9044_p10 }
  0x7f   :  { %9052 = shalt.err (!%p9049_p12)
}
  0x80   :  { %s9053_s15 = scalar_lea.vmem %s9661_s10, 768  ;;  %p9058_p0 = scmp.lt.s32.totalorder %s9661_s10, %s9661_s10 }
  0x81   :  { %p9054_p13 = scmp.ne.s32.totalorder %s9661_s10, %s9053_s15  ;;  %p9059_p1 = scmp.lt.s32.totalorder %s9053_s15, %s9053_s15 }
  0x83   :  { %p9060_p2 = por %p9059_p1, %p9058_p0 }
  0x85   :  { %p9061_p3 = pnand %p9060_p2, %p9054_p13 }
  0x87   :  { %9064 = shalt.err (!%p9061_p3)
}
  0x88   :  { %185 = dma.hbm_to_vmem [thread:$0]  %s9516_s8, 768, %s9661_s10, [#allocation21], %s9430_s26, %s9430_s26, %s9431_s13  }
  0x89   :  { %s9434_s29 = smov [#allocation23]   ;;  %s9065_s0 = scalar_lea.hbm %s9526_s19, 48 }
  0x8a   :  { %s204_s5 = sshll.u32 %s9434_s29, 4  ;;  %p9066_p4 = scmp.ne.s32.totalorder %s9526_s19, %s9065_s0  ;;  %s205_s5 = int_to_ptr.vmem [resolvable:$true] %s204_s5 }
  0x8b   :  { %p9069_p5 = scmp.lt.u32.totalorder %s9065_s0, %s9526_s19 }
  0x8d   :  { %p9071_p6 = pnand %p9069_p5, %p9066_p4 }
  0x8f   :  { %9074 = shalt.err (!%p9071_p6)
}
  0x90   :  { %s9075_s14 = scalar_lea.vmem %s205_s5, 48  ;;  %s9079_s12 = scalar_lea.vmem %s205_s5, 64 }
  0x91   :  { %p9076_p7 = scmp.ne.s32.totalorder %s205_s5, %s9075_s14  ;;  %p9080_p8 = scmp.lt.s32.totalorder %s205_s5, %s205_s5 }
  0x92   :  { %p9081_p9 = scmp.lt.s32.totalorder %s9079_s12, %s9075_s14 }
  0x94   :  { %p9082_p10 = por %p9081_p9, %p9080_p8 }
  0x96   :  { %p9083_p11 = pnand %p9082_p10, %p9076_p7 }
  0x98   :  { %9086 = shalt.err (!%p9083_p11)
}
  0x99   :  { %207 = dma.hbm_to_vmem [thread:$0]  %s9526_s19, 48, %s205_s5, [#allocation24]  }
  0x9a   :  { %s9435_s8 = smov [#allocation26]   ;;  %s9436_s16 = smov [#allocation29]  }
  0x9b   :  { %s227_s7 = sshll.u32 %s9435_s8, 4  ;;  %s249_s28 = sshll.u32 %s9436_s16, 4  ;;  %s228_s7 = int_to_ptr.vmem [resolvable:$true] %s227_s7  ;;  %s250_s28 = int_to_ptr.vmem [resolvable:$true] %s249_s28 }
  0x9c   :  { %s9087_s18 = scalar_lea.hbm %s9541_s6, 2048 }
  0x9d   :  { %p9088_p12 = scmp.ne.s32.totalorder %s9541_s6, %s9087_s18  ;;  %p9091_p13 = scmp.lt.u32.totalorder %s9087_s18, %s9541_s6 }
  0x9f   :  { %p9093_p0 = pnand %p9091_p13, %p9088_p12 }
  0xa1   :  { %9096 = shalt.err (!%p9093_p0)
}
  0xa2   :  { %s9097_s24 = scalar_lea.vmem %s228_s7, 2048  ;;  %p9102_p2 = scmp.lt.s32.totalorder %s228_s7, %s228_s7 }
  0xa3   :  { %p9098_p1 = scmp.ne.s32.totalorder %s228_s7, %s9097_s24  ;;  %p9103_p3 = scmp.lt.s32.totalorder %s9097_s24, %s9097_s24 }
  0xa5   :  { %p9104_p4 = por %p9103_p3, %p9102_p2 }
  0xa7   :  { %p9105_p5 = pnand %p9104_p4, %p9098_p1 }
  0xa9   :  { %9108 = shalt.err (!%p9105_p5)
}
  0xaa   :  { %s9437_s22 = smov 256   ;;  %s9438_s19 = smov 16  }
  0xab   :  { %233 = dma.hbm_to_vmem [thread:$0]  %s9541_s6, 2048, %s228_s7, [#allocation27], %s9437_s22, %s9437_s22, %s9438_s19  }
  0xac   :  { %s9109_s27 = scalar_lea.hbm %s9551_s20, 1024 }
  0xad   :  { %p9110_p6 = scmp.ne.s32.totalorder %s9551_s20, %s9109_s27  ;;  %p9113_p7 = scmp.lt.u32.totalorder %s9109_s27, %s9551_s20 }
  0xaf   :  { %p9115_p8 = pnand %p9113_p7, %p9110_p6 }
  0xb1   :  { %9118 = shalt.err (!%p9115_p8)
}
  0xb2   :  { %s9119_s1 = scalar_lea.vmem %s250_s28, 1024  ;;  %p9124_p10 = scmp.lt.s32.totalorder %s250_s28, %s250_s28 }
  0xb3   :  { %p9120_p9 = scmp.ne.s32.totalorder %s250_s28, %s9119_s1  ;;  %p9125_p11 = scmp.lt.s32.totalorder %s9119_s1, %s9119_s1 }
  0xb5   :  { %p9126_p12 = por %p9125_p11, %p9124_p10 }
  0xb7   :  { %p9127_p13 = pnand %p9126_p12, %p9120_p9 }
  0xb9   :  { %9130 = shalt.err (!%p9127_p13)
}
  0xba   :  { %s9439_s2 = smov 128   ;;  %s9440_s10 = smov 8  }
  0xbb   :  { %255 = dma.hbm_to_vmem [thread:$0]  %s9551_s20, 1024, %s250_s28, [#allocation30], %s9439_s2, %s9439_s2, %s9440_s10  }
  0xbc   :  { %s9441_s6 = smov [#allocation32]   ;;  %s9442_s11 = smov [#allocation9]  }
  0xbd   :  { %s272_s30 = sshll.u32 %s9441_s6, 4  ;;  %s104_s21 = sshll.u32 %s9442_s11, 4  ;;  %s273_s30 = int_to_ptr.vmem [resolvable:$true] %s272_s30  ;;  %s105_s21 = int_to_ptr.vmem [resolvable:$true] %s104_s21 }
  0xbe   :  { %s9131_s15 = scalar_lea.hbm %s9561_s4, 16 }
  0xbf   :  { %p9132_p0 = scmp.ne.s32.totalorder %s9561_s4, %s9131_s15  ;;  %p9135_p1 = scmp.lt.u32.totalorder %s9131_s15, %s9561_s4 }
  0xc1   :  { %p9137_p2 = pnand %p9135_p1, %p9132_p0 }
  0xc3   :  { %9140 = shalt.err (!%p9137_p2)
}
  0xc4   :  { %s9141_s29 = scalar_lea.vmem %s273_s30, 16  ;;  %s9145_s5 = scalar_lea.vmem %s273_s30, 32 }
  0xc5   :  { %p9142_p3 = scmp.ne.s32.totalorder %s273_s30, %s9141_s29  ;;  %p9146_p4 = scmp.lt.s32.totalorder %s273_s30, %s273_s30 }
  0xc6   :  { %p9147_p5 = scmp.lt.s32.totalorder %s9145_s5, %s9141_s29 }
  0xc8   :  { %p9148_p6 = por %p9147_p5, %p9146_p4 }
  0xca   :  { %p9149_p7 = pnand %p9148_p6, %p9142_p3 }
  0xcc   :  { %9152 = shalt.err (!%p9149_p7)
}
  0xcd   :  { %275 = dma.hbm_to_vmem [thread:$0]  %s9561_s4, 16, %s273_s30, [#allocation33]  }
  0xce   :  { %s9153_s20 = scalar_lea.hbm %s9481_s9, 48 }
  0xcf   :  { %p9154_p8 = scmp.ne.s32.totalorder %s9481_s9, %s9153_s20  ;;  %p9157_p9 = scmp.lt.u32.totalorder %s9153_s20, %s9481_s9 }
  0xd1   :  { %p9159_p10 = pnand %p9157_p9, %p9154_p8 }
  0xd3   :  { %9162 = shalt.err (!%p9159_p10)
}
  0xd4   :  { %s9163_s0 = scalar_lea.vmem %s105_s21, 48  ;;  %s9167_s14 = scalar_lea.vmem %s105_s21, 64 }
  0xd5   :  { %p9164_p11 = scmp.ne.s32.totalorder %s105_s21, %s9163_s0  ;;  %p9168_p12 = scmp.lt.s32.totalorder %s105_s21, %s105_s21 }
  0xd6   :  { %p9169_p13 = scmp.lt.s32.totalorder %s9167_s14, %s9163_s0 }
  0xd8   :  { %p9170_p0 = por %p9169_p13, %p9168_p12 }
  0xda   :  { %p9171_p1 = pnand %p9170_p0, %p9164_p11 }
  0xdc   :  { %9174 = shalt.err (!%p9171_p1)
}
  0xdd   :  { %107 = dma.hbm_to_vmem [thread:$0]  %s9481_s9, 48, %s105_s21, [#allocation10]  }
  0xde   :  { %s9443_s4 = smov [#allocation13]   ;;  %s9444_s8 = smov [#allocation16]  }
  0xdf   :  { %s124_s12 = sshll.u32 %s9443_s4, 4  ;;  %s146_s7 = sshll.u32 %s9444_s8, 4  ;;  %s125_s12 = int_to_ptr.vmem [resolvable:$true] %s124_s12  ;;  %s147_s7 = int_to_ptr.vmem [resolvable:$true] %s146_s7 }
  0xe0   :  { %s9175_s16 = scalar_lea.hbm %s9491_s17, 48 }
  0xe1   :  { %p9176_p2 = scmp.ne.s32.totalorder %s9491_s17, %s9175_s16  ;;  %p9179_p3 = scmp.lt.u32.totalorder %s9175_s16, %s9491_s17 }
  0xe3   :  { %p9181_p4 = pnand %p9179_p3, %p9176_p2 }
  0xe5   :  { %9184 = shalt.err (!%p9181_p4)
}
  0xe6   :  { %s9185_s28 = scalar_lea.vmem %s125_s12, 48  ;;  %s9189_s18 = scalar_lea.vmem %s125_s12, 64 }
  0xe7   :  { %p9186_p5 = scmp.ne.s32.totalorder %s125_s12, %s9185_s28  ;;  %p9190_p6 = scmp.lt.s32.totalorder %s125_s12, %s125_s12 }
  0xe8   :  { %p9191_p7 = scmp.lt.s32.totalorder %s9189_s18, %s9185_s28 }
  0xea   :  { %p9192_p8 = por %p9191_p7, %p9190_p6 }
  0xec   :  { %p9193_p9 = pnand %p9192_p8, %p9186_p5 }
  0xee   :  { %9196 = shalt.err (!%p9193_p9)
}
  0xef   :  { %127 = dma.hbm_to_vmem [thread:$0]  %s9491_s17, 48, %s125_s12, [#allocation12]  }
  0xf0   :  { %s9197_s9 = scalar_lea.hbm %s9501_s25, 48 }
  0xf1   :  { %p9198_p10 = scmp.ne.s32.totalorder %s9501_s25, %s9197_s9  ;;  %p9201_p11 = scmp.lt.u32.totalorder %s9197_s9, %s9501_s25 }
  0xf3   :  { %p9203_p12 = pnand %p9201_p11, %p9198_p10 }
  0xf5   :  { %9206 = shalt.err (!%p9203_p12)
}
  0xf6   :  { %s9207_s24 = scalar_lea.vmem %s147_s7, 48  ;;  %s9211_s27 = scalar_lea.vmem %s147_s7, 64 }
  0xf7   :  { %p9208_p13 = scmp.ne.s32.totalorder %s147_s7, %s9207_s24  ;;  %p9212_p0 = scmp.lt.s32.totalorder %s147_s7, %s147_s7 }
  0xf8   :  { %p9213_p1 = scmp.lt.s32.totalorder %s9211_s27, %s9207_s24 }
  0xfa   :  { %p9214_p2 = por %p9213_p1, %p9212_p0 }
  0xfc   :  { %p9215_p3 = pnand %p9214_p2, %p9208_p13 }
  0xfe   :  { %9218 = shalt.err (!%p9215_p3)
}
  0xff   :  { %149 = dma.hbm_to_vmem [thread:$0]  %s9501_s25, 48, %s147_s7, [#allocation15]  }
 0x100   :  { %s9445_s17 = smov [#allocation19]   ;;  %s9446_s2 = smov [#allocation22]  }
 0x101   :  { %s167_s1 = sshll.u32 %s9445_s17, 4  ;;  %s191_s10 = sshll.u32 %s9446_s2, 4  ;;  %s168_s1 = int_to_ptr.vmem [resolvable:$true] %s167_s1  ;;  %s192_s10 = int_to_ptr.vmem [resolvable:$true] %s191_s10 }
 0x102   :  { %s9219_s6 = scalar_lea.hbm %s9511_s3, 3072 }
 0x103   :  { %p9220_p4 = scmp.ne.s32.totalorder %s9511_s3, %s9219_s6  ;;  %p9223_p5 = scmp.lt.u32.totalorder %s9219_s6, %s9511_s3 }
 0x105   :  { %p9225_p6 = pnand %p9223_p5, %p9220_p4 }
 0x107   :  { %9228 = shalt.err (!%p9225_p6)
}
 0x108   :  { %s9229_s30 = scalar_lea.vmem %s168_s1, 3072  ;;  %p9234_p8 = scmp.lt.s32.totalorder %s168_s1, %s168_s1 }
 0x109   :  { %p9230_p7 = scmp.ne.s32.totalorder %s168_s1, %s9229_s30  ;;  %p9235_p9 = scmp.lt.s32.totalorder %s9229_s30, %s9229_s30 }
 0x10b   :  { %p9236_p10 = por %p9235_p9, %p9234_p8 }
 0x10d   :  { %p9237_p11 = pnand %p9236_p10, %p9230_p7 }
 0x10f   :  { %9240 = shalt.err (!%p9237_p11)
}
 0x110   :  { %s11043_s25 = sld [smem:[#allocation48_spill]] }
 0x111   :  { %173 = dma.hbm_to_vmem [thread:$0]  %s9511_s3, 3072, %s168_s1, [#allocation18], %s9430_s26, %s9430_s26, %s9431_s13  }
 0x116   :  { %s9241_s11 = scalar_lea.hbm %s11043_s25, 3840 }
 0x117   :  { %p9242_p12 = scmp.ne.s32.totalorder %s11043_s25, %s9241_s11  ;;  %p9245_p13 = scmp.lt.u32.totalorder %s9241_s11, %s11043_s25 }
 0x119   :  { %p9247_p0 = pnand %p9245_p13, %p9242_p12 }
 0x11b   :  { %9250 = shalt.err (!%p9247_p0)
}
 0x11c   :  { %s9251_s21 = scalar_lea.vmem %s192_s10, 3840  ;;  %p9256_p2 = scmp.lt.s32.totalorder %s192_s10, %s192_s10 }
 0x11d   :  { %p9252_p1 = scmp.ne.s32.totalorder %s192_s10, %s9251_s21  ;;  %p9257_p3 = scmp.lt.s32.totalorder %s9251_s21, %s9251_s21 }
 0x11f   :  { %p9258_p4 = por %p9257_p3, %p9256_p2 }
 0x121   :  { %p9259_p5 = pnand %p9258_p4, %p9252_p1 }
 0x123   :  { %9262 = shalt.err (!%p9259_p5)
}
 0x124   :  { %s11044_s15 = sld [smem:[#allocation50_spill]]  ;;  %s9447_s3 = smov [#allocation25]  }
 0x125   :  { %197 = dma.hbm_to_vmem [thread:$0]  %s11043_s25, 3840, %s192_s10, [#allocation21], %s9430_s26, %s9430_s26, %s9431_s13  }
 0x126   :  { %s215_s29 = sshll.u32 %s9447_s3, 4  ;;  %s9448_s5 = smov [#allocation28]   ;;  %s216_s29 = int_to_ptr.vmem [resolvable:$true] %s215_s29 }
 0x127   :  { %s240_s20 = sshll.u32 %s9448_s5, 4  ;;  %s241_s20 = int_to_ptr.vmem [resolvable:$true] %s240_s20 }
 0x12a   :  { %s9263_s0 = scalar_lea.hbm %s11044_s15, 2048 }
 0x12b   :  { %p9264_p6 = scmp.ne.s32.totalorder %s11044_s15, %s9263_s0  ;;  %p9267_p7 = scmp.lt.u32.totalorder %s9263_s0, %s11044_s15 }
 0x12d   :  { %p9269_p8 = pnand %p9267_p7, %p9264_p6 }
 0x12f   :  { %9272 = shalt.err (!%p9269_p8)
}
 0x130   :  { %s9273_s14 = scalar_lea.vmem %s216_s29, 2048  ;;  %p9278_p10 = scmp.lt.s32.totalorder %s216_s29, %s216_s29 }
 0x131   :  { %p9274_p9 = scmp.ne.s32.totalorder %s216_s29, %s9273_s14  ;;  %p9279_p11 = scmp.lt.s32.totalorder %s9273_s14, %s9273_s14 }
 0x133   :  { %p9280_p12 = por %p9279_p11, %p9278_p10 }
 0x135   :  { %p9281_p13 = pnand %p9280_p12, %p9274_p9 }
 0x137   :  { %9284 = shalt.err (!%p9281_p13)
}
 0x138   :  { %s11045_s26 = sld [smem:[#allocation51_spill]] }
 0x139   :  { %221 = dma.hbm_to_vmem [thread:$0]  %s11044_s15, 2048, %s216_s29, [#allocation24], %s9437_s22, %s9437_s22, %s9438_s19  }
 0x13e   :  { %s9285_s13 = scalar_lea.hbm %s11045_s26, 32 }
 0x13f   :  { %p9286_p0 = scmp.ne.s32.totalorder %s11045_s26, %s9285_s13  ;;  %p9289_p1 = scmp.lt.u32.totalorder %s9285_s13, %s11045_s26 }
 0x141   :  { %p9291_p2 = pnand %p9289_p1, %p9286_p0 }
 0x143   :  { %9294 = shalt.err (!%p9291_p2)
}
 0x144   :  { %s9295_s4 = scalar_lea.vmem %s241_s20, 32  ;;  %p9300_p4 = scmp.lt.s32.totalorder %s241_s20, %s241_s20 }
 0x145   :  { %p9296_p3 = scmp.ne.s32.totalorder %s241_s20, %s9295_s4  ;;  %p9301_p5 = scmp.lt.s32.totalorder %s9295_s4, %s9295_s4 }
 0x147   :  { %p9302_p6 = por %p9301_p5, %p9300_p4 }
 0x149   :  { %p9303_p7 = pnand %p9302_p6, %p9296_p3 }
 0x14b   :  { %9306 = shalt.err (!%p9303_p7)
}
 0x14c   :  { %s11046_s12 = sld [smem:[#allocation52_spill]]  ;;  %s9449_s8 = smov [#allocation31]  }
 0x14d   :  { %243 = dma.hbm_to_vmem [thread:$0]  %s11045_s26, 32, %s241_s20, [#allocation27]  }
 0x14e   :  { %s262_s22 = sshll.u32 %s9449_s8, 4  ;;  %s9450_s7 = smov [#allocation34]   ;;  %s263_s22 = int_to_ptr.vmem [resolvable:$true] %s262_s22 }
 0x14f   :  { %s286_s16 = sshll.u32 %s9450_s7, 4  ;;  %s287_s16 = int_to_ptr.vmem [resolvable:$true] %s286_s16 }
 0x152   :  { %s9307_s28 = scalar_lea.hbm %s11046_s12, 16 }
 0x153   :  { %p9308_p8 = scmp.ne.s32.totalorder %s11046_s12, %s9307_s28  ;;  %p9311_p9 = scmp.lt.u32.totalorder %s9307_s28, %s11046_s12 }
 0x155   :  { %p9313_p10 = pnand %p9311_p9, %p9308_p8 }
 0x157   :  { %9316 = shalt.err (!%p9313_p10)
}
 0x158   :  { %s9317_s18 = scalar_lea.vmem %s263_s22, 16  ;;  %s9321_s9 = scalar_lea.vmem %s263_s22, 32 }
 0x159   :  { %p9318_p11 = scmp.ne.s32.totalorder %s263_s22, %s9317_s18  ;;  %p9322_p12 = scmp.lt.s32.totalorder %s263_s22, %s263_s22 }
 0x15a   :  { %p9323_p13 = scmp.lt.s32.totalorder %s9321_s9, %s9317_s18 }
 0x15c   :  { %p9324_p0 = por %p9323_p13, %p9322_p12 }
 0x15e   :  { %p9325_p1 = pnand %p9324_p0, %p9318_p11 }
 0x160   :  { %9328 = shalt.err (!%p9325_p1)
}
 0x161   :  { %s11047_s24 = sld [smem:[#allocation54_spill]] }
 0x162   :  { %265 = dma.hbm_to_vmem [thread:$0]  %s11046_s12, 16, %s263_s22, [#allocation30]  }
 0x167   :  { %s9329_s27 = scalar_lea.hbm %s11047_s24, 16 }
 0x168   :  { %p9330_p2 = scmp.ne.s32.totalorder %s11047_s24, %s9329_s27  ;;  %p9333_p3 = scmp.lt.u32.totalorder %s9329_s27, %s11047_s24 }
 0x16a   :  { %p9335_p4 = pnand %p9333_p3, %p9330_p2 }
 0x16c   :  { %9338 = shalt.err (!%p9335_p4)
}
 0x16d   :  { %s9339_s17 = scalar_lea.vmem %s287_s16, 16  ;;  %s9343_s1 = scalar_lea.vmem %s287_s16, 32 }
 0x16e   :  { %p9340_p5 = scmp.ne.s32.totalorder %s287_s16, %s9339_s17  ;;  %p9344_p6 = scmp.lt.s32.totalorder %s287_s16, %s287_s16 }
 0x16f   :  { %p9345_p7 = scmp.lt.s32.totalorder %s9343_s1, %s9339_s17 }
 0x171   :  { %p9346_p8 = por %p9345_p7, %p9344_p6 }
 0x173   :  { %p9347_p9 = pnand %p9346_p8, %p9340_p5 }
 0x175   :  { %9350 = shalt.err (!%p9347_p9)
}
 0x176   :  { %s11048_s2 = sld [smem:[#allocation55_spill]]  ;;  %s9451_s10 = smov [#allocation35]  }
 0x177   :  { %289 = dma.hbm_to_vmem [thread:$0]  %s11047_s24, 16, %s287_s16, [#allocation33]  }
 0x178   :  { %s296_s6 = sshll.u32 %s9451_s10, 4  ;;  %s297_s6 = int_to_ptr.vmem [resolvable:$true] %s296_s6 }
 0x17c   :  { %s9351_s30 = scalar_lea.hbm %s11048_s2, 16 }
 0x17d   :  { %p9352_p10 = scmp.ne.s32.totalorder %s11048_s2, %s9351_s30  ;;  %p9355_p11 = scmp.lt.u32.totalorder %s9351_s30, %s11048_s2 }
 0x17f   :  { %p9357_p12 = pnand %p9355_p11, %p9352_p10 }
 0x181   :  { %9360 = shalt.err (!%p9357_p12)
}
 0x182   :  { %s9361_s25 = scalar_lea.vmem %s297_s6, 16  ;;  %s9365_s11 = scalar_lea.vmem %s297_s6, 32 }
 0x183   :  { %p9362_p13 = scmp.ne.s32.totalorder %s297_s6, %s9361_s25  ;;  %p9366_p0 = scmp.lt.s32.totalorder %s297_s6, %s297_s6 }
 0x184   :  { %p9367_p1 = scmp.lt.s32.totalorder %s9365_s11, %s9361_s25 }
 0x186   :  { %p9368_p2 = por %p9367_p1, %p9366_p0 }
 0x188   :  { %p9369_p3 = pnand %p9368_p2, %p9362_p13 }
 0x18a   :  { %9372 = shalt.err (!%p9369_p3)
}
 0x18b   :  { %299 = dma.hbm_to_vmem [thread:$0]  %s11048_s2, 16, %s297_s6, [#allocation36]  }
 0x18c   :  { %9373 = dma.done.wait [#allocation10], 48  }
 0x18d   :  { %9374 = vsyncadd [#allocation10], 4294967248 }
 0x18e   :  { %9375 = dma.done.wait [#allocation12], 96  }
 0x18f   :  { %9376 = vsyncadd [#allocation12], 4294967200 }
 0x190   :  { %9377 = dma.done.wait [#allocation15], 3888  }
 0x191   :  { %9378 = vsyncadd [#allocation15], 4294963408 }
 0x192   :  { %9379 = dma.done.wait [#allocation18], 6144  }
 0x193   :  { %9380 = vsyncadd [#allocation18], 4294961152 }
 0x194   :  { %9381 = dma.done.wait [#allocation21], 4608  }
 0x195   :  { %9382 = vsyncadd [#allocation21], 4294962688 }
 0x196   :  { %9383 = dma.done.wait [#allocation24], 2096  }
 0x197   :  { %9384 = vsyncadd [#allocation24], 4294965200 }
 0x198   :  { %9385 = dma.done.wait [#allocation27], 2080  }
 0x199   :  { %9386 = vsyncadd [#allocation27], 4294965216 }
 0x19a   :  { %9387 = dma.done.wait [#allocation30], 1040  }
 0x19b   :  { %9388 = vsyncadd [#allocation30], 4294966256 }
 0x19c   :  { %9389 = dma.done.wait [#allocation33], 32  }
 0x19d   :  { %9390 = vsyncadd [#allocation33], 4294967264 }
 0x19e   :  { %9391 = dma.done.wait [#allocation36], 16  }
 0x19f   :  { %9392 = vsyncadd [#allocation36], 4294967280  ;;  %s11049_s21 = sld [smem:[#allocation47_spill]]  ;;  %v11020_v5 = vmov 0.0|0.0   ;;  %v11018_v6 = vmov 0.0   ;;  %vm9454_vm0 = vmmov 0  }
 0x1a0   :  { %7881 = vmatprep.subr.bf16.mxu1 %v11020_v5  ;;  %843 = vmatprep.mubr.f32.mxu0 %v11018_v6  ;;  %v9455_v7 = vmov 0   ;;  %v745_v9 = vld [vmem:[#allocation14 + $0x8] sm:$0xff]  ;;  %v748_v10 = vld [vmem:[#allocation14 + $0x20] sm:$0xff]  ;;  %s9456_s15 = smov 124   ;;  %v747_v14 = vld [vmem:[#allocation14 + $0x18] sm:$0xff]  ;;  %s9457_s3 = smov 123  }
 0x1a1   :  { %7416 = vmatprep.mubr.msk.f32.mxu1 %vm9454_vm0, %v11018_v6  ;;  %8763 = vset.pattern.permute.xlu1 %v9455_v7  ;;  %v9759_v12 = vpack.c.bf16 %v748_v10, %v745_v9  ;;  %v744_v13 = vld [vmem:[#allocation14] sm:$0xff]  ;;  %v751_v15 = vld [vmem:[#allocation14 + $0x38] sm:$0xff]  ;;  %v754_v17 = vld [vmem:[#allocation14 + $0x50] sm:$0xff]  ;;  %s9458_s29 = smov 127   ;;  %s9459_s5 = smov 126   ;;  %vm408_vm1 = vcmask 1041408  }
 0x1a2   :  { %8764 = vset.pattern.permute.xlu0 %v9455_v7  ;;  %v9761_v16 = vpack.c.bf16 %v747_v14, %v744_v13  ;;  %v746_v18 = vld [vmem:[#allocation14 + $0x10] sm:$0xff]  ;;  %v749_v19 = vld [vmem:[#allocation14 + $0x28] sm:$0xff]  ;;  %v9765_v21 = vpack.c.bf16 %v754_v17, %v751_v15  ;;  %v760_v27 = vld [vmem:[#allocation14 + $0x80] sm:$0xff]  ;;  %s9460_s20 = smov 122   ;;  %s9461_s0 = smov 125   ;;  %vm410_vm2 = vcmask 1043456  }
 0x1a3   :  { %7862 = vmatprep.subr.bf16.mxu0 %v9759_v12  ;;  %v9767_v22 = vpack.c.bf16 %v749_v19, %v746_v18  ;;  %v750_v23 = vld [vmem:[#allocation14 + $0x30] sm:$0xff]  ;;  %v753_v24 = vld [vmem:[#allocation14 + $0x48] sm:$0xff]  ;;  %v752_v28 = vld [vmem:[#allocation14 + $0x40] sm:$0xff]  ;;  %s9462_s14 = smov 121   ;;  %vm412_vm3 = vcmask 1045504   ;;  %vm551_vm4 = vcmask 1043458  }
 0x1a4   :  { %v757_v25 = vld [vmem:[#allocation14 + $0x68] sm:$0xff]  ;;  %7864 = vmatpush1.bf16.msra.mxu0 %v9761_v16  ;;  %v9770_v26 = vpack.c.bf16 %v753_v24, %v750_v23  ;;  %v755_v29 = vld [vmem:[#allocation14 + $0x58] sm:$0xff]  ;;  %v756_v31 = vld [vmem:[#allocation14 + $0x60] sm:$0xff]  ;;  %v9463_v9 = vmov 1983009808   ;;  %vm553_vm5 = vcmask 521220  }
 0x1a5   :  { %v9755_v8 = vld [vmem:[%s11049_s21] sm:$0x3]  ;;  %7866 = vmatprep.subr.bf16.mxu0 %v9765_v21  ;;  %v9773_v30 = vpack.c.bf16 %v760_v27, %v757_v25  ;;  %7883 = vmatpush3.bf16.msra.mxu1 %v9767_v22  ;;  %v9776_v33 = vpack.c.bf16 %v755_v29, %v752_v28  ;;  %v766_v35 = vld [vmem:[#allocation14 + $0xb0] sm:$0xff]  ;;  %v761_v38 = vld [vmem:[#allocation14 + $0x88] sm:$0xff]  ;;  %v536_v10 = vunpack.c.l.s4 %v9463_v9  ;;  %vm952_vm8 = vcmask 130048   ;;  %s9464_s26 = smov 80  }
 0x1a6   :  { %396 = vrot.lane.b32.xlu0 %v9755_v8, %s9456_s15  ;;  %v384_v11 = vrot.slane %v9755_v8, 6  ;;  %v388_v20 = vrot.slane %v9755_v8, 4  ;;  %v759_v32 = vld [vmem:[#allocation14 + $0x78] sm:$0xff]  ;;  %v392_v36 = vrot.slane %v9755_v8, 2  ;;  %7884 = vmatprep.subr.bf16.mxu1 %v11020_v5  ;;  %v758_v37 = vld [vmem:[#allocation14 + $0x70] sm:$0xff]  ;;  %v765_v42 = vld [vmem:[#allocation14 + $0xa8] sm:$0xff] }
 0x1a7   :  { %v763_v34 = vld [vmem:[#allocation14 + $0x98] sm:$0xff]  ;;  %v9781_v39 = vpack.c.bf16 %v759_v32, %v756_v31  ;;  %v762_v41 = vld [vmem:[#allocation14 + $0x90] sm:$0xff]  ;;  %v9787_v43 = vpack.c.bf16 %v761_v38, %v758_v37  ;;  %v769_v44 = vld [vmem:[#allocation14 + $0xc8] sm:$0xff]  ;;  %s9465_s13 = smov 96   ;;  %vm775_vm9 = vcmask 654336   ;;  %s9466_s4 = smov 48  }
 0x1a8   :  { %399 = vrot.lane.b32.xlu1 %v384_v11, %s9457_s3  ;;  %7868 = vmatpush1.bf16.msra.mxu0 %v9770_v26  ;;  %v9784_v40 = vpack.c.bf16 %v766_v35, %v763_v34  ;;  %v772_v45 = vld [vmem:[#allocation14 + $0xe0] sm:$0xff]  ;;  %v767_v47 = vld [vmem:[#allocation14 + $0xb8] sm:$0xff]  ;;  %v9791_v48 = vpack.c.bf16 %v765_v42, %v762_v41  ;;  %v770_v53 = vld [vmem:[#allocation14 + $0xd0] sm:$0xff]  ;;  %vm975_vm10 = vcmask 392192   ;;  %s9467_s12 = smov 64   ;;  %vm2513_vm12 = vcmask 523264  }
 0x1a9   :  { %7870 = vmatprep.subr.bf16.mxu0 %v9773_v30  ;;  %7886 = vmatpush3.bf16.msra.mxu1 %v9776_v33  ;;  %v764_v46 = vld [vmem:[#allocation14 + $0xa0] sm:$0xff]  ;;  %v9794_v49 = vpack.c.bf16 %v772_v45, %v769_v44  ;;  %v771_v51 = vld [vmem:[#allocation14 + $0xd8] sm:$0xff]  ;;  %v773_v54 = vld [vmem:[#allocation14 + $0xe8] sm:$0xff]  ;;  %s11059_s8 = sld [smem:[#allocation49_spill]]  ;;  %s11061_s22 = sld [smem:[#allocation59_spill]]  ;;  %vm6947_vm13 = vcmask 123904  }
 0x1aa   :  { %385 = vrot.lane.b32.xlu0 %v384_v11, %s9458_s29  ;;  %7887 = vmatprep.subr.bf16.mxu1 %v11020_v5  ;;  %v768_v50 = vld [vmem:[#allocation14 + $0xc0] sm:$0xff]  ;;  %v9797_v52 = vpack.c.bf16 %v767_v47, %v764_v46  ;;  %v9805_v56 = vpack.c.bf16 %v773_v54, %v770_v53  ;;  %v537_v11 = vunpack.c.0.s8 %v536_v10  ;;  %v417_v31 = vld [vmem:[#allocation9] sm:$0x7]  ;;  %v450_v32 = vld [vmem:[#allocation11] sm:$0x7]  ;;  %s11062_s7 = sld [smem:[#allocation56_spill]] }
 0x1ab   :  { %v9801_v55 = vpack.c.bf16 %v771_v51, %v768_v50  ;;  %v473_v34 = vld [vmem:[#allocation13] sm:$0x7]  ;;  %v496_v35 = vld [vmem:[#allocation16] sm:$0x7]  ;;  %vm552_vm6 = vmor %vm551_vm4, %vm408_vm1  ;;  %s11063_s16 = sld [smem:[#allocation60_spill]]  ;;  %s11064_s28 = sld [smem:[#allocation61_spill]] }
 0x1ac   :  { %389 = vrot.lane.b32.xlu1 %v388_v20, %s9459_s5  ;;  %7872 = vmatpush1.bf16.msra.mxu0 %v9781_v39  ;;  %vm9892_vm7 = vmor %vm553_vm5, %vm552_vm6  ;;  %s11065_s18 = sld [smem:[#allocation57_spill]]  ;;  %s11066_s9 = sld [smem:[#allocation58_spill]]  ;;  %vm6842_vm14 = vcmask 254976   ;;  %vm6998_vm15 = vcmask 58368  }
 0x1ad   :  { %7874 = vmatprep.subr.bf16.mxu0 %v9784_v40  ;;  %7889 = vmatpush3.bf16.msra.mxu1 %v9787_v43  ;;  %s11067_s24 = sld [smem:[#allocation62_spill]]  ;;  %s11068_s27 = sld [smem:[#allocation63_spill]] }
 0x1ae   :  { %402 = vrot.lane.b32.xlu0 %v388_v20, %s9460_s20  ;;  %7890 = vmatprep.subr.bf16.mxu1 %v11020_v5  ;;  %s11069_s17 = sld [smem:[#allocation64_spill]] }
 0x1b0   :  { %393 = vrot.lane.b32.xlu1 %v392_v36, %s9461_s0  ;;  %7876 = vmatpush1.bf16.msra.mxu0 %v9791_v48 }
 0x1b1   :  { %7878 = vmatprep.subr.bf16.mxu0 %v9794_v49  ;;  %7892 = vmatpush3.bf16.msra.mxu1 %v9797_v52 }
 0x1b2   :  { %405 = vrot.lane.b32.xlu0 %v392_v36, %s9462_s14  ;;  %7893 = vmatprep.subr.bf16.mxu1 %v11020_v5 }
 0x1b4   :  { %7880 = vmatpush1.bf16.msra.mxu0 %v9801_v55 }
 0x1b5   :  { %7897 = vmatprep.subr.bf16.mxu0 %v9759_v12  ;;  %7895 = vmatpush3.bf16.msra.mxu1 %v9805_v56 }
 0x1b6   :  { %7916 = vmatprep.subr.bf16.mxu1 %v11020_v5 }
 0x1b7   :  { %844 = vmatmul.mubr.f32.vlgmr.msra.gmra.mrb[0].mxu0 %v11018_v6 }
 0x1b8   :  { %7899 = vmatpush1.bf16.msra.mxu0 %v9761_v16  ;;  %1047 = vmatprep.mubr.f32.mxu0 %v11018_v6 }
 0x1b9   :  { %7417 = vmatmul.mubr.f32.vlgmr.msra.gmra.mrb[0].mxu1 %v11018_v6  ;;  %7901 = vmatprep.subr.bf16.mxu0 %v9765_v21 }
 0x1ba   :  { %7918 = vmatpush3.bf16.msra.mxu1 %v9767_v22  ;;  %7439 = vmatprep.mubr.msk.f32.mxu1 %vm9454_vm0, %v11018_v6 }
 0x1bb   :  { %7919 = vmatprep.subr.bf16.mxu1 %v11020_v5 }
 0x1bc   :  { %7903 = vmatpush1.bf16.msra.mxu0 %v9770_v26 }
 0x1bd   :  { %7905 = vmatprep.subr.bf16.mxu0 %v9773_v30 }
 0x1be   :  { %7921 = vmatpush3.bf16.msra.mxu1 %v9776_v33 }
 0x1bf   :  { %7922 = vmatprep.subr.bf16.mxu1 %v11020_v5 }
 0x1c0   :  { %7907 = vmatpush1.bf16.msra.mxu0 %v9781_v39 }
 0x1c1   :  { %7909 = vmatprep.subr.bf16.mxu0 %v9784_v40 }
 0x1c2   :  { %7924 = vmatpush3.bf16.msra.mxu1 %v9787_v43 }
 0x1c3   :  { %7925 = vmatprep.subr.bf16.mxu1 %v11020_v5 }
 0x1c4   :  { %7911 = vmatpush1.bf16.msra.mxu0 %v9791_v48 }
 0x1c5   :  { %7913 = vmatprep.subr.bf16.mxu0 %v9794_v49 }
 0x1c6   :  { %7927 = vmatpush3.bf16.msra.mxu1 %v9797_v52 }
 0x1c7   :  { %7928 = vmatprep.subr.bf16.mxu1 %v11020_v5 }
 0x1c8   :  { %7915 = vmatpush1.bf16.msra.mxu0 %v9801_v55 }
 0x1c9   :  { %7932 = vmatprep.subr.bf16.mxu0 %v9759_v12 }
 0x1ca   :  { %7930 = vmatpush3.bf16.msra.mxu1 %v9805_v56 }
 0x1cb   :  { %7951 = vmatprep.subr.bf16.mxu1 %v11020_v5 }
 0x218   :  { %v397_v57 = vpop.permute.xlu0 %396 }
 0x21a   :  { %v400_v58 = vpop.permute.xlu1 %399 }
 0x21b   :  { %v414_v1 = vsel %vm408_vm1, %v397_v57, %v400_v58 }
 0x21c   :  { %v386_v59 = vpop.permute.xlu0 %385 }
 0x21d   :  { %v409_v61 = vsel %vm408_vm1, %v9755_v8, %v386_v59  ;;  %v11017_v8 = vlaneseq }
 0x21e   :  { %v390_v60 = vpop.permute.xlu1 %389 }
 0x21f   :  { %v411_v63 = vsel %vm410_vm2, %v409_v61, %v390_v60  ;;  %v430_v13 = vshrl.u32 %v11017_v8, 7 }
 0x220   :  { %v403_v62 = vpop.permute.xlu0 %402 }
 0x221   :  { %v415_v3 = vsel %vm410_vm2, %v414_v1, %v403_v62  ;;  %v9845_v15 = vsub.s32 %v537_v11, %v430_v13  ;;  %v9851_v27 = vsub.s32 0, %v430_v13  ;;  %v9853_v28 = vsub.s32 1, %v430_v13 }
 0x222   :  { %v394_v0 = vpop.permute.xlu1 %393  ;;  %v9855_v29 = vsub.s32 2, %v430_v13 }
 0x223   :  { %v413_v2 = vsel %vm412_vm3, %v411_v63, %v394_v0  ;;  %11050 = vst [vmem:[#allocation65_spill] sm:$0xff] %v9853_v28  ;;  %v432_v36 = vrot.slane %v417_v31, %v9851_v27  ;;  %v436_v37 = vrot.slane %v417_v31, %v9853_v28  ;;  %v455_v41 = vrot.slane %v450_v32, %v9851_v27 }
 0x224   :  { %420 = vperm.xlu1 %8763, %v413_v2   ;;  %v406_v4 = vpop.permute.xlu0 %405  ;;  %11051 = vst [vmem:[#allocation66_spill] sm:$0xff] %v9855_v29  ;;  %v440_v38 = vrot.slane %v417_v31, %v9855_v29  ;;  %v459_v42 = vrot.slane %v450_v32, %v9853_v28  ;;  %v463_v44 = vrot.slane %v450_v32, %v9855_v29 }
 0x225   :  { %v416_v7 = vsel %vm412_vm3, %v415_v3, %v406_v4  ;;  %v478_v45 = vrot.slane %v473_v34, %v9851_v27  ;;  %v482_v46 = vrot.slane %v473_v34, %v9853_v28  ;;  %v486_v47 = vrot.slane %v473_v34, %v9855_v29 }
 0x226   :  { %425 = vperm.xlu0 %8764, %v416_v7   ;;  %v501_v50 = vrot.slane %v496_v35, %v9851_v27  ;;  %v505_v51 = vrot.slane %v496_v35, %v9853_v28  ;;  %v509_v53 = vrot.slane %v496_v35, %v9855_v29 }
 0x28a   :  { %v845_v14 = vpop.f32.mrb[0].mxu0 }
 0x28b   :  { %v847_v17 = vpop.f32.mrb[1].mxu0 }
 0x28c   :  { %v923_v18 = vcombine.low %v845_v14, %v847_v17  ;;  %v916_v19 = vpop.f32.mrb[0].mxu1 }
 0x28d   :  { %v937_v20 = vrot.slane %v916_v19, %v9845_v15  ;;  %v7418_v23 = vpop.f32.mrb[1].mxu1 }
 0x28e   :  { %v930_v24 = vrot.slane %v923_v18, %v9845_v15 }
 0x290   :  { %v9849_v25 = vcombine.low %v930_v24, %v937_v20 }
 0x2a3   :  { %v421_v54 = vpop.permute.xlu1 %420 }
 0x2a4   :  { %v444_v57 = vmul.f32 %v432_v36, %v421_v54  ;;  %v445_v58 = vmul.f32 %v436_v37, %v421_v54  ;;  %v446_v59 = vmul.f32 %v440_v38, %v421_v54  ;;  %v9869_v60 = vmul.f32 %v455_v41, %v421_v54 }
 0x2a5   :  { %v9871_v61 = vmul.f32 %v459_v42, %v421_v54  ;;  %v9873_v62 = vmul.f32 %v463_v44, %v421_v54  ;;  %v490_v63 = vmul.f32 %v478_v45, %v421_v54  ;;  %v491_v0 = vmul.f32 %v482_v46, %v421_v54  ;;  %v426_v1 = vpop.permute.xlu0 %425 }
 0x2a6   :  { %v492_v2 = vmul.f32 %v486_v47, %v421_v54  ;;  %v513_v3 = vadd.f32 %v501_v50, %v444_v57  ;;  %v514_v4 = vadd.f32 %v505_v51, %v445_v58  ;;  %v515_v7 = vadd.f32 %v509_v53, %v446_v59 }
 0x2a7   :  { %v636_v9 = vrot.slane %v9869_v60, 6  ;;  %v637_v10 = vrot.slane %v9871_v61, 6  ;;  %v638_v11 = vrot.slane %v9873_v62, 6  ;;  %v670_v13 = vrot.slane %v9869_v60, 2 }
 0x2a8   :  { %v671_v14 = vrot.slane %v9871_v61, 2  ;;  %v672_v17 = vrot.slane %v9873_v62, 2  ;;  %v447_v18 = vmul.f32 %v432_v36, %v426_v1  ;;  %v448_v19 = vmul.f32 %v436_v37, %v426_v1 }
 0x2a9   :  { %v449_v20 = vmul.f32 %v440_v38, %v426_v1  ;;  %v470_v23 = vmul.f32 %v455_v41, %v426_v1  ;;  %v471_v24 = vmul.f32 %v459_v42, %v426_v1  ;;  %v472_v31 = vmul.f32 %v463_v44, %v426_v1 }
 0x2aa   :  { %v493_v32 = vmul.f32 %v478_v45, %v426_v1  ;;  %v494_v34 = vmul.f32 %v482_v46, %v426_v1  ;;  %v495_v35 = vmul.f32 %v486_v47, %v426_v1  ;;  %v630_v54 = vadd.f32 %v501_v50, %v447_v18 }
 0x2ab   :  { %v519_v57 = vrot.slane %v470_v23, 6  ;;  %v520_v58 = vrot.slane %v471_v24, 6  ;;  %v521_v59 = vrot.slane %v472_v31, 6  ;;  %v556_v60 = vrot.slane %v470_v23, 2 }
 0x2ac   :  { %v557_v8 = vrot.slane %v471_v24, 2  ;;  %v558_v6 = vrot.slane %v472_v31, 2  ;;  %v631_v61 = vadd.f32 %v505_v51, %v448_v19  ;;  %v632_v5 = vadd.f32 %v509_v53, %v449_v20 }
 0x2ad   :  { %v525_v62 = vadd.f32 %v519_v57, %v513_v3  ;;  %v526_v36 = vadd.f32 %v520_v58, %v514_v4  ;;  %v527_v37 = vadd.f32 %v521_v59, %v515_v7  ;;  %v562_v38 = vadd.f32 %v556_v60, %v513_v3 }
 0x2ae   :  { %v563_v41 = vadd.f32 %v557_v8, %v514_v4  ;;  %v564_v42 = vadd.f32 %v558_v6, %v515_v7  ;;  %v642_v44 = vadd.f32 %v636_v9, %v630_v54  ;;  %v643_v45 = vadd.f32 %v637_v10, %v631_v61 }
 0x2af   :  { %v528_v46 = vadd.f32 %v525_v62, %v490_v63  ;;  %v529_v47 = vadd.f32 %v526_v36, %v491_v0  ;;  %v530_v50 = vadd.f32 %v527_v37, %v492_v2  ;;  %v565_v1 = vadd.f32 %v562_v38, %v490_v63 }
 0x2b0   :  { %v566_v18 = vadd.f32 %v563_v41, %v491_v0  ;;  %v567_v28 = vadd.f32 %v564_v42, %v492_v2  ;;  %v644_v29 = vadd.f32 %v638_v11, %v632_v5  ;;  %v645_v23 = vadd.f32 %v642_v44, %v493_v32 }
 0x2b1   :  { %v534_v24 = vcombine.low %v528_v46, %v529_v47  ;;  %v548_v51 = vrot.slane %v530_v50, %v9845_v15  ;;  %v590_v53 = vcombine.high %v528_v46, %v529_v47  ;;  %v591_v19 = vcombine.high %v530_v50, %v530_v50 }
 0x2b2   :  { %v571_v20 = vcombine.low %v565_v1, %v566_v18  ;;  %v585_v3 = vrot.slane %v567_v28, %v9845_v15  ;;  %v610_v8 = vcombine.high %v565_v1, %v566_v18  ;;  %v611_v6 = vcombine.high %v567_v28, %v567_v28 }
 0x2b3   :  { %v541_v4 = vrot.slane %v534_v24, %v9845_v15  ;;  %v598_v63 = vrot.slane %v590_v53, %v9845_v15  ;;  %v605_v0 = vrot.slane %v591_v19, %v9845_v15  ;;  %v646_v2 = vadd.f32 %v643_v45, %v494_v34 }
 0x2b4   :  { %v578_v7 = vrot.slane %v571_v20, %v9845_v15  ;;  %v618_v9 = vrot.slane %v610_v8, %v9845_v15  ;;  %v625_v10 = vrot.slane %v611_v6, %v9845_v15  ;;  %v647_v11 = vadd.f32 %v644_v29, %v495_v35 }
 0x2b5   :  { %v651_v31 = vcombine.low %v645_v23, %v646_v2  ;;  %v676_v57 = vadd.f32 %v670_v13, %v630_v54  ;;  %v677_v28 = vadd.f32 %v671_v14, %v631_v61  ;;  %v678_v58 = vadd.f32 %v672_v17, %v632_v5 }
 0x2b6   :  { %v665_v60 = vrot.slane %v647_v11, %v9845_v15  ;;  %v704_v62 = vcombine.high %v645_v23, %v646_v2  ;;  %v705_v36 = vcombine.high %v647_v11, %v647_v11  ;;  %v549_v37 = vcombine.low %v541_v4, %v548_v51 }
 0x2b7   :  { %v658_v38 = vrot.slane %v651_v31, %v9845_v15  ;;  %v679_v41 = vadd.f32 %v676_v57, %v493_v32  ;;  %v680_v42 = vadd.f32 %v677_v28, %v494_v34  ;;  %v681_v44 = vadd.f32 %v678_v58, %v495_v35 }
 0x2b8   :  { %v712_v29 = vrot.slane %v704_v62, %v9845_v15  ;;  %v719_v13 = vrot.slane %v705_v36, %v9845_v15  ;;  %555 = vst.msk [vmem:[#allocation2] sm:$0x3f] %vm9892_vm7, %v549_v37  ;;  %v586_v5 = vcombine.high %v578_v7, %v585_v3  ;;  %v606_v14 = vcombine.low %v598_v63, %v605_v0 }
 0x2b9   :  { %v666_v17 = vcombine.low %v658_v38, %v665_v60  ;;  %v685_v54 = vcombine.low %v679_v41, %v680_v42  ;;  %v724_v61 = vcombine.high %v679_v41, %v680_v42  ;;  %v725_v46 = vcombine.high %v681_v44, %v681_v44 }
 0x2ba   :  { %v720_v45 = vcombine.low %v712_v29, %v719_v13  ;;  %589 = vst.msk [vmem:[#allocation2 + $0x6] sm:$0x3f] %vm9892_vm7, %v586_v5  ;;  %609 = vst.msk [vmem:[#allocation2 + $0xc] sm:$0x3f] %vm9892_vm7, %v606_v14  ;;  %v626_v32 = vcombine.high %v618_v9, %v625_v10  ;;  %v699_v35 = vrot.slane %v681_v44, %v9845_v15  ;;  %v11054_v36 = vmov 0.0|0.0  }
 0x2bb   :  { %v692_v34 = vrot.slane %v685_v54, %v9845_v15  ;;  %v732_v47 = vrot.slane %v724_v61, %v9845_v15  ;;  %669 = vst.msk [vmem:[#allocation2 + $0x18] sm:$0x3f] %vm9892_vm7, %v666_v17  ;;  %v739_v50 = vrot.slane %v725_v46, %v9845_v15  ;;  %v11055_v37 = vmov 0.0  }
 0x2bc   :  { %723 = vst.msk [vmem:[#allocation2 + $0x24] sm:$0x3f] %vm9892_vm7, %v720_v45  ;;  %629 = vst.msk [vmem:[#allocation2 + $0x12] sm:$0x3f] %vm9892_vm7, %v626_v32 }
 0x2bd   :  { %v700_v1 = vcombine.high %v692_v34, %v699_v35  ;;  %v740_v18 = vcombine.high %v732_v47, %v739_v50 }
 0x2bf   :  { %v774_v23 = vld [vmem:[#allocation2] sm:$0x3f]  ;;  %703 = vst.msk [vmem:[#allocation2 + $0x1e] sm:$0x3f] %vm9892_vm7, %v700_v1  ;;  %743 = vst.msk [vmem:[#allocation2 + $0x2a] sm:$0x3f] %vm9892_vm7, %v740_v18 }
 0x2c0   :  { %v940_v24 = vadd.f32 %v9849_v25, %v774_v23 }
 0x2c1   :  { %v979_v17 = vld [vmem:[#allocation2 + $0x6] sm:$0x3f] }
 0x2c2   :  { %948 = vrot.lane.b32.xlu1 %v940_v24, %s9438_s19  ;;  %v7070_v51 = vmul.f32 -1.442695, %v940_v24 }
 0x2c4   :  { %8765 = vpow2.f32 %v7070_v51 }
 0x2ce   :  { %v8766_v53 = vpop.eup %8765 }
 0x2cf   :  { %v944_v19 = vadd.f32 1.0, %v8766_v53 }
 0x2d1   :  { %8767 = vrcp.f32 %v944_v19 }
 0x2db   :  { %v8768_v4 = vpop.eup %8767 }
 0x2dc   :  { %v956_v7 = vmul.f32 0.0, %v8768_v4 }
 0x334   :  { %v949_v20 = vpop.permute.xlu1 %948 }
 0x335   :  { %v950_v3 = vrot.slane %v949_v20, 2  ;;  %v951_v8 = vrot.slane %v949_v20, 4 }
 0x337   :  { %v953_v6 = vsel %vm952_vm8, %v950_v3, %v951_v8 }
 0x338   :  { %8769 = vtanh.f32 %v953_v6 }
 0x342   :  { %v8770_v63 = vpop.eup %8769 }
 0x343   :  { %v957_v25 = vmul.f32 %v8770_v63, %v8768_v4 }
 0x345   :  { %959 = vrot.lane.b32.xlu1 %v957_v25, %s9464_s26 }
 0x349   :  { %967 = vrot.lane.b32.xlu1 %v8768_v4, %s9465_s13 }
 0x3b7   :  { %v960_v0 = vpop.permute.xlu1 %959 }
 0x3b8   :  { %v961_v2 = vrot.slane %v960_v0, 6 }
 0x3ba   :  { %v962_v9 = vsel %vm775_vm9, %v961_v2, %v960_v0 }
 0x3bb   :  { %v9926_v10 = vadd.f32 %v962_v9, %v956_v7  ;;  %v968_v31 = vpop.permute.xlu1 %967 }
 0x3bc   :  { %v969_v58 = vrot.slane %v968_v31, 2 }
 0x3bd   :  { %8771 = vtanh.f32 %v9926_v10 }
 0x3c7   :  { %v8772_v11 = vpop.eup %8771 }
 0x3c8   :  { %972 = vrot.lane.b32.xlu0 %v8772_v11, %s9466_s4 }
 0x43a   :  { %v973_v57 = vpop.permute.xlu0 %972 }
 0x43b   :  { %v974_v28 = vrot.slane %v973_v57, 2 }
 0x43d   :  { %v976_v60 = vsel %vm975_vm10, %v973_v57, %v974_v28  ;;  %v1181_v28 = vld [vmem:[#allocation2 + $0xc] sm:$0x3f] }
 0x43e   :  { %v9931_v62 = vmul.f32 %v976_v60, %v969_v58 }
 0x440   :  { %7071 = vmatmul.mubr.msk.f32.vlgmr.msra.gmra.mrb[2].mxu0 %vm775_vm9, %v9931_v62  ;;  %7440 = vmatmul.mubr.msk.f32.vlgmr.msra.gmra.mrb[2].mxu1 %vm775_vm9, %v9931_v62 }
 0x441   :  { %7934 = vmatpush1.bf16.msra.mxu0 %v9761_v16  ;;  %7953 = vmatpush3.bf16.msra.mxu1 %v9767_v22 }
 0x442   :  { %7936 = vmatprep.subr.bf16.mxu0 %v9765_v21  ;;  %7954 = vmatprep.subr.bf16.mxu1 %v11054_v36 }
 0x443   :  { %1249 = vmatprep.mubr.f32.mxu0 %v11055_v37  ;;  %7462 = vmatprep.mubr.msk.f32.mxu1 %vm9454_vm0, %v11055_v37 }
 0x445   :  { %7938 = vmatpush1.bf16.msra.mxu0 %v9770_v26  ;;  %7956 = vmatpush3.bf16.msra.mxu1 %v9776_v33 }
 0x446   :  { %7940 = vmatprep.subr.bf16.mxu0 %v9773_v30  ;;  %7957 = vmatprep.subr.bf16.mxu1 %v11054_v36 }
 0x449   :  { %7942 = vmatpush1.bf16.msra.mxu0 %v9781_v39  ;;  %7959 = vmatpush3.bf16.msra.mxu1 %v9787_v43 }
 0x44a   :  { %7944 = vmatprep.subr.bf16.mxu0 %v9784_v40  ;;  %7960 = vmatprep.subr.bf16.mxu1 %v11054_v36 }
 0x44d   :  { %7946 = vmatpush1.bf16.msra.mxu0 %v9791_v48  ;;  %7962 = vmatpush3.bf16.msra.mxu1 %v9797_v52 }
 0x44e   :  { %7948 = vmatprep.subr.bf16.mxu0 %v9794_v49  ;;  %7963 = vmatprep.subr.bf16.mxu1 %v11054_v36 }
 0x451   :  { %7950 = vmatpush1.bf16.msra.mxu0 %v9801_v55  ;;  %7965 = vmatpush3.bf16.msra.mxu1 %v9805_v56 }
 0x452   :  { %7967 = vmatprep.subr.bf16.mxu0 %v9759_v12  ;;  %7986 = vmatprep.subr.bf16.mxu1 %v11054_v36 }
 0x513   :  { %v1049_v38 = vpop.f32.mrb[2].mxu0  ;;  %v1120_v41 = vpop.f32.mrb[2].mxu1 }
 0x514   :  { %v1051_v42 = vpop.f32.mrb[3].mxu0  ;;  %v7441_v44 = vpop.f32.mrb[3].mxu1  ;;  %v1141_v13 = vrot.slane %v1120_v41, %v9845_v15 }
 0x515   :  { %v1127_v29 = vcombine.low %v1049_v38, %v1051_v42 }
 0x517   :  { %v1134_v5 = vrot.slane %v1127_v29, %v9845_v15 }
 0x519   :  { %v1142_v14 = vcombine.low %v1134_v5, %v1141_v13 }
 0x51b   :  { %v1144_v54 = vadd.f32 %v1142_v14, %v979_v17 }
 0x51d   :  { %1152 = vrot.lane.b32.xlu0 %v1144_v54, %s9438_s19  ;;  %v7073_v61 = vmul.f32 -1.442695, %v1144_v54 }
 0x51f   :  { %8773 = vpow2.f32 %v7073_v61 }
 0x529   :  { %v8774_v45 = vpop.eup %8773 }
 0x52a   :  { %v1148_v46 = vadd.f32 1.0, %v8774_v45 }
 0x52c   :  { %8775 = vrcp.f32 %v1148_v46 }
 0x536   :  { %v8776_v50 = vpop.eup %8775 }
 0x537   :  { %v1159_v51 = vmul.f32 %v8776_v50, %v9926_v10 }
 0x58f   :  { %v1153_v32 = vpop.permute.xlu0 %1152 }
 0x590   :  { %v1154_v34 = vrot.slane %v1153_v32, 2  ;;  %v1155_v35 = vrot.slane %v1153_v32, 4 }
 0x592   :  { %v1156_v47 = vsel %vm952_vm8, %v1154_v34, %v1155_v35 }
 0x593   :  { %8777 = vtanh.f32 %v1156_v47 }
 0x59d   :  { %v8778_v1 = vpop.eup %8777 }
 0x59e   :  { %v1160_v18 = vmul.f32 %v8778_v1, %v8776_v50 }
 0x5a0   :  { %1162 = vrot.lane.b32.xlu1 %v1160_v18, %s9464_s26 }
 0x5a4   :  { %1170 = vrot.lane.b32.xlu1 %v8776_v50, %s9465_s13 }
 0x612   :  { %v1163_v23 = vpop.permute.xlu1 %1162 }
 0x613   :  { %v1164_v24 = vrot.slane %v1163_v23, 6 }
 0x615   :  { %v1165_v53 = vsel %vm775_vm9, %v1164_v24, %v1163_v23 }
 0x616   :  { %v1167_v19 = vadd.f32 %v1165_v53, %v1159_v51  ;;  %v1171_v3 = vpop.permute.xlu1 %1170 }
 0x617   :  { %v1172_v4 = vrot.slane %v1171_v3, 2 }
 0x618   :  { %8779 = vtanh.f32 %v1167_v19 }
 0x622   :  { %v8780_v20 = vpop.eup %8779 }
 0x623   :  { %1175 = vrot.lane.b32.xlu0 %v8780_v20, %s9466_s4 }
 0x695   :  { %v1176_v8 = vpop.permute.xlu0 %1175 }
 0x696   :  { %v1177_v6 = vrot.slane %v1176_v8, 2 }
 0x698   :  { %v1178_v63 = vsel %vm975_vm10, %v1176_v8, %v1177_v6 }
 0x699   :  { %v9970_v25 = vmul.f32 %v1178_v63, %v1172_v4  ;;  %v1383_v4 = vld [vmem:[#allocation2 + $0x12] sm:$0x3f] }
 0x69b   :  { %7074 = vmatmul.mubr.msk.f32.vlgmr.msra.gmra.mrb[4].mxu0 %vm775_vm9, %v9970_v25  ;;  %7463 = vmatmul.mubr.msk.f32.vlgmr.msra.gmra.mrb[4].mxu1 %vm775_vm9, %v9970_v25 }
 0x69c   :  { %7969 = vmatpush1.bf16.msra.mxu0 %v9761_v16  ;;  %7988 = vmatpush3.bf16.msra.mxu1 %v9767_v22 }
 0x69d   :  { %7971 = vmatprep.subr.bf16.mxu0 %v9765_v21  ;;  %7989 = vmatprep.subr.bf16.mxu1 %v11054_v36 }
 0x69e   :  { %1451 = vmatprep.mubr.f32.mxu0 %v11055_v37  ;;  %7485 = vmatprep.mubr.msk.f32.mxu1 %vm9454_vm0, %v11055_v37 }
 0x6a0   :  { %7973 = vmatpush1.bf16.msra.mxu0 %v9770_v26  ;;  %7991 = vmatpush3.bf16.msra.mxu1 %v9776_v33 }
 0x6a1   :  { %7975 = vmatprep.subr.bf16.mxu0 %v9773_v30  ;;  %7992 = vmatprep.subr.bf16.mxu1 %v11054_v36 }
 0x6a4   :  { %7977 = vmatpush1.bf16.msra.mxu0 %v9781_v39  ;;  %7994 = vmatpush3.bf16.msra.mxu1 %v9787_v43 }
 0x6a5   :  { %7979 = vmatprep.subr.bf16.mxu0 %v9784_v40  ;;  %7995 = vmatprep.subr.bf16.mxu1 %v11054_v36 }
 0x6a8   :  { %7981 = vmatpush1.bf16.msra.mxu0 %v9791_v48  ;;  %7997 = vmatpush3.bf16.msra.mxu1 %v9797_v52 }
 0x6a9   :  { %7983 = vmatprep.subr.bf16.mxu0 %v9794_v49  ;;  %7998 = vmatprep.subr.bf16.mxu1 %v11054_v36 }
 0x6ac   :  { %7985 = vmatpush1.bf16.msra.mxu0 %v9801_v55  ;;  %8000 = vmatpush3.bf16.msra.mxu1 %v9805_v56 }
 0x6ad   :  { %8002 = vmatprep.subr.bf16.mxu0 %v9759_v12  ;;  %8021 = vmatprep.subr.bf16.mxu1 %v11054_v36 }
 0x76e   :  { %v1251_v0 = vpop.f32.mrb[4].mxu0  ;;  %v1322_v2 = vpop.f32.mrb[4].mxu1 }
 0x76f   :  { %v1253_v7 = vpop.f32.mrb[5].mxu0  ;;  %v7464_v9 = vpop.f32.mrb[5].mxu1  ;;  %v1343_v11 = vrot.slane %v1322_v2, %v9845_v15 }
 0x770   :  { %v1329_v10 = vcombine.low %v1251_v0, %v1253_v7 }
 0x772   :  { %v1336_v31 = vrot.slane %v1329_v10, %v9845_v15 }
 0x774   :  { %v1344_v57 = vcombine.low %v1336_v31, %v1343_v11 }
 0x776   :  { %v1346_v58 = vadd.f32 %v1344_v57, %v1181_v28 }
 0x778   :  { %1354 = vrot.lane.b32.xlu0 %v1346_v58, %s9438_s19  ;;  %v7076_v60 = vmul.f32 -1.442695, %v1346_v58 }
 0x77a   :  { %8781 = vpow2.f32 %v7076_v60 }
 0x784   :  { %v8782_v38 = vpop.eup %8781 }
 0x785   :  { %v1350_v41 = vadd.f32 1.0, %v8782_v38 }
 0x787   :  { %8783 = vrcp.f32 %v1350_v41 }
 0x791   :  { %v8784_v5 = vpop.eup %8783 }
 0x792   :  { %v1361_v45 = vmul.f32 %v8784_v5, %v1167_v19 }
 0x7ea   :  { %v1355_v42 = vpop.permute.xlu0 %1354 }
 0x7eb   :  { %v1356_v44 = vrot.slane %v1355_v42, 2  ;;  %v1357_v29 = vrot.slane %v1355_v42, 4 }
 0x7ed   :  { %v1358_v13 = vsel %vm952_vm8, %v1356_v44, %v1357_v29 }
 0x7ee   :  { %8785 = vtanh.f32 %v1358_v13 }
 0x7f8   :  { %v8786_v14 = vpop.eup %8785 }
 0x7f9   :  { %v1362_v17 = vmul.f32 %v8786_v14, %v8784_v5 }
 0x7fb   :  { %1364 = vrot.lane.b32.xlu1 %v1362_v17, %s9464_s26 }
 0x7ff   :  { %1372 = vrot.lane.b32.xlu1 %v8784_v5, %s9465_s13 }
 0x86d   :  { %v1365_v54 = vpop.permute.xlu1 %1364 }
 0x86e   :  { %v1366_v61 = vrot.slane %v1365_v54, 6 }
 0x870   :  { %v1367_v46 = vsel %vm775_vm9, %v1366_v61, %v1365_v54 }
 0x871   :  { %v1369_v32 = vadd.f32 %v1367_v46, %v1361_v45  ;;  %v1373_v35 = vpop.permute.xlu1 %1372 }
 0x872   :  { %v1374_v1 = vrot.slane %v1373_v35, 2 }
 0x873   :  { %8787 = vtanh.f32 %v1369_v32 }
 0x87d   :  { %v8788_v34 = vpop.eup %8787 }
 0x87e   :  { %1377 = vrot.lane.b32.xlu0 %v8788_v34, %s9466_s4 }
 0x8f0   :  { %v1378_v47 = vpop.permute.xlu0 %1377 }
 0x8f1   :  { %v1379_v50 = vrot.slane %v1378_v47, 2 }
 0x8f3   :  { %v1380_v18 = vsel %vm975_vm10, %v1378_v47, %v1379_v50 }
 0x8f4   :  { %v10008_v23 = vmul.f32 %v1380_v18, %v1374_v1  ;;  %v1585_v18 = vld [vmem:[#allocation2 + $0x18] sm:$0x3f] }
 0x8f6   :  { %7077 = vmatmul.mubr.msk.f32.vlgmr.msra.gmra.mrb[6].mxu0 %vm775_vm9, %v10008_v23  ;;  %7486 = vmatmul.mubr.msk.f32.vlgmr.msra.gmra.mrb[6].mxu1 %vm775_vm9, %v10008_v23 }
 0x8f7   :  { %8004 = vmatpush1.bf16.msra.mxu0 %v9761_v16  ;;  %8023 = vmatpush3.bf16.msra.mxu1 %v9767_v22 }
 0x8f8   :  { %8006 = vmatprep.subr.bf16.mxu0 %v9765_v21  ;;  %8024 = vmatprep.subr.bf16.mxu1 %v11054_v36 }
 0x8f9   :  { %1653 = vmatprep.mubr.f32.mxu0 %v11055_v37  ;;  %7508 = vmatprep.mubr.msk.f32.mxu1 %vm9454_vm0, %v11055_v37 }
 0x8fb   :  { %8008 = vmatpush1.bf16.msra.mxu0 %v9770_v26  ;;  %8026 = vmatpush3.bf16.msra.mxu1 %v9776_v33 }
 0x8fc   :  { %8010 = vmatprep.subr.bf16.mxu0 %v9773_v30  ;;  %8027 = vmatprep.subr.bf16.mxu1 %v11054_v36 }
 0x8ff   :  { %8012 = vmatpush1.bf16.msra.mxu0 %v9781_v39  ;;  %8029 = vmatpush3.bf16.msra.mxu1 %v9787_v43 }
 0x900   :  { %8014 = vmatprep.subr.bf16.mxu0 %v9784_v40  ;;  %8030 = vmatprep.subr.bf16.mxu1 %v11054_v36 }
 0x903   :  { %8016 = vmatpush1.bf16.msra.mxu0 %v9791_v48  ;;  %8032 = vmatpush3.bf16.msra.mxu1 %v9797_v52 }
 0x904   :  { %8018 = vmatprep.subr.bf16.mxu0 %v9794_v49  ;;  %8033 = vmatprep.subr.bf16.mxu1 %v11054_v36 }
 0x907   :  { %8020 = vmatpush1.bf16.msra.mxu0 %v9801_v55  ;;  %8035 = vmatpush3.bf16.msra.mxu1 %v9805_v56 }
 0x908   :  { %8037 = vmatprep.subr.bf16.mxu0 %v9759_v12  ;;  %8056 = vmatprep.subr.bf16.mxu1 %v11054_v36 }
 0x9c9   :  { %v1453_v24 = vpop.f32.mrb[6].mxu0  ;;  %v1524_v51 = vpop.f32.mrb[6].mxu1 }
 0x9ca   :  { %v1455_v53 = vpop.f32.mrb[7].mxu0  ;;  %v7487_v19 = vpop.f32.mrb[7].mxu1  ;;  %v1545_v3 = vrot.slane %v1524_v51, %v9845_v15 }
 0x9cb   :  { %v1531_v20 = vcombine.low %v1453_v24, %v1455_v53 }
 0x9cd   :  { %v1538_v8 = vrot.slane %v1531_v20, %v9845_v15 }
 0x9cf   :  { %v1546_v6 = vcombine.low %v1538_v8, %v1545_v3 }
 0x9d1   :  { %v1548_v63 = vadd.f32 %v1546_v6, %v1383_v4 }
 0x9d3   :  { %1556 = vrot.lane.b32.xlu0 %v1548_v63, %s9438_s19  ;;  %v7079_v0 = vmul.f32 -1.442695, %v1548_v63 }
 0x9d5   :  { %8789 = vpow2.f32 %v7079_v0 }
 0x9df   :  { %v8790_v2 = vpop.eup %8789 }
 0x9e0   :  { %v1552_v7 = vadd.f32 1.0, %v8790_v2 }
 0x9e2   :  { %8791 = vrcp.f32 %v1552_v7 }
 0x9ec   :  { %v8792_v57 = vpop.eup %8791 }
 0x9ed   :  { %v1563_v41 = vmul.f32 %v8792_v57, %v1369_v32 }
 0xa45   :  { %v1557_v9 = vpop.permute.xlu0 %1556 }
 0xa46   :  { %v1558_v10 = vrot.slane %v1557_v9, 2  ;;  %v1559_v11 = vrot.slane %v1557_v9, 4 }
 0xa48   :  { %v1560_v31 = vsel %vm952_vm8, %v1558_v10, %v1559_v11 }
 0xa49   :  { %8793 = vtanh.f32 %v1560_v31 }
 0xa53   :  { %v8794_v28 = vpop.eup %8793 }
 0xa54   :  { %v1564_v58 = vmul.f32 %v8794_v28, %v8792_v57 }
 0xa56   :  { %1566 = vrot.lane.b32.xlu1 %v1564_v58, %s9464_s26 }
 0xa5a   :  { %1574 = vrot.lane.b32.xlu1 %v8792_v57, %s9465_s13 }
 0xac8   :  { %v1567_v60 = vpop.permute.xlu1 %1566 }
 0xac9   :  { %v1568_v38 = vrot.slane %v1567_v60, 6 }
 0xacb   :  { %v1569_v42 = vsel %vm775_vm9, %v1568_v38, %v1567_v60 }
 0xacc   :  { %v1571_v44 = vadd.f32 %v1569_v42, %v1563_v41  ;;  %v1575_v13 = vpop.permute.xlu1 %1574 }
 0xacd   :  { %v1576_v17 = vrot.slane %v1575_v13, 2 }
 0xace   :  { %8795 = vtanh.f32 %v1571_v44 }
 0xad8   :  { %v8796_v29 = vpop.eup %8795 }
 0xad9   :  { %1579 = vrot.lane.b32.xlu0 %v8796_v29, %s9466_s4 }
 0xb4b   :  { %v1580_v5 = vpop.permute.xlu0 %1579 }
 0xb4c   :  { %v1581_v14 = vrot.slane %v1580_v5, 2 }
 0xb4e   :  { %v1582_v54 = vsel %vm975_vm10, %v1580_v5, %v1581_v14 }
 0xb4f   :  { %v10046_v61 = vmul.f32 %v1582_v54, %v1576_v17 }
 0xb51   :  { %7080 = vmatmul.mubr.msk.f32.vlgmr.msra.gmra.mrb[8].mxu0 %vm775_vm9, %v10046_v61  ;;  %7509 = vmatmul.mubr.msk.f32.vlgmr.msra.gmra.mrb[8].mxu1 %vm775_vm9, %v10046_v61 }
 0xb52   :  { %8039 = vmatpush1.bf16.msra.mxu0 %v9761_v16  ;;  %8058 = vmatpush3.bf16.msra.mxu1 %v9767_v22 }
 0xb53   :  { %8041 = vmatprep.subr.bf16.mxu0 %v9765_v21  ;;  %8059 = vmatprep.subr.bf16.mxu1 %v11054_v36 }
 0xb54   :  { %1855 = vmatprep.mubr.f32.mxu0 %v11055_v37  ;;  %7531 = vmatprep.mubr.msk.f32.mxu1 %vm9454_vm0, %v11055_v37 }
 0xb56   :  { %8043 = vmatpush1.bf16.msra.mxu0 %v9770_v26  ;;  %8061 = vmatpush3.bf16.msra.mxu1 %v9776_v33 }
 0xb57   :  { %8045 = vmatprep.subr.bf16.mxu0 %v9773_v30  ;;  %8062 = vmatprep.subr.bf16.mxu1 %v11054_v36 }
 0xb5a   :  { %8047 = vmatpush1.bf16.msra.mxu0 %v9781_v39  ;;  %8064 = vmatpush3.bf16.msra.mxu1 %v9787_v43 }
 0xb5b   :  { %8049 = vmatprep.subr.bf16.mxu0 %v9784_v40  ;;  %8065 = vmatprep.subr.bf16.mxu1 %v11054_v36 }
 0xb5e   :  { %8051 = vmatpush1.bf16.msra.mxu0 %v9791_v48  ;;  %8067 = vmatpush3.bf16.msra.mxu1 %v9797_v52 }
 0xb5f   :  { %8053 = vmatprep.subr.bf16.mxu0 %v9794_v49  ;;  %8068 = vmatprep.subr.bf16.mxu1 %v11054_v36 }
 0xb62   :  { %8055 = vmatpush1.bf16.msra.mxu0 %v9801_v55  ;;  %8070 = vmatpush3.bf16.msra.mxu1 %v9805_v56 }
 0xb63   :  { %8072 = vmatprep.subr.bf16.mxu0 %v9759_v12  ;;  %8091 = vmatprep.subr.bf16.mxu1 %v11054_v36 }
 0xc24   :  { %v1655_v45 = vpop.f32.mrb[8].mxu0  ;;  %v1726_v46 = vpop.f32.mrb[8].mxu1 }
 0xc25   :  { %v1657_v32 = vpop.f32.mrb[9].mxu0  ;;  %v7510_v34 = vpop.f32.mrb[9].mxu1  ;;  %v1747_v47 = vrot.slane %v1726_v46, %v9845_v15 }
 0xc26   :  { %v1733_v35 = vcombine.low %v1655_v45, %v1657_v32  ;;  %v1787_v45 = vld [vmem:[#allocation2 + $0x1e] sm:$0x3f] }
 0xc28   :  { %v1740_v50 = vrot.slane %v1733_v35, %v9845_v15 }
 0xc2a   :  { %v1748_v1 = vcombine.low %v1740_v50, %v1747_v47 }
 0xc2c   :  { %v1750_v24 = vadd.f32 %v1748_v1, %v1585_v18 }
 0xc2e   :  { %1758 = vrot.lane.b32.xlu0 %v1750_v24, %s9438_s19  ;;  %v7082_v51 = vmul.f32 -1.442695, %v1750_v24 }
 0xc30   :  { %8797 = vpow2.f32 %v7082_v51 }
 0xc3a   :  { %v8798_v53 = vpop.eup %8797 }
 0xc3b   :  { %v1754_v19 = vadd.f32 1.0, %v8798_v53 }
 0xc3d   :  { %8799 = vrcp.f32 %v1754_v19 }
 0xc47   :  { %v8800_v4 = vpop.eup %8799 }
 0xc48   :  { %v1765_v9 = vmul.f32 %v8800_v4, %v1571_v44 }
 0xca0   :  { %v1759_v20 = vpop.permute.xlu0 %1758 }
 0xca1   :  { %v1760_v3 = vrot.slane %v1759_v20, 2  ;;  %v1761_v8 = vrot.slane %v1759_v20, 4 }
 0xca3   :  { %v1762_v6 = vsel %vm952_vm8, %v1760_v3, %v1761_v8 }
 0xca4   :  { %8801 = vtanh.f32 %v1762_v6 }
 0xcae   :  { %v8802_v63 = vpop.eup %8801 }
 0xcaf   :  { %v1766_v0 = vmul.f32 %v8802_v63, %v8800_v4 }
 0xcb1   :  { %1768 = vrot.lane.b32.xlu1 %v1766_v0, %s9464_s26 }
 0xcb5   :  { %1776 = vrot.lane.b32.xlu1 %v8800_v4, %s9465_s13 }
 0xd23   :  { %v1769_v2 = vpop.permute.xlu1 %1768 }
 0xd24   :  { %v1770_v7 = vrot.slane %v1769_v2, 6 }
 0xd26   :  { %v1771_v10 = vsel %vm775_vm9, %v1770_v7, %v1769_v2 }
 0xd27   :  { %v1773_v11 = vadd.f32 %v1771_v10, %v1765_v9  ;;  %v1777_v57 = vpop.permute.xlu1 %1776 }
 0xd28   :  { %v1778_v60 = vrot.slane %v1777_v57, 2 }
 0xd29   :  { %8803 = vtanh.f32 %v1773_v11 }
 0xd33   :  { %v8804_v31 = vpop.eup %8803 }
 0xd34   :  { %1781 = vrot.lane.b32.xlu0 %v8804_v31, %s9466_s4 }
 0xda6   :  { %v1782_v28 = vpop.permute.xlu0 %1781 }
 0xda7   :  { %v1783_v58 = vrot.slane %v1782_v28, 2 }
 0xda9   :  { %v1784_v38 = vsel %vm975_vm10, %v1782_v28, %v1783_v58 }
 0xdaa   :  { %v10084_v41 = vmul.f32 %v1784_v38, %v1778_v60 }
 0xdac   :  { %7083 = vmatmul.mubr.msk.f32.vlgmr.msra.gmra.mrb[10].mxu0 %vm775_vm9, %v10084_v41  ;;  %7532 = vmatmul.mubr.msk.f32.vlgmr.msra.gmra.mrb[10].mxu1 %vm775_vm9, %v10084_v41 }
 0xdad   :  { %8074 = vmatpush1.bf16.msra.mxu0 %v9761_v16  ;;  %8093 = vmatpush3.bf16.msra.mxu1 %v9767_v22 }
 0xdae   :  { %8076 = vmatprep.subr.bf16.mxu0 %v9765_v21  ;;  %8094 = vmatprep.subr.bf16.mxu1 %v11054_v36 }
 0xdaf   :  { %2057 = vmatprep.mubr.f32.mxu0 %v11055_v37  ;;  %7554 = vmatprep.mubr.msk.f32.mxu1 %vm9454_vm0, %v11055_v37 }
 0xdb1   :  { %8078 = vmatpush1.bf16.msra.mxu0 %v9770_v26  ;;  %8096 = vmatpush3.bf16.msra.mxu1 %v9776_v33 }
 0xdb2   :  { %8080 = vmatprep.subr.bf16.mxu0 %v9773_v30  ;;  %8097 = vmatprep.subr.bf16.mxu1 %v11054_v36 }
 0xdb5   :  { %8082 = vmatpush1.bf16.msra.mxu0 %v9781_v39  ;;  %8099 = vmatpush3.bf16.msra.mxu1 %v9787_v43 }
 0xdb6   :  { %8084 = vmatprep.subr.bf16.mxu0 %v9784_v40  ;;  %8100 = vmatprep.subr.bf16.mxu1 %v11054_v36 }
 0xdb9   :  { %8086 = vmatpush1.bf16.msra.mxu0 %v9791_v48  ;;  %8102 = vmatpush3.bf16.msra.mxu1 %v9797_v52 }
 0xdba   :  { %8088 = vmatprep.subr.bf16.mxu0 %v9794_v49  ;;  %8103 = vmatprep.subr.bf16.mxu1 %v11054_v36 }
 0xdbd   :  { %8090 = vmatpush1.bf16.msra.mxu0 %v9801_v55  ;;  %8105 = vmatpush3.bf16.msra.mxu1 %v9805_v56 }
 0xdbe   :  { %8107 = vmatprep.subr.bf16.mxu0 %v9759_v12  ;;  %8126 = vmatprep.subr.bf16.mxu1 %v11054_v36 }
 0xe7f   :  { %v1857_v42 = vpop.f32.mrb[10].mxu0  ;;  %v1928_v44 = vpop.f32.mrb[10].mxu1 }
 0xe80   :  { %v1859_v29 = vpop.f32.mrb[11].mxu0  ;;  %v7533_v13 = vpop.f32.mrb[11].mxu1  ;;  %v1949_v14 = vrot.slane %v1928_v44, %v9845_v15 }
 0xe81   :  { %v1935_v5 = vcombine.low %v1857_v42, %v1859_v29 }
 0xe83   :  { %v1942_v17 = vrot.slane %v1935_v5, %v9845_v15  ;;  %v11056_v5 = vlaneseq }
 0xe85   :  { %v1950_v54 = vcombine.low %v1942_v17, %v1949_v14  ;;  %v10161_v14 = vand.u32 127, %v11056_v5  ;;  %v2495_v5 = vld [vmem:[#allocation17 + $0x30] sm:$0xff] }
 0xe87   :  { %v1952_v46 = vadd.f32 %v1950_v54, %v1787_v45  ;;  %vm2393_vm11 = vcmp.lt.s32.totalorder %v10161_v14, 32 }
 0xe89   :  { %1960 = vrot.lane.b32.xlu0 %v1952_v46, %s9438_s19  ;;  %v7085_v32 = vmul.f32 -1.442695, %v1952_v46 }
 0xe8b   :  { %8805 = vpow2.f32 %v7085_v32 }
 0xe95   :  { %v8806_v34 = vpop.eup %8805 }
 0xe96   :  { %v1956_v12 = vadd.f32 1.0, %v8806_v34 }
 0xe98   :  { %8807 = vrcp.f32 %v1956_v12 }
 0xea2   :  { %v8808_v18 = vpop.eup %8807 }
 0xea3   :  { %v1967_v20 = vmul.f32 %v8808_v18, %v1773_v11 }
 0xefb   :  { %v1961_v35 = vpop.permute.xlu0 %1960 }
 0xefc   :  { %v1962_v47 = vrot.slane %v1961_v35, 2  ;;  %v1963_v50 = vrot.slane %v1961_v35, 4 }
 0xefe   :  { %v1964_v1 = vsel %vm952_vm8, %v1962_v47, %v1963_v50 }
 0xeff   :  { %8809 = vtanh.f32 %v1964_v1 }
 0xf09   :  { %v8810_v24 = vpop.eup %8809 }
 0xf0a   :  { %v1968_v51 = vmul.f32 %v8810_v24, %v8808_v18  ;;  %v2398_v24 = vsel %vm2393_vm11, %v10084_v41, %v10046_v61 }
 0xf0c   :  { %1970 = vrot.lane.b32.xlu1 %v1968_v51, %s9464_s26 }
 0xf10   :  { %1978 = vrot.lane.b32.xlu1 %v8808_v18, %s9465_s13 }
 0xf7e   :  { %v1971_v53 = vpop.permute.xlu1 %1970 }
 0xf7f   :  { %v1972_v19 = vrot.slane %v1971_v53, 6 }
 0xf81   :  { %v1973_v3 = vsel %vm775_vm9, %v1972_v19, %v1971_v53 }
 0xf82   :  { %v1975_v8 = vadd.f32 %v1973_v3, %v1967_v20  ;;  %v1979_v4 = vpop.permute.xlu1 %1978 }
 0xf83   :  { %v1980_v2 = vrot.slane %v1979_v4, 2 }
 0xf84   :  { %8811 = vtanh.f32 %v1975_v8 }
 0xf8e   :  { %v8812_v6 = vpop.eup %8811 }
 0xf8f   :  { %1983 = vrot.lane.b32.xlu0 %v8812_v6, %s9466_s4 }
0x1001   :  { %v1984_v63 = vpop.permute.xlu0 %1983 }
0x1002   :  { %v1985_v0 = vrot.slane %v1984_v63, 2 }
0x1004   :  { %v1986_v7 = vsel %vm975_vm10, %v1984_v63, %v1985_v0 }
0x1005   :  { %v10122_v9 = vmul.f32 %v1986_v7, %v1980_v2 }
0x1007   :  { %7086 = vmatmul.mubr.msk.f32.vlgmr.msra.gmra.mrb[12].mxu0 %vm775_vm9, %v10122_v9  ;;  %7555 = vmatmul.mubr.msk.f32.vlgmr.msra.gmra.mrb[12].mxu1 %vm775_vm9, %v10122_v9  ;;  %v2399_v46 = vsel %vm2393_vm11, %v10122_v9, %v10008_v23  ;;  %v2454_v32 = vcombine.low %v10122_v9, %v10122_v9 }
0x1008   :  { %8109 = vmatpush1.bf16.msra.mxu0 %v9761_v16  ;;  %8128 = vmatpush3.bf16.msra.mxu1 %v9767_v22  ;;  %v2412_v47 = vrot.slane %v2399_v46, 6  ;;  %v2500_v46 = vld [vmem:[#allocation17 + $0x58] sm:$0xff] }
0x1009   :  { %8111 = vmatprep.subr.bf16.mxu0 %v9765_v21  ;;  %8129 = vmatprep.subr.bf16.mxu1 %v11054_v36  ;;  %v2461_v50 = vrot.slane %v2454_v32, %v9845_v15 }
0x100a   :  { %2259 = vmatprep.mubr.f32.mxu0 %v11055_v37  ;;  %7577 = vmatprep.mubr.msk.f32.mxu1 %vm9454_vm0, %v11055_v37  ;;  %v2423_v53 = vsel %vm408_vm1, %v2398_v24, %v2412_v47  ;;  %v2444_v24 = vcombine.low %v10046_v61, %v10046_v61 }
0x100b   :  { %v2486_v3 = vsel %vm408_vm1, %v10084_v41, %v2461_v50 }
0x100c   :  { %8113 = vmatpush1.bf16.msra.mxu0 %v9770_v26  ;;  %8131 = vmatpush3.bf16.msra.mxu1 %v9776_v33 }
0x100d   :  { %8115 = vmatprep.subr.bf16.mxu0 %v9773_v30  ;;  %8132 = vmatprep.subr.bf16.mxu1 %v11054_v36 }
0x1010   :  { %8117 = vmatpush1.bf16.msra.mxu0 %v9781_v39  ;;  %8134 = vmatpush3.bf16.msra.mxu1 %v9787_v43  ;;  %v1989_v43 = vld [vmem:[#allocation2 + $0x24] sm:$0x3f] }
0x1011   :  { %8119 = vmatprep.subr.bf16.mxu0 %v9784_v40  ;;  %8135 = vmatprep.subr.bf16.mxu1 %v11054_v36 }
0x1014   :  { %8121 = vmatpush1.bf16.msra.mxu0 %v9791_v48  ;;  %8137 = vmatpush3.bf16.msra.mxu1 %v9797_v52 }
0x1015   :  { %8123 = vmatprep.subr.bf16.mxu0 %v9794_v49  ;;  %8138 = vmatprep.subr.bf16.mxu1 %v11054_v36 }
0x1018   :  { %8125 = vmatpush1.bf16.msra.mxu0 %v9801_v55  ;;  %8140 = vmatpush3.bf16.msra.mxu1 %v9805_v56 }
0x10da   :  { %v2059_v16 = vpop.f32.mrb[12].mxu0  ;;  %v2130_v21 = vpop.f32.mrb[12].mxu1 }
0x10db   :  { %v2061_v22 = vpop.f32.mrb[13].mxu0  ;;  %v7556_v26 = vpop.f32.mrb[13].mxu1  ;;  %v2151_v33 = vrot.slane %v2130_v21, %v9845_v15 }
0x10dc   :  { %v2137_v30 = vcombine.low %v2059_v16, %v2061_v22  ;;  %v2191_v22 = vld [vmem:[#allocation2 + $0x2a] sm:$0x3f] }
0x10de   :  { %v2144_v39 = vrot.slane %v2137_v30, %v9845_v15 }
0x10e0   :  { %v2152_v40 = vcombine.low %v2144_v39, %v2151_v33 }
0x10e2   :  { %v2154_v48 = vadd.f32 %v2152_v40, %v1989_v43 }
0x10e4   :  { %2162 = vrot.lane.b32.xlu0 %v2154_v48, %s9438_s19  ;;  %v7088_v49 = vmul.f32 -1.442695, %v2154_v48 }
0x10e6   :  { %8813 = vpow2.f32 %v7088_v49 }
0x10f0   :  { %v8814_v52 = vpop.eup %8813 }
0x10f1   :  { %v2158_v55 = vadd.f32 1.0, %v8814_v52 }
0x10f3   :  { %8815 = vrcp.f32 %v2158_v55 }
0x10fd   :  { %v8816_v57 = vpop.eup %8815 }
0x10fe   :  { %v2169_v42 = vmul.f32 %v8816_v57, %v1975_v8 }
0x1156   :  { %v2163_v10 = vpop.permute.xlu0 %2162 }
0x1157   :  { %v2164_v56 = vrot.slane %v2163_v10, 2  ;;  %v2165_v11 = vrot.slane %v2163_v10, 4 }
0x1159   :  { %v2166_v31 = vsel %vm952_vm8, %v2164_v56, %v2165_v11  ;;  %v2490_v56 = vld [vmem:[#allocation17 + $0x8] sm:$0xff]  ;;  %v2493_v11 = vld [vmem:[#allocation17 + $0x20] sm:$0xff] }
0x115a   :  { %8817 = vtanh.f32 %v2166_v31  ;;  %v2489_v31 = vld [vmem:[#allocation17] sm:$0xff] }
0x1164   :  { %v8818_v28 = vpop.eup %8817 }
0x1165   :  { %v2170_v58 = vmul.f32 %v8818_v28, %v8816_v57  ;;  %v2492_v28 = vld [vmem:[#allocation17 + $0x18] sm:$0xff] }
0x1167   :  { %2172 = vrot.lane.b32.xlu1 %v2170_v58, %s9464_s26  ;;  %v2491_v58 = vld [vmem:[#allocation17 + $0x10] sm:$0xff] }
0x116b   :  { %2180 = vrot.lane.b32.xlu1 %v8816_v57, %s9465_s13  ;;  %v8141_v57 = vpack.c.bf16 %v2493_v11, %v2490_v56  ;;  %v2674_v56 = vld [vmem:[#allocation19 + $0x10] sm:$0xff] }
0x116d   :  { %8142 = vmatprep.subr.bf16.mxu0 %v8141_v57 }
0x11d9   :  { %v2173_v60 = vpop.permute.xlu1 %2172 }
0x11da   :  { %v2174_v38 = vrot.slane %v2173_v60, 6 }
0x11dc   :  { %v2175_v44 = vsel %vm775_vm9, %v2174_v38, %v2173_v60  ;;  %v2494_v60 = vld [vmem:[#allocation17 + $0x28] sm:$0xff]  ;;  %v8143_v38 = vpack.c.bf16 %v2492_v28, %v2489_v31 }
0x11dd   :  { %v10156_v29 = vadd.f32 %v2175_v44, %v2169_v42  ;;  %v2181_v17 = vpop.permute.xlu1 %2180  ;;  %v8157_v42 = vpack.c.bf16 %v2494_v60, %v2491_v58  ;;  %v2496_v44 = vld [vmem:[#allocation17 + $0x38] sm:$0xff]  ;;  %v2677_v31 = vld [vmem:[#allocation19 + $0x28] sm:$0xff] }
0x11de   :  { %v2182_v34 = vrot.slane %v2181_v17, 2  ;;  %v8189_v58 = vpack.c.bf16 %v2677_v31, %v2674_v56  ;;  %v2690_v56 = vld [vmem:[#allocation19 + $0x90] sm:$0xff] }
0x11df   :  { %8819 = vtanh.f32 %v10156_v29  ;;  %8158 = vmatprep.subr.bf16.mxu1 %v8157_v42 }
0x11e9   :  { %v8820_v13 = vpop.eup %8819 }
0x11ea   :  { %2185 = vrot.lane.b32.xlu0 %v8820_v13, %s9466_s4  ;;  %v2499_v13 = vld [vmem:[#allocation17 + $0x50] sm:$0xff] }
0x11eb   :  { %v8145_v17 = vpack.c.bf16 %v2499_v13, %v2496_v44 }
0x125c   :  { %v2186_v54 = vpop.permute.xlu0 %2185 }
0x125d   :  { %v2187_v45 = vrot.slane %v2186_v54, 2 }
0x125f   :  { %v2188_v12 = vsel %vm975_vm10, %v2186_v54, %v2187_v45  ;;  %v2498_v54 = vld [vmem:[#allocation17 + $0x48] sm:$0xff]  ;;  %v2497_v45 = vld [vmem:[#allocation17 + $0x40] sm:$0xff] }
0x1260   :  { %v10171_v35 = vmul.f32 %v2188_v12, %v2182_v34  ;;  %v8147_v32 = vpack.c.bf16 %v2498_v54, %v2495_v5  ;;  %v8161_v34 = vpack.c.bf16 %v2500_v46, %v2497_v45  ;;  %v2397_v45 = vsel %vm2393_vm11, %v10046_v61, %v10084_v41 }
0x1262   :  { %7089 = vmatmul.mubr.msk.f32.vlgmr.msra.gmra.mrb[14].mxu0 %vm775_vm9, %v10171_v35  ;;  %7578 = vmatmul.mubr.msk.f32.vlgmr.msra.gmra.mrb[14].mxu1 %vm775_vm9, %v10171_v35  ;;  %v2400_v1 = vsel %vm2393_vm11, %v10171_v35, %v9970_v25  ;;  %v2469_v18 = vrot.slane %v10171_v35, %v9845_v15  ;;  %v2395_v54 = vsel %vm2393_vm11, %v9970_v25, %v10171_v35 }
0x1263   :  { %2584 = vmatprep.mubr.f32.mxu0 %v11055_v37  ;;  %v2415_v51 = vrot.slane %v2400_v1, 4  ;;  %8144 = vmatpush1.bf16.msra.mxu0 %v8143_v38 }
0x1264   :  { %v2470_v19 = vcombine.low %v2469_v18, %v2469_v18  ;;  %8160 = vmatpush3.bf16.msra.mxu1 %v8157_v42  ;;  %8146 = vmatprep.subr.bf16.mxu0 %v8145_v17 }
0x1265   :  { %v10191_v20 = vsel %vm410_vm2, %v2423_v53, %v2415_v51  ;;  %8162 = vmatprep.subr.bf16.mxu1 %v8161_v34  ;;  %v2502_v51 = vld [vmem:[#allocation17 + $0x68] sm:$0xff]  ;;  %v2505_v53 = vld [vmem:[#allocation17 + $0x80] sm:$0xff] }
0x1266   :  { %v10196_v8 = vsel %vm410_vm2, %v2486_v3, %v2470_v19  ;;  %v2426_v19 = vcombine.low %v9970_v25, %v9970_v25  ;;  %v8149_v3 = vpack.c.bf16 %v2505_v53, %v2502_v51  ;;  %v2682_v51 = vld [vmem:[#allocation19 + $0x50] sm:$0xff] }
0x1267   :  { %8148 = vmatpush1.bf16.msra.mxu0 %v8147_v32  ;;  %v2396_v32 = vsel %vm2393_vm11, %v10008_v23, %v10122_v9  ;;  %v2679_v9 = vld [vmem:[#allocation19 + $0x38] sm:$0xff]  ;;  %v2678_v53 = vld [vmem:[#allocation19 + $0x30] sm:$0xff] }
0x1268   :  { %8164 = vmatpush3.bf16.msra.mxu1 %v8161_v34  ;;  %8150 = vmatprep.subr.bf16.mxu0 %v8149_v3  ;;  %v2406_v35 = vrot.slane %v2396_v32, 4  ;;  %v3253_v32 = vld [vmem:[#allocation22] sm:$0xff] }
0x1335   :  { %v2261_v6 = vpop.f32.mrb[14].mxu0  ;;  %v2332_v4 = vpop.f32.mrb[14].mxu1 }
0x1336   :  { %v2263_v63 = vpop.f32.mrb[15].mxu0  ;;  %v7579_v0 = vpop.f32.mrb[15].mxu1  ;;  %v2353_v7 = vrot.slane %v2332_v4, %v9845_v15  ;;  %v2504_v4 = vld [vmem:[#allocation17 + $0x78] sm:$0xff] }
0x1337   :  { %v2339_v2 = vcombine.low %v2261_v6, %v2263_v63  ;;  %v2501_v6 = vld [vmem:[#allocation17 + $0x60] sm:$0xff]  ;;  %v2503_v63 = vld [vmem:[#allocation17 + $0x70] sm:$0xff]  ;;  %v2441_v0 = vrot.slane %v10008_v23, %v9845_v15 }
0x1339   :  { %v2346_v16 = vrot.slane %v2339_v2, %v9845_v15  ;;  %v2506_v2 = vld [vmem:[#allocation17 + $0x88] sm:$0xff]  ;;  %v2442_v11 = vcombine.low %v2441_v0, %v2441_v0 }
0x133b   :  { %v2354_v21 = vcombine.low %v2346_v16, %v2353_v7  ;;  %v2508_v7 = vld [vmem:[#allocation17 + $0x98] sm:$0xff]  ;;  %v2511_v16 = vld [vmem:[#allocation17 + $0xb0] sm:$0xff] }
0x133d   :  { %v2356_v26 = vadd.f32 %v2354_v21, %v2191_v22  ;;  %v2451_v21 = vrot.slane %v2444_v24, %v9845_v15  ;;  %v8165_v22 = vpack.c.bf16 %v2506_v2, %v2503_v63  ;;  %v2683_v63 = vld [vmem:[#allocation19 + $0x58] sm:$0xff]  ;;  %v2688_v2 = vld [vmem:[#allocation19 + $0x80] sm:$0xff] }
0x133f   :  { %2364 = vrot.lane.b32.xlu0 %v2356_v26, %s9438_s19  ;;  %v7091_v30 = vmul.f32 -1.442695, %v2356_v26  ;;  %v8153_v26 = vpack.c.bf16 %v2511_v16, %v2508_v7  ;;  %8166 = vmatprep.subr.bf16.mxu1 %v8165_v22  ;;  %v2452_v28 = vcombine.low %v2451_v21, %v2451_v21  ;;  %v8177_v16 = vpack.c.bf16 %v2682_v51, %v2679_v9  ;;  %v2686_v21 = vld [vmem:[#allocation19 + $0x70] sm:$0xff]  ;;  %v3268_v51 = vld [vmem:[#allocation22 + $0x78] sm:$0xff] }
0x1340   :  { %8168 = vmatpush3.bf16.msra.mxu1 %v8165_v22  ;;  %v2689_v22 = vld [vmem:[#allocation19 + $0x88] sm:$0xff]  ;;  %v3265_v9 = vld [vmem:[#allocation22 + $0x60] sm:$0xff] }
0x1341   :  { %8821 = vpow2.f32 %v7091_v30  ;;  %v2507_v30 = vld [vmem:[#allocation17 + $0x90] sm:$0xff] }
0x134b   :  { %v8822_v33 = vpop.eup %8821 }
0x134c   :  { %v2360_v39 = vadd.f32 1.0, %v8822_v33  ;;  %v2510_v33 = vld [vmem:[#allocation17 + $0xa8] sm:$0xff] }
0x134e   :  { %8823 = vrcp.f32 %v2360_v39  ;;  %v2509_v39 = vld [vmem:[#allocation17 + $0xa0] sm:$0xff] }
0x1358   :  { %v8824_v52 = vpop.eup %8823 }
0x1359   :  { %v2371_v50 = vmul.f32 %v8824_v52, %v10156_v29  ;;  %v8151_v29 = vpack.c.bf16 %v2504_v4, %v2501_v6  ;;  %v2681_v6 = vld [vmem:[#allocation19 + $0x48] sm:$0xff]  ;;  %v2680_v4 = vld [vmem:[#allocation19 + $0x40] sm:$0xff] }
0x135b   :  { %8152 = vmatpush1.bf16.msra.mxu0 %v8151_v29  ;;  %v2685_v29 = vld [vmem:[#allocation19 + $0x68] sm:$0xff] }
0x135c   :  { %8154 = vmatprep.subr.bf16.mxu0 %v8153_v26  ;;  %v8179_v26 = vpack.c.bf16 %v2681_v6, %v2678_v53  ;;  %v3272_v53 = vld [vmem:[#allocation22 + $0x98] sm:$0xff] }
0x13b1   :  { %v2365_v40 = vpop.permute.xlu0 %2364 }
0x13b2   :  { %v2366_v43 = vrot.slane %v2365_v40, 2  ;;  %v2367_v48 = vrot.slane %v2365_v40, 4  ;;  %v8155_v40 = vpack.c.bf16 %v2510_v33, %v2507_v30  ;;  %v8193_v30 = vpack.c.bf16 %v2683_v63, %v2680_v4  ;;  %v3271_v4 = vld [vmem:[#allocation22 + $0x90] sm:$0xff]  ;;  %v3274_v63 = vld [vmem:[#allocation22 + $0xa8] sm:$0xff] }
0x13b3   :  { %v8181_v33 = vpack.c.bf16 %v2688_v2, %v2685_v29  ;;  %v10296_v29 = vpack.c.bf16 %v3274_v63, %v3271_v4 }
0x13b4   :  { %v2368_v49 = vsel %vm952_vm8, %v2366_v43, %v2367_v48  ;;  %v2512_v43 = vld [vmem:[#allocation17 + $0xb8] sm:$0xff]  ;;  %v2673_v48 = vld [vmem:[#allocation19 + $0x8] sm:$0xff]  ;;  %8156 = vmatpush1.bf16.msra.mxu0 %v8155_v40 }
0x13b5   :  { %8825 = vtanh.f32 %v2368_v49  ;;  %v2676_v49 = vld [vmem:[#allocation19 + $0x20] sm:$0xff]  ;;  %v2687_v40 = vld [vmem:[#allocation19 + $0x78] sm:$0xff] }
0x13bf   :  { %v8826_v55 = vpop.eup %8825 }
0x13c0   :  { %v2372_v10 = vmul.f32 %v8826_v55, %v8824_v52  ;;  %v8169_v55 = vpack.c.bf16 %v2512_v43, %v2509_v39  ;;  %v2684_v39 = vld [vmem:[#allocation19 + $0x60] sm:$0xff]  ;;  %v8197_v43 = vpack.c.bf16 %v2689_v22, %v2686_v21 }
0x13c1   :  { %v3255_v22 = vld [vmem:[#allocation22 + $0x10] sm:$0xff] }
0x13c2   :  { %2374 = vrot.lane.b32.xlu1 %v2372_v10, %s9464_s26  ;;  %v8173_v10 = vpack.c.bf16 %v2676_v49, %v2673_v48  ;;  %8170 = vmatprep.subr.bf16.mxu1 %v8169_v55  ;;  %v2691_v48 = vld [vmem:[#allocation19 + $0x98] sm:$0xff]  ;;  %v2694_v49 = vld [vmem:[#allocation19 + $0xb0] sm:$0xff] }
0x13c3   :  { %8172 = vmatpush3.bf16.msra.mxu1 %v8169_v55  ;;  %v2695_v55 = vld [vmem:[#allocation19 + $0xb8] sm:$0xff] }
0x13c4   :  { %8174 = vmatprep.subr.bf16.mxu0 %v8173_v10  ;;  %8190 = vmatprep.subr.bf16.mxu1 %v8189_v58  ;;  %v8183_v10 = vpack.c.bf16 %v2687_v40, %v2684_v39 }
0x13c6   :  { %2382 = vrot.lane.b32.xlu1 %v8824_v52, %s9465_s13  ;;  %v2433_v52 = vrot.slane %v2426_v19, %v9845_v15 }
0x13c8   :  { %v2483_v60 = vsel %vm408_vm1, %v9931_v62, %v2433_v52  ;;  %v2692_v52 = vld [vmem:[#allocation19 + $0xa0] sm:$0xff] }
0x13c9   :  { %v2484_v38 = vsel %vm410_vm2, %v2483_v60, %v2442_v11  ;;  %v2693_v11 = vld [vmem:[#allocation19 + $0xa8] sm:$0xff]  ;;  %v8201_v31 = vpack.c.bf16 %v2695_v55, %v2692_v52  ;;  %v2852_v60 = vld [vmem:[#allocation20 + $0x20] sm:$0xff]  ;;  %v3273_v52 = vld [vmem:[#allocation22 + $0xa0] sm:$0xff] }
0x13ca   :  { %v2485_v42 = vsel %vm412_vm3, %v2484_v38, %v2452_v28  ;;  %v2853_v28 = vld [vmem:[#allocation20 + $0x28] sm:$0xff]  ;;  %v8187_v38 = vpack.c.bf16 %v2693_v11, %v2690_v56  ;;  %v3282_v56 = vld [vmem:[#allocation22 + $0xe8] sm:$0xff] }
0x13cb   :  { %v3276_v55 = vld [vmem:[#allocation22 + $0xb8] sm:$0xff] }
0x1434   :  { %v2375_v12 = vpop.permute.xlu1 %2374 }
0x1435   :  { %v2376_v47 = vrot.slane %v2375_v12, 6 }
0x1437   :  { %v2377_v1 = vsel %vm775_vm9, %v2376_v47, %v2375_v12  ;;  %v2672_v12 = vld [vmem:[#allocation19] sm:$0xff]  ;;  %v2675_v47 = vld [vmem:[#allocation19 + $0x18] sm:$0xff] }
0x1438   :  { %v2379_v18 = vadd.f32 %v2377_v1, %v2371_v50  ;;  %v2383_v44 = vpop.permute.xlu1 %2382  ;;  %v2403_v50 = vrot.slane %v2395_v54, 6  ;;  %v2409_v1 = vrot.slane %v2397_v45, 2  ;;  %v8175_v23 = vpack.c.bf16 %v2675_v47, %v2672_v12  ;;  %v3257_v54 = vld [vmem:[#allocation22 + $0x20] sm:$0xff]  ;;  %v3260_v12 = vld [vmem:[#allocation22 + $0x38] sm:$0xff]  ;;  %v3263_v47 = vld [vmem:[#allocation22 + $0x50] sm:$0xff] }
0x1439   :  { %v2384_v17 = vrot.slane %v2383_v44, 2 }
0x143a   :  { %8827 = vtanh.f32 %v2379_v18 }
0x1444   :  { %v8828_v57 = vpop.eup %8827 }
0x1445   :  { %2387 = vrot.lane.b32.xlu0 %v8828_v57, %s9466_s4  ;;  %v2850_v57 = vld [vmem:[#allocation20 + $0x10] sm:$0xff] }
0x1449   :  { %2856 = vrot.lane.b32.xlu0 %v2485_v42, %s9467_s12  ;;  %v8209_v42 = vpack.c.bf16 %v2853_v28, %v2850_v57 }
0x14b7   :  { %v2388_v13 = vpop.permute.xlu0 %2387 }
0x14b8   :  { %v2389_v5 = vrot.slane %v2388_v13, 2 }
0x14ba   :  { %v2390_v46 = vsel %vm975_vm10, %v2388_v13, %v2389_v5  ;;  %v2848_v13 = vld [vmem:[#allocation20] sm:$0xff]  ;;  %v2851_v5 = vld [vmem:[#allocation20 + $0x18] sm:$0xff] }
0x14bb   :  { %v2392_v34 = vmul.f32 %v2390_v46, %v2384_v17  ;;  %v3254_v17 = vld [vmem:[#allocation22 + $0x8] sm:$0xff]  ;;  %v8207_v45 = vpack.c.bf16 %v2851_v5, %v2848_v13 }
0x14bc   :  { %v10264_v46 = vpack.c.bf16 %v3257_v54, %v3254_v17  ;;  %v11057_v13 = vld [vmem:[#allocation66_spill] sm:$0xff]  ;;  %v11058_v17 = vld [vmem:[#allocation65_spill] sm:$0xff] }
0x14bd   :  { %v2394_v25 = vsel %vm2393_vm11, %v9931_v62, %v2392_v34  ;;  %v2401_v61 = vsel %vm2393_vm11, %v2392_v34, %v9931_v62  ;;  %v2473_v41 = vcombine.low %v2392_v34, %v2392_v34  ;;  %v3256_v34 = vld [vmem:[#allocation22 + $0x18] sm:$0xff] }
0x14be   :  { %v2418_v18 = vrot.slane %v2401_v61, 2  ;;  %v2420_v24 = vsel %vm408_vm1, %v2394_v25, %v2403_v50  ;;  %v10272_v50 = vpack.c.bf16 %v3256_v34, %v3253_v32  ;;  %v3259_v25 = vld [vmem:[#allocation22 + $0x30] sm:$0xff]  ;;  %v3262_v61 = vld [vmem:[#allocation22 + $0x48] sm:$0xff] }
0x14bf   :  { %v2421_v19 = vsel %vm410_vm2, %v2420_v24, %v2406_v35  ;;  %v2480_v3 = vrot.slane %v2473_v41, %v9845_v15  ;;  %v2857_v41 = vpop.permute.xlu0 %2856  ;;  %v3266_v35 = vld [vmem:[#allocation22 + $0x68] sm:$0xff]  ;;  %v10284_v24 = vpack.c.bf16 %v3262_v61, %v3259_v25 }
0x14c0   :  { %v10243_v0 = vsel %vm412_vm3, %v2421_v19, %v2409_v1  ;;  %v10247_v62 = vsel %vm412_vm3, %v10191_v20, %v2418_v18  ;;  %v10275_v1 = vpack.c.bf16 %v3263_v47, %v3260_v12  ;;  %v3269_v18 = vld [vmem:[#allocation22 + $0x80] sm:$0xff]  ;;  %v3275_v19 = vld [vmem:[#allocation22 + $0xb0] sm:$0xff] }
0x14c1   :  { %7092 = vmatmul.mubr.msk.f32.vlgmr.msra.gmra.mrb[16].mxu0 %vm2513_vm12, %v10243_v0  ;;  %7596 = vmatprep.mubr.msk.f32.mxu1 %vm2513_vm12, %v10243_v0  ;;  %v2481_v7 = vcombine.low %v2480_v3, %v2480_v3  ;;  %v10290_v3 = vpack.c.bf16 %v3268_v51, %v3265_v9  ;;  %v10293_v6 = vpack.c.bf16 %v3275_v19, %v3272_v53 }
0x14c2   :  { %8176 = vmatpush1.bf16.msra.mxu0 %v8175_v23  ;;  %7597 = vmatmul.mubr.msk.f32.vlgmr.msra.gmra.mrb[16].mxu1 %vm2513_vm12, %v10247_v62  ;;  %v10287_v23 = vpack.c.bf16 %v3269_v18, %v3266_v35 }
0x14c3   :  { %8192 = vmatpush3.bf16.msra.mxu1 %v8189_v58  ;;  %7615 = vmatprep.mubr.msk.f32.mxu1 %vm2513_vm12, %v10243_v0  ;;  %v2488_v20 = vsel %vm412_vm3, %v10196_v8, %v2481_v7  ;;  %v8185_v8 = vpack.c.bf16 %v2694_v49, %v2691_v48  ;;  %v2849_v58 = vld [vmem:[#allocation20 + $0x8] sm:$0xff]  ;;  %v3277_v7 = vld [vmem:[#allocation22 + $0xc0] sm:$0xff]  ;;  %v3270_v48 = vld [vmem:[#allocation22 + $0x88] sm:$0xff] }
0x14c4   :  { %2858 = vrot.lane.b32.xlu1 %v2488_v20, %s9467_s12  ;;  %2590 = vmatprep.mubr.f32.mxu0 %v11055_v37  ;;  %v8205_v44 = vpack.c.bf16 %v2852_v60, %v2849_v58  ;;  %v3261_v20 = vld [vmem:[#allocation22 + $0x40] sm:$0xff] }
0x14c5   :  { %8178 = vmatprep.subr.bf16.mxu0 %v8177_v16  ;;  %7093 = vmatmul.mubr.msk.f32.gmra.mrb[18].mxu0 %vm2513_vm12, %v10247_v62  ;;  %v3280_v16 = vld [vmem:[#allocation22 + $0xd8] sm:$0xff] }
0x14c6   :  { %8180 = vmatpush1.bf16.msra.mxu0 %v8179_v26  ;;  %8194 = vmatprep.subr.bf16.mxu1 %v8193_v30  ;;  %v10302_v21 = vpack.c.bf16 %v3280_v16, %v3277_v7  ;;  %v3258_v26 = vld [vmem:[#allocation22 + $0x28] sm:$0xff] }
0x14c7   :  { %8196 = vmatpush3.bf16.msra.mxu1 %v8193_v30  ;;  %8182 = vmatprep.subr.bf16.mxu0 %v8181_v33  ;;  %v10307_v30 = vpack.c.bf16 %v3258_v26, %v3255_v22  ;;  %v3264_v33 = vld [vmem:[#allocation22 + $0x58] sm:$0xff] }
0x14c8   :  { %8198 = vmatprep.subr.bf16.mxu1 %v8197_v43  ;;  %2760 = vmatprep.mubr.f32.mxu0 %v11055_v37  ;;  %v10312_v40 = vpack.c.bf16 %v3264_v33, %v3261_v20 }
0x14ca   :  { %8184 = vmatpush1.bf16.msra.mxu0 %v8183_v10  ;;  %v10327_v10 = vpack.c.bf16 %v3276_v55, %v3273_v52 }
0x14cb   :  { %8200 = vmatpush3.bf16.msra.mxu1 %v8197_v43  ;;  %8186 = vmatprep.subr.bf16.mxu0 %v8185_v8  ;;  %v3267_v43 = vld [vmem:[#allocation22 + $0x70] sm:$0xff] }
0x14cc   :  { %8202 = vmatprep.subr.bf16.mxu1 %v8201_v31  ;;  %v10320_v49 = vpack.c.bf16 %v3270_v48, %v3267_v43  ;;  %v3279_v8 = vld [vmem:[#allocation22 + $0xd0] sm:$0xff] }
0x14cd   :  { %v10333_v11 = vpack.c.bf16 %v3282_v56, %v3279_v8 }
0x14ce   :  { %8188 = vmatpush1.bf16.msra.mxu0 %v8187_v38 }
0x14cf   :  { %8204 = vmatpush3.bf16.msra.mxu1 %v8201_v31  ;;  %8210 = vmatprep.subr.bf16.mxu0 %v8209_v42 }
0x14d0   :  { %8206 = vmatprep.subr.bf16.mxu1 %v8205_v44 }
0x14d1   :  { %7096 = vmatmul.mubr.msk.f32.vlgmr.msra.gmra.mrb[20].mxu0 %vm2513_vm12, %v10243_v0  ;;  %v3278_v0 = vld [vmem:[#allocation22 + $0xc8] sm:$0xff] }
0x14d2   :  { %7616 = vmatmul.mubr.msk.f32.vlgmr.msra.gmra.mrb[18].mxu1 %vm2513_vm12, %v10247_v62  ;;  %2766 = vmatprep.mubr.f32.mxu0 %v11055_v37 }
0x14d3   :  { %8208 = vmatpush1.bf16.msra.mxu1 %v8207_v45  ;;  %2928 = vmatprep.mubr.f32.mxu1 %v11055_v37 }
0x14d4   :  { %8212 = vmatpush3.bf16.msra.mxu0 %v8209_v42  ;;  %8214 = vmatprep.subr.bf16.mxu1 %v10264_v46  ;;  %v3016_v42 = vld [vmem:[#allocation23] sm:$0x7] }
0x14d5   :  { %7097 = vmatmul.mubr.msk.f32.gmra.mrb[22].mxu0 %vm2513_vm12, %v10247_v62  ;;  %8233 = vmatprep.subr.bf16.mxu0 %v11054_v36  ;;  %v3281_v62 = vld [vmem:[#allocation22 + $0xe0] sm:$0xff]  ;;  %v3021_v44 = vrot.slane %v3016_v42, %v9851_v27  ;;  %v3029_v5 = vrot.slane %v3016_v42, %v11057_v13  ;;  %v3025_v54 = vrot.slane %v3016_v42, %v11058_v17 }
0x14d6   :  { %7100 = vmatmul.mubr.msk.f32.vlgmr.msra.gmra.mrb[20].mxu1 %vm952_vm8, %v2857_v41  ;;  %7622 = vmatprep.mubr.msk.f32.mxu0 %vm952_vm8, %v2857_v41  ;;  %v10299_v2 = vpack.c.bf16 %v3281_v62, %v3278_v0 }
0x14d7   :  { %8216 = vmatpush1.bf16.msra.mxu1 %v10272_v50  ;;  %2934 = vmatprep.mubr.f32.mxu1 %v11055_v37 }
0x14d8   :  { %8218 = vmatprep.subr.bf16.mxu1 %v10275_v1 }
0x14db   :  { %8220 = vmatpush1.bf16.msra.mxu1 %v10284_v24 }
0x14dc   :  { %8222 = vmatprep.subr.bf16.mxu1 %v10287_v23 }
0x14df   :  { %8224 = vmatpush1.bf16.msra.mxu1 %v10290_v3 }
0x14e0   :  { %8226 = vmatprep.subr.bf16.mxu1 %v10293_v6 }
0x14e3   :  { %8228 = vmatpush1.bf16.msra.mxu1 %v10296_v29 }
0x14e4   :  { %8230 = vmatprep.subr.bf16.mxu1 %v10299_v2 }
0x14e7   :  { %8232 = vmatpush1.bf16.msra.mxu1 %v10302_v21 }
0x14e8   :  { %8249 = vmatprep.subr.bf16.mxu1 %v10264_v46 }
0x1536   :  { %v2859_v39 = vpop.permute.xlu1 %2858 }
0x1537   :  { %7101 = vmatmul.mubr.msk.f32.gmra.mrb[22].mxu1 %vm952_vm8, %v2859_v39  ;;  %7623 = vmatmul.mubr.msk.f32.vlgmr.msra.gmra.mrb[24].mxu0 %vm952_vm8, %v2859_v39 }
0x1538   :  { %8235 = vmatpush3.bf16.msra.mxu0 %v10307_v30  ;;  %3348 = vmatprep.mubr.f32.mxu1 %v11055_v37 }
0x1539   :  { %8236 = vmatprep.subr.bf16.mxu0 %v11054_v36  ;;  %7645 = vmatprep.mubr.msk.f32.mxu0 %vm9454_vm0, %v11055_v37 }
0x153b   :  { %3349 = vmatmul.mubr.f32.vlgmr.msra.gmra.mrb[24].mxu1 %v11055_v37 }
0x153c   :  { %8238 = vmatpush3.bf16.msra.mxu0 %v10312_v40  ;;  %8251 = vmatpush1.bf16.msra.mxu1 %v10272_v50 }
0x153d   :  { %8239 = vmatprep.subr.bf16.mxu0 %v11054_v36  ;;  %8253 = vmatprep.subr.bf16.mxu1 %v10275_v1 }
0x153e   :  { %3550 = vmatprep.mubr.f32.mxu1 %v11055_v37 }
0x1540   :  { %8241 = vmatpush3.bf16.msra.mxu0 %v10320_v49  ;;  %8255 = vmatpush1.bf16.msra.mxu1 %v10284_v24 }
0x1541   :  { %8242 = vmatprep.subr.bf16.mxu0 %v11054_v36  ;;  %8257 = vmatprep.subr.bf16.mxu1 %v10287_v23 }
0x1544   :  { %8244 = vmatpush3.bf16.msra.mxu0 %v10327_v10  ;;  %8259 = vmatpush1.bf16.msra.mxu1 %v10290_v3 }
0x1545   :  { %8245 = vmatprep.subr.bf16.mxu0 %v11054_v36  ;;  %8261 = vmatprep.subr.bf16.mxu1 %v10293_v6 }
0x1548   :  { %8247 = vmatpush3.bf16.msra.mxu0 %v10333_v11  ;;  %8263 = vmatpush1.bf16.msra.mxu1 %v10296_v29 }
0x1549   :  { %8268 = vmatprep.subr.bf16.mxu0 %v11054_v36  ;;  %8265 = vmatprep.subr.bf16.mxu1 %v10299_v2 }
0x154b   :  { %7646 = vmatmul.mubr.f32.vlgmr.msra.gmra.mrb[26].mxu0 %v11055_v37 }
0x154c   :  { %8270 = vmatpush3.bf16.msra.mxu0 %v10307_v30  ;;  %8267 = vmatpush1.bf16.msra.mxu1 %v10302_v21 }
0x154d   :  { %8271 = vmatprep.subr.bf16.mxu0 %v11054_v36  ;;  %7668 = vmatprep.mubr.msk.f32.mxu0 %vm9454_vm0, %v11055_v37 }
0x154e   :  { %8284 = vmatprep.subr.bf16.mxu1 %v10264_v46 }
0x1550   :  { %8273 = vmatpush3.bf16.msra.mxu0 %v10312_v40 }
0x1551   :  { %8274 = vmatprep.subr.bf16.mxu0 %v11054_v36 }
0x1554   :  { %8276 = vmatpush3.bf16.msra.mxu0 %v10320_v49 }
0x1555   :  { %8277 = vmatprep.subr.bf16.mxu0 %v11054_v36 }
0x1558   :  { %8279 = vmatpush3.bf16.msra.mxu0 %v10327_v10 }
0x1559   :  { %8280 = vmatprep.subr.bf16.mxu0 %v11054_v36 }
0x155c   :  { %8282 = vmatpush3.bf16.msra.mxu0 %v10333_v11 }
0x155d   :  { %8303 = vmatprep.subr.bf16.mxu0 %v11054_v36 }
0x1594   :  { %v2586_v31 = vpop.f32.mrb[16].mxu0 }
0x1595   :  { %v2588_v57 = vpop.f32.mrb[17].mxu0  ;;  %v7598_v28 = vpop.f32.mrb[16].mxu1  ;;  %v3033_v45 = vadd.f32 %v3021_v44, %v2586_v31 }
0x1596   :  { %v2663_v58 = vpop.f32.mrb[17].mxu1  ;;  %v3145_v32 = vadd.f32 %v7598_v28, %v3029_v5  ;;  %v3034_v56 = vadd.f32 %v3025_v54, %v2588_v57 }
0x1597   :  { %v3035_v34 = vadd.f32 %v3029_v5, %v2663_v58 }
0x1598   :  { %v2592_v60 = vpop.f32.mrb[18].mxu0 }
0x1599   :  { %v2594_v38 = vpop.f32.mrb[19].mxu0  ;;  %v3143_v47 = vadd.f32 %v3021_v44, %v2592_v60 }
0x159a   :  { %v3144_v25 = vadd.f32 %v3025_v54, %v2594_v38 }
0x15a4   :  { %v2762_v12 = vpop.f32.mrb[20].mxu0 }
0x15a5   :  { %v3149_v61 = vrot.slane %v2762_v12, 6  ;;  %v3182_v41 = vrot.slane %v2762_v12, 2  ;;  %v2764_v35 = vpop.f32.mrb[21].mxu0  ;;  %v7617_v18 = vpop.f32.mrb[18].mxu1 }
0x15a6   :  { %v3150_v9 = vrot.slane %v2764_v35, 6  ;;  %v3183_v51 = vrot.slane %v2764_v35, 2  ;;  %v3041_v53 = vrot.slane %v7617_v18, 6  ;;  %v3074_v19 = vrot.slane %v7617_v18, 2  ;;  %v2839_v4 = vpop.f32.mrb[19].mxu1 }
0x15a7   :  { %v3151_v63 = vrot.slane %v2839_v4, 6  ;;  %v3184_v0 = vrot.slane %v2839_v4, 2  ;;  %v3155_v62 = vadd.f32 %v3149_v61, %v3143_v47  ;;  %v3188_v7 = vadd.f32 %v3182_v41, %v3143_v47 }
0x15a8   :  { %v2768_v16 = vpop.f32.mrb[22].mxu0  ;;  %v3156_v22 = vadd.f32 %v3150_v9, %v3144_v25  ;;  %v3189_v26 = vadd.f32 %v3183_v51, %v3144_v25  ;;  %v3047_v20 = vadd.f32 %v3041_v53, %v3035_v34  ;;  %v3080_v33 = vadd.f32 %v3074_v19, %v3035_v34 }
0x15a9   :  { %v3039_v39 = vrot.slane %v2768_v16, 6  ;;  %v3072_v43 = vrot.slane %v2768_v16, 2  ;;  %v2770_v48 = vpop.f32.mrb[23].mxu0  ;;  %v2930_v52 = vpop.f32.mrb[20].mxu1  ;;  %v3157_v55 = vadd.f32 %v3151_v63, %v3145_v32  ;;  %v3190_v8 = vadd.f32 %v3184_v0, %v3145_v32 }
0x15aa   :  { %v3040_v31 = vrot.slane %v2770_v48, 6  ;;  %v3073_v28 = vrot.slane %v2770_v48, 2  ;;  %v2932_v58 = vpop.f32.mrb[21].mxu1 }
0x15ab   :  { %v3045_v60 = vadd.f32 %v3039_v39, %v3033_v45  ;;  %v3078_v38 = vadd.f32 %v3072_v43, %v3033_v45 }
0x15ac   :  { %v3046_v42 = vadd.f32 %v3040_v31, %v3034_v56  ;;  %v3079_v44 = vadd.f32 %v3073_v28, %v3034_v56 }
0x15ad   :  { %v3048_v13 = vadd.f32 %v3045_v60, %v2930_v52  ;;  %v3081_v5 = vadd.f32 %v3078_v38, %v2930_v52 }
0x15ae   :  { %v3049_v12 = vadd.f32 %v3046_v42, %v2932_v58  ;;  %v3082_v47 = vadd.f32 %v3079_v44, %v2932_v58 }
0x15b0   :  { %v3054_v25 = vcombine.low %v3048_v13, %v3049_v12  ;;  %v3087_v34 = vcombine.low %v3081_v5, %v3082_v47  ;;  %v3105_v61 = vcombine.high %v3048_v13, %v3049_v12  ;;  %v3124_v41 = vcombine.high %v3081_v5, %v3082_v47 }
0x15b2   :  { %v3061_v35 = vrot.slane %v3054_v25, %v9845_v15  ;;  %v3094_v32 = vrot.slane %v3087_v34, %v9845_v15  ;;  %v3113_v57 = vrot.slane %v3105_v61, %v9845_v15 }
0x160a   :  { %v2936_v54 = vpop.f32.mrb[22].mxu1  ;;  %v7624_v18 = vpop.f32.mrb[24].mxu0 }
0x160b   :  { %v3158_v9 = vadd.f32 %v3155_v62, %v2936_v54  ;;  %v3191_v45 = vadd.f32 %v3188_v7, %v2936_v54  ;;  %v3160_v51 = vadd.f32 %v7624_v18, %v3157_v55  ;;  %v3193_v53 = vadd.f32 %v7624_v18, %v3190_v8  ;;  %v2938_v19 = vpop.f32.mrb[23].mxu1  ;;  %v3007_v4 = vpop.f32.mrb[25].mxu0 }
0x160c   :  { %v3159_v63 = vadd.f32 %v3156_v22, %v2938_v19  ;;  %v3192_v0 = vadd.f32 %v3189_v26, %v2938_v19  ;;  %v3050_v16 = vadd.f32 %v3047_v20, %v3007_v4  ;;  %v3083_v39 = vadd.f32 %v3080_v33, %v3007_v4 }
0x160d   :  { %v3178_v43 = vrot.slane %v3160_v51, %v9845_v15  ;;  %v3211_v48 = vrot.slane %v3193_v53, %v9845_v15  ;;  %v3216_v52 = vcombine.high %v3160_v51, %v3160_v51  ;;  %v3235_v56 = vcombine.high %v3193_v53, %v3193_v53 }
0x160e   :  { %v3164_v31 = vcombine.low %v3158_v9, %v3159_v63  ;;  %v3197_v28 = vcombine.low %v3191_v45, %v3192_v0  ;;  %v3215_v58 = vcombine.high %v3158_v9, %v3159_v63  ;;  %v3234_v60 = vcombine.high %v3191_v45, %v3192_v0  ;;  %v3350_v62 = vpop.f32.mrb[24].mxu1 }
0x160f   :  { %v3230_v7 = vrot.slane %v3216_v52, %v9845_v15  ;;  %v3249_v55 = vrot.slane %v3235_v56, %v9845_v15  ;;  %v3068_v22 = vrot.slane %v3050_v16, %v9845_v15  ;;  %v3101_v26 = vrot.slane %v3083_v39, %v9845_v15  ;;  %v3352_v20 = vpop.f32.mrb[25].mxu1 }
0x1610   :  { %v3171_v33 = vrot.slane %v3164_v31, %v9845_v15  ;;  %v3204_v8 = vrot.slane %v3197_v28, %v9845_v15  ;;  %v3223_v38 = vrot.slane %v3215_v58, %v9845_v15  ;;  %v3242_v42 = vrot.slane %v3234_v60, %v9845_v15 }
0x1611   :  { %v3069_v44 = vcombine.low %v3061_v35, %v3068_v22  ;;  %v3102_v13 = vcombine.high %v3094_v32, %v3101_v26  ;;  %v3106_v5 = vcombine.high %v3050_v16, %v3050_v16  ;;  %v3125_v12 = vcombine.high %v3083_v39, %v3083_v39 }
0x1612   :  { %v3179_v47 = vcombine.low %v3171_v33, %v3178_v43  ;;  %v3212_v25 = vcombine.high %v3204_v8, %v3211_v48  ;;  %v3231_v34 = vcombine.low %v3223_v38, %v3230_v7  ;;  %v3250_v61 = vcombine.high %v3242_v42, %v3249_v55 }
0x1613   :  { %v3132_v54 = vrot.slane %v3124_v41, %v9845_v15  ;;  %3071 = vst.msk [vmem:[#allocation2] sm:$0x3f] %vm9892_vm7, %v3069_v44  ;;  %3104 = vst.msk [vmem:[#allocation2 + $0x6] sm:$0x3f] %vm9892_vm7, %v3102_v13  ;;  %v3120_v18 = vrot.slane %v3106_v5, %v9845_v15  ;;  %v3139_v9 = vrot.slane %v3125_v12, %v9845_v15 }
0x1614   :  { %v3428_v35 = vcombine.low %v3350_v62, %v3352_v20  ;;  %3181 = vst.msk [vmem:[#allocation2 + $0x18] sm:$0x3f] %vm9892_vm7, %v3179_v47  ;;  %3214 = vst.msk [vmem:[#allocation2 + $0x1e] sm:$0x3f] %vm9892_vm7, %v3212_v25 }
0x1615   :  { %3233 = vst.msk [vmem:[#allocation2 + $0x24] sm:$0x3f] %vm9892_vm7, %v3231_v34  ;;  %3252 = vst.msk [vmem:[#allocation2 + $0x2a] sm:$0x3f] %vm9892_vm7, %v3250_v61  ;;  %v3121_v41 = vcombine.low %v3113_v57, %v3120_v18  ;;  %v3140_v32 = vcombine.high %v3132_v54, %v3139_v9 }
0x1616   :  { %v3435_v45 = vrot.slane %v3428_v35, %v9845_v15 }
0x1617   :  { %3123 = vst.msk [vmem:[#allocation2 + $0xc] sm:$0x3f] %vm9892_vm7, %v3121_v41  ;;  %3142 = vst.msk [vmem:[#allocation2 + $0x12] sm:$0x3f] %vm9892_vm7, %v3140_v32 }
0x161a   :  { %v3283_v63 = vld [vmem:[#allocation2] sm:$0x3f]  ;;  %v3482_v54 = vld [vmem:[#allocation2 + $0x6] sm:$0x3f] }
0x161e   :  { %v3421_v51 = vpop.f32.mrb[26].mxu0 }
0x161f   :  { %v3442_v53 = vrot.slane %v3421_v51, %v9845_v15  ;;  %v7647_v19 = vpop.f32.mrb[27].mxu0 }
0x1621   :  { %v3443_v4 = vcombine.low %v3435_v45, %v3442_v53 }
0x1623   :  { %v3445_v0 = vadd.f32 %v3443_v4, %v3283_v63 }
0x1625   :  { %3453 = vrot.lane.b32.xlu0 %v3445_v0, %s9438_s19  ;;  %v7104_v16 = vmul.f32 -1.442695, %v3445_v0 }
0x1627   :  { %8829 = vpow2.f32 %v7104_v16 }
0x1631   :  { %v8830_v57 = vpop.eup %8829 }
0x1632   :  { %v3449_v39 = vadd.f32 1.0, %v8830_v57 }
0x1634   :  { %8831 = vrcp.f32 %v3449_v39 }
0x163e   :  { %v8832_v56 = vpop.eup %8831 }
0x163f   :  { %v3460_v62 = vmul.f32 0.0, %v8832_v56 }
0x1697   :  { %v3454_v43 = vpop.permute.xlu0 %3453 }
0x1698   :  { %v3455_v48 = vrot.slane %v3454_v43, 2  ;;  %v3456_v52 = vrot.slane %v3454_v43, 4 }
0x169a   :  { %v3457_v59 = vsel %vm952_vm8, %v3455_v48, %v3456_v52 }
0x169b   :  { %8833 = vtanh.f32 %v3457_v59 }
0x16a5   :  { %v8834_v31 = vpop.eup %8833 }
0x16a6   :  { %v3461_v28 = vmul.f32 %v8834_v31, %v8832_v56 }
0x16a8   :  { %3463 = vrot.lane.b32.xlu1 %v3461_v28, %s9464_s26 }
0x16ac   :  { %3471 = vrot.lane.b32.xlu1 %v8832_v56, %s9465_s13 }
0x171a   :  { %v3464_v58 = vpop.permute.xlu1 %3463 }
0x171b   :  { %v3465_v60 = vrot.slane %v3464_v58, 6 }
0x171d   :  { %v3466_v7 = vsel %vm775_vm9, %v3465_v60, %v3464_v58 }
0x171e   :  { %v3468_v55 = vadd.f32 %v3466_v7, %v3460_v62  ;;  %v3472_v26 = vpop.permute.xlu1 %3471 }
0x171f   :  { %v3473_v8 = vrot.slane %v3472_v26, 2 }
0x1720   :  { %8835 = vtanh.f32 %v3468_v55 }
0x172a   :  { %v8836_v22 = vpop.eup %8835 }
0x172b   :  { %3476 = vrot.lane.b32.xlu0 %v8836_v22, %s9466_s4 }
0x179d   :  { %v3477_v20 = vpop.permute.xlu0 %3476 }
0x179e   :  { %v3478_v33 = vrot.slane %v3477_v20, 2 }
0x17a0   :  { %v3479_v38 = vsel %vm975_vm10, %v3477_v20, %v3478_v33 }
0x17a1   :  { %v10401_v42 = vmul.f32 %v3479_v38, %v3473_v8  ;;  %v3684_v8 = vld [vmem:[#allocation2 + $0xc] sm:$0x3f] }
0x17a3   :  { %7105 = vmatmul.mubr.msk.f32.vlgmr.msra.gmra.mrb[26].mxu1 %vm775_vm9, %v10401_v42  ;;  %7669 = vmatmul.mubr.msk.f32.vlgmr.msra.gmra.mrb[28].mxu0 %vm775_vm9, %v10401_v42 }
0x17a4   :  { %8286 = vmatpush1.bf16.msra.mxu1 %v10272_v50  ;;  %8305 = vmatpush3.bf16.msra.mxu0 %v10307_v30 }
0x17a5   :  { %8288 = vmatprep.subr.bf16.mxu1 %v10275_v1  ;;  %8306 = vmatprep.subr.bf16.mxu0 %v11054_v36 }
0x17a6   :  { %3752 = vmatprep.mubr.f32.mxu1 %v11055_v37  ;;  %7691 = vmatprep.mubr.msk.f32.mxu0 %vm9454_vm0, %v11055_v37 }
0x17a8   :  { %8290 = vmatpush1.bf16.msra.mxu1 %v10284_v24  ;;  %8308 = vmatpush3.bf16.msra.mxu0 %v10312_v40 }
0x17a9   :  { %8292 = vmatprep.subr.bf16.mxu1 %v10287_v23  ;;  %8309 = vmatprep.subr.bf16.mxu0 %v11054_v36 }
0x17ac   :  { %8294 = vmatpush1.bf16.msra.mxu1 %v10290_v3  ;;  %8311 = vmatpush3.bf16.msra.mxu0 %v10320_v49 }
0x17ad   :  { %8296 = vmatprep.subr.bf16.mxu1 %v10293_v6  ;;  %8312 = vmatprep.subr.bf16.mxu0 %v11054_v36 }
0x17b0   :  { %8298 = vmatpush1.bf16.msra.mxu1 %v10296_v29  ;;  %8314 = vmatpush3.bf16.msra.mxu0 %v10327_v10 }
0x17b1   :  { %8300 = vmatprep.subr.bf16.mxu1 %v10299_v2  ;;  %8315 = vmatprep.subr.bf16.mxu0 %v11054_v36 }
0x17b4   :  { %8302 = vmatpush1.bf16.msra.mxu1 %v10302_v21  ;;  %8317 = vmatpush3.bf16.msra.mxu0 %v10333_v11 }
0x17b5   :  { %8319 = vmatprep.subr.bf16.mxu1 %v10264_v46  ;;  %8338 = vmatprep.subr.bf16.mxu0 %v11054_v36 }
0x1876   :  { %v3552_v44 = vpop.f32.mrb[26].mxu1  ;;  %v3623_v13 = vpop.f32.mrb[28].mxu0 }
0x1877   :  { %v3554_v5 = vpop.f32.mrb[27].mxu1  ;;  %v7670_v12 = vpop.f32.mrb[29].mxu0  ;;  %v3644_v25 = vrot.slane %v3623_v13, %v9845_v15 }
0x1878   :  { %v3630_v47 = vcombine.low %v3552_v44, %v3554_v5 }
0x187a   :  { %v3637_v34 = vrot.slane %v3630_v47, %v9845_v15 }
0x187c   :  { %v3645_v61 = vcombine.low %v3637_v34, %v3644_v25 }
0x187e   :  { %v3647_v18 = vadd.f32 %v3645_v61, %v3482_v54 }
0x1880   :  { %3655 = vrot.lane.b32.xlu0 %v3647_v18, %s9438_s19  ;;  %v7107_v9 = vmul.f32 -1.442695, %v3647_v18 }
0x1882   :  { %8837 = vpow2.f32 %v7107_v9 }
0x188c   :  { %v8838_v35 = vpop.eup %8837 }
0x188d   :  { %v3651_v41 = vadd.f32 1.0, %v8838_v35 }
0x188f   :  { %8839 = vrcp.f32 %v3651_v41 }
0x1899   :  { %v8840_v19 = vpop.eup %8839 }
0x189a   :  { %v3662_v57 = vmul.f32 %v8840_v19, %v3468_v55 }
0x18f2   :  { %v3656_v32 = vpop.permute.xlu0 %3655 }
0x18f3   :  { %v3657_v45 = vrot.slane %v3656_v32, 2  ;;  %v3658_v51 = vrot.slane %v3656_v32, 4 }
0x18f5   :  { %v3659_v53 = vsel %vm952_vm8, %v3657_v45, %v3658_v51 }
0x18f6   :  { %8841 = vtanh.f32 %v3659_v53 }
0x1900   :  { %v8842_v4 = vpop.eup %8841 }
0x1901   :  { %v3663_v63 = vmul.f32 %v8842_v4, %v8840_v19 }
0x1903   :  { %3665 = vrot.lane.b32.xlu1 %v3663_v63, %s9464_s26 }
0x1907   :  { %3673 = vrot.lane.b32.xlu1 %v8840_v19, %s9465_s13 }
0x1975   :  { %v3666_v0 = vpop.permute.xlu1 %3665 }
0x1976   :  { %v3667_v16 = vrot.slane %v3666_v0, 6 }
0x1978   :  { %v3668_v39 = vsel %vm775_vm9, %v3667_v16, %v3666_v0 }
0x1979   :  { %v3670_v43 = vadd.f32 %v3668_v39, %v3662_v57  ;;  %v3674_v52 = vpop.permute.xlu1 %3673 }
0x197a   :  { %v3675_v31 = vrot.slane %v3674_v52, 2 }
0x197b   :  { %8843 = vtanh.f32 %v3670_v43 }
0x1985   :  { %v8844_v48 = vpop.eup %8843 }
0x1986   :  { %3678 = vrot.lane.b32.xlu0 %v8844_v48, %s9466_s4 }
0x19f8   :  { %v3679_v59 = vpop.permute.xlu0 %3678 }
0x19f9   :  { %v3680_v56 = vrot.slane %v3679_v59, 2 }
0x19fb   :  { %v3681_v28 = vsel %vm975_vm10, %v3679_v59, %v3680_v56 }
0x19fc   :  { %v10439_v58 = vmul.f32 %v3681_v28, %v3675_v31  ;;  %v3886_v28 = vld [vmem:[#allocation2 + $0x12] sm:$0x3f] }
0x19fe   :  { %7108 = vmatmul.mubr.msk.f32.vlgmr.msra.gmra.mrb[28].mxu1 %vm775_vm9, %v10439_v58  ;;  %7692 = vmatmul.mubr.msk.f32.vlgmr.msra.gmra.mrb[30].mxu0 %vm775_vm9, %v10439_v58 }
0x19ff   :  { %8321 = vmatpush1.bf16.msra.mxu1 %v10272_v50  ;;  %8340 = vmatpush3.bf16.msra.mxu0 %v10307_v30 }
0x1a00   :  { %8323 = vmatprep.subr.bf16.mxu1 %v10275_v1  ;;  %8341 = vmatprep.subr.bf16.mxu0 %v11054_v36 }
0x1a01   :  { %3954 = vmatprep.mubr.f32.mxu1 %v11055_v37  ;;  %7714 = vmatprep.mubr.msk.f32.mxu0 %vm9454_vm0, %v11055_v37 }
0x1a03   :  { %8325 = vmatpush1.bf16.msra.mxu1 %v10284_v24  ;;  %8343 = vmatpush3.bf16.msra.mxu0 %v10312_v40 }
0x1a04   :  { %8327 = vmatprep.subr.bf16.mxu1 %v10287_v23  ;;  %8344 = vmatprep.subr.bf16.mxu0 %v11054_v36 }
0x1a07   :  { %8329 = vmatpush1.bf16.msra.mxu1 %v10290_v3  ;;  %8346 = vmatpush3.bf16.msra.mxu0 %v10320_v49 }
0x1a08   :  { %8331 = vmatprep.subr.bf16.mxu1 %v10293_v6  ;;  %8347 = vmatprep.subr.bf16.mxu0 %v11054_v36 }
0x1a0b   :  { %8333 = vmatpush1.bf16.msra.mxu1 %v10296_v29  ;;  %8349 = vmatpush3.bf16.msra.mxu0 %v10327_v10 }
0x1a0c   :  { %8335 = vmatprep.subr.bf16.mxu1 %v10299_v2  ;;  %8350 = vmatprep.subr.bf16.mxu0 %v11054_v36 }
0x1a0f   :  { %8337 = vmatpush1.bf16.msra.mxu1 %v10302_v21  ;;  %8352 = vmatpush3.bf16.msra.mxu0 %v10333_v11 }
0x1a10   :  { %8354 = vmatprep.subr.bf16.mxu1 %v10264_v46  ;;  %8373 = vmatprep.subr.bf16.mxu0 %v11054_v36 }
0x1ad1   :  { %v3754_v60 = vpop.f32.mrb[28].mxu1  ;;  %v3825_v62 = vpop.f32.mrb[30].mxu0 }
0x1ad2   :  { %v3756_v7 = vpop.f32.mrb[29].mxu1  ;;  %v7693_v55 = vpop.f32.mrb[31].mxu0  ;;  %v3846_v26 = vrot.slane %v3825_v62, %v9845_v15 }
0x1ad3   :  { %v3832_v22 = vcombine.low %v3754_v60, %v3756_v7 }
0x1ad5   :  { %v3839_v20 = vrot.slane %v3832_v22, %v9845_v15 }
0x1ad7   :  { %v3847_v33 = vcombine.low %v3839_v20, %v3846_v26 }
0x1ad9   :  { %v3849_v38 = vadd.f32 %v3847_v33, %v3684_v8 }
0x1adb   :  { %3857 = vrot.lane.b32.xlu0 %v3849_v38, %s9438_s19  ;;  %v7110_v44 = vmul.f32 -1.442695, %v3849_v38 }
0x1add   :  { %8845 = vpow2.f32 %v7110_v44 }
0x1ae7   :  { %v8846_v13 = vpop.eup %8845 }
0x1ae8   :  { %v3853_v5 = vadd.f32 1.0, %v8846_v13 }
0x1aea   :  { %8847 = vrcp.f32 %v3853_v5 }
0x1af4   :  { %v8848_v61 = vpop.eup %8847 }
0x1af5   :  { %v3864_v41 = vmul.f32 %v8848_v61, %v3670_v43 }
0x1b4d   :  { %v3858_v12 = vpop.permute.xlu0 %3857 }
0x1b4e   :  { %v3859_v47 = vrot.slane %v3858_v12, 2  ;;  %v3860_v25 = vrot.slane %v3858_v12, 4 }
0x1b50   :  { %v3861_v34 = vsel %vm952_vm8, %v3859_v47, %v3860_v25 }
0x1b51   :  { %8849 = vtanh.f32 %v3861_v34 }
0x1b5b   :  { %v8850_v54 = vpop.eup %8849 }
0x1b5c   :  { %v3865_v18 = vmul.f32 %v8850_v54, %v8848_v61 }
0x1b5e   :  { %3867 = vrot.lane.b32.xlu1 %v3865_v18, %s9464_s26 }
0x1b62   :  { %3875 = vrot.lane.b32.xlu1 %v8848_v61, %s9465_s13 }
0x1bd0   :  { %v3868_v9 = vpop.permute.xlu1 %3867 }
0x1bd1   :  { %v3869_v35 = vrot.slane %v3868_v9, 6 }
0x1bd3   :  { %v3870_v32 = vsel %vm775_vm9, %v3869_v35, %v3868_v9 }
0x1bd4   :  { %v3872_v45 = vadd.f32 %v3870_v32, %v3864_v41  ;;  %v3876_v53 = vpop.permute.xlu1 %3875 }
0x1bd5   :  { %v3877_v63 = vrot.slane %v3876_v53, 2 }
0x1bd6   :  { %8851 = vtanh.f32 %v3872_v45 }
0x1be0   :  { %v8852_v51 = vpop.eup %8851 }
0x1be1   :  { %3880 = vrot.lane.b32.xlu0 %v8852_v51, %s9466_s4 }
0x1c53   :  { %v3881_v19 = vpop.permute.xlu0 %3880 }
0x1c54   :  { %v3882_v4 = vrot.slane %v3881_v19, 2 }
0x1c56   :  { %v3883_v0 = vsel %vm975_vm10, %v3881_v19, %v3882_v4 }
0x1c57   :  { %v10477_v16 = vmul.f32 %v3883_v0, %v3877_v63 }
0x1c59   :  { %7111 = vmatmul.mubr.msk.f32.vlgmr.msra.gmra.mrb[30].mxu1 %vm775_vm9, %v10477_v16  ;;  %7715 = vmatmul.mubr.msk.f32.vlgmr.msra.gmra.mrb[32].mxu0 %vm775_vm9, %v10477_v16 }
0x1c5a   :  { %8356 = vmatpush1.bf16.msra.mxu1 %v10272_v50  ;;  %8375 = vmatpush3.bf16.msra.mxu0 %v10307_v30 }
0x1c5b   :  { %8358 = vmatprep.subr.bf16.mxu1 %v10275_v1  ;;  %8376 = vmatprep.subr.bf16.mxu0 %v11054_v36 }
0x1c5c   :  { %4156 = vmatprep.mubr.f32.mxu1 %v11055_v37  ;;  %7737 = vmatprep.mubr.msk.f32.mxu0 %vm9454_vm0, %v11055_v37 }
0x1c5e   :  { %8360 = vmatpush1.bf16.msra.mxu1 %v10284_v24  ;;  %8378 = vmatpush3.bf16.msra.mxu0 %v10312_v40 }
0x1c5f   :  { %8362 = vmatprep.subr.bf16.mxu1 %v10287_v23  ;;  %8379 = vmatprep.subr.bf16.mxu0 %v11054_v36 }
0x1c62   :  { %8364 = vmatpush1.bf16.msra.mxu1 %v10290_v3  ;;  %8381 = vmatpush3.bf16.msra.mxu0 %v10320_v49 }
0x1c63   :  { %8366 = vmatprep.subr.bf16.mxu1 %v10293_v6  ;;  %8382 = vmatprep.subr.bf16.mxu0 %v11054_v36 }
0x1c66   :  { %8368 = vmatpush1.bf16.msra.mxu1 %v10296_v29  ;;  %8384 = vmatpush3.bf16.msra.mxu0 %v10327_v10 }
0x1c67   :  { %8370 = vmatprep.subr.bf16.mxu1 %v10299_v2  ;;  %8385 = vmatprep.subr.bf16.mxu0 %v11054_v36 }
0x1c6a   :  { %8372 = vmatpush1.bf16.msra.mxu1 %v10302_v21  ;;  %8387 = vmatpush3.bf16.msra.mxu0 %v10333_v11 }
0x1c6b   :  { %8389 = vmatprep.subr.bf16.mxu1 %v10264_v46  ;;  %8408 = vmatprep.subr.bf16.mxu0 %v11054_v36 }
0x1d2c   :  { %v3956_v57 = vpop.f32.mrb[30].mxu1  ;;  %v4027_v39 = vpop.f32.mrb[32].mxu0 }
0x1d2d   :  { %v3958_v43 = vpop.f32.mrb[31].mxu1  ;;  %v7716_v48 = vpop.f32.mrb[33].mxu0  ;;  %v4048_v59 = vrot.slane %v4027_v39, %v9845_v15 }
0x1d2e   :  { %v4034_v52 = vcombine.low %v3956_v57, %v3958_v43  ;;  %v4088_v57 = vld [vmem:[#allocation2 + $0x18] sm:$0x3f] }
0x1d30   :  { %v4041_v56 = vrot.slane %v4034_v52, %v9845_v15 }
0x1d32   :  { %v4049_v31 = vcombine.low %v4041_v56, %v4048_v59 }
0x1d34   :  { %v4051_v60 = vadd.f32 %v4049_v31, %v3886_v28 }
0x1d36   :  { %4059 = vrot.lane.b32.xlu0 %v4051_v60, %s9438_s19  ;;  %v7113_v62 = vmul.f32 -1.442695, %v4051_v60 }
0x1d38   :  { %8853 = vpow2.f32 %v7113_v62 }
0x1d42   :  { %v8854_v7 = vpop.eup %8853 }
0x1d43   :  { %v4055_v55 = vadd.f32 1.0, %v8854_v7 }
0x1d45   :  { %8855 = vrcp.f32 %v4055_v55 }
0x1d4f   :  { %v8856_v8 = vpop.eup %8855 }
0x1d50   :  { %v4066_v12 = vmul.f32 %v8856_v8, %v3872_v45 }
0x1da8   :  { %v4060_v22 = vpop.permute.xlu0 %4059 }
0x1da9   :  { %v4061_v26 = vrot.slane %v4060_v22, 2  ;;  %v4062_v20 = vrot.slane %v4060_v22, 4 }
0x1dab   :  { %v4063_v33 = vsel %vm952_vm8, %v4061_v26, %v4062_v20 }
0x1dac   :  { %8857 = vtanh.f32 %v4063_v33 }
0x1db6   :  { %v8858_v38 = vpop.eup %8857 }
0x1db7   :  { %v4067_v44 = vmul.f32 %v8858_v38, %v8856_v8 }
0x1db9   :  { %4069 = vrot.lane.b32.xlu1 %v4067_v44, %s9464_s26 }
0x1dbd   :  { %4077 = vrot.lane.b32.xlu1 %v8856_v8, %s9465_s13 }
0x1e2b   :  { %v4070_v13 = vpop.permute.xlu1 %4069 }
0x1e2c   :  { %v4071_v5 = vrot.slane %v4070_v13, 6 }
0x1e2e   :  { %v4072_v47 = vsel %vm775_vm9, %v4071_v5, %v4070_v13 }
0x1e2f   :  { %v4074_v25 = vadd.f32 %v4072_v47, %v4066_v12  ;;  %v4078_v61 = vpop.permute.xlu1 %4077 }
0x1e30   :  { %v4079_v9 = vrot.slane %v4078_v61, 2 }
0x1e31   :  { %8859 = vtanh.f32 %v4074_v25 }
0x1e3b   :  { %v8860_v34 = vpop.eup %8859 }
0x1e3c   :  { %4082 = vrot.lane.b32.xlu0 %v8860_v34, %s9466_s4 }
0x1eae   :  { %v4083_v54 = vpop.permute.xlu0 %4082 }
0x1eaf   :  { %v4084_v18 = vrot.slane %v4083_v54, 2 }
0x1eb1   :  { %v4085_v35 = vsel %vm975_vm10, %v4083_v54, %v4084_v18 }
0x1eb2   :  { %v10515_v41 = vmul.f32 %v4085_v35, %v4079_v9 }
0x1eb4   :  { %7114 = vmatmul.mubr.msk.f32.vlgmr.msra.gmra.mrb[32].mxu1 %vm775_vm9, %v10515_v41  ;;  %7738 = vmatmul.mubr.msk.f32.vlgmr.msra.gmra.mrb[34].mxu0 %vm775_vm9, %v10515_v41 }
0x1eb5   :  { %8391 = vmatpush1.bf16.msra.mxu1 %v10272_v50  ;;  %8410 = vmatpush3.bf16.msra.mxu0 %v10307_v30 }
0x1eb6   :  { %8393 = vmatprep.subr.bf16.mxu1 %v10275_v1  ;;  %8411 = vmatprep.subr.bf16.mxu0 %v11054_v36 }
0x1eb7   :  { %4358 = vmatprep.mubr.f32.mxu1 %v11055_v37  ;;  %7760 = vmatprep.mubr.msk.f32.mxu0 %vm9454_vm0, %v11055_v37 }
0x1eb9   :  { %8395 = vmatpush1.bf16.msra.mxu1 %v10284_v24  ;;  %8413 = vmatpush3.bf16.msra.mxu0 %v10312_v40 }
0x1eba   :  { %8397 = vmatprep.subr.bf16.mxu1 %v10287_v23  ;;  %8414 = vmatprep.subr.bf16.mxu0 %v11054_v36 }
0x1ebd   :  { %8399 = vmatpush1.bf16.msra.mxu1 %v10290_v3  ;;  %8416 = vmatpush3.bf16.msra.mxu0 %v10320_v49 }
0x1ebe   :  { %8401 = vmatprep.subr.bf16.mxu1 %v10293_v6  ;;  %8417 = vmatprep.subr.bf16.mxu0 %v11054_v36 }
0x1ec1   :  { %8403 = vmatpush1.bf16.msra.mxu1 %v10296_v29  ;;  %8419 = vmatpush3.bf16.msra.mxu0 %v10327_v10 }
0x1ec2   :  { %8405 = vmatprep.subr.bf16.mxu1 %v10299_v2  ;;  %8420 = vmatprep.subr.bf16.mxu0 %v11054_v36 }
0x1ec5   :  { %8407 = vmatpush1.bf16.msra.mxu1 %v10302_v21  ;;  %8422 = vmatpush3.bf16.msra.mxu0 %v10333_v11 }
0x1ec6   :  { %8424 = vmatprep.subr.bf16.mxu1 %v10264_v46  ;;  %8443 = vmatprep.subr.bf16.mxu0 %v11054_v36 }
0x1f87   :  { %v4158_v32 = vpop.f32.mrb[32].mxu1  ;;  %v4229_v45 = vpop.f32.mrb[34].mxu0 }
0x1f88   :  { %v4160_v51 = vpop.f32.mrb[33].mxu1  ;;  %v7739_v53 = vpop.f32.mrb[35].mxu0  ;;  %v4250_v4 = vrot.slane %v4229_v45, %v9845_v15  ;;  %v4290_v45 = vld [vmem:[#allocation2 + $0x1e] sm:$0x3f] }
0x1f89   :  { %v4236_v19 = vcombine.low %v4158_v32, %v4160_v51 }
0x1f8b   :  { %v4243_v63 = vrot.slane %v4236_v19, %v9845_v15 }
0x1f8d   :  { %v4251_v0 = vcombine.low %v4243_v63, %v4250_v4 }
0x1f8f   :  { %v4253_v39 = vadd.f32 %v4251_v0, %v4088_v57 }
0x1f91   :  { %4261 = vrot.lane.b32.xlu0 %v4253_v39, %s9438_s19  ;;  %v7116_v43 = vmul.f32 -1.442695, %v4253_v39 }
0x1f93   :  { %8861 = vpow2.f32 %v7116_v43 }
0x1f9d   :  { %v8862_v48 = vpop.eup %8861 }
0x1f9e   :  { %v4257_v52 = vadd.f32 1.0, %v8862_v48 }
0x1fa0   :  { %8863 = vrcp.f32 %v4257_v52 }
0x1faa   :  { %v8864_v60 = vpop.eup %8863 }
0x1fab   :  { %v4268_v26 = vmul.f32 %v8864_v60, %v4074_v25 }
0x2003   :  { %v4262_v59 = vpop.permute.xlu0 %4261 }
0x2004   :  { %v4263_v56 = vrot.slane %v4262_v59, 2  ;;  %v4264_v31 = vrot.slane %v4262_v59, 4 }
0x2006   :  { %v4265_v28 = vsel %vm952_vm8, %v4263_v56, %v4264_v31 }
0x2007   :  { %8865 = vtanh.f32 %v4265_v28 }
0x2011   :  { %v8866_v62 = vpop.eup %8865 }
0x2012   :  { %v4269_v7 = vmul.f32 %v8866_v62, %v8864_v60 }
0x2014   :  { %4271 = vrot.lane.b32.xlu1 %v4269_v7, %s9464_s26 }
0x2018   :  { %4279 = vrot.lane.b32.xlu1 %v8864_v60, %s9465_s13 }
0x2086   :  { %v4272_v55 = vpop.permute.xlu1 %4271 }
0x2087   :  { %v4273_v22 = vrot.slane %v4272_v55, 6 }
0x2089   :  { %v4274_v20 = vsel %vm775_vm9, %v4273_v22, %v4272_v55 }
0x208a   :  { %v4276_v33 = vadd.f32 %v4274_v20, %v4268_v26  ;;  %v4280_v38 = vpop.permute.xlu1 %4279 }
0x208b   :  { %v4281_v5 = vrot.slane %v4280_v38, 2 }
0x208c   :  { %8867 = vtanh.f32 %v4276_v33 }
0x2096   :  { %v8868_v8 = vpop.eup %8867 }
0x2097   :  { %4284 = vrot.lane.b32.xlu0 %v8868_v8, %s9466_s4 }
0x2109   :  { %v4285_v44 = vpop.permute.xlu0 %4284 }
0x210a   :  { %v4286_v13 = vrot.slane %v4285_v44, 2 }
0x210c   :  { %v4287_v12 = vsel %vm975_vm10, %v4285_v44, %v4286_v13 }
0x210d   :  { %v10553_v47 = vmul.f32 %v4287_v12, %v4281_v5 }
0x210f   :  { %7117 = vmatmul.mubr.msk.f32.vlgmr.msra.gmra.mrb[34].mxu1 %vm775_vm9, %v10553_v47  ;;  %7761 = vmatmul.mubr.msk.f32.vlgmr.msra.gmra.mrb[36].mxu0 %vm775_vm9, %v10553_v47 }
0x2110   :  { %8426 = vmatpush1.bf16.msra.mxu1 %v10272_v50  ;;  %8445 = vmatpush3.bf16.msra.mxu0 %v10307_v30 }
0x2111   :  { %8428 = vmatprep.subr.bf16.mxu1 %v10275_v1  ;;  %8446 = vmatprep.subr.bf16.mxu0 %v11054_v36 }
0x2112   :  { %4560 = vmatprep.mubr.f32.mxu1 %v11055_v37  ;;  %7783 = vmatprep.mubr.msk.f32.mxu0 %vm9454_vm0, %v11055_v37 }
0x2114   :  { %8430 = vmatpush1.bf16.msra.mxu1 %v10284_v24  ;;  %8448 = vmatpush3.bf16.msra.mxu0 %v10312_v40 }
0x2115   :  { %8432 = vmatprep.subr.bf16.mxu1 %v10287_v23  ;;  %8449 = vmatprep.subr.bf16.mxu0 %v11054_v36 }
0x2118   :  { %8434 = vmatpush1.bf16.msra.mxu1 %v10290_v3  ;;  %8451 = vmatpush3.bf16.msra.mxu0 %v10320_v49 }
0x2119   :  { %8436 = vmatprep.subr.bf16.mxu1 %v10293_v6  ;;  %8452 = vmatprep.subr.bf16.mxu0 %v11054_v36 }
0x211c   :  { %8438 = vmatpush1.bf16.msra.mxu1 %v10296_v29  ;;  %8454 = vmatpush3.bf16.msra.mxu0 %v10327_v10 }
0x211d   :  { %8440 = vmatprep.subr.bf16.mxu1 %v10299_v2  ;;  %8455 = vmatprep.subr.bf16.mxu0 %v11054_v36 }
0x2120   :  { %8442 = vmatpush1.bf16.msra.mxu1 %v10302_v21  ;;  %8457 = vmatpush3.bf16.msra.mxu0 %v10333_v11 }
0x2121   :  { %8459 = vmatprep.subr.bf16.mxu1 %v10264_v46  ;;  %8478 = vmatprep.subr.bf16.mxu0 %v11054_v36 }
0x21e2   :  { %v4360_v25 = vpop.f32.mrb[34].mxu1  ;;  %v4431_v34 = vpop.f32.mrb[36].mxu0 }
0x21e3   :  { %v4362_v61 = vpop.f32.mrb[35].mxu1  ;;  %v7762_v54 = vpop.f32.mrb[37].mxu0  ;;  %v4452_v9 = vrot.slane %v4431_v34, %v9845_v15 }
0x21e4   :  { %v4438_v18 = vcombine.low %v4360_v25, %v4362_v61 }
0x21e6   :  { %v4445_v35 = vrot.slane %v4438_v18, %v9845_v15 }
0x21e8   :  { %v4453_v32 = vcombine.low %v4445_v35, %v4452_v9 }
0x21ea   :  { %v4455_v51 = vadd.f32 %v4453_v32, %v4290_v45 }
0x21ec   :  { %4463 = vrot.lane.b32.xlu0 %v4455_v51, %s9438_s19  ;;  %v7119_v53 = vmul.f32 -1.442695, %v4455_v51 }
0x21ee   :  { %8869 = vpow2.f32 %v7119_v53 }
0x21f8   :  { %v8870_v19 = vpop.eup %8869 }
0x21f9   :  { %v4459_v46 = vadd.f32 1.0, %v8870_v19 }
0x21fb   :  { %8871 = vrcp.f32 %v4459_v46 }
0x2205   :  { %v8872_v39 = vpop.eup %8871 }
0x2206   :  { %v4470_v56 = vmul.f32 %v8872_v39, %v4276_v33 }
0x225e   :  { %v4464_v4 = vpop.permute.xlu0 %4463 }
0x225f   :  { %v4465_v63 = vrot.slane %v4464_v4, 2  ;;  %v4466_v0 = vrot.slane %v4464_v4, 4 }
0x2261   :  { %v4467_v57 = vsel %vm952_vm8, %v4465_v63, %v4466_v0 }
0x2262   :  { %8873 = vtanh.f32 %v4467_v57 }
0x226c   :  { %v8874_v43 = vpop.eup %8873 }
0x226d   :  { %v4471_v48 = vmul.f32 %v8874_v43, %v8872_v39 }
0x226f   :  { %4473 = vrot.lane.b32.xlu1 %v4471_v48, %s9464_s26 }
0x2273   :  { %4481 = vrot.lane.b32.xlu1 %v8872_v39, %s9465_s13  ;;  %v4900_v39 = vsel %vm2393_vm11, %v10553_v47, %v10515_v41 }
0x22e1   :  { %v4474_v52 = vpop.permute.xlu1 %4473 }
0x22e2   :  { %v4475_v59 = vrot.slane %v4474_v52, 6 }
0x22e4   :  { %v4476_v31 = vsel %vm775_vm9, %v4475_v59, %v4474_v52 }
0x22e5   :  { %v4478_v28 = vadd.f32 %v4476_v31, %v4470_v56  ;;  %v4482_v62 = vpop.permute.xlu1 %4481 }
0x22e6   :  { %v4483_v22 = vrot.slane %v4482_v62, 2 }
0x22e7   :  { %8875 = vtanh.f32 %v4478_v28 }
0x22f1   :  { %v8876_v60 = vpop.eup %8875 }
0x22f2   :  { %4486 = vrot.lane.b32.xlu0 %v8876_v60, %s9466_s4 }
0x2364   :  { %v4487_v7 = vpop.permute.xlu0 %4486 }
0x2365   :  { %v4488_v55 = vrot.slane %v4487_v7, 2 }
0x2367   :  { %v4489_v26 = vsel %vm975_vm10, %v4487_v7, %v4488_v55 }
0x2368   :  { %v10591_v20 = vmul.f32 %v4489_v26, %v4483_v22 }
0x236a   :  { %7120 = vmatmul.mubr.msk.f32.vlgmr.msra.gmra.mrb[36].mxu1 %vm775_vm9, %v10591_v20  ;;  %7784 = vmatmul.mubr.msk.f32.vlgmr.msra.gmra.mrb[38].mxu0 %vm775_vm9, %v10591_v20  ;;  %v4901_v45 = vsel %vm2393_vm11, %v10591_v20, %v10477_v16  ;;  %v6485_v51 = vcombine.low %v10591_v20, %v10591_v20 }
0x236b   :  { %8461 = vmatpush1.bf16.msra.mxu1 %v10272_v50  ;;  %8480 = vmatpush3.bf16.msra.mxu0 %v10307_v30  ;;  %v4914_v4 = vrot.slane %v4901_v45, 6  ;;  %v4934_v45 = vld [vmem:[%s11059_s8 + $0x30] sm:$0xff] }
0x236c   :  { %8463 = vmatprep.subr.bf16.mxu1 %v10275_v1  ;;  %8481 = vmatprep.subr.bf16.mxu0 %v11054_v36  ;;  %v6492_v63 = vrot.slane %v6485_v51, %v9845_v15 }
0x236d   :  { %4762 = vmatprep.mubr.f32.mxu1 %v11055_v37  ;;  %7806 = vmatprep.mubr.msk.f32.mxu0 %vm9454_vm0, %v11055_v37  ;;  %v4925_v48 = vsel %vm408_vm1, %v4900_v39, %v4914_v4  ;;  %v5034_v4 = vld [vmem:[#allocation25 + $0x38] sm:$0xff] }
0x236e   :  { %v6517_v56 = vsel %vm408_vm1, %v10553_v47, %v6492_v63  ;;  %v5031_v63 = vld [vmem:[#allocation25 + $0x20] sm:$0xff] }
0x236f   :  { %8465 = vmatpush1.bf16.msra.mxu1 %v10284_v24  ;;  %8483 = vmatpush3.bf16.msra.mxu0 %v10312_v40  ;;  %v4492_v40 = vld [vmem:[#allocation2 + $0x24] sm:$0x3f] }
0x2370   :  { %8467 = vmatprep.subr.bf16.mxu1 %v10287_v23  ;;  %8484 = vmatprep.subr.bf16.mxu0 %v11054_v36 }
0x2373   :  { %8469 = vmatpush1.bf16.msra.mxu1 %v10290_v3  ;;  %8486 = vmatpush3.bf16.msra.mxu0 %v10320_v49 }
0x2374   :  { %8471 = vmatprep.subr.bf16.mxu1 %v10293_v6  ;;  %8487 = vmatprep.subr.bf16.mxu0 %v11054_v36 }
0x2377   :  { %8473 = vmatpush1.bf16.msra.mxu1 %v10296_v29  ;;  %8489 = vmatpush3.bf16.msra.mxu0 %v10327_v10 }
0x2378   :  { %8475 = vmatprep.subr.bf16.mxu1 %v10299_v2  ;;  %8490 = vmatprep.subr.bf16.mxu0 %v11054_v36 }
0x237b   :  { %8477 = vmatpush1.bf16.msra.mxu1 %v10302_v21  ;;  %8492 = vmatpush3.bf16.msra.mxu0 %v10333_v11 }
0x243d   :  { %v4562_v50 = vpop.f32.mrb[36].mxu1  ;;  %v4633_v1 = vpop.f32.mrb[38].mxu0 }
0x243e   :  { %v4564_v24 = vpop.f32.mrb[37].mxu1  ;;  %v7785_v23 = vpop.f32.mrb[39].mxu0  ;;  %v4654_v6 = vrot.slane %v4633_v1, %v9845_v15  ;;  %v4694_v1 = vld [vmem:[#allocation2 + $0x2a] sm:$0x3f] }
0x243f   :  { %v4640_v3 = vcombine.low %v4562_v50, %v4564_v24 }
0x2441   :  { %v4647_v30 = vrot.slane %v4640_v3, %v9845_v15 }
0x2443   :  { %v4655_v29 = vcombine.low %v4647_v30, %v4654_v6 }
0x2445   :  { %v4657_v49 = vadd.f32 %v4655_v29, %v4492_v40 }
0x2447   :  { %4665 = vrot.lane.b32.xlu0 %v4657_v49, %s9438_s19  ;;  %v7122_v2 = vmul.f32 -1.442695, %v4657_v49 }
0x2449   :  { %8877 = vpow2.f32 %v7122_v2 }
0x2453   :  { %v8878_v10 = vpop.eup %8877 }
0x2454   :  { %v4661_v21 = vadd.f32 1.0, %v8878_v10 }
0x2456   :  { %8879 = vrcp.f32 %v4661_v21 }
0x2460   :  { %v8880_v44 = vpop.eup %8879 }
0x2461   :  { %v4672_v34 = vmul.f32 %v8880_v44, %v4478_v28 }
0x24b9   :  { %v4666_v33 = vpop.permute.xlu0 %4665 }
0x24ba   :  { %v4667_v11 = vrot.slane %v4666_v33, 2  ;;  %v4668_v8 = vrot.slane %v4666_v33, 4  ;;  %v4929_v33 = vld [vmem:[%s11059_s8 + $0x8] sm:$0xff] }
0x24bc   :  { %v4669_v38 = vsel %vm952_vm8, %v4667_v11, %v4668_v8  ;;  %v4931_v11 = vld [vmem:[%s11059_s8 + $0x18] sm:$0xff]  ;;  %v4928_v8 = vld [vmem:[%s11059_s8] sm:$0xff] }
0x24bd   :  { %8881 = vtanh.f32 %v4669_v38  ;;  %v8493_v38 = vpack.c.bf16 %v4931_v11, %v4929_v33  ;;  %v5039_v11 = vld [vmem:[#allocation25 + $0x60] sm:$0xff] }
0x24bf   :  { %8494 = vmatprep.subr.bf16.mxu1 %v8493_v38  ;;  %v5264_v38 = vld [vmem:[#allocation26 + $0x8] sm:$0xff] }
0x24c7   :  { %v8882_v13 = vpop.eup %8881 }
0x24c8   :  { %v4673_v5 = vmul.f32 %v8882_v13, %v8880_v44  ;;  %v5028_v13 = vld [vmem:[#allocation25 + $0x8] sm:$0xff] }
0x24ca   :  { %4675 = vrot.lane.b32.xlu1 %v4673_v5, %s9464_s26  ;;  %v5030_v5 = vld [vmem:[#allocation25 + $0x18] sm:$0xff] }
0x24ce   :  { %4683 = vrot.lane.b32.xlu1 %v8880_v44, %s9465_s13  ;;  %v4930_v44 = vld [vmem:[%s11059_s8 + $0x10] sm:$0xff] }
0x253c   :  { %v4676_v12 = vpop.permute.xlu1 %4675 }
0x253d   :  { %v4677_v25 = vrot.slane %v4676_v12, 6 }
0x253f   :  { %v4678_v61 = vsel %vm775_vm9, %v4677_v25, %v4676_v12  ;;  %v8495_v12 = vpack.c.bf16 %v4930_v44, %v4928_v8  ;;  %v8509_v25 = vpack.c.bf16 %v5030_v5, %v5028_v13  ;;  %v5041_v8 = vld [vmem:[#allocation25 + $0x70] sm:$0xff]  ;;  %v5266_v13 = vld [vmem:[#allocation26 + $0x18] sm:$0xff] }
0x2540   :  { %v10625_v54 = vadd.f32 %v4678_v61, %v4672_v34  ;;  %v4684_v9 = vpop.permute.xlu1 %4683  ;;  %v5027_v34 = vld [vmem:[#allocation25] sm:$0xff]  ;;  %v5029_v61 = vld [vmem:[#allocation25 + $0x10] sm:$0xff]  ;;  %v8523_v44 = vpack.c.bf16 %v5041_v8, %v5039_v11  ;;  %v10688_v5 = vpack.c.bf16 %v5266_v13, %v5264_v38 }
0x2541   :  { %v4685_v53 = vrot.slane %v4684_v9, 2  ;;  %v8511_v9 = vpack.c.bf16 %v5029_v61, %v5027_v34  ;;  %8510 = vmatprep.subr.bf16.mxu0 %v8509_v25 }
0x2542   :  { %8883 = vtanh.f32 %v10625_v54 }
0x254c   :  { %v8884_v18 = vpop.eup %8883 }
0x254d   :  { %4688 = vrot.lane.b32.xlu0 %v8884_v18, %s9466_s4  ;;  %v4933_v18 = vld [vmem:[%s11059_s8 + $0x28] sm:$0xff] }
0x25bf   :  { %v4689_v35 = vpop.permute.xlu0 %4688 }
0x25c0   :  { %v4690_v32 = vrot.slane %v4689_v35, 2 }
0x25c2   :  { %v4691_v19 = vsel %vm975_vm10, %v4689_v35, %v4690_v32  ;;  %v4935_v35 = vld [vmem:[%s11059_s8 + $0x38] sm:$0xff]  ;;  %v4932_v32 = vld [vmem:[%s11059_s8 + $0x20] sm:$0xff] }
0x25c3   :  { %v10636_v46 = vmul.f32 %v4691_v19, %v4685_v53  ;;  %v8497_v51 = vpack.c.bf16 %v4935_v35, %v4933_v18  ;;  %v8499_v53 = vpack.c.bf16 %v4934_v45, %v4932_v32  ;;  %v5032_v19 = vld [vmem:[#allocation25 + $0x28] sm:$0xff]  ;;  %v4898_v32 = vsel %vm2393_vm11, %v10477_v16, %v10591_v20 }
0x25c5   :  { %7123 = vmatmul.mubr.msk.f32.vlgmr.msra.gmra.mrb[38].mxu1 %vm775_vm9, %v10636_v46  ;;  %7807 = vmatmul.mubr.msk.f32.vlgmr.msra.gmra.mrb[40].mxu0 %vm775_vm9, %v10636_v46  ;;  %v4902_v0 = vsel %vm2393_vm11, %v10636_v46, %v10439_v58  ;;  %v6500_v57 = vrot.slane %v10636_v46, %v9845_v15 }
0x25c6   :  { %5014 = vmatprep.mubr.f32.mxu1 %v11055_v37  ;;  %5107 = vmatprep.mubr.f32.mxu0 %v11055_v37  ;;  %v4917_v43 = vrot.slane %v4902_v0, 4  ;;  %v8513_v0 = vpack.c.bf16 %v5034_v4, %v5032_v19  ;;  %v5265_v19 = vld [vmem:[#allocation26 + $0x10] sm:$0xff] }
0x25c7   :  { %v6501_v52 = vcombine.low %v6500_v57, %v6500_v57  ;;  %8496 = vmatpush1.bf16.msra.mxu1 %v8495_v12  ;;  %8512 = vmatpush1.bf16.msra.mxu0 %v8511_v9  ;;  %v5033_v57 = vld [vmem:[#allocation25 + $0x30] sm:$0xff]  ;;  %v4897_v9 = vsel %vm2393_vm11, %v10439_v58, %v10636_v46 }
0x25c8   :  { %v10657_v59 = vsel %vm410_vm2, %v4925_v48, %v4917_v43  ;;  %8498 = vmatprep.subr.bf16.mxu1 %v8497_v51  ;;  %v8515_v39 = vpack.c.bf16 %v5033_v57, %v5031_v63  ;;  %8514 = vmatprep.subr.bf16.mxu0 %v8513_v0  ;;  %v4899_v51 = vsel %vm2393_vm11, %v10515_v41, %v10553_v47  ;;  %v4905_v4 = vrot.slane %v4897_v9, 6  ;;  %v5268_v63 = vld [vmem:[#allocation26 + $0x28] sm:$0xff]  ;;  %v5270_v0 = vld [vmem:[#allocation26 + $0x38] sm:$0xff] }
0x25c9   :  { %v10662_v31 = vsel %vm410_vm2, %v6517_v56, %v6501_v52 }
0x25cb   :  { %8500 = vmatpush1.bf16.msra.mxu1 %v8499_v53  ;;  %8516 = vmatpush1.bf16.msra.mxu0 %v8515_v39  ;;  %v5263_v53 = vld [vmem:[#allocation26] sm:$0xff]  ;;  %v4908_v39 = vrot.slane %v4898_v32, 4 }
0x2698   :  { %v4764_v28 = vpop.f32.mrb[38].mxu1  ;;  %v4835_v60 = vpop.f32.mrb[40].mxu0 }
0x2699   :  { %v4766_v62 = vpop.f32.mrb[39].mxu1  ;;  %v7808_v7 = vpop.f32.mrb[41].mxu0  ;;  %v4856_v22 = vrot.slane %v4835_v60, %v9845_v15  ;;  %v4937_v60 = vld [vmem:[%s11059_s8 + $0x48] sm:$0xff] }
0x269a   :  { %v4842_v55 = vcombine.low %v4764_v28, %v4766_v62  ;;  %v4939_v62 = vld [vmem:[%s11059_s8 + $0x58] sm:$0xff] }
0x269b   :  { %v8501_v7 = vpack.c.bf16 %v4939_v62, %v4937_v60  ;;  %v5269_v60 = vld [vmem:[#allocation26 + $0x30] sm:$0xff] }
0x269c   :  { %v4849_v26 = vrot.slane %v4842_v55, %v9845_v15  ;;  %v4936_v55 = vld [vmem:[%s11059_s8 + $0x40] sm:$0xff] }
0x269d   :  { %8502 = vmatprep.subr.bf16.mxu1 %v8501_v7 }
0x269e   :  { %v4857_v50 = vcombine.low %v4849_v26, %v4856_v22  ;;  %v4938_v22 = vld [vmem:[%s11059_s8 + $0x50] sm:$0xff]  ;;  %v5036_v26 = vld [vmem:[#allocation25 + $0x48] sm:$0xff] }
0x26a0   :  { %v4859_v24 = vadd.f32 %v4857_v50, %v4694_v1  ;;  %v8503_v50 = vpack.c.bf16 %v4938_v22, %v4936_v55  ;;  %v5038_v1 = vld [vmem:[#allocation25 + $0x58] sm:$0xff]  ;;  %v5272_v22 = vld [vmem:[#allocation26 + $0x48] sm:$0xff] }
0x26a2   :  { %4867 = vrot.lane.b32.xlu0 %v4859_v24, %s9438_s19  ;;  %v7125_v23 = vmul.f32 -1.442695, %v4859_v24  ;;  %v5035_v24 = vld [vmem:[#allocation25 + $0x40] sm:$0xff]  ;;  %8504 = vmatpush1.bf16.msra.mxu1 %v8503_v50  ;;  %s11060_s19 = sld [smem:[#allocation53_spill]] }
0x26a4   :  { %8885 = vpow2.f32 %v7125_v23  ;;  %v5037_v23 = vld [vmem:[#allocation25 + $0x50] sm:$0xff] }
0x26ae   :  { %v8886_v3 = vpop.eup %8885 }
0x26af   :  { %v4863_v6 = vadd.f32 1.0, %v8886_v3  ;;  %v8519_v3 = vpack.c.bf16 %v5037_v23, %v5035_v24  ;;  %v5271_v23 = vld [vmem:[#allocation26 + $0x40] sm:$0xff] }
0x26b1   :  { %8887 = vrcp.f32 %v4863_v6  ;;  %v4941_v6 = vld [vmem:[%s11059_s8 + $0x68] sm:$0xff] }
0x26bb   :  { %v8888_v2 = vpop.eup %8887 }
0x26bc   :  { %v4874_v52 = vmul.f32 %v8888_v2, %v10625_v54  ;;  %v8517_v54 = vpack.c.bf16 %v5038_v1, %v5036_v26  ;;  %v5274_v26 = vld [vmem:[#allocation26 + $0x58] sm:$0xff] }
0x26bd   :  { %v10728_v24 = vpack.c.bf16 %v5274_v26, %v5272_v22 }
0x26be   :  { %8518 = vmatprep.subr.bf16.mxu0 %v8517_v54  ;;  %v5273_v54 = vld [vmem:[#allocation26 + $0x50] sm:$0xff] }
0x26bf   :  { %8520 = vmatpush1.bf16.msra.mxu0 %v8519_v3 }
0x2714   :  { %v4868_v30 = vpop.permute.xlu0 %4867 }
0x2715   :  { %v4869_v29 = vrot.slane %v4868_v30, 2  ;;  %v4870_v40 = vrot.slane %v4868_v30, 4  ;;  %v4943_v30 = vld [vmem:[%s11059_s8 + $0x78] sm:$0xff] }
0x2717   :  { %v4871_v49 = vsel %vm952_vm8, %v4869_v29, %v4870_v40  ;;  %v4940_v29 = vld [vmem:[%s11059_s8 + $0x60] sm:$0xff]  ;;  %v8505_v40 = vpack.c.bf16 %v4943_v30, %v4941_v6 }
0x2718   :  { %8889 = vtanh.f32 %v4871_v49  ;;  %v4942_v49 = vld [vmem:[%s11059_s8 + $0x70] sm:$0xff]  ;;  %v5276_v30 = vld [vmem:[#allocation26 + $0x68] sm:$0xff] }
0x2719   :  { %8506 = vmatprep.subr.bf16.mxu1 %v8505_v40  ;;  %v10740_v40 = vpack.c.bf16 %v5273_v54, %v5271_v23 }
0x2722   :  { %v8890_v10 = vpop.eup %8889 }
0x2723   :  { %v4875_v21 = vmul.f32 %v8890_v10, %v8888_v2  ;;  %v5042_v10 = vld [vmem:[#allocation25 + $0x78] sm:$0xff] }
0x2725   :  { %4877 = vrot.lane.b32.xlu1 %v4875_v21, %s9464_s26  ;;  %v8507_v21 = vpack.c.bf16 %v4942_v49, %v4940_v29  ;;  %v5278_v29 = vld [vmem:[#allocation26 + $0x78] sm:$0xff]  ;;  %v5275_v49 = vld [vmem:[#allocation26 + $0x60] sm:$0xff] }
0x2727   :  { %8508 = vmatpush1.bf16.msra.mxu1 %v8507_v21 }
0x2728   :  { %8526 = vmatprep.subr.bf16.mxu1 %v10688_v5 }
0x2729   :  { %4885 = vrot.lane.b32.xlu1 %v8888_v2, %s9465_s13  ;;  %v5040_v2 = vld [vmem:[#allocation25 + $0x68] sm:$0xff] }
0x272a   :  { %v8521_v33 = vpack.c.bf16 %v5042_v10, %v5040_v2  ;;  %v5120_v10 = vld [vmem:[#allocation28] sm:$0x3] }
0x272b   :  { %v5129_v8 = vrot.slane %v5120_v10, %v11058_v17 }
0x272c   :  { %8522 = vmatprep.subr.bf16.mxu0 %v8521_v33  ;;  %v5125_v33 = vrot.slane %v5120_v10, %v9851_v27 }
0x272d   :  { %8524 = vmatpush1.bf16.msra.mxu0 %v8523_v44 }
0x272e   :  { %8542 = vmatprep.subr.bf16.mxu0 %v10688_v5 }
0x2797   :  { %v4878_v43 = vpop.permute.xlu1 %4877 }
0x2798   :  { %v4879_v48 = vrot.slane %v4878_v43, 6 }
0x279a   :  { %v4880_v56 = vsel %vm775_vm9, %v4879_v48, %v4878_v43  ;;  %v4911_v48 = vrot.slane %v4899_v51, 2 }
0x279b   :  { %v4882_v28 = vadd.f32 %v4880_v56, %v4874_v52  ;;  %v4886_v25 = vpop.permute.xlu1 %4885  ;;  %v10713_v52 = vpack.c.bf16 %v5265_v19, %v5263_v53  ;;  %v10716_v56 = vpack.c.bf16 %v5270_v0, %v5268_v63 }
0x279c   :  { %v4887_v18 = vrot.slane %v4886_v25, 2 }
0x279d   :  { %8891 = vtanh.f32 %v4882_v28  ;;  %v5267_v28 = vld [vmem:[#allocation26 + $0x20] sm:$0xff] }
0x279e   :  { %v10724_v1 = vpack.c.bf16 %v5269_v60, %v5267_v28 }
0x27a7   :  { %v8892_v12 = vpop.eup %8891 }
0x27a8   :  { %4890 = vrot.lane.b32.xlu0 %v8892_v12, %s9466_s4 }
0x281a   :  { %v4891_v34 = vpop.permute.xlu0 %4890 }
0x281b   :  { %v4892_v61 = vrot.slane %v4891_v34, 2 }
0x281d   :  { %v4893_v35 = vsel %vm975_vm10, %v4891_v34, %v4892_v61 }
0x281e   :  { %v4895_v45 = vmul.f32 %v4893_v35, %v4887_v18 }
0x2820   :  { %v4896_v46 = vsel %vm2393_vm11, %v10401_v42, %v4895_v45  ;;  %v4903_v57 = vsel %vm2393_vm11, %v4895_v45, %v10401_v42  ;;  %v6504_v20 = vcombine.low %v4895_v45, %v4895_v45 }
0x2821   :  { %v4922_v43 = vsel %vm408_vm1, %v4896_v46, %v4905_v4  ;;  %v4920_v7 = vrot.slane %v4903_v57, 2 }
0x2822   :  { %v4923_v47 = vsel %vm410_vm2, %v4922_v43, %v4908_v39  ;;  %v6511_v62 = vrot.slane %v6504_v20, %v9845_v15 }
0x2823   :  { %v4924_v55 = vsel %vm412_vm3, %v4923_v47, %v4911_v48  ;;  %v4927_v6 = vsel %vm412_vm3, %v10657_v59, %v4920_v7  ;;  %v5277_v59 = vld [vmem:[#allocation26 + $0x70] sm:$0xff] }
0x2824   :  { %7126 = vmatmul.mubr.msk.f32.vlgmr.msra.gmra.mrb[40].mxu1 %vm2513_vm12, %v4924_v55  ;;  %7128 = vmatmul.mubr.msk.f32.vlgmr.msra.gmra.mrb[42].mxu0 %vm2513_vm12, %v4924_v55  ;;  %v6512_v50 = vcombine.low %v6511_v62, %v6511_v62  ;;  %v10751_v2 = vpack.c.bf16 %v5277_v59, %v5275_v49 }
0x2825   :  { %8528 = vmatpush1.bf16.msra.mxu1 %v10713_v52  ;;  %5020 = vmatprep.mubr.f32.mxu1 %v11055_v37 }
0x2826   :  { %5113 = vmatprep.mubr.f32.mxu0 %v11055_v37  ;;  %8530 = vmatprep.subr.bf16.mxu1 %v10716_v56  ;;  %v10732_v3 = vsel %vm412_vm3, %v10662_v31, %v6512_v50  ;;  %v10744_v31 = vpack.c.bf16 %v5278_v29, %v5276_v30 }
0x2827   :  { %8544 = vmatpush1.bf16.msra.mxu0 %v10713_v52 }
0x2828   :  { %7127 = vmatmul.mubr.msk.f32.gmra.mrb[42].mxu1 %vm2513_vm12, %v4927_v6  ;;  %7129 = vmatmul.mubr.msk.f32.gmra.mrb[44].mxu0 %vm2513_vm12, %v4927_v6 }
0x2829   :  { %8532 = vmatpush1.bf16.msra.mxu1 %v10724_v1  ;;  %5346 = vmatprep.mubr.f32.mxu1 %v11055_v37 }
0x282a   :  { %8534 = vmatprep.subr.bf16.mxu1 %v10728_v24  ;;  %8546 = vmatprep.subr.bf16.mxu0 %v10716_v56 }
0x282b   :  { %8548 = vmatpush1.bf16.msra.mxu0 %v10724_v1  ;;  %5461 = vmatprep.mubr.f32.mxu0 %v11055_v37 }
0x282c   :  { %8550 = vmatprep.subr.bf16.mxu0 %v10728_v24 }
0x282d   :  { %8536 = vmatpush1.bf16.msra.mxu1 %v10740_v40 }
0x282e   :  { %8538 = vmatprep.subr.bf16.mxu1 %v10744_v31 }
0x282f   :  { %8552 = vmatpush1.bf16.msra.mxu0 %v10740_v40 }
0x2830   :  { %8554 = vmatprep.subr.bf16.mxu0 %v10744_v31 }
0x2831   :  { %8540 = vmatpush1.bf16.msra.mxu1 %v10751_v2 }
0x2832   :  { %8558 = vmatprep.subr.bf16.mxu1 %v10688_v5 }
0x2833   :  { %8556 = vmatpush1.bf16.msra.mxu0 %v10751_v2 }
0x2834   :  { %5347 = vmatmul.mubr.f32.vlgmr.msra.gmra.mrb[44].mxu1 %v11055_v37  ;;  %8574 = vmatprep.subr.bf16.mxu0 %v10688_v5 }
0x2835   :  { %8560 = vmatpush1.bf16.msra.mxu1 %v10713_v52  ;;  %5576 = vmatprep.mubr.f32.mxu1 %v11055_v37 }
0x2836   :  { %8562 = vmatprep.subr.bf16.mxu1 %v10716_v56 }
0x2839   :  { %8564 = vmatpush1.bf16.msra.mxu1 %v10724_v1 }
0x283a   :  { %8566 = vmatprep.subr.bf16.mxu1 %v10728_v24 }
0x283d   :  { %8568 = vmatpush1.bf16.msra.mxu1 %v10740_v40 }
0x283e   :  { %8570 = vmatprep.subr.bf16.mxu1 %v10744_v31 }
0x2841   :  { %8572 = vmatpush1.bf16.msra.mxu1 %v10751_v2 }
0x2842   :  { %8590 = vmatprep.subr.bf16.mxu1 %v10688_v5 }
0x28f7   :  { %v5016_v21 = vpop.f32.mrb[40].mxu1  ;;  %v5109_v11 = vpop.f32.mrb[42].mxu0 }
0x28f8   :  { %v5018_v38 = vpop.f32.mrb[41].mxu1  ;;  %v5111_v44 = vpop.f32.mrb[43].mxu0  ;;  %v5132_v13 = vadd.f32 %v5125_v33, %v5016_v21  ;;  %v5201_v12 = vrot.slane %v5109_v11, 6  ;;  %v5220_v25 = vrot.slane %v5109_v11, 2 }
0x28f9   :  { %v5133_v34 = vadd.f32 %v5129_v8, %v5018_v38  ;;  %v5202_v9 = vrot.slane %v5111_v44, 6  ;;  %v5221_v19 = vrot.slane %v5111_v44, 2 }
0x28fb   :  { %v5022_v61 = vpop.f32.mrb[42].mxu1  ;;  %v5115_v18 = vpop.f32.mrb[44].mxu0 }
0x28fc   :  { %v5197_v35 = vadd.f32 %v5125_v33, %v5022_v61  ;;  %v5136_v32 = vrot.slane %v5115_v18, 6  ;;  %v5154_v45 = vrot.slane %v5115_v18, 2  ;;  %v5024_v51 = vpop.f32.mrb[43].mxu1  ;;  %v5117_v53 = vpop.f32.mrb[45].mxu0 }
0x28fd   :  { %v5198_v4 = vadd.f32 %v5129_v8, %v5024_v51  ;;  %v5137_v63 = vrot.slane %v5117_v53, 6  ;;  %v5155_v0 = vrot.slane %v5117_v53, 2 }
0x28fe   :  { %v5205_v46 = vadd.f32 %v5201_v12, %v5197_v35  ;;  %v5224_v57 = vadd.f32 %v5220_v25, %v5197_v35  ;;  %v5140_v20 = vadd.f32 %v5136_v32, %v5132_v13  ;;  %v5158_v39 = vadd.f32 %v5154_v45, %v5132_v13 }
0x28ff   :  { %v5206_v43 = vadd.f32 %v5202_v9, %v5198_v4  ;;  %v5225_v48 = vadd.f32 %v5221_v19, %v5198_v4  ;;  %v5141_v47 = vadd.f32 %v5137_v63, %v5133_v34  ;;  %v5159_v28 = vadd.f32 %v5155_v0, %v5133_v34 }
0x2901   :  { %v5209_v60 = vcombine.low %v5205_v46, %v5206_v43  ;;  %v5228_v62 = vcombine.low %v5224_v57, %v5225_v48  ;;  %v5240_v7 = vcombine.high %v5205_v46, %v5206_v43  ;;  %v5251_v55 = vcombine.high %v5224_v57, %v5225_v48 }
0x2902   :  { %v5144_v22 = vcombine.low %v5140_v20, %v5141_v47  ;;  %v5162_v26 = vcombine.low %v5158_v39, %v5159_v28  ;;  %v5174_v50 = vcombine.high %v5140_v20, %v5141_v47  ;;  %v5185_v23 = vcombine.high %v5158_v39, %v5159_v28 }
0x2903   :  { %7132 = vst.sshfl [vmem:[#allocation3 + $0x10] sm:$0x33 pattern:$0x76325410] %v5209_v60  ;;  %v5235_v54 = vrot.slane %v5228_v62, %v9845_v15  ;;  %v5258_v6 = vrot.slane %v5251_v55, %v9845_v15 }
0x2904   :  { %7133 = vst.sshfl [vmem:[#allocation3 + $0x18] sm:$0x33 pattern:$0x76325410] %v5240_v7  ;;  %v5169_v30 = vrot.slane %v5162_v26, %v9845_v15  ;;  %v5192_v29 = vrot.slane %v5185_v23, %v9845_v15 }
0x2905   :  { %7130 = vst.sshfl [vmem:[#allocation3] sm:$0x33 pattern:$0x76325410] %v5144_v22  ;;  %v5236_v49 = vcombine.high %v5235_v54, %v5235_v54  ;;  %v5259_v59 = vcombine.high %v5258_v6, %v5258_v6 }
0x2906   :  { %7131 = vst.sshfl [vmem:[#allocation3 + $0x8] sm:$0x33 pattern:$0x76325410] %v5174_v50  ;;  %v5170_v10 = vcombine.high %v5169_v30, %v5169_v30  ;;  %v5193_v21 = vcombine.high %v5192_v29, %v5192_v29 }
0x2907   :  { %5239 = vst [vmem:[#allocation3 + $0x14] sm:$0xf] %v5236_v49  ;;  %5262 = vst [vmem:[#allocation3 + $0x1c] sm:$0xf] %v5259_v59  ;;  %v5348_v33 = vpop.f32.mrb[44].mxu1 }
0x2908   :  { %5173 = vst [vmem:[#allocation3 + $0x4] sm:$0xf] %v5170_v10  ;;  %5196 = vst [vmem:[#allocation3 + $0xc] sm:$0xf] %v5193_v21  ;;  %v5350_v11 = vpop.f32.mrb[45].mxu1 }
0x2909   :  { %v5355_v8 = vcombine.low %v5348_v33, %v5350_v11 }
0x290b   :  { %v5362_v38 = vrot.slane %v5355_v8, %v9845_v15 }
0x290c   :  { %v5279_v44 = vld [vmem:[#allocation3] sm:$0xf] }
0x290d   :  { %v5364_v13 = vadd.f32 %v5362_v38, %v5279_v44  ;;  %v5508_v11 = vld [vmem:[#allocation3 + $0x8] sm:$0xf] }
0x290f   :  { %5372 = vrot.lane.b32.xlu0 %v5364_v13, %s9467_s12  ;;  %v7134_v12 = vmul.f32 -1.442695, %v5364_v13  ;;  %v5393_v43 = vld [vmem:[#allocation3 + $0x4] sm:$0xf] }
0x2911   :  { %8893 = vpow2.f32 %v7134_v12 }
0x291b   :  { %v8894_v25 = vpop.eup %8893 }
0x291c   :  { %v5368_v34 = vadd.f32 1.0, %v8894_v25 }
0x291e   :  { %8895 = vrcp.f32 %v5368_v34 }
0x2928   :  { %v8896_v9 = vpop.eup %8895 }
0x2929   :  { %v5377_v45 = vmul.f32 0.0, %v8896_v9  ;;  %v5386_v4 = vrot.slane %v8896_v9, 2 }
0x2981   :  { %v5373_v61 = vpop.permute.xlu0 %5372 }
0x2982   :  { %v5374_v18 = vrot.slane %v5373_v61, 2 }
0x2984   :  { %8897 = vtanh.f32 %v5374_v18 }
0x298e   :  { %v8898_v35 = vpop.eup %8897 }
0x298f   :  { %v5378_v32 = vmul.f32 %v8898_v35, %v8896_v9 }
0x2991   :  { %5380 = vrot.lane.b32.xlu1 %v5378_v32, %s9467_s12 }
0x2a03   :  { %v5381_v51 = vpop.permute.xlu1 %5380 }
0x2a04   :  { %v5383_v53 = vadd.f32 %v5381_v51, %v5377_v45 }
0x2a06   :  { %8899 = vtanh.f32 %v5383_v53 }
0x2a10   :  { %v8900_v19 = vpop.eup %8899 }
0x2a11   :  { %5389 = vrot.lane.b32.xlu0 %v8900_v19, %s9467_s12 }
0x2a83   :  { %v5390_v63 = vpop.permute.xlu0 %5389 }
0x2a84   :  { %v10780_v0 = vmul.f32 %v5390_v63, %v5386_v4 }
0x2a86   :  { %7135 = vmatmul.mubr.msk.f32.vlgmr.msra.gmra.mrb[46].mxu0 %vm2513_vm12, %v10780_v0 }
0x2a87   :  { %8576 = vmatpush1.bf16.msra.mxu0 %v10713_v52  ;;  %5691 = vmatprep.mubr.f32.mxu0 %v11055_v37 }
0x2a88   :  { %8578 = vmatprep.subr.bf16.mxu0 %v10716_v56 }
0x2a8b   :  { %8580 = vmatpush1.bf16.msra.mxu0 %v10724_v1 }
0x2a8c   :  { %8582 = vmatprep.subr.bf16.mxu0 %v10728_v24 }
0x2a8f   :  { %8584 = vmatpush1.bf16.msra.mxu0 %v10740_v40 }
0x2a90   :  { %8586 = vmatprep.subr.bf16.mxu0 %v10744_v31 }
0x2a93   :  { %8588 = vmatpush1.bf16.msra.mxu0 %v10751_v2 }
0x2a94   :  { %8606 = vmatprep.subr.bf16.mxu0 %v10688_v5 }
0x2b59   :  { %v5463_v46 = vpop.f32.mrb[46].mxu0 }
0x2b5a   :  { %v5465_v57 = vpop.f32.mrb[47].mxu0 }
0x2b5b   :  { %v5470_v20 = vcombine.low %v5463_v46, %v5465_v57 }
0x2b5d   :  { %v5477_v39 = vrot.slane %v5470_v20, %v9845_v15  ;;  %v5623_v20 = vld [vmem:[#allocation3 + $0xc] sm:$0xf] }
0x2b5f   :  { %v5479_v48 = vadd.f32 %v5477_v39, %v5393_v43 }
0x2b61   :  { %5487 = vrot.lane.b32.xlu1 %v5479_v48, %s9467_s12  ;;  %v7136_v47 = vmul.f32 -1.442695, %v5479_v48 }
0x2b63   :  { %8901 = vpow2.f32 %v7136_v47 }
0x2b6d   :  { %v8902_v28 = vpop.eup %8901 }
0x2b6e   :  { %v5483_v60 = vadd.f32 1.0, %v8902_v28 }
0x2b70   :  { %8903 = vrcp.f32 %v5483_v60 }
0x2b7a   :  { %v8904_v55 = vpop.eup %8903 }
0x2b7b   :  { %v5492_v50 = vmul.f32 %v8904_v55, %v5383_v53  ;;  %v5501_v30 = vrot.slane %v8904_v55, 2 }
0x2bd3   :  { %v5488_v62 = vpop.permute.xlu1 %5487 }
0x2bd4   :  { %v5489_v7 = vrot.slane %v5488_v62, 2 }
0x2bd6   :  { %8905 = vtanh.f32 %v5489_v7 }
0x2be0   :  { %v8906_v22 = vpop.eup %8905 }
0x2be1   :  { %v5493_v26 = vmul.f32 %v8906_v22, %v8904_v55 }
0x2be3   :  { %5495 = vrot.lane.b32.xlu0 %v5493_v26, %s9467_s12 }
0x2c55   :  { %v5496_v23 = vpop.permute.xlu0 %5495 }
0x2c56   :  { %v5498_v54 = vadd.f32 %v5496_v23, %v5492_v50 }
0x2c58   :  { %8907 = vtanh.f32 %v5498_v54 }
0x2c62   :  { %v8908_v6 = vpop.eup %8907 }
0x2c63   :  { %5504 = vrot.lane.b32.xlu1 %v8908_v6, %s9467_s12 }
0x2cd5   :  { %v5505_v29 = vpop.permute.xlu1 %5504 }
0x2cd6   :  { %v10797_v49 = vmul.f32 %v5505_v29, %v5501_v30 }
0x2cd8   :  { %7137 = vmatmul.mubr.msk.f32.vlgmr.msra.gmra.mrb[46].mxu1 %vm2513_vm12, %v10797_v49 }
0x2cd9   :  { %8592 = vmatpush1.bf16.msra.mxu1 %v10713_v52  ;;  %5806 = vmatprep.mubr.f32.mxu1 %v11055_v37 }
0x2cda   :  { %8594 = vmatprep.subr.bf16.mxu1 %v10716_v56 }
0x2cdd   :  { %8596 = vmatpush1.bf16.msra.mxu1 %v10724_v1 }
0x2cde   :  { %8598 = vmatprep.subr.bf16.mxu1 %v10728_v24 }
0x2ce1   :  { %8600 = vmatpush1.bf16.msra.mxu1 %v10740_v40 }
0x2ce2   :  { %8602 = vmatprep.subr.bf16.mxu1 %v10744_v31 }
0x2ce5   :  { %8604 = vmatpush1.bf16.msra.mxu1 %v10751_v2 }
0x2ce6   :  { %8622 = vmatprep.subr.bf16.mxu1 %v10688_v5 }
0x2dab   :  { %v5578_v59 = vpop.f32.mrb[46].mxu1 }
0x2dac   :  { %v5580_v10 = vpop.f32.mrb[47].mxu1 }
0x2dad   :  { %v5585_v21 = vcombine.low %v5578_v59, %v5580_v10 }
0x2daf   :  { %v5592_v33 = vrot.slane %v5585_v21, %v9845_v15  ;;  %v5738_v21 = vld [vmem:[#allocation3 + $0x10] sm:$0xf] }
0x2db1   :  { %v5594_v8 = vadd.f32 %v5592_v33, %v5508_v11 }
0x2db3   :  { %5602 = vrot.lane.b32.xlu0 %v5594_v8, %s9467_s12  ;;  %v7138_v38 = vmul.f32 -1.442695, %v5594_v8 }
0x2db5   :  { %8909 = vpow2.f32 %v7138_v38 }
0x2dbf   :  { %v8910_v44 = vpop.eup %8909 }
0x2dc0   :  { %v5598_v13 = vadd.f32 1.0, %v8910_v44 }
0x2dc2   :  { %8911 = vrcp.f32 %v5598_v13 }
0x2dcc   :  { %v8912_v34 = vpop.eup %8911 }
0x2dcd   :  { %v5607_v9 = vmul.f32 %v8912_v34, %v5498_v54  ;;  %v5616_v51 = vrot.slane %v8912_v34, 2 }
0x2e25   :  { %v5603_v12 = vpop.permute.xlu0 %5602 }
0x2e26   :  { %v5604_v25 = vrot.slane %v5603_v12, 2 }
0x2e28   :  { %8913 = vtanh.f32 %v5604_v25 }
0x2e32   :  { %v8914_v61 = vpop.eup %8913 }
0x2e33   :  { %v5608_v18 = vmul.f32 %v8914_v61, %v8912_v34 }
0x2e35   :  { %5610 = vrot.lane.b32.xlu1 %v5608_v18, %s9467_s12 }
0x2ea7   :  { %v5611_v35 = vpop.permute.xlu1 %5610 }
0x2ea8   :  { %v5613_v32 = vadd.f32 %v5611_v35, %v5607_v9 }
0x2eaa   :  { %8915 = vtanh.f32 %v5613_v32 }
0x2eb4   :  { %v8916_v45 = vpop.eup %8915 }
0x2eb5   :  { %5619 = vrot.lane.b32.xlu0 %v8916_v45, %s9467_s12 }
0x2f27   :  { %v5620_v53 = vpop.permute.xlu0 %5619 }
0x2f28   :  { %v10814_v19 = vmul.f32 %v5620_v53, %v5616_v51 }
0x2f2a   :  { %7139 = vmatmul.mubr.msk.f32.vlgmr.msra.gmra.mrb[48].mxu0 %vm2513_vm12, %v10814_v19 }
0x2f2b   :  { %8608 = vmatpush1.bf16.msra.mxu0 %v10713_v52  ;;  %5921 = vmatprep.mubr.f32.mxu0 %v11055_v37 }
0x2f2c   :  { %8610 = vmatprep.subr.bf16.mxu0 %v10716_v56 }
0x2f2f   :  { %8612 = vmatpush1.bf16.msra.mxu0 %v10724_v1 }
0x2f30   :  { %8614 = vmatprep.subr.bf16.mxu0 %v10728_v24 }
0x2f33   :  { %8616 = vmatpush1.bf16.msra.mxu0 %v10740_v40 }
0x2f34   :  { %8618 = vmatprep.subr.bf16.mxu0 %v10744_v31 }
0x2f37   :  { %8620 = vmatpush1.bf16.msra.mxu0 %v10751_v2 }
0x2f38   :  { %8638 = vmatprep.subr.bf16.mxu0 %v10688_v5 }
0x2ffd   :  { %v5693_v4 = vpop.f32.mrb[48].mxu0 }
0x2ffe   :  { %v5695_v63 = vpop.f32.mrb[49].mxu0 }
0x2fff   :  { %v5700_v46 = vcombine.low %v5693_v4, %v5695_v63 }
0x3001   :  { %v5707_v57 = vrot.slane %v5700_v46, %v9845_v15 }
0x3003   :  { %v5709_v39 = vadd.f32 %v5707_v57, %v5623_v20 }
0x3005   :  { %5717 = vrot.lane.b32.xlu1 %v5709_v39, %s9467_s12  ;;  %v7140_v43 = vmul.f32 -1.442695, %v5709_v39 }
0x3007   :  { %8917 = vpow2.f32 %v7140_v43 }
0x3011   :  { %v8918_v48 = vpop.eup %8917 }
0x3012   :  { %v5713_v47 = vadd.f32 1.0, %v8918_v48 }
0x3014   :  { %8919 = vrcp.f32 %v5713_v47 }
0x301e   :  { %v8920_v62 = vpop.eup %8919 }
0x301f   :  { %v5722_v55 = vmul.f32 %v8920_v62, %v5613_v32  ;;  %v5731_v23 = vrot.slane %v8920_v62, 2 }
0x3077   :  { %v5718_v28 = vpop.permute.xlu1 %5717 }
0x3078   :  { %v5719_v60 = vrot.slane %v5718_v28, 2 }
0x307a   :  { %8921 = vtanh.f32 %v5719_v60 }
0x3084   :  { %v8922_v7 = vpop.eup %8921 }
0x3085   :  { %v5723_v5 = vmul.f32 %v8922_v7, %v8920_v62 }
0x3087   :  { %5725 = vrot.lane.b32.xlu0 %v5723_v5, %s9467_s12 }
0x30f9   :  { %v5726_v22 = vpop.permute.xlu0 %5725 }
0x30fa   :  { %v5728_v26 = vadd.f32 %v5726_v22, %v5722_v55 }
0x30fc   :  { %8923 = vtanh.f32 %v5728_v26 }
0x3106   :  { %v8924_v50 = vpop.eup %8923 }
0x3107   :  { %5734 = vrot.lane.b32.xlu1 %v8924_v50, %s9467_s12 }
0x3179   :  { %v5735_v54 = vpop.permute.xlu1 %5734 }
0x317a   :  { %v10831_v6 = vmul.f32 %v5735_v54, %v5731_v23 }
0x317c   :  { %7141 = vmatmul.mubr.msk.f32.vlgmr.msra.gmra.mrb[48].mxu1 %vm2513_vm12, %v10831_v6 }
0x317d   :  { %8624 = vmatpush1.bf16.msra.mxu1 %v10713_v52  ;;  %6036 = vmatprep.mubr.f32.mxu1 %v11055_v37 }
0x317e   :  { %8626 = vmatprep.subr.bf16.mxu1 %v10716_v56 }
0x3181   :  { %8628 = vmatpush1.bf16.msra.mxu1 %v10724_v1 }
0x3182   :  { %8630 = vmatprep.subr.bf16.mxu1 %v10728_v24 }
0x3185   :  { %8632 = vmatpush1.bf16.msra.mxu1 %v10740_v40 }
0x3186   :  { %8634 = vmatprep.subr.bf16.mxu1 %v10744_v31 }
0x3189   :  { %8636 = vmatpush1.bf16.msra.mxu1 %v10751_v2 }
0x324f   :  { %v5808_v30 = vpop.f32.mrb[48].mxu1 }
0x3250   :  { %v5810_v29 = vpop.f32.mrb[49].mxu1 }
0x3251   :  { %v5815_v59 = vcombine.low %v5808_v30, %v5810_v29  ;;  %v5968_v29 = vld [vmem:[#allocation3 + $0x18] sm:$0xf] }
0x3253   :  { %v5822_v10 = vrot.slane %v5815_v59, %v9845_v15 }
0x3255   :  { %v5824_v33 = vadd.f32 %v5822_v10, %v5738_v21 }
0x3257   :  { %5832 = vrot.lane.b32.xlu0 %v5824_v33, %s9467_s12  ;;  %v7142_v11 = vmul.f32 -1.442695, %v5824_v33 }
0x3259   :  { %8925 = vpow2.f32 %v7142_v11 }
0x3263   :  { %v8926_v8 = vpop.eup %8925 }
0x3264   :  { %v5828_v38 = vadd.f32 1.0, %v8926_v8 }
0x3266   :  { %8927 = vrcp.f32 %v5828_v38 }
0x3270   :  { %v8928_v12 = vpop.eup %8927 }
0x3271   :  { %v5837_v61 = vmul.f32 %v8928_v12, %v5728_v26  ;;  %v5846_v32 = vrot.slane %v8928_v12, 2 }
0x32c9   :  { %v5833_v44 = vpop.permute.xlu0 %5832 }
0x32ca   :  { %v5834_v13 = vrot.slane %v5833_v44, 2 }
0x32cc   :  { %8929 = vtanh.f32 %v5834_v13 }
0x32d6   :  { %v8930_v25 = vpop.eup %8929 }
0x32d7   :  { %v5838_v34 = vmul.f32 %v8930_v25, %v8928_v12 }
0x32d9   :  { %5840 = vrot.lane.b32.xlu1 %v5838_v34, %s9467_s12 }
0x334b   :  { %v5841_v18 = vpop.permute.xlu1 %5840 }
0x334c   :  { %v5843_v9 = vadd.f32 %v5841_v18, %v5837_v61 }
0x334e   :  { %8931 = vtanh.f32 %v5843_v9 }
0x3358   :  { %v8932_v35 = vpop.eup %8931 }
0x3359   :  { %5849 = vrot.lane.b32.xlu0 %v8932_v35, %s9467_s12 }
0x33cb   :  { %v5850_v45 = vpop.permute.xlu0 %5849 }
0x33cc   :  { %v10847_v51 = vmul.f32 %v5850_v45, %v5846_v32 }
0x33ce   :  { %7143 = vmatmul.mubr.msk.f32.vlgmr.msra.gmra.mrb[50].mxu0 %vm2513_vm12, %v10847_v51  ;;  %v6202_v22 = vsel %vm2393_vm11, %v10847_v51, %v10831_v6 }
0x33cf   :  { %8640 = vmatpush1.bf16.msra.mxu0 %v10713_v52  ;;  %6151 = vmatprep.mubr.f32.mxu0 %v11055_v37  ;;  %v5853_v52 = vld [vmem:[#allocation3 + $0x14] sm:$0xf] }
0x33d0   :  { %8642 = vmatprep.subr.bf16.mxu0 %v10716_v56 }
0x33d3   :  { %8644 = vmatpush1.bf16.msra.mxu0 %v10724_v1 }
0x33d4   :  { %8646 = vmatprep.subr.bf16.mxu0 %v10728_v24 }
0x33d7   :  { %8648 = vmatpush1.bf16.msra.mxu0 %v10740_v40 }
0x33d8   :  { %8650 = vmatprep.subr.bf16.mxu0 %v10744_v31 }
0x33db   :  { %8652 = vmatpush1.bf16.msra.mxu0 %v10751_v2 }
0x34a1   :  { %v5923_v53 = vpop.f32.mrb[50].mxu0 }
0x34a2   :  { %v5925_v4 = vpop.f32.mrb[51].mxu0 }
0x34a3   :  { %v5930_v63 = vcombine.low %v5923_v53, %v5925_v4  ;;  %v6475_v4 = vcombine.low %v10515_v41, %v10515_v41 }
0x34a5   :  { %v5937_v46 = vrot.slane %v5930_v63, %v9845_v15 }
0x34a7   :  { %v5939_v57 = vadd.f32 %v5937_v46, %v5853_v52  ;;  %v6457_v52 = vcombine.low %v10439_v58, %v10439_v58 }
0x34a9   :  { %5947 = vrot.lane.b32.xlu1 %v5939_v57, %s9467_s12  ;;  %v7144_v56 = vmul.f32 -1.442695, %v5939_v57 }
0x34ab   :  { %8933 = vpow2.f32 %v7144_v56  ;;  %v6472_v56 = vrot.slane %v10477_v16, %v9845_v15 }
0x34b5   :  { %v8934_v1 = vpop.eup %8933 }
0x34b6   :  { %v5943_v20 = vadd.f32 1.0, %v8934_v1  ;;  %v6482_v1 = vrot.slane %v6475_v4, %v9845_v15 }
0x34b8   :  { %8935 = vrcp.f32 %v5943_v20 }
0x34c2   :  { %v8936_v40 = vpop.eup %8935 }
0x34c3   :  { %v5952_v43 = vmul.f32 %v8936_v40, %v5843_v9  ;;  %v5961_v60 = vrot.slane %v8936_v40, 2 }
0x351b   :  { %v5948_v24 = vpop.permute.xlu1 %5947 }
0x351c   :  { %v5949_v39 = vrot.slane %v5948_v24, 2  ;;  %v6083_v24 = vld [vmem:[#allocation3 + $0x1c] sm:$0xf] }
0x351e   :  { %8937 = vtanh.f32 %v5949_v39  ;;  %v6464_v39 = vrot.slane %v6457_v52, %v9845_v15 }
0x3520   :  { %v6514_v58 = vsel %vm408_vm1, %v10401_v42, %v6464_v39  ;;  %v6520_v42 = vld [vmem:[%s11060_s19] sm:$0xff] }
0x3521   :  { %v7157_v39 = vld [vmem:[#allocation35] ss:$0 sm:$0xff] }
0x3528   :  { %v8938_v31 = vpop.eup %8937 }
0x3529   :  { %v5953_v2 = vmul.f32 %v8938_v31, %v8936_v40  ;;  %v6473_v31 = vcombine.low %v6472_v56, %v6472_v56 }
0x352b   :  { %5955 = vrot.lane.b32.xlu0 %v5953_v2, %s9467_s12  ;;  %v6483_v2 = vcombine.low %v6482_v1, %v6482_v1  ;;  %v6515_v41 = vsel %vm410_vm2, %v6514_v58, %v6473_v31 }
0x352d   :  { %v10908_v16 = vsel %vm412_vm3, %v6515_v41, %v6483_v2 }
0x359d   :  { %v5956_v48 = vpop.permute.xlu0 %5955 }
0x359e   :  { %v5958_v47 = vadd.f32 %v5956_v48, %v5952_v43 }
0x35a0   :  { %8939 = vtanh.f32 %v5958_v47 }
0x35aa   :  { %v8940_v28 = vpop.eup %8939 }
0x35ab   :  { %5964 = vrot.lane.b32.xlu1 %v8940_v28, %s9467_s12 }
0x361d   :  { %v5965_v62 = vpop.permute.xlu1 %5964 }
0x361e   :  { %v10863_v7 = vmul.f32 %v5965_v62, %v5961_v60  ;;  %v6521_v62 = vld [vmem:[%s11060_s19 + $0x8] sm:$0xff] }
0x3620   :  { %v6203_v5 = vsel %vm2393_vm11, %v10863_v7, %v10814_v19  ;;  %7145 = vmatmul.mubr.msk.f32.vlgmr.msra.gmra.mrb[50].mxu1 %vm2513_vm12, %v10863_v7 }
0x3621   :  { %v6216_v55 = vrot.slane %v6203_v5, 6  ;;  %v8669_v5 = vpack.c.bf16 %v6521_v62, %v6520_v42 }
0x3623   :  { %v6227_v26 = vsel %vm408_vm1, %v6202_v22, %v6216_v55  ;;  %8670 = vmatprep.subr.bf16.mxu0 %v8669_v5 }
0x36f3   :  { %v6038_v50 = vpop.f32.mrb[50].mxu1 }
0x36f4   :  { %v6040_v23 = vpop.f32.mrb[51].mxu1 }
0x36f5   :  { %v6045_v54 = vcombine.low %v6038_v50, %v6040_v23  ;;  %v6230_v50 = vld [vmem:[#allocation29] sm:$0xff]  ;;  %v6231_v23 = vld [vmem:[#allocation29 + $0x8] sm:$0xff] }
0x36f7   :  { %v6052_v30 = vrot.slane %v6045_v54, %v9845_v15  ;;  %v6232_v54 = vld [vmem:[#allocation29 + $0x10] sm:$0xff] }
0x36f9   :  { %v6054_v59 = vadd.f32 %v6052_v30, %v5968_v29  ;;  %v8653_v30 = vpack.c.bf16 %v6231_v23, %v6230_v50  ;;  %v6233_v29 = vld [vmem:[#allocation29 + $0x18] sm:$0xff] }
0x36fb   :  { %6062 = vrot.lane.b32.xlu0 %v6054_v59, %s9467_s12  ;;  %v7146_v10 = vmul.f32 -1.442695, %v6054_v59  ;;  %v8657_v59 = vpack.c.bf16 %v6233_v29, %v6232_v54  ;;  %8654 = vmatprep.subr.bf16.mxu1 %v8653_v30 }
0x36fc   :  { %8656 = vmatpush3.bf16.msra.mxu1 %v8653_v30 }
0x36fd   :  { %8941 = vpow2.f32 %v7146_v10  ;;  %v6234_v10 = vld [vmem:[#allocation29 + $0x20] sm:$0xff]  ;;  %8658 = vmatprep.subr.bf16.mxu1 %v8657_v59 }
0x3700   :  { %8660 = vmatpush3.bf16.msra.mxu1 %v8657_v59 }
0x3707   :  { %v8942_v21 = vpop.eup %8941 }
0x3708   :  { %v6058_v33 = vadd.f32 1.0, %v8942_v21  ;;  %v6235_v21 = vld [vmem:[#allocation29 + $0x28] sm:$0xff] }
0x370a   :  { %8943 = vrcp.f32 %v6058_v33  ;;  %v8661_v33 = vpack.c.bf16 %v6235_v21, %v6234_v10 }
0x370c   :  { %8662 = vmatprep.subr.bf16.mxu1 %v8661_v33 }
0x370d   :  { %8664 = vmatpush3.bf16.msra.mxu1 %v8661_v33 }
0x3714   :  { %v8944_v38 = vpop.eup %8943 }
0x3715   :  { %v6067_v12 = vmul.f32 %v8944_v38, %v5958_v47  ;;  %v6076_v18 = vrot.slane %v8944_v38, 2 }
0x376d   :  { %v6063_v11 = vpop.permute.xlu0 %6062 }
0x376e   :  { %v6064_v8 = vrot.slane %v6063_v11, 2 }
0x3770   :  { %8945 = vtanh.f32 %v6064_v8 }
0x377a   :  { %v8946_v44 = vpop.eup %8945 }
0x377b   :  { %v6068_v13 = vmul.f32 %v8946_v44, %v8944_v38 }
0x377d   :  { %6070 = vrot.lane.b32.xlu1 %v6068_v13, %s9467_s12  ;;  %v6236_v13 = vld [vmem:[#allocation29 + $0x30] sm:$0xff] }
0x37ef   :  { %v6071_v25 = vpop.permute.xlu1 %6070 }
0x37f0   :  { %v10879_v34 = vadd.f32 %v6071_v25, %v6067_v12  ;;  %v6237_v12 = vld [vmem:[#allocation29 + $0x38] sm:$0xff] }
0x37f1   :  { %v8665_v25 = vpack.c.bf16 %v6237_v12, %v6236_v13 }
0x37f2   :  { %8947 = vtanh.f32 %v10879_v34 }
0x37f3   :  { %8666 = vmatprep.subr.bf16.mxu1 %v8665_v25 }
0x37f4   :  { %8668 = vmatpush3.bf16.msra.mxu1 %v8665_v25 }
0x37f5   :  { %8685 = vmatprep.subr.bf16.mxu1 %v11054_v36 }
0x37fc   :  { %v8948_v61 = vpop.eup %8947 }
0x37fd   :  { %6079 = vrot.lane.b32.xlu0 %v8948_v61, %s9467_s12 }
0x386f   :  { %v6080_v9 = vpop.permute.xlu0 %6079 }
0x3870   :  { %v10883_v35 = vmul.f32 %v6080_v9, %v6076_v18  ;;  %v6200_v9 = vsel %vm2393_vm11, %v10814_v19, %v10863_v7 }
0x3872   :  { %v6204_v32 = vsel %vm2393_vm11, %v10883_v35, %v10797_v49  ;;  %7147 = vmatmul.mubr.msk.f32.vlgmr.msra.gmra.mrb[52].mxu0 %vm2513_vm12, %v10883_v35 }
0x3873   :  { %v6219_v45 = vrot.slane %v6204_v32, 4  ;;  %8672 = vmatpush3.bf16.msra.mxu0 %v8669_v5 }
0x3874   :  { %8673 = vmatprep.subr.bf16.mxu0 %v11054_v36 }
0x3875   :  { %v10892_v53 = vsel %vm410_vm2, %v6227_v26, %v6219_v45  ;;  %v6201_v45 = vsel %vm2393_vm11, %v10831_v6, %v10847_v51 }
0x3945   :  { %v6153_v63 = vpop.f32.mrb[52].mxu0 }
0x3946   :  { %v6155_v46 = vpop.f32.mrb[53].mxu0 }
0x3947   :  { %v6160_v57 = vcombine.low %v6153_v63, %v6155_v46  ;;  %v6210_v46 = vrot.slane %v6200_v9, 4 }
0x3949   :  { %v6167_v20 = vrot.slane %v6160_v57, %v9845_v15 }
0x394b   :  { %v6169_v40 = vadd.f32 %v6167_v20, %v6083_v24 }
0x394d   :  { %6177 = vrot.lane.b32.xlu1 %v6169_v40, %s9467_s12  ;;  %v7148_v43 = vmul.f32 -1.442695, %v6169_v40 }
0x394f   :  { %8949 = vpow2.f32 %v7148_v43  ;;  %v7149_v43 = vld [vmem:[#allocation31] ss:$0 sm:$0xff] }
0x3951   :  { %6531 = vrot.lane.b32.xlu1 %v10908_v16, %s9467_s12 }
0x3959   :  { %v8950_v15 = vpop.eup %8949 }
0x395a   :  { %v6173_v48 = vadd.f32 1.0, %v8950_v15 }
0x395c   :  { %8951 = vrcp.f32 %v6173_v48 }
0x3966   :  { %v8952_v55 = vpop.eup %8951 }
0x3967   :  { %v6182_v11 = vmul.f32 %v8952_v55, %v10879_v34  ;;  %v6199_v34 = vsel %vm2393_vm11, %v10797_v49, %v10883_v35  ;;  %v6191_v18 = vrot.slane %v8952_v55, 2  ;;  %v6213_v35 = vrot.slane %v6201_v45, 2 }
0x3968   :  { %v6207_v63 = vrot.slane %v6199_v34, 6 }
0x39bf   :  { %v6178_v47 = vpop.permute.xlu1 %6177 }
0x39c0   :  { %v6179_v28 = vrot.slane %v6178_v47, 2 }
0x39c2   :  { %8953 = vtanh.f32 %v6179_v28  ;;  %v7152_v28 = vld [vmem:[#allocation32] ss:$0 sm:$0xff] }
0x39c3   :  { %v6532_v60 = vpop.permute.xlu1 %6531 }
0x39c4   :  { %7832 = vmatprep.mubr.msk.f32.mxu0 %vm952_vm8, %v6532_v60 }
0x39cc   :  { %v8954_v22 = vpop.eup %8953 }
0x39cd   :  { %v6183_v26 = vmul.f32 %v8954_v22, %v8952_v55 }
0x39cf   :  { %6185 = vrot.lane.b32.xlu0 %v6183_v26, %s9467_s12  ;;  %v7158_v26 = vld [vmem:[#allocation5] ss:$0 sm:$0xff] }
0x39d3   :  { %6533 = vrot.lane.b32.xlu0 %v10732_v3, %s9467_s12 }
0x3a41   :  { %v6186_v8 = vpop.permute.xlu0 %6185 }
0x3a42   :  { %v6188_v38 = vadd.f32 %v6186_v8, %v6182_v11 }
0x3a44   :  { %8955 = vtanh.f32 %v6188_v38 }
0x3a45   :  { %v6534_v44 = vpop.permute.xlu0 %6533 }
0x3a46   :  { %7833 = vmatmul.mubr.msk.f32.vlgmr.msra.gmra.mrb[54].mxu0 %vm952_vm8, %v6534_v44 }
0x3a47   :  { %7851 = vmatprep.mubr.msk.f32.mxu0 %vm9454_vm0, %v11055_v37 }
0x3a4e   :  { %v8956_v61 = vpop.eup %8955 }
0x3a4f   :  { %6194 = vrot.lane.b32.xlu1 %v8956_v61, %s9467_s12 }
0x3ac1   :  { %v6195_v32 = vpop.permute.xlu1 %6194 }
0x3ac2   :  { %v6197_v4 = vmul.f32 %v6195_v32, %v6191_v18 }
0x3ac4   :  { %v6198_v52 = vsel %vm2393_vm11, %v10780_v0, %v6197_v4  ;;  %v6205_v49 = vsel %vm2393_vm11, %v6197_v4, %v10780_v0  ;;  %v7154_v0 = vld [vmem:[#allocation34] ss:$0 sm:$0xff] }
0x3ac5   :  { %v6222_v57 = vrot.slane %v6205_v49, 2  ;;  %v6224_v19 = vsel %vm408_vm1, %v6198_v52, %v6207_v63 }
0x3ac6   :  { %v6225_v7 = vsel %vm410_vm2, %v6224_v19, %v6210_v46 }
0x3ac7   :  { %v10946_v56 = vsel %vm412_vm3, %v6225_v7, %v6213_v35  ;;  %v10950_v6 = vsel %vm412_vm3, %v10892_v53, %v6222_v57 }
0x3ac8   :  { %7825 = vmatprep.mubr.msk.f32.mxu1 %vm2513_vm12, %v10946_v56 }
0x3ac9   :  { %7826 = vmatmul.mubr.msk.f32.vlgmr.msra.gmra.mrb[52].mxu1 %vm2513_vm12, %v10950_v6 }
0x3aca   :  { %7858 = vmatprep.mubr.msk.f32.mxu1 %vm9454_vm0, %v11055_v37  ;;  %vm7011_vm0 = vcmp.eq.s32.totalorder %v10161_v14, 1 }
0x3b19   :  { %v7834_v51 = vpop.f32.mrb[54].mxu0 }
0x3b1a   :  { %v6611_v1 = vadd.f32 %v7834_v51, %v7154_v0  ;;  %v6605_v20 = vpop.f32.mrb[55].mxu0 }
0x3b1b   :  { %v6606_v24 = vadd.f32 %v7154_v0, %v6605_v20 }
0x3b1c   :  { %8957 = vtanh.f32 %v6611_v1 }
0x3b1d   :  { %8959 = vtanh.f32 %v6606_v24 }
0x3b26   :  { %v8958_v40 = vpop.eup %8957 }
0x3b27   :  { %v8960_v53 = vpop.eup %8959  ;;  %v6624_v31 = vmul.f32 %v8958_v40, %v7157_v39 }
0x3b28   :  { %v6623_v2 = vmul.f32 %v8960_v53, %v7157_v39 }
0x3b29   :  { %v6628_v58 = vsel %vm952_vm8, %v6624_v31, 0.0 }
0x3b2a   :  { %6629 = vadd.xlane.f32.xlu1 %v6628_v58  ;;  %v6625_v41 = vsel %vm952_vm8, %v6623_v2, 0.0 }
0x3b2b   :  { %6626 = vadd.xlane.f32.xlu0 %v6625_v41 }
0x3b9c   :  { %v7827_v37 = vpop.f32.mrb[52].mxu1 }
0x3b9d   :  { %v6323_v15 = vadd.f32 %v7827_v37, %v7149_v43  ;;  %v6317_v48 = vpop.f32.mrb[53].mxu1 }
0x3b9e   :  { %v6318_v47 = vadd.f32 %v7149_v43, %v6317_v48 }
0x3b9f   :  { %8961 = vtanh.f32 %v6323_v15 }
0x3ba0   :  { %8963 = vtanh.f32 %v6318_v47 }
0x3ba9   :  { %v8962_v60 = vpop.eup %8961 }
0x3baa   :  { %v8964_v42 = vpop.eup %8963  ;;  %v6336_v55 = vmul.f32 %v8962_v60, %v7152_v28 }
0x3bab   :  { %v6335_v62 = vmul.f32 %v8964_v42, %v7152_v28 }
0x3bac   :  { %v6340_v22 = vsel %vm2513_vm12, %v6336_v55, 0.0 }
0x3bad   :  { %v6337_v5 = vsel %vm2513_vm12, %v6335_v62, 0.0  ;;  %v6854_v62 = vld [vmem:[%s11061_s22] sm:$0xff] }
0x3bae   :  { %6338 = vadd.xlane.f32.xlu0 %v6337_v5  ;;  %v6855_v5 = vld [vmem:[%s11061_s22 + $0x8] sm:$0xff] }
0x3baf   :  { %v8686_v55 = vpack.c.bf16 %v6855_v5, %v6854_v62 }
0x3bb1   :  { %8687 = vmatpush3.bf16.msra.mxu1 %v8686_v55 }
0x3bb2   :  { %6341 = vadd.xlane.f32.xlu0 %v6340_v22  ;;  %v7153_v22 = vld [vmem:[#allocation4] ss:$0 sm:$0xff] }
0x3bb7   :  { %v6630_v30 = vpop.xlane.xlu1 %6629 }
0x3bb8   :  { %v6627_v50 = vpop.xlane.xlu0 %6626  ;;  %v6639_v10 = vadd.f32 %v7158_v26, %v6630_v30 }
0x3bb9   :  { %v6638_v23 = vadd.f32 %v7158_v26, %v6627_v50 }
0x3bba   :  { %v6652_v8 = vrot.slane %v6639_v10, 2  ;;  %v6655_v44 = vrot.slane %v6639_v10, 4  ;;  %v6658_v12 = vrot.slane %v6639_v10, 6 }
0x3bbb   :  { %v6641_v54 = vrot.slane %v6638_v23, 2  ;;  %v6644_v59 = vrot.slane %v6638_v23, 4  ;;  %v6647_v33 = vrot.slane %v6638_v23, 6 }
0x3bbd   :  { %v6643_v29 = vmax.f32 %v6638_v23, %v6641_v54 }
0x3bbf   :  { %v6646_v21 = vmax.f32 %v6643_v29, %v6644_v59 }
0x3bc1   :  { %v6649_v11 = vmax.f32 %v6646_v21, %v6647_v33 }
0x3bc3   :  { %v6650_v38 = vmax.f32 %v6649_v11, %v6639_v10 }
0x3bc5   :  { %v6654_v13 = vmax.f32 %v6650_v38, %v6652_v8 }
0x3bc7   :  { %v6657_v25 = vmax.f32 %v6654_v13, %v6655_v44 }
0x3bc9   :  { %v6660_v61 = vmax.f32 %v6657_v25, %v6658_v12 }
0x3bcb   :  { %v6662_v34 = vrot.slane %v6660_v61, 6  ;;  %v6664_v18 = vrot.slane %v6660_v61, 4  ;;  %v6666_v9 = vrot.slane %v6660_v61, 2 }
0x3bcd   :  { %v6668_v32 = vsel %vm408_vm1, %v6660_v61, %v6662_v34 }
0x3bce   :  { %v6669_v45 = vsel %vm410_vm2, %v6668_v32, %v6664_v18 }
0x3bcf   :  { %v6670_v4 = vsel %vm412_vm3, %v6669_v45, %v6666_v9 }
0x3bd0   :  { %v6671_v63 = vsub.f32 %v6638_v23, %v6670_v4  ;;  %v6672_v46 = vsub.f32 %v6639_v10, %v6670_v4 }
0x3bd2   :  { %v6673_v52 = vmul.f32 1.442695, %v6671_v63  ;;  %v6675_v49 = vmul.f32 1.442695, %v6672_v46 }
0x3bd4   :  { %8965 = vpow2.f32 %v6673_v52 }
0x3bd5   :  { %8967 = vpow2.f32 %v6675_v49 }
0x3bde   :  { %v8966_v35 = vpop.eup %8965 }
0x3bdf   :  { %v6678_v57 = vrot.slane %v8966_v35, 2  ;;  %v6681_v7 = vrot.slane %v8966_v35, 4  ;;  %v6684_v51 = vrot.slane %v8966_v35, 6  ;;  %v8968_v1 = vpop.eup %8967 }
0x3be0   :  { %v6689_v39 = vrot.slane %v8968_v1, 2  ;;  %v6692_v53 = vrot.slane %v8968_v1, 4  ;;  %v6695_v2 = vrot.slane %v8968_v1, 6 }
0x3be1   :  { %v6680_v19 = vadd.f32 %v8966_v35, %v6678_v57 }
0x3be3   :  { %v6683_v0 = vadd.f32 %v6681_v7, %v6680_v19 }
0x3be5   :  { %v6686_v20 = vadd.f32 %v6684_v51, %v6683_v0 }
0x3be7   :  { %v6687_v24 = vadd.f32 %v8968_v1, %v6686_v20 }
0x3be9   :  { %v6691_v40 = vadd.f32 %v6689_v39, %v6687_v24 }
0x3beb   :  { %v6694_v31 = vadd.f32 %v6692_v53, %v6691_v40 }
0x3bed   :  { %v6697_v58 = vadd.f32 %v6695_v2, %v6694_v31 }
0x3bef   :  { %8969 = vrcp.f32 %v6697_v58 }
0x3bf9   :  { %v8970_v41 = vpop.eup %8969 }
0x3bfa   :  { %v6701_v43 = vrot.slane %v8970_v41, 6  ;;  %v6703_v37 = vrot.slane %v8970_v41, 4  ;;  %v6705_v15 = vrot.slane %v8970_v41, 2 }
0x3bfc   :  { %v6707_v48 = vsel %vm408_vm1, %v8970_v41, %v6701_v43 }
0x3bfd   :  { %v6708_v47 = vsel %vm410_vm2, %v6707_v48, %v6703_v37 }
0x3bfe   :  { %v6709_v28 = vsel %vm412_vm3, %v6708_v47, %v6705_v15 }
0x3bff   :  { %v6711_v60 = vmul.f32 %v8968_v1, %v6709_v28  ;;  %v6710_v42 = vmul.f32 %v8966_v35, %v6709_v28 }
0x3c01   :  { %6719 = vperm.xlu0 %8764, %v6711_v60   ;;  %6714 = vperm.xlu1 %8763, %v6710_v42  }
0x3c3b   :  { %v6339_v26 = vpop.xlane.xlu0 %6338 }
0x3c3c   :  { %v6350_v50 = vadd.f32 %v7153_v22, %v6339_v26 }
0x3c3e   :  { %v6353_v23 = vrot.slane %v6350_v50, 2  ;;  %v6356_v29 = vrot.slane %v6350_v50, 4  ;;  %v6359_v10 = vrot.slane %v6350_v50, 6 }
0x3c3f   :  { %v6342_v54 = vpop.xlane.xlu0 %6341 }
0x3c40   :  { %v6355_v30 = vmax.f32 %v6350_v50, %v6353_v23  ;;  %v6351_v21 = vadd.f32 %v7153_v22, %v6342_v54 }
0x3c42   :  { %v6358_v59 = vmax.f32 %v6355_v30, %v6356_v29  ;;  %v6364_v8 = vrot.slane %v6351_v21, 2  ;;  %v6367_v44 = vrot.slane %v6351_v21, 4  ;;  %v6370_v12 = vrot.slane %v6351_v21, 6  ;;  %v6745_v29 = vld [vmem:[%s11062_s7] sm:$0xff] }
0x3c44   :  { %v6361_v33 = vmax.f32 %v6358_v59, %v6359_v10  ;;  %v6746_v59 = vld [vmem:[%s11062_s7 + $0x8] sm:$0xff] }
0x3c46   :  { %v6362_v11 = vmax.f32 %v6361_v33, %v6351_v21 }
0x3c48   :  { %v6366_v38 = vmax.f32 %v6362_v11, %v6364_v8  ;;  %v6747_v8 = vld [vmem:[%s11062_s7 + $0x10] sm:$0xff] }
0x3c4a   :  { %v6369_v13 = vmax.f32 %v6366_v38, %v6367_v44 }
0x3c4c   :  { %v6372_v25 = vmax.f32 %v6369_v13, %v6370_v12 }
0x3c4e   :  { %v6374_v61 = vrot.slane %v6372_v25, 6  ;;  %v6376_v34 = vrot.slane %v6372_v25, 4  ;;  %v6378_v18 = vrot.slane %v6372_v25, 2 }
0x3c50   :  { %v6380_v9 = vsel %vm408_vm1, %v6372_v25, %v6374_v61  ;;  %v6749_v25 = vld [vmem:[%s11062_s7 + $0x20] sm:$0xff]  ;;  %v6750_v61 = vld [vmem:[%s11062_s7 + $0x28] sm:$0xff] }
0x3c51   :  { %v6381_v32 = vsel %vm410_vm2, %v6380_v9, %v6376_v34  ;;  %v8680_v34 = vpack.c.bf16 %v6750_v61, %v6749_v25  ;;  %v6752_v9 = vld [vmem:[%s11062_s7 + $0x38] sm:$0xff] }
0x3c52   :  { %v6382_v45 = vsel %vm412_vm3, %v6381_v32, %v6378_v18  ;;  %v6751_v18 = vld [vmem:[%s11062_s7 + $0x30] sm:$0xff] }
0x3c53   :  { %v6383_v4 = vsub.f32 %v6350_v50, %v6382_v45  ;;  %v6384_v63 = vsub.f32 %v6351_v21, %v6382_v45  ;;  %v8674_v21 = vpack.c.bf16 %v6746_v59, %v6745_v29  ;;  %v8683_v32 = vpack.c.bf16 %v6752_v9, %v6751_v18 }
0x3c55   :  { %v6385_v46 = vmul.f32 1.442695, %v6383_v4  ;;  %v6387_v52 = vmul.f32 1.442695, %v6384_v63  ;;  %8675 = vmatpush3.bf16.msra.mxu0 %v8674_v21 }
0x3c56   :  { %8676 = vmatprep.subr.bf16.mxu0 %v11054_v36 }
0x3c57   :  { %8971 = vpow2.f32 %v6385_v46 }
0x3c58   :  { %8973 = vpow2.f32 %v6387_v52 }
0x3c61   :  { %v8972_v49 = vpop.eup %8971 }
0x3c62   :  { %v6390_v35 = vrot.slane %v8972_v49, 2  ;;  %v6393_v19 = vrot.slane %v8972_v49, 4  ;;  %v6396_v0 = vrot.slane %v8972_v49, 6  ;;  %v8974_v51 = vpop.eup %8973 }
0x3c63   :  { %v6401_v24 = vrot.slane %v8974_v51, 2  ;;  %v6404_v40 = vrot.slane %v8974_v51, 4  ;;  %v6407_v31 = vrot.slane %v8974_v51, 6 }
0x3c64   :  { %v6392_v57 = vadd.f32 %v8972_v49, %v6390_v35 }
0x3c66   :  { %v6395_v7 = vadd.f32 %v6393_v19, %v6392_v57 }
0x3c68   :  { %v6398_v1 = vadd.f32 %v6396_v0, %v6395_v7 }
0x3c6a   :  { %v6399_v20 = vadd.f32 %v8974_v51, %v6398_v1 }
0x3c6c   :  { %v6403_v39 = vadd.f32 %v6401_v24, %v6399_v20 }
0x3c6e   :  { %v6406_v53 = vadd.f32 %v6404_v40, %v6403_v39  ;;  %v7163_v40 = vld [vmem:[%s11063_s16] ss:$0 sm:$0xff] }
0x3c70   :  { %v6409_v2 = vadd.f32 %v6407_v31, %v6406_v53 }
0x3c72   :  { %8975 = vrcp.f32 %v6409_v2 }
0x3c7c   :  { %v8976_v58 = vpop.eup %8975 }
0x3c7d   :  { %v6413_v41 = vrot.slane %v8976_v58, 6  ;;  %v6415_v43 = vrot.slane %v8976_v58, 4  ;;  %v6417_v37 = vrot.slane %v8976_v58, 2 }
0x3c7f   :  { %v6419_v15 = vsel %vm408_vm1, %v8976_v58, %v6413_v41  ;;  %v7165_v58 = vld [vmem:[%s11064_s28] ss:$0 sm:$0xff]  ;;  %vm7010_vm1 = vcmp.eq.s32.totalorder %v10161_v14, 0 }
0x3c80   :  { %v6715_v48 = vpop.permute.xlu1 %6714  ;;  %v6420_v47 = vsel %vm410_vm2, %v6419_v15, %v6415_v43  ;;  %v6720_v5 = vpop.permute.xlu0 %6719  ;;  %vm7019_vm2 = vcmask 17408  }
0x3c81   :  { %v6722_v28 = vmul.f32 %v6715_v48, %v10908_v16  ;;  %v6421_v60 = vsel %vm412_vm3, %v6420_v47, %v6417_v37  ;;  %v6723_v50 = vmul.f32 %v6720_v5, %v10732_v3  ;;  %v6748_v3 = vld [vmem:[%s11062_s7 + $0x18] sm:$0xff]  ;;  %v7159_v37 = vld [vmem:[%s11065_s18] ss:$0 sm:$0xff]  ;;  %v7166_v5 = vld [vmem:[#allocation7] ss:$0 sm:$0xff] }
0x3c82   :  { %v6422_v42 = vmul.f32 %v8972_v49, %v6421_v60  ;;  %v6423_v26 = vmul.f32 %v8974_v51, %v6421_v60  ;;  %v8677_v13 = vpack.c.bf16 %v6748_v3, %v6747_v8  ;;  %v7168_v3 = vld [vmem:[%s11069_s17] ss:$0 sm:$0xff] }
0x3c83   :  { %v6725_v62 = vrot.slane %v6722_v28, 2  ;;  %v6728_v22 = vrot.slane %v6722_v28, 4  ;;  %v6731_v54 = vrot.slane %v6722_v28, 6  ;;  %v6736_v16 = vrot.slane %v6723_v50, 2 }
0x3c84   :  { %6426 = vperm.xlu1 %8763, %v6422_v42   ;;  %v6739_v33 = vrot.slane %v6723_v50, 4  ;;  %v6742_v38 = vrot.slane %v6723_v50, 6  ;;  %8678 = vmatpush3.bf16.msra.mxu0 %v8677_v13 }
0x3c85   :  { %v6727_v55 = vadd.f32 %v6725_v62, %v6722_v28  ;;  %8679 = vmatprep.subr.bf16.mxu0 %v11054_v36  ;;  %v7161_v28 = vld [vmem:[%s11066_s9] ss:$0 sm:$0xff] }
0x3c87   :  { %v6730_v23 = vadd.f32 %v6728_v22, %v6727_v55 }
0x3c88   :  { %6431 = vperm.xlu1 %8763, %v6423_v26   ;;  %8681 = vmatpush3.bf16.msra.mxu0 %v8680_v34  ;;  %v7162_v26 = vld [vmem:[#allocation6] ss:$0 sm:$0xff] }
0x3c89   :  { %v6733_v30 = vadd.f32 %v6731_v54, %v6730_v23  ;;  %8682 = vmatprep.subr.bf16.mxu0 %v11054_v36  ;;  %v6959_v54 = vld [vmem:[%s11067_s24] sm:$0x3] }
0x3c8a   :  { %v6968_v29 = vrot.slane %v6959_v54, %v9851_v27 }
0x3c8b   :  { %v6734_v10 = vadd.f32 %v6733_v30, %v6723_v50  ;;  %v6978_v30 = vrot.slane %v6959_v54, %v11058_v17 }
0x3c8c   :  { %8684 = vmatpush3.bf16.msra.mxu0 %v8683_v32 }
0x3c8d   :  { %v6738_v11 = vadd.f32 %v6736_v16, %v6734_v10 }
0x3c8f   :  { %v6741_v44 = vadd.f32 %v6739_v33, %v6738_v11  ;;  %v7167_v33 = vld [vmem:[%s11068_s27] ss:$0 sm:$0xff] }
0x3c91   :  { %v6744_v12 = vadd.f32 %v6742_v38, %v6741_v44 }
0x3c93   :  { %6864 = vrot.lane.b32.xlu0 %v6744_v12, %s9467_s12  ;;  %v7169_v12 = vld [vmem:[#allocation8] ss:$0 sm:$0xff] }
0x3d03   :  { %v6427_v45 = vpop.permute.xlu1 %6426 }
0x3d04   :  { %v6434_v4 = vmul.f32 %v6427_v45, %v10946_v56 }
0x3d05   :  { %v6865_v63 = vpop.permute.xlu0 %6864 }
0x3d06   :  { %v6437_v46 = vrot.slane %v6434_v4, 2  ;;  %7859 = vmatmul.mubr.msk.f32.vlgmr.msra.gmra.mrb[54].mxu1 %vm952_vm8, %v6865_v63  ;;  %v6440_v35 = vrot.slane %v6434_v4, 4  ;;  %v6443_v19 = vrot.slane %v6434_v4, 6 }
0x3d07   :  { %v6432_v52 = vpop.permute.xlu1 %6431 }
0x3d08   :  { %v6439_v49 = vadd.f32 %v6437_v46, %v6434_v4  ;;  %v6435_v7 = vmul.f32 %v6432_v52, %v10950_v6 }
0x3d0a   :  { %v6442_v57 = vadd.f32 %v6440_v35, %v6439_v49  ;;  %v6448_v36 = vrot.slane %v6435_v7, 2  ;;  %v6451_v20 = vrot.slane %v6435_v7, 4  ;;  %v6454_v24 = vrot.slane %v6435_v7, 6 }
0x3d0c   :  { %v6445_v0 = vadd.f32 %v6443_v19, %v6442_v57 }
0x3d0e   :  { %v6446_v51 = vadd.f32 %v6445_v0, %v6435_v7 }
0x3d10   :  { %v6450_v1 = vadd.f32 %v6448_v36, %v6446_v51 }
0x3d12   :  { %v6453_v56 = vadd.f32 %v6451_v20, %v6450_v1 }
0x3d14   :  { %v6456_v39 = vadd.f32 %v6454_v24, %v6453_v56 }
0x3d16   :  { %7852 = vmatmul.mubr.msk.f32.vlgmr.msra.gmra.mrb[56].mxu0 %vm2513_vm12, %v6456_v39 }
0x3dd9   :  { %v6934_v53 = vpop.f32.mrb[54].mxu1 }
0x3dda   :  { %v6935_v31 = vadd.f32 %v7163_v40, %v6934_v53  ;;  %v7860_v2 = vpop.f32.mrb[55].mxu1 }
0x3ddc   :  { %v6938_v41 = vmax.f32 %v6935_v31, 0.0 }
0x3dde   :  { %v6946_v6 = vmul.f32 %v7165_v58, %v6938_v41 }
0x3de0   :  { %v6948_v43 = vsel %vm6947_vm13, %v6946_v6, 0.0 }
0x3de1   :  { %6949 = vadd.xlane.f32.xlu0 %v6948_v43 }
0x3de9   :  { %v6829_v15 = vpop.f32.mrb[56].mxu0 }
0x3dea   :  { %v6830_v48 = vadd.f32 %v7159_v37, %v6829_v15  ;;  %v7853_v47 = vpop.f32.mrb[57].mxu0 }
0x3dec   :  { %v6833_v60 = vmax.f32 %v6830_v48, 0.0 }
0x3dee   :  { %v6841_v42 = vmul.f32 %v7161_v28, %v6833_v60 }
0x3df0   :  { %v6843_v62 = vsel %vm6842_vm14, %v6841_v42, 0.0 }
0x3df1   :  { %6844 = vadd.xlane.f32.xlu1 %v6843_v62 }
0x3e6e   :  { %v6950_v55 = vpop.xlane.xlu0 %6949 }
0x3e6f   :  { %v6958_v22 = vadd.f32 %v7166_v5, %v6950_v55 }
0x3e71   :  { %6972 = vperm.xlu1 %8763, %v6958_v22  }
0x3e7e   :  { %v6845_v50 = vpop.xlane.xlu1 %6844 }
0x3e7f   :  { %v6853_v23 = vadd.f32 %v7162_v26, %v6845_v50 }
0x3e81   :  { %6962 = vperm.xlu0 %8764, %v6853_v23  }
0x3ef0   :  { %v6973_v59 = vpop.permute.xlu1 %6972 }
0x3ef1   :  { %v6979_v10 = vmul.f32 %v6978_v30, %v6973_v59 }
0x3f00   :  { %v6963_v16 = vpop.permute.xlu0 %6962 }
0x3f01   :  { %v6969_v21 = vmul.f32 %v6968_v29, %v6963_v16  ;;  %v7012_v27 = vsel %vm7011_vm0, %v6963_v16, %v6973_v59 }
0x3f03   :  { %v6980_v11 = vadd.f32 %v6979_v10, %v6969_v21 }
0x3f05   :  { %v6988_v8 = vadd.f32 %v7167_v33, %v6980_v11 }
0x3f07   :  { %v6989_v38 = vmax.f32 %v6988_v8, 0.0 }
0x3f09   :  { %v6997_v44 = vmul.f32 %v7168_v3, %v6989_v38 }
0x3f0b   :  { %v6999_v13 = vsel %vm6998_vm15, %v6997_v44, 0.0 }
0x3f0c   :  { %7000 = vadd.xlane.f32.xlu1 %v6999_v13 }
0x3f99   :  { %v7001_v25 = vpop.xlane.xlu1 %7000 }
0x3f9a   :  { %v7009_v61 = vadd.f32 %v7169_v12, %v7001_v25 }
0x3f9c   :  { %7015 = vperm.xlu0 %8764, %v7009_v61  }
0x401b   :  { %v7016_v17 = vpop.permute.xlu0 %7015 }
0x401c   :  { %v7018_v34 = vsel %vm7010_vm1, %v7016_v17, %v7012_v27 }
0x401d   :  { %7020 = vst.msk [vmem:[%s9629_s23] sm:$0x3] %vm7019_vm2, %v7018_v34 }
0x401e   :  { %7025 = vsyncpa [#allocation10], 1 }
0x401f   :  { %7026 = vsyncpa [#allocation12], 1 }
0x4020   :  { %7027 = vsyncpa [#allocation15], 1 }
0x4021   :  { %7028 = vsyncpa [#allocation18], 1 }
0x4022   :  { %7029 = vsyncpa [#allocation21], 1 }
0x4023   :  { %7030 = vsyncpa [#allocation24], 1 }
0x4024   :  { %7031 = vsyncpa [#allocation27], 1 }
0x4025   :  { %7032 = vsyncpa [#allocation30], 1 }
0x4026   :  { %7033 = vsyncpa [#allocation33], 1 }
0x4027   :  { %7034 = vsyncpa [#allocation36], 1 }

</bundles_post_ra>
